<compile_context>
chip_gen: v6e
topology: v6e:2x2x1
jax: 0.10.0
libtpu: 0.0.40
codegen_flags: <defaults>
</compile_context>

<pallas_src>
import functools

import numpy as np

import jax
import jax.numpy as jnp
from jax.experimental import pallas as pl
from jax.experimental.pallas import tpu as pltpu


# --------------------------------------------------------------------------- #
# Parameter prep: lower each conv to a dense (Cin*Hi*Wi, Cout*Ho*Wo) matrix    #
# acting on flattened-NCHW activations.                                        #
# --------------------------------------------------------------------------- #

def _conv_as_dense(w, Hi, Wi, stride, pad, bias=None):
    """Conv2d (OIHW weight) on an (I, Hi, Wi) map -> dense matmul operands for
    flattened NCHW activations (feature order = (c, h, w))."""
    w = np.asarray(w, np.float32)                      # (O, I, K, K)
    O, I, K, _ = w.shape
    Ho = (Hi + 2 * pad - K) // stride + 1
    Wo = (Wi + 2 * pad - K) // stride + 1
    Wd = np.zeros((I * Hi * Wi, O * Ho * Wo), np.float32)
    ci = np.arange(I) * (Hi * Wi)
    co = np.arange(O) * (Ho * Wo)
    for kh in range(K):
        for kw in range(K):
            wk = w[:, :, kh, kw].T                     # (I, O)
            for ho in range(Ho):
                hi = stride * ho + kh - pad
                if not (0 <= hi < Hi):
                    continue
                for wo in range(Wo):
                    wi = stride * wo + kw - pad
                    if not (0 <= wi < Wi):
                        continue
                    Wd[np.ix_(ci + hi * Wi + wi, co + ho * Wo + wo)] = wk
    bflat = None
    if bias is not None:
        bflat = np.repeat(np.asarray(bias, np.float32), Ho * Wo)[None, :]  # (1, O*Ho*Wo)
    return Wd, bflat, (Ho, Wo)


def prepare_encoder(params, img_hw):
    """One-time prep: pre-lower every conv of the encoder to dense matrices."""
    H, W = img_hw
    cin = params["w1"].shape[1]
    w1, b1, (H1, W1) = _conv_as_dense(params["w1"], H, W, 2, 1, params["b1"])
    w2, b2, (H2, W2) = _conv_as_dense(params["w2"], H1, W1, 2, 1, params["b2"])
    w3, b3, (H3, W3) = _conv_as_dense(params["w3"], H2, W2, 1, 1, params["b3"])
    cout = params["w3"].shape[0]
    Dout = cout * H3 * W3

    wa_list, wb_list = [], []
    for rb in params["res"]:
        wa, _, _ = _conv_as_dense(rb["w_a"], H3, W3, 1, 1)   # 3x3, pad 1, no bias
        wb, _, _ = _conv_as_dense(rb["w_b"], H3, W3, 1, 0)   # 1x1, no bias
        wa_list.append(wa)
        wb_list.append(wb)
    n_res = len(params["res"])

    mats = [w1, b1, w2, b2, w3, b3]
    if n_res:
        mats += [np.stack(wa_list, 0), np.stack(wb_list, 0)]   # (n_res, D, D) each
    weights = [jnp.asarray(m) for m in mats]
    dims = dict(Din=cin * H * W, Dout=Dout, cout=cout, Hout=H3, Wout=W3,
                n_res=n_res)
    return {"weights": weights, "dims": dims}


# --------------------------------------------------------------------------- #
# Fused Pallas kernel: whole encoder forward for a block of Bb images          #
# --------------------------------------------------------------------------- #

def _encoder_kernel(*refs, n_res):
    x_ref = refs[0]
    w1, b1, w2, b2, w3, b3 = refs[1:7]
    o_ref = refs[-1]

    def mm(a, b):
        return jnp.dot(a, b, preferred_element_type=jnp.float32)

    def lrelu(v):                                    # PyTorch LeakyReLU slope 0.01
        return jnp.where(v >= 0.0, v, 0.01 * v)

    # downblocks: conv4x4/s2 + LeakyReLU, conv4x4/s2 + LeakyReLU, conv3x3/s1
    a = lrelu(mm(x_ref[...], w1[...]) + b1[...])     # (Bb, C1*H1*W1)
    a = lrelu(mm(a, w2[...]) + b2[...])              # (Bb, C2*H2*W2)
    a = mm(a, w3[...]) + b3[...]                     # (Bb, Dout)

    # resblocks: x + Conv1x1(ReLU(Conv3x3(ReLU(x))))   (bias-free convs)
    if n_res:
        wa_ref, wb_ref = refs[7], refs[8]
        for r in range(n_res):
            h = jnp.maximum(a, 0.0)
            h = mm(h, wa_ref[r])
            h = jnp.maximum(h, 0.0)
            a = a + mm(h, wb_ref[r])

    o_ref[...] = a                                   # lane-dense (Bb, Dout)


def _pick_batch_block(B):
    """Batch rows per grid step: multiple of 8 (sublane-dense stores), capped at
    256 (MXU M saturation), and ~B/2 so large batches keep >= 2 grid steps for
    v7x's two TensorCores."""
    if B <= 8:
        return 8
    half = -(-B // 2)
    return int(min(256, ((half + 7) // 8) * 8))


def make_encoder_forward(prep):
    d = prep["dims"]
    weights = prep["weights"]
    Din, Dout, n_res = d["Din"], d["Dout"], d["n_res"]
    cout, Hout, Wout = d["cout"], d["Hout"], d["Wout"]

    kernel = functools.partial(_encoder_kernel, n_res=n_res)
    weight_bytes = sum(int(w.size) * w.dtype.itemsize for w in weights)

    def fwd(x_nchw):
        B = x_nchw.shape[0]
        # flattened-NCHW features -> pure reshape, no transpose (review item)
        x_flat = x_nchw.reshape(B, Din).astype(jnp.float32)

        Bb = _pick_batch_block(B)
        n_steps = -(-B // Bb)
        Bpad = n_steps * Bb
        if Bpad != B:
            x_flat = jnp.pad(x_flat, ((0, Bpad - B), (0, 0)))

        def full_spec(a):
            # whole array resident in VMEM; constant block index -> fetched once
            return pl.BlockSpec(a.shape, lambda i, _nd=a.ndim: (0,) * _nd)

        in_specs = [pl.BlockSpec((Bb, Din), lambda i: (i, 0))]
        in_specs += [full_spec(a) for a in weights]
        out_spec = pl.BlockSpec((Bb, Dout), lambda i: (i, 0))

        io_bytes = Bb * (Din + Dout) * 4
        vmem_limit = int(min(2 * (weight_bytes + io_bytes) + (16 << 20), 48 << 20))

        out = pl.pallas_call(
            kernel,
            out_shape=jax.ShapeDtypeStruct((Bpad, Dout), jnp.float32),
            grid=(n_steps,),                          # batch blocks are independent
            in_specs=in_specs,
            out_specs=out_spec,
            compiler_params=pltpu.CompilerParams(
                dimension_semantics=("parallel",),    # megacore on v7x
                vmem_limit_bytes=vmem_limit),
        )(x_flat, *weights)

        # flattened-NCHW output -> pure reshape back to NCHW (no transpose)
        return out[:B].reshape(B, cout, Hout, Wout)

    return jax.jit(fwd)


# --------------------------------------------------------------------------- #
# Pure-JAX reference (lax.conv) for the correctness check                      #
# --------------------------------------------------------------------------- #

def _ref_conv(x, w, b, stride, pad):
    y = jax.lax.conv_general_dilated(
        x, w, (stride, stride), [(pad, pad), (pad, pad)],
        dimension_numbers=("NCHW", "OIHW", "NCHW"))
    if b is not None:
        y = y + b[None, :, None, None]
    return y


def encoder_reference(x, params):
    lrelu = lambda v: jnp.where(v >= 0.0, v, 0.01 * v)
    x = lrelu(_ref_conv(x, params["w1"], params["b1"], 2, 1))
    x = lrelu(_ref_conv(x, params["w2"], params["b2"], 2, 1))
    x = _ref_conv(x, params["w3"], params["b3"], 1, 1)
    for rb in params["res"]:
        h = jnp.maximum(x, 0.0)
        h = _ref_conv(h, rb["w_a"], None, 1, 1)
        h = jnp.maximum(h, 0.0)
        h = _ref_conv(h, rb["w_b"], None, 1, 0)
        x = x + h
    return x


# --------------------------------------------------------------------------- #
# Deterministic parameter init (PyTorch-style fan-in uniform)                  #
# --------------------------------------------------------------------------- #

def _init_conv(key, cout, cin, k, bias=True):
    kw, kb = jax.random.split(key)
    bound = 1.0 / jnp.sqrt(cin * k * k)
    w = jax.random.uniform(kw, (cout, cin, k, k), jnp.float32, -bound, bound)
    b = (jax.random.uniform(kb, (cout,), jnp.float32, -bound, bound)
         if bias else None)
    return w, b


def build_params(key, img_channels, hidden_dim, n_resblocks):
    keys = jax.random.split(key, 3 + 2 * n_resblocks)
    w1, b1 = _init_conv(keys[0], hidden_dim // 2, img_channels, 4)
    w2, b2 = _init_conv(keys[1], hidden_dim, hidden_dim // 2, 4)
    w3, b3 = _init_conv(keys[2], hidden_dim, hidden_dim, 3)
    res = []
    for r in range(n_resblocks):
        wa, _ = _init_conv(keys[3 + 2 * r], hidden_dim, hidden_dim, 3, bias=False)
        wb, _ = _init_conv(keys[4 + 2 * r], hidden_dim, hidden_dim, 1, bias=False)
        res.append({"w_a": wa, "w_b": wb})
    return {"w1": w1, "b1": b1, "w2": w2, "b2": b2, "w3": w3, "b3": b3, "res": res}


# --------------------------------------------------------------------------- #

if __name__ == "__main__":
    IMG_CHANNELS, HIDDEN_DIM, N_RESBLOCKS = 3, 32, 2
    B, H, W = 2, 16, 16

    root = jax.random.PRNGKey(0)
    kx, kp = jax.random.split(root)
    x = jax.random.normal(kx, (B, IMG_CHANNELS, H, W), jnp.float32)
    params = build_params(kp, IMG_CHANNELS, HIDDEN_DIM, N_RESBLOCKS)

    prep = prepare_encoder(params, (H, W))        # one-time weight lowering
    encoder = make_encoder_forward(prep)          # single fused Pallas kernel

    out = jax.block_until_ready(encoder(x))
    assert out.shape == (B, HIDDEN_DIM, H // 4, W // 4), out.shape

    ref = jax.block_until_ready(encoder_reference(x, params))
    err = float(jnp.max(jnp.abs(out - ref)))
    assert err < 1e-3, err

    print("KERNEL_OK")
</pallas_src>

<mosaic_0001>
module attributes {stable_mosaic.version = 11 : i64} {
  func.func @_encoder_kernel(%arg0: i32, %arg1: memref<8x768xf32, #tpu.memory_space<vmem>>, %arg2: memref<768x1024xf32, #tpu.memory_space<vmem>>, %arg3: memref<1x1024xf32, #tpu.memory_space<vmem>>, %arg4: memref<1024x512xf32, #tpu.memory_space<vmem>>, %arg5: memref<1x512xf32, #tpu.memory_space<vmem>>, %arg6: memref<512x512xf32, #tpu.memory_space<vmem>>, %arg7: memref<1x512xf32, #tpu.memory_space<vmem>>, %arg8: memref<2x512x512xf32, #tpu.memory_space<vmem>>, %arg9: memref<2x512x512xf32, #tpu.memory_space<vmem>>, %arg10: memref<8x512xf32, #tpu.memory_space<vmem>>) attributes {dimension_semantics = [#tpu.dimension_semantics<parallel>], iteration_bounds = array<i64: 1>, scalar_prefetch = 0 : i64, scratch_operands = 0 : i64, tpu.core_type = #tpu.core_type<tc>, window_params = [{transform_indices = @transform_0, window_bounds = array<i64: 8, 768>}, {pipeline_mode = #tpu.pipeline_mode<synchronous>, transform_indices = @transform_1, window_bounds = array<i64: 768, 1024>}, {pipeline_mode = #tpu.pipeline_mode<synchronous>, transform_indices = @transform_2, window_bounds = array<i64: 1, 1024>}, {pipeline_mode = #tpu.pipeline_mode<synchronous>, transform_indices = @transform_3, window_bounds = array<i64: 1024, 512>}, {pipeline_mode = #tpu.pipeline_mode<synchronous>, transform_indices = @transform_4, window_bounds = array<i64: 1, 512>}, {pipeline_mode = #tpu.pipeline_mode<synchronous>, transform_indices = @transform_5, window_bounds = array<i64: 512, 512>}, {pipeline_mode = #tpu.pipeline_mode<synchronous>, transform_indices = @transform_6, window_bounds = array<i64: 1, 512>}, {pipeline_mode = #tpu.pipeline_mode<synchronous>, transform_indices = @transform_7, window_bounds = array<i64: 2, 512, 512>}, {pipeline_mode = #tpu.pipeline_mode<synchronous>, transform_indices = @transform_8, window_bounds = array<i64: 2, 512, 512>}, {transform_indices = @transform_9, window_bounds = array<i64: 8, 512>}]} {
    %c0 = arith.constant 0 : index
    %c0_0 = arith.constant 0 : index
    %0 = vector.load %arg1[%c0, %c0_0] : memref<8x768xf32, #tpu.memory_space<vmem>>, vector<8x768xf32>
    %c0_1 = arith.constant 0 : index
    %c0_2 = arith.constant 0 : index
    %1 = vector.load %arg2[%c0_1, %c0_2] : memref<768x1024xf32, #tpu.memory_space<vmem>>, vector<768x1024xf32>
    %cst = arith.constant dense<0.000000e+00> : vector<8x1024xf32>
    %2 = tpu.matmul %0, %1, %cst {dimension_numbers = #tpu.dot_dimension_numbers<[1], [0], [0], [1], [0, 0, 1, 1], [], []>} : vector<8x768xf32>, vector<768x1024xf32>, vector<8x1024xf32> -> vector<8x1024xf32>
    %c0_3 = arith.constant 0 : index
    %c0_4 = arith.constant 0 : index
    %3 = vector.load %arg3[%c0_3, %c0_4] : memref<1x1024xf32, #tpu.memory_space<vmem>>, vector<1x1024xf32>
    %4 = vector.broadcast %3 : vector<1x1024xf32> to vector<8x1024xf32>
    %5 = arith.addf %2, %4 : vector<8x1024xf32>
    %cst_5 = arith.constant 0.000000e+00 : f32
    %6 = vector.broadcast %cst_5 : f32 to vector<8x1024xf32>
    %7 = arith.cmpf oge, %5, %6 : vector<8x1024xf32>
    %cst_6 = arith.constant 0.00999999977 : f32
    %8 = vector.broadcast %cst_6 : f32 to vector<8x1024xf32>
    %9 = arith.mulf %8, %5 : vector<8x1024xf32>
    %10 = arith.select %7, %5, %9 : vector<8x1024xi1>, vector<8x1024xf32>
    %c0_7 = arith.constant 0 : index
    %c0_8 = arith.constant 0 : index
    %11 = vector.load %arg4[%c0_7, %c0_8] : memref<1024x512xf32, #tpu.memory_space<vmem>>, vector<1024x512xf32>
    %cst_9 = arith.constant dense<0.000000e+00> : vector<8x512xf32>
    %12 = tpu.matmul %10, %11, %cst_9 {dimension_numbers = #tpu.dot_dimension_numbers<[1], [0], [0], [1], [0, 0, 1, 1], [], []>} : vector<8x1024xf32>, vector<1024x512xf32>, vector<8x512xf32> -> vector<8x512xf32>
    %c0_10 = arith.constant 0 : index
    %c0_11 = arith.constant 0 : index
    %13 = vector.load %arg5[%c0_10, %c0_11] : memref<1x512xf32, #tpu.memory_space<vmem>>, vector<1x512xf32>
    %14 = vector.broadcast %13 : vector<1x512xf32> to vector<8x512xf32>
    %15 = arith.addf %12, %14 : vector<8x512xf32>
    %cst_12 = arith.constant 0.000000e+00 : f32
    %16 = vector.broadcast %cst_12 : f32 to vector<8x512xf32>
    %17 = arith.cmpf oge, %15, %16 : vector<8x512xf32>
    %cst_13 = arith.constant 0.00999999977 : f32
    %18 = vector.broadcast %cst_13 : f32 to vector<8x512xf32>
    %19 = arith.mulf %18, %15 : vector<8x512xf32>
    %20 = arith.select %17, %15, %19 : vector<8x512xi1>, vector<8x512xf32>
    %c0_14 = arith.constant 0 : index
    %c0_15 = arith.constant 0 : index
    %21 = vector.load %arg6[%c0_14, %c0_15] : memref<512x512xf32, #tpu.memory_space<vmem>>, vector<512x512xf32>
    %cst_16 = arith.constant dense<0.000000e+00> : vector<8x512xf32>
    %22 = tpu.matmul %20, %21, %cst_16 {dimension_numbers = #tpu.dot_dimension_numbers<[1], [0], [0], [1], [0, 0, 1, 1], [], []>} : vector<8x512xf32>, vector<512x512xf32>, vector<8x512xf32> -> vector<8x512xf32>
    %c0_17 = arith.constant 0 : index
    %c0_18 = arith.constant 0 : index
    %23 = vector.load %arg7[%c0_17, %c0_18] : memref<1x512xf32, #tpu.memory_space<vmem>>, vector<1x512xf32>
    %24 = vector.broadcast %23 : vector<1x512xf32> to vector<8x512xf32>
    %25 = arith.addf %22, %24 : vector<8x512xf32>
    %cst_19 = arith.constant 0.000000e+00 : f32
    %26 = vector.broadcast %cst_19 : f32 to vector<8x512xf32>
    %27 = arith.maximumf %25, %26 : vector<8x512xf32>
    %c0_20 = arith.constant 0 : index
    %c0_21 = arith.constant 0 : index
    %c0_22 = arith.constant 0 : index
    %28 = vector.load %arg8[%c0_20, %c0_21, %c0_22] : memref<2x512x512xf32, #tpu.memory_space<vmem>>, vector<1x512x512xf32>
    %29 = vector.shape_cast %28 : vector<1x512x512xf32> to vector<512x512xf32>
    %cst_23 = arith.constant dense<0.000000e+00> : vector<8x512xf32>
    %30 = tpu.matmul %27, %29, %cst_23 {dimension_numbers = #tpu.dot_dimension_numbers<[1], [0], [0], [1], [0, 0, 1, 1], [], []>} : vector<8x512xf32>, vector<512x512xf32>, vector<8x512xf32> -> vector<8x512xf32>
    %cst_24 = arith.constant 0.000000e+00 : f32
    %31 = vector.broadcast %cst_24 : f32 to vector<8x512xf32>
    %32 = arith.maximumf %30, %31 : vector<8x512xf32>
    %c0_25 = arith.constant 0 : index
    %c0_26 = arith.constant 0 : index
    %c0_27 = arith.constant 0 : index
    %33 = vector.load %arg9[%c0_25, %c0_26, %c0_27] : memref<2x512x512xf32, #tpu.memory_space<vmem>>, vector<1x512x512xf32>
    %34 = vector.shape_cast %33 : vector<1x512x512xf32> to vector<512x512xf32>
    %cst_28 = arith.constant dense<0.000000e+00> : vector<8x512xf32>
    %35 = tpu.matmul %32, %34, %cst_28 {dimension_numbers = #tpu.dot_dimension_numbers<[1], [0], [0], [1], [0, 0, 1, 1], [], []>} : vector<8x512xf32>, vector<512x512xf32>, vector<8x512xf32> -> vector<8x512xf32>
    %36 = arith.addf %25, %35 : vector<8x512xf32>
    %cst_29 = arith.constant 0.000000e+00 : f32
    %37 = vector.broadcast %cst_29 : f32 to vector<8x512xf32>
    %38 = arith.maximumf %36, %37 : vector<8x512xf32>
    %c1 = arith.constant 1 : index
    %c0_30 = arith.constant 0 : index
    %c0_31 = arith.constant 0 : index
    %39 = vector.load %arg8[%c1, %c0_30, %c0_31] : memref<2x512x512xf32, #tpu.memory_space<vmem>>, vector<1x512x512xf32>
    %40 = vector.shape_cast %39 : vector<1x512x512xf32> to vector<512x512xf32>
    %cst_32 = arith.constant dense<0.000000e+00> : vector<8x512xf32>
    %41 = tpu.matmul %38, %40, %cst_32 {dimension_numbers = #tpu.dot_dimension_numbers<[1], [0], [0], [1], [0, 0, 1, 1], [], []>} : vector<8x512xf32>, vector<512x512xf32>, vector<8x512xf32> -> vector<8x512xf32>
    %cst_33 = arith.constant 0.000000e+00 : f32
    %42 = vector.broadcast %cst_33 : f32 to vector<8x512xf32>
    %43 = arith.maximumf %41, %42 : vector<8x512xf32>
    %c1_34 = arith.constant 1 : index
    %c0_35 = arith.constant 0 : index
    %c0_36 = arith.constant 0 : index
    %44 = vector.load %arg9[%c1_34, %c0_35, %c0_36] : memref<2x512x512xf32, #tpu.memory_space<vmem>>, vector<1x512x512xf32>
    %45 = vector.shape_cast %44 : vector<1x512x512xf32> to vector<512x512xf32>
    %cst_37 = arith.constant dense<0.000000e+00> : vector<8x512xf32>
    %46 = tpu.matmul %43, %45, %cst_37 {dimension_numbers = #tpu.dot_dimension_numbers<[1], [0], [0], [1], [0, 0, 1, 1], [], []>} : vector<8x512xf32>, vector<512x512xf32>, vector<8x512xf32> -> vector<8x512xf32>
    %47 = arith.addf %36, %46 : vector<8x512xf32>
    %c0_38 = arith.constant 0 : index
    %c0_39 = arith.constant 0 : index
    %48 = vector.load %arg10[%c0_38, %c0_39] : memref<8x512xf32, #tpu.memory_space<vmem>>, vector<8x512xf32>
    tpu.vector_store %arg10[%c0_38, %c0_39], %47 {strides = array<i32>} : memref<8x512xf32, #tpu.memory_space<vmem>>, vector<8x512xf32>,
    return
  }
  func.func @transform_0(%arg0: i32) -> (i32, i32) {
    %c0_i32 = arith.constant 0 : i32
    %c0_i32_0 = arith.constant 0 : i32
    return %arg0, %c0_i32 : i32, i32
  }
  func.func @transform_1(%arg0: i32) -> (i32, i32) {
    %c0_i32 = arith.constant 0 : i32
    %c0_i32_0 = arith.constant 0 : i32
    %c0_i32_1 = arith.constant 0 : i32
    return %c0_i32, %c0_i32_0 : i32, i32
  }
  func.func @transform_2(%arg0: i32) -> (i32, i32) {
    %c0_i32 = arith.constant 0 : i32
    %c0_i32_0 = arith.constant 0 : i32
    %c0_i32_1 = arith.constant 0 : i32
    return %c0_i32, %c0_i32_0 : i32, i32
  }
  func.func @transform_3(%arg0: i32) -> (i32, i32) {
    %c0_i32 = arith.constant 0 : i32
    %c0_i32_0 = arith.constant 0 : i32
    %c0_i32_1 = arith.constant 0 : i32
    return %c0_i32, %c0_i32_0 : i32, i32
  }
  func.func @transform_4(%arg0: i32) -> (i32, i32) {
    %c0_i32 = arith.constant 0 : i32
    %c0_i32_0 = arith.constant 0 : i32
    %c0_i32_1 = arith.constant 0 : i32
    return %c0_i32, %c0_i32_0 : i32, i32
  }
  func.func @transform_5(%arg0: i32) -> (i32, i32) {
    %c0_i32 = arith.constant 0 : i32
    %c0_i32_0 = arith.constant 0 : i32
    %c0_i32_1 = arith.constant 0 : i32
    return %c0_i32, %c0_i32_0 : i32, i32
  }
  func.func @transform_6(%arg0: i32) -> (i32, i32) {
    %c0_i32 = arith.constant 0 : i32
    %c0_i32_0 = arith.constant 0 : i32
    %c0_i32_1 = arith.constant 0 : i32
    return %c0_i32, %c0_i32_0 : i32, i32
  }
  func.func @transform_7(%arg0: i32) -> (i32, i32, i32) {
    %c0_i32 = arith.constant 0 : i32
    %c0_i32_0 = arith.constant 0 : i32
    %c0_i32_1 = arith.constant 0 : i32
    %c0_i32_2 = arith.constant 0 : i32
    return %c0_i32, %c0_i32_0, %c0_i32_1 : i32, i32, i32
  }
  func.func @transform_8(%arg0: i32) -> (i32, i32, i32) {
    %c0_i32 = arith.constant 0 : i32
    %c0_i32_0 = arith.constant 0 : i32
    %c0_i32_1 = arith.constant 0 : i32
    %c0_i32_2 = arith.constant 0 : i32
    return %c0_i32, %c0_i32_0, %c0_i32_1 : i32, i32, i32
  }
  func.func @transform_9(%arg0: i32) -> (i32, i32) {
    %c0_i32 = arith.constant 0 : i32
    %c0_i32_0 = arith.constant 0 : i32
    return %arg0, %c0_i32 : i32, i32
  }
}

</mosaic_0001>

<bundles_post_ra>
// kernel: fwd.1
= control target key start
LH: loop header
LB: loop body
LE: loop exit
PB: predicated region body
PF: predicated region fallthrough
CT: control target
= control target key end

     0   :  { %14 = vsyncpa [#allocation3], 0  ;;  %s6278_s0 = inlined_call_operand.vmem [shape: f32[8,768], index: 0, kind: input, shape index: {}]   ;;  %s6279_s1 = inlined_call_operand.hbm [shape: f32[768,1024], index: 1, kind: input, shape index: {}]   ;;  %s6280_s2 = inlined_call_operand.hbm [shape: f32[1,1024], index: 2, kind: input, shape index: {}]   ;;  %s6281_s3 = inlined_call_operand.hbm [shape: f32[1024,512], index: 3, kind: input, shape index: {}]   ;;  %s6282_s4 = inlined_call_operand.hbm [shape: f32[1,512], index: 4, kind: input, shape index: {}]   ;;  %s6283_s5 = inlined_call_operand.hbm [shape: f32[512,512], index: 5, kind: input, shape index: {}]   ;;  %s6284_s6 = inlined_call_operand.hbm [shape: f32[1,512], index: 6, kind: input, shape index: {}]   ;;  %s6285_s7 = inlined_call_operand.hbm [shape: f32[2,512,512], index: 7, kind: input, shape index: {}]   ;;  %s6286_s8 = inlined_call_operand.hbm [shape: f32[2,512,512], index: 8, kind: input, shape index: {}]   ;;  %s6287_s9 = inlined_call_operand.vmem [shape: f32[8,512], index: 9, kind: output, shape index: {}]  }
   0x1   :  { %15 = vsyncpa [#allocation5], 0 }
   0x2   :  { %16 = vsyncpa [#allocation8], 0 }
   0x3   :  { %17 = vsyncpa [#allocation11], 0 }
   0x4   :  { %18 = vsyncpa [#allocation14], 0  ;;  %s5894_s30 = smov [#allocation4]   ;;  %s5895_s11 = smov [#allocation7]  }
   0x5   :  { %s39_s10 = sshll.u32 %s5894_s30, 4  ;;  %s61_s12 = sshll.u32 %s5895_s11, 4  ;;  %s40_s10 = int_to_ptr.vmem [resolvable:$true] %s39_s10  ;;  %s62_s12 = int_to_ptr.vmem [resolvable:$true] %s61_s12 }
   0x6   :  { %s5732_s13 = scalar_lea.vmem %s40_s10, 128  ;;  %p5737_p1 = scmp.lt.s32.totalorder %s40_s10, %s40_s10 }
   0x7   :  { %p5733_p0 = scmp.ne.s32.totalorder %s40_s10, %s5732_s13  ;;  %p5738_p2 = scmp.lt.s32.totalorder %s5732_s13, %s5732_s13 }
   0x9   :  { %p5739_p3 = por %p5738_p2, %p5737_p1 }
   0xb   :  { %p5740_p4 = pnand %p5739_p3, %p5733_p0 }
   0xd   :  { %5743 = shalt.err (!%p5740_p4)
}
   0xe   :  { %42 = dma.hbm_to_vmem [thread:$0]  %s6280_s2, 128, %s40_s10, [#allocation5]  }
   0xf   :  { %s5752_s16 = scalar_lea.vmem %s62_s12, 64  ;;  %p5757_p6 = scmp.lt.s32.totalorder %s62_s12, %s62_s12 }
  0x10   :  { %p5753_p5 = scmp.ne.s32.totalorder %s62_s12, %s5752_s16  ;;  %p5758_p7 = scmp.lt.s32.totalorder %s5752_s16, %s5752_s16 }
  0x12   :  { %p5759_p8 = por %p5758_p7, %p5757_p6 }
  0x14   :  { %p5760_p9 = pnand %p5759_p8, %p5753_p5 }
  0x16   :  { %5763 = shalt.err (!%p5760_p9)
}
  0x17   :  { %64 = dma.hbm_to_vmem [thread:$0]  %s6282_s4, 64, %s62_s12, [#allocation8]  }
  0x18   :  { %s5896_s19 = smov [#allocation10]   ;;  %s5897_s21 = smov [#allocation2]  }
  0x19   :  { %s83_s20 = sshll.u32 %s5896_s19, 4  ;;  %s26_s22 = sshll.u32 %s5897_s21, 4  ;;  %s84_s20 = int_to_ptr.vmem [resolvable:$true] %s83_s20  ;;  %s27_s22 = int_to_ptr.vmem [resolvable:$true] %s26_s22 }
  0x1a   :  { %s5772_s23 = scalar_lea.vmem %s84_s20, 64  ;;  %p5777_p11 = scmp.lt.s32.totalorder %s84_s20, %s84_s20 }
  0x1b   :  { %p5773_p10 = scmp.ne.s32.totalorder %s84_s20, %s5772_s23  ;;  %p5778_p12 = scmp.lt.s32.totalorder %s5772_s23, %s5772_s23 }
  0x1d   :  { %p5779_p13 = por %p5778_p12, %p5777_p11 }
  0x1f   :  { %p5780_p0 = pnand %p5779_p13, %p5773_p10 }
  0x21   :  { %5783 = shalt.err (!%p5780_p0)
}
  0x22   :  { %86 = dma.hbm_to_vmem [thread:$0]  %s6284_s6, 64, %s84_s20, [#allocation11]  }
  0x23   :  { %s5792_s25 = scalar_lea.vmem %s27_s22, 98304  ;;  %p5797_p2 = scmp.lt.s32.totalorder %s27_s22, %s27_s22 }
  0x24   :  { %p5793_p1 = scmp.ne.s32.totalorder %s27_s22, %s5792_s25  ;;  %p5798_p3 = scmp.lt.s32.totalorder %s5792_s25, %s5792_s25 }
  0x26   :  { %p5799_p4 = por %p5798_p3, %p5797_p2 }
  0x28   :  { %p5800_p5 = pnand %p5799_p4, %p5793_p1 }
  0x2a   :  { %5803 = shalt.err (!%p5800_p5)
}
  0x2b   :  { %s5898_s4 = smov 1024   ;;  %s5899_s26 = smov 64  }
  0x2c   :  { %32 = dma.hbm_to_vmem [thread:$0]  %s6279_s1, 98304, %s27_s22, [#allocation3], %s5898_s4, %s5898_s4, %s5899_s26  }
  0x2d   :  { %s5900_s29 = smov [#allocation6]  }
  0x2e   :  { %s48_s30 = sshll.u32 %s5900_s29, 4  ;;  %s49_s30 = int_to_ptr.vmem [resolvable:$true] %s48_s30 }
  0x2f   :  { %s5812_s10 = scalar_lea.vmem %s49_s30, 65536  ;;  %p5817_p7 = scmp.lt.s32.totalorder %s49_s30, %s49_s30 }
  0x30   :  { %p5813_p6 = scmp.ne.s32.totalorder %s49_s30, %s5812_s10  ;;  %p5818_p8 = scmp.lt.s32.totalorder %s5812_s10, %s5812_s10 }
  0x32   :  { %p5819_p9 = por %p5818_p8, %p5817_p7 }
  0x34   :  { %p5820_p10 = pnand %p5819_p9, %p5813_p6 }
  0x36   :  { %5823 = shalt.err (!%p5820_p10)
}
  0x37   :  { %s5901_s6 = smov 512   ;;  %s5902_s11 = smov 32  }
  0x38   :  { %54 = dma.hbm_to_vmem [thread:$0]  %s6281_s3, 65536, %s49_s30, [#allocation5], %s5901_s6, %s5901_s6, %s5902_s11  }
  0x39   :  { %s5903_s1 = smov [#allocation9]   ;;  %s5904_s15 = smov [#allocation12]  }
  0x3a   :  { %s70_s14 = sshll.u32 %s5903_s1, 4  ;;  %s92_s16 = sshll.u32 %s5904_s15, 4  ;;  %s71_s14 = int_to_ptr.vmem [resolvable:$true] %s70_s14  ;;  %s93_s16 = int_to_ptr.vmem [resolvable:$true] %s92_s16 }
  0x3b   :  { %s5832_s17 = scalar_lea.vmem %s71_s14, 32768  ;;  %p5837_p12 = scmp.lt.s32.totalorder %s71_s14, %s71_s14 }
  0x3c   :  { %p5833_p11 = scmp.ne.s32.totalorder %s71_s14, %s5832_s17  ;;  %p5838_p13 = scmp.lt.s32.totalorder %s5832_s17, %s5832_s17 }
  0x3e   :  { %p5839_p0 = por %p5838_p13, %p5837_p12 }
  0x40   :  { %p5840_p1 = pnand %p5839_p0, %p5833_p11 }
  0x42   :  { %5843 = shalt.err (!%p5840_p1)
}
  0x43   :  { %76 = dma.hbm_to_vmem [thread:$0]  %s6283_s5, 32768, %s71_s14, [#allocation8], %s5901_s6, %s5901_s6, %s5902_s11  }
  0x44   :  { %s5852_s3 = scalar_lea.vmem %s93_s16, 65536  ;;  %p5857_p3 = scmp.lt.s32.totalorder %s93_s16, %s93_s16 }
  0x45   :  { %p5853_p2 = scmp.ne.s32.totalorder %s93_s16, %s5852_s3  ;;  %p5858_p4 = scmp.lt.s32.totalorder %s5852_s3, %s5852_s3 }
  0x47   :  { %p5859_p5 = por %p5858_p4, %p5857_p3 }
  0x49   :  { %p5860_p6 = pnand %p5859_p5, %p5853_p2 }
  0x4b   :  { %5863 = shalt.err (!%p5860_p6)
}
  0x4c   :  { %98 = dma.hbm_to_vmem [thread:$0]  %s6285_s7, 65536, %s93_s16, [#allocation11], %s5901_s6, %s5901_s6, %s5902_s11  }
  0x4d   :  { %s5905_s22 = smov [#allocation13]  }
  0x4e   :  { %s104_s23 = sshll.u32 %s5905_s22, 4  ;;  %s105_s23 = int_to_ptr.vmem [resolvable:$true] %s104_s23 }
  0x4f   :  { %s5872_s2 = scalar_lea.vmem %s105_s23, 65536  ;;  %p5877_p8 = scmp.lt.s32.totalorder %s105_s23, %s105_s23 }
  0x50   :  { %p5873_p7 = scmp.ne.s32.totalorder %s105_s23, %s5872_s2  ;;  %p5878_p9 = scmp.lt.s32.totalorder %s5872_s2, %s5872_s2 }
  0x52   :  { %p5879_p10 = por %p5878_p9, %p5877_p8 }
  0x54   :  { %p5880_p11 = pnand %p5879_p10, %p5873_p7 }
  0x56   :  { %5883 = shalt.err (!%p5880_p11)
}
  0x57   :  { %110 = dma.hbm_to_vmem [thread:$0]  %s6286_s8, 65536, %s105_s23, [#allocation14], %s5901_s6, %s5901_s6, %s5902_s11  }
  0x58   :  { %5884 = dma.done.wait [#allocation3], 98304  }
  0x59   :  { %5885 = vsyncadd [#allocation3], 4294868992 }
  0x5a   :  { %5886 = dma.done.wait [#allocation5], 65664  }
  0x5b   :  { %5887 = vsyncadd [#allocation5], 4294901632 }
  0x5c   :  { %5888 = dma.done.wait [#allocation8], 32832  }
  0x5d   :  { %5889 = vsyncadd [#allocation8], 4294934464 }
  0x5e   :  { %5890 = dma.done.wait [#allocation11], 65600  }
  0x5f   :  { %5891 = vsyncadd [#allocation11], 4294901696 }
  0x60   :  { %5892 = dma.done.wait [#allocation14], 65536  }
  0x61   :  { %5893 = vsyncadd [#allocation14], 4294901760  ;;  %v262_v0 = vld [vmem:[#allocation2 + $0x3c8] sm:$0xff]  ;;  %v261_v2 = vld [vmem:[#allocation2 + $0x3c0] sm:$0xff] }
  0x62   :  { %v518_v1 = vld [vmem:[#allocation2 + $0xbc8] sm:$0xff]  ;;  %951 = vmatprep.subr.mxu0 %v262_v0  ;;  %v517_v3 = vld [vmem:[#allocation2 + $0xbc0] sm:$0xff] }
  0x63   :  { %1022 = vmatprep.subr.mxu1 %v518_v1  ;;  %v254_v4 = vld [vmem:[#allocation2 + $0x388] sm:$0xff]  ;;  %952 = vmatpush1.msra.mxu0 %v261_v2  ;;  %v253_v6 = vld [vmem:[#allocation2 + $0x380] sm:$0xff] }
  0x64   :  { %v510_v5 = vld [vmem:[#allocation2 + $0xb88] sm:$0xff]  ;;  %1023 = vmatpush1.msra.mxu1 %v517_v3  ;;  %v509_v7 = vld [vmem:[#allocation2 + $0xb80] sm:$0xff]  ;;  %953 = vmatprep.subr.mxu0 %v254_v4 }
  0x65   :  { %v246_v8 = vld [vmem:[#allocation2 + $0x348] sm:$0xff]  ;;  %1024 = vmatprep.subr.mxu1 %v510_v5  ;;  %v245_v10 = vld [vmem:[#allocation2 + $0x340] sm:$0xff]  ;;  %954 = vmatpush1.msra.mxu0 %v253_v6 }
  0x66   :  { %v502_v9 = vld [vmem:[#allocation2 + $0xb48] sm:$0xff]  ;;  %v501_v11 = vld [vmem:[#allocation2 + $0xb40] sm:$0xff]  ;;  %1025 = vmatpush1.msra.mxu1 %v509_v7  ;;  %955 = vmatprep.subr.mxu0 %v246_v8 }
  0x67   :  { %v238_v12 = vld [vmem:[#allocation2 + $0x308] sm:$0xff]  ;;  %1026 = vmatprep.subr.mxu1 %v502_v9  ;;  %v237_v14 = vld [vmem:[#allocation2 + $0x300] sm:$0xff]  ;;  %956 = vmatpush1.msra.mxu0 %v245_v10 }
  0x68   :  { %v494_v13 = vld [vmem:[#allocation2 + $0xb08] sm:$0xff]  ;;  %v493_v15 = vld [vmem:[#allocation2 + $0xb00] sm:$0xff]  ;;  %1027 = vmatpush1.msra.mxu1 %v501_v11  ;;  %957 = vmatprep.subr.mxu0 %v238_v12 }
  0x69   :  { %v230_v16 = vld [vmem:[#allocation2 + $0x2c8] sm:$0xff]  ;;  %1028 = vmatprep.subr.mxu1 %v494_v13  ;;  %v229_v18 = vld [vmem:[#allocation2 + $0x2c0] sm:$0xff]  ;;  %958 = vmatpush1.msra.mxu0 %v237_v14 }
  0x6a   :  { %v486_v17 = vld [vmem:[#allocation2 + $0xac8] sm:$0xff]  ;;  %v485_v19 = vld [vmem:[#allocation2 + $0xac0] sm:$0xff]  ;;  %1029 = vmatpush1.msra.mxu1 %v493_v15  ;;  %959 = vmatprep.subr.mxu0 %v230_v16 }
  0x6b   :  { %v222_v20 = vld [vmem:[#allocation2 + $0x288] sm:$0xff]  ;;  %1030 = vmatprep.subr.mxu1 %v486_v17  ;;  %v221_v22 = vld [vmem:[#allocation2 + $0x280] sm:$0xff]  ;;  %960 = vmatpush1.msra.mxu0 %v229_v18 }
  0x6c   :  { %v478_v21 = vld [vmem:[#allocation2 + $0xa88] sm:$0xff]  ;;  %v477_v23 = vld [vmem:[#allocation2 + $0xa80] sm:$0xff]  ;;  %1031 = vmatpush1.msra.mxu1 %v485_v19  ;;  %961 = vmatprep.subr.mxu0 %v222_v20 }
  0x6d   :  { %v214_v24 = vld [vmem:[#allocation2 + $0x248] sm:$0xff]  ;;  %1032 = vmatprep.subr.mxu1 %v478_v21  ;;  %v213_v26 = vld [vmem:[#allocation2 + $0x240] sm:$0xff]  ;;  %962 = vmatpush1.msra.mxu0 %v221_v22 }
  0x6e   :  { %v470_v25 = vld [vmem:[#allocation2 + $0xa48] sm:$0xff]  ;;  %v469_v27 = vld [vmem:[#allocation2 + $0xa40] sm:$0xff]  ;;  %1033 = vmatpush1.msra.mxu1 %v477_v23  ;;  %963 = vmatprep.subr.mxu0 %v214_v24 }
  0x6f   :  { %v206_v28 = vld [vmem:[#allocation2 + $0x208] sm:$0xff]  ;;  %1034 = vmatprep.subr.mxu1 %v470_v25  ;;  %v205_v30 = vld [vmem:[#allocation2 + $0x200] sm:$0xff]  ;;  %964 = vmatpush1.msra.mxu0 %v213_v26 }
  0x70   :  { %v462_v29 = vld [vmem:[#allocation2 + $0xa08] sm:$0xff]  ;;  %v461_v31 = vld [vmem:[#allocation2 + $0xa00] sm:$0xff]  ;;  %1035 = vmatpush1.msra.mxu1 %v469_v27  ;;  %965 = vmatprep.subr.mxu0 %v206_v28 }
  0x71   :  { %v198_v32 = vld [vmem:[#allocation2 + $0x1c8] sm:$0xff]  ;;  %1036 = vmatprep.subr.mxu1 %v462_v29  ;;  %v197_v34 = vld [vmem:[#allocation2 + $0x1c0] sm:$0xff]  ;;  %966 = vmatpush1.msra.mxu0 %v205_v30 }
  0x72   :  { %v454_v33 = vld [vmem:[#allocation2 + $0x9c8] sm:$0xff]  ;;  %v453_v35 = vld [vmem:[#allocation2 + $0x9c0] sm:$0xff]  ;;  %1037 = vmatpush1.msra.mxu1 %v461_v31  ;;  %967 = vmatprep.subr.mxu0 %v198_v32 }
  0x73   :  { %v190_v36 = vld [vmem:[#allocation2 + $0x188] sm:$0xff]  ;;  %1038 = vmatprep.subr.mxu1 %v454_v33  ;;  %v189_v38 = vld [vmem:[#allocation2 + $0x180] sm:$0xff]  ;;  %968 = vmatpush1.msra.mxu0 %v197_v34 }
  0x74   :  { %v446_v37 = vld [vmem:[#allocation2 + $0x988] sm:$0xff]  ;;  %v445_v39 = vld [vmem:[#allocation2 + $0x980] sm:$0xff]  ;;  %1039 = vmatpush1.msra.mxu1 %v453_v35  ;;  %969 = vmatprep.subr.mxu0 %v190_v36 }
  0x75   :  { %v182_v40 = vld [vmem:[#allocation2 + $0x148] sm:$0xff]  ;;  %1040 = vmatprep.subr.mxu1 %v446_v37  ;;  %v181_v42 = vld [vmem:[#allocation2 + $0x140] sm:$0xff]  ;;  %970 = vmatpush1.msra.mxu0 %v189_v38 }
  0x76   :  { %v438_v41 = vld [vmem:[#allocation2 + $0x948] sm:$0xff]  ;;  %v437_v43 = vld [vmem:[#allocation2 + $0x940] sm:$0xff]  ;;  %1041 = vmatpush1.msra.mxu1 %v445_v39  ;;  %971 = vmatprep.subr.mxu0 %v182_v40 }
  0x77   :  { %v174_v44 = vld [vmem:[#allocation2 + $0x108] sm:$0xff]  ;;  %1042 = vmatprep.subr.mxu1 %v438_v41  ;;  %v173_v46 = vld [vmem:[#allocation2 + $0x100] sm:$0xff]  ;;  %972 = vmatpush1.msra.mxu0 %v181_v42 }
  0x78   :  { %v430_v45 = vld [vmem:[#allocation2 + $0x908] sm:$0xff]  ;;  %v429_v47 = vld [vmem:[#allocation2 + $0x900] sm:$0xff]  ;;  %1043 = vmatpush1.msra.mxu1 %v437_v43  ;;  %973 = vmatprep.subr.mxu0 %v174_v44 }
  0x79   :  { %v166_v48 = vld [vmem:[#allocation2 + $0xc8] sm:$0xff]  ;;  %1044 = vmatprep.subr.mxu1 %v430_v45  ;;  %v165_v50 = vld [vmem:[#allocation2 + $0xc0] sm:$0xff]  ;;  %974 = vmatpush1.msra.mxu0 %v173_v46 }
  0x7a   :  { %v422_v49 = vld [vmem:[#allocation2 + $0x8c8] sm:$0xff]  ;;  %v421_v51 = vld [vmem:[#allocation2 + $0x8c0] sm:$0xff]  ;;  %1045 = vmatpush1.msra.mxu1 %v429_v47  ;;  %975 = vmatprep.subr.mxu0 %v166_v48 }
  0x7b   :  { %v158_v52 = vld [vmem:[#allocation2 + $0x88] sm:$0xff]  ;;  %1046 = vmatprep.subr.mxu1 %v422_v49  ;;  %v157_v54 = vld [vmem:[#allocation2 + $0x80] sm:$0xff]  ;;  %976 = vmatpush1.msra.mxu0 %v165_v50 }
  0x7c   :  { %v414_v53 = vld [vmem:[#allocation2 + $0x888] sm:$0xff]  ;;  %v413_v55 = vld [vmem:[#allocation2 + $0x880] sm:$0xff]  ;;  %1047 = vmatpush1.msra.mxu1 %v421_v51  ;;  %977 = vmatprep.subr.mxu0 %v158_v52 }
  0x7d   :  { %v150_v56 = vld [vmem:[#allocation2 + $0x48] sm:$0xff]  ;;  %1048 = vmatprep.subr.mxu1 %v414_v53  ;;  %v149_v58 = vld [vmem:[#allocation2 + $0x40] sm:$0xff]  ;;  %978 = vmatpush1.msra.mxu0 %v157_v54 }
  0x7e   :  { %v406_v57 = vld [vmem:[#allocation2 + $0x848] sm:$0xff]  ;;  %v405_v59 = vld [vmem:[#allocation2 + $0x840] sm:$0xff]  ;;  %1049 = vmatpush1.msra.mxu1 %v413_v55  ;;  %979 = vmatprep.subr.mxu0 %v150_v56 }
  0x7f   :  { %v142_v60 = vld [vmem:[#allocation2 + $0x8] sm:$0xff]  ;;  %1050 = vmatprep.subr.mxu1 %v406_v57  ;;  %v141_v62 = vld [vmem:[#allocation2] sm:$0xff]  ;;  %980 = vmatpush1.msra.mxu0 %v149_v58 }
  0x80   :  { %v398_v61 = vld [vmem:[#allocation2 + $0x808] sm:$0xff]  ;;  %v397_v63 = vld [vmem:[#allocation2 + $0x800] sm:$0xff]  ;;  %1051 = vmatpush1.msra.mxu1 %v405_v59  ;;  %981 = vmatprep.subr.mxu0 %v142_v60 }
  0x81   :  { %v390_v0 = vld [vmem:[#allocation2 + $0x7c8] sm:$0xff]  ;;  %1052 = vmatprep.subr.mxu1 %v398_v61  ;;  %v389_v2 = vld [vmem:[#allocation2 + $0x7c0] sm:$0xff]  ;;  %982 = vmatpush1.msra.mxu0 %v141_v62 }
  0x82   :  { %v646_v1 = vld [vmem:[#allocation2 + $0xfc8] sm:$0xff]  ;;  %v645_v3 = vld [vmem:[#allocation2 + $0xfc0] sm:$0xff]  ;;  %1053 = vmatpush1.msra.mxu1 %v397_v63  ;;  %983 = vmatprep.subr.mxu0 %v390_v0 }
  0x83   :  { %v382_v4 = vld [vmem:[#allocation2 + $0x788] sm:$0xff]  ;;  %1054 = vmatprep.subr.mxu1 %v646_v1  ;;  %v381_v6 = vld [vmem:[#allocation2 + $0x780] sm:$0xff]  ;;  %984 = vmatpush2.msra.mxu0 %v389_v2  ;;  %v138_v2 = vld [vmem:[%s6278_s0 + $0x18] sm:$0xff] }
  0x84   :  { %v638_v5 = vld [vmem:[#allocation2 + $0xf88] sm:$0xff]  ;;  %v637_v7 = vld [vmem:[#allocation2 + $0xf80] sm:$0xff]  ;;  %1055 = vmatpush2.msra.mxu1 %v645_v3  ;;  %985 = vmatprep.subr.mxu0 %v382_v4  ;;  %v264_v4 = vld [vmem:[#allocation2 + $0x3d8] sm:$0xff] }
  0x85   :  { %v374_v8 = vld [vmem:[#allocation2 + $0x748] sm:$0xff]  ;;  %1056 = vmatprep.subr.mxu1 %v638_v5  ;;  %v373_v10 = vld [vmem:[#allocation2 + $0x740] sm:$0xff]  ;;  %986 = vmatpush2.msra.mxu0 %v381_v6  ;;  %v137_v5 = vld [vmem:[%s6278_s0 + $0x10] sm:$0xff] }
  0x86   :  { %v630_v9 = vld [vmem:[#allocation2 + $0xf48] sm:$0xff]  ;;  %v629_v11 = vld [vmem:[#allocation2 + $0xf40] sm:$0xff]  ;;  %1057 = vmatpush2.msra.mxu1 %v637_v7  ;;  %987 = vmatprep.subr.mxu0 %v374_v8  ;;  %v263_v7 = vld [vmem:[#allocation2 + $0x3d0] sm:$0xff] }
  0x87   :  { %v366_v12 = vld [vmem:[#allocation2 + $0x708] sm:$0xff]  ;;  %1058 = vmatprep.subr.mxu1 %v630_v9  ;;  %v365_v14 = vld [vmem:[#allocation2 + $0x700] sm:$0xff]  ;;  %988 = vmatpush2.msra.mxu0 %v373_v10  ;;  %v256_v9 = vld [vmem:[#allocation2 + $0x398] sm:$0xff] }
  0x88   :  { %v622_v13 = vld [vmem:[#allocation2 + $0xf08] sm:$0xff]  ;;  %v621_v15 = vld [vmem:[#allocation2 + $0xf00] sm:$0xff]  ;;  %1059 = vmatpush2.msra.mxu1 %v629_v11  ;;  %989 = vmatprep.subr.mxu0 %v366_v12  ;;  %v255_v11 = vld [vmem:[#allocation2 + $0x390] sm:$0xff] }
  0x89   :  { %v358_v16 = vld [vmem:[#allocation2 + $0x6c8] sm:$0xff]  ;;  %1060 = vmatprep.subr.mxu1 %v622_v13  ;;  %v357_v18 = vld [vmem:[#allocation2 + $0x6c0] sm:$0xff]  ;;  %990 = vmatpush2.msra.mxu0 %v365_v14  ;;  %v248_v13 = vld [vmem:[#allocation2 + $0x358] sm:$0xff] }
  0x8a   :  { %v614_v17 = vld [vmem:[#allocation2 + $0xec8] sm:$0xff]  ;;  %v613_v19 = vld [vmem:[#allocation2 + $0xec0] sm:$0xff]  ;;  %1061 = vmatpush2.msra.mxu1 %v621_v15  ;;  %991 = vmatprep.subr.mxu0 %v358_v16  ;;  %v247_v15 = vld [vmem:[#allocation2 + $0x350] sm:$0xff] }
  0x8b   :  { %v350_v20 = vld [vmem:[#allocation2 + $0x688] sm:$0xff]  ;;  %1062 = vmatprep.subr.mxu1 %v614_v17  ;;  %v349_v22 = vld [vmem:[#allocation2 + $0x680] sm:$0xff]  ;;  %992 = vmatpush2.msra.mxu0 %v357_v18  ;;  %v240_v17 = vld [vmem:[#allocation2 + $0x318] sm:$0xff] }
  0x8c   :  { %v606_v21 = vld [vmem:[#allocation2 + $0xe88] sm:$0xff]  ;;  %v605_v23 = vld [vmem:[#allocation2 + $0xe80] sm:$0xff]  ;;  %1063 = vmatpush2.msra.mxu1 %v613_v19  ;;  %993 = vmatprep.subr.mxu0 %v350_v20  ;;  %v239_v19 = vld [vmem:[#allocation2 + $0x310] sm:$0xff] }
  0x8d   :  { %v342_v24 = vld [vmem:[#allocation2 + $0x648] sm:$0xff]  ;;  %1064 = vmatprep.subr.mxu1 %v606_v21  ;;  %v341_v26 = vld [vmem:[#allocation2 + $0x640] sm:$0xff]  ;;  %994 = vmatpush2.msra.mxu0 %v349_v22  ;;  %v232_v21 = vld [vmem:[#allocation2 + $0x2d8] sm:$0xff] }
  0x8e   :  { %v598_v25 = vld [vmem:[#allocation2 + $0xe48] sm:$0xff]  ;;  %v597_v27 = vld [vmem:[#allocation2 + $0xe40] sm:$0xff]  ;;  %1065 = vmatpush2.msra.mxu1 %v605_v23  ;;  %995 = vmatprep.subr.mxu0 %v342_v24  ;;  %v231_v23 = vld [vmem:[#allocation2 + $0x2d0] sm:$0xff] }
  0x8f   :  { %v334_v28 = vld [vmem:[#allocation2 + $0x608] sm:$0xff]  ;;  %1066 = vmatprep.subr.mxu1 %v598_v25  ;;  %v333_v30 = vld [vmem:[#allocation2 + $0x600] sm:$0xff]  ;;  %996 = vmatpush2.msra.mxu0 %v341_v26  ;;  %v224_v25 = vld [vmem:[#allocation2 + $0x298] sm:$0xff] }
  0x90   :  { %v590_v29 = vld [vmem:[#allocation2 + $0xe08] sm:$0xff]  ;;  %v589_v31 = vld [vmem:[#allocation2 + $0xe00] sm:$0xff]  ;;  %1067 = vmatpush2.msra.mxu1 %v597_v27  ;;  %997 = vmatprep.subr.mxu0 %v334_v28  ;;  %v223_v27 = vld [vmem:[#allocation2 + $0x290] sm:$0xff] }
  0x91   :  { %v326_v32 = vld [vmem:[#allocation2 + $0x5c8] sm:$0xff]  ;;  %1068 = vmatprep.subr.mxu1 %v590_v29  ;;  %v325_v34 = vld [vmem:[#allocation2 + $0x5c0] sm:$0xff]  ;;  %998 = vmatpush2.msra.mxu0 %v333_v30  ;;  %v216_v29 = vld [vmem:[#allocation2 + $0x258] sm:$0xff] }
  0x92   :  { %v582_v33 = vld [vmem:[#allocation2 + $0xdc8] sm:$0xff]  ;;  %v581_v35 = vld [vmem:[#allocation2 + $0xdc0] sm:$0xff]  ;;  %1069 = vmatpush2.msra.mxu1 %v589_v31  ;;  %999 = vmatprep.subr.mxu0 %v326_v32  ;;  %v215_v31 = vld [vmem:[#allocation2 + $0x250] sm:$0xff] }
  0x93   :  { %v318_v36 = vld [vmem:[#allocation2 + $0x588] sm:$0xff]  ;;  %1070 = vmatprep.subr.mxu1 %v582_v33  ;;  %v317_v38 = vld [vmem:[#allocation2 + $0x580] sm:$0xff]  ;;  %1000 = vmatpush2.msra.mxu0 %v325_v34  ;;  %v208_v33 = vld [vmem:[#allocation2 + $0x218] sm:$0xff] }
  0x94   :  { %v574_v37 = vld [vmem:[#allocation2 + $0xd88] sm:$0xff]  ;;  %v573_v39 = vld [vmem:[#allocation2 + $0xd80] sm:$0xff]  ;;  %1071 = vmatpush2.msra.mxu1 %v581_v35  ;;  %1001 = vmatprep.subr.mxu0 %v318_v36  ;;  %v207_v35 = vld [vmem:[#allocation2 + $0x210] sm:$0xff] }
  0x95   :  { %v310_v40 = vld [vmem:[#allocation2 + $0x548] sm:$0xff]  ;;  %1072 = vmatprep.subr.mxu1 %v574_v37  ;;  %v309_v42 = vld [vmem:[#allocation2 + $0x540] sm:$0xff]  ;;  %1002 = vmatpush2.msra.mxu0 %v317_v38  ;;  %v200_v37 = vld [vmem:[#allocation2 + $0x1d8] sm:$0xff] }
  0x96   :  { %v566_v41 = vld [vmem:[#allocation2 + $0xd48] sm:$0xff]  ;;  %v565_v43 = vld [vmem:[#allocation2 + $0xd40] sm:$0xff]  ;;  %1073 = vmatpush2.msra.mxu1 %v573_v39  ;;  %1003 = vmatprep.subr.mxu0 %v310_v40  ;;  %v199_v39 = vld [vmem:[#allocation2 + $0x1d0] sm:$0xff] }
  0x97   :  { %v302_v44 = vld [vmem:[#allocation2 + $0x508] sm:$0xff]  ;;  %1074 = vmatprep.subr.mxu1 %v566_v41  ;;  %v301_v46 = vld [vmem:[#allocation2 + $0x500] sm:$0xff]  ;;  %1004 = vmatpush2.msra.mxu0 %v309_v42  ;;  %v192_v41 = vld [vmem:[#allocation2 + $0x198] sm:$0xff] }
  0x98   :  { %v558_v45 = vld [vmem:[#allocation2 + $0xd08] sm:$0xff]  ;;  %v557_v47 = vld [vmem:[#allocation2 + $0xd00] sm:$0xff]  ;;  %1075 = vmatpush2.msra.mxu1 %v565_v43  ;;  %1005 = vmatprep.subr.mxu0 %v302_v44  ;;  %v191_v43 = vld [vmem:[#allocation2 + $0x190] sm:$0xff] }
  0x99   :  { %v294_v48 = vld [vmem:[#allocation2 + $0x4c8] sm:$0xff]  ;;  %1076 = vmatprep.subr.mxu1 %v558_v45  ;;  %v293_v50 = vld [vmem:[#allocation2 + $0x4c0] sm:$0xff]  ;;  %1006 = vmatpush2.msra.mxu0 %v301_v46  ;;  %v184_v45 = vld [vmem:[#allocation2 + $0x158] sm:$0xff] }
  0x9a   :  { %v550_v49 = vld [vmem:[#allocation2 + $0xcc8] sm:$0xff]  ;;  %v549_v51 = vld [vmem:[#allocation2 + $0xcc0] sm:$0xff]  ;;  %1077 = vmatpush2.msra.mxu1 %v557_v47  ;;  %1007 = vmatprep.subr.mxu0 %v294_v48  ;;  %v183_v47 = vld [vmem:[#allocation2 + $0x150] sm:$0xff] }
  0x9b   :  { %v286_v52 = vld [vmem:[#allocation2 + $0x488] sm:$0xff]  ;;  %1078 = vmatprep.subr.mxu1 %v550_v49  ;;  %v285_v54 = vld [vmem:[#allocation2 + $0x480] sm:$0xff]  ;;  %1008 = vmatpush2.msra.mxu0 %v293_v50  ;;  %v176_v49 = vld [vmem:[#allocation2 + $0x118] sm:$0xff] }
  0x9c   :  { %v542_v53 = vld [vmem:[#allocation2 + $0xc88] sm:$0xff]  ;;  %v541_v55 = vld [vmem:[#allocation2 + $0xc80] sm:$0xff]  ;;  %1079 = vmatpush2.msra.mxu1 %v549_v51  ;;  %1009 = vmatprep.subr.mxu0 %v286_v52  ;;  %v175_v51 = vld [vmem:[#allocation2 + $0x110] sm:$0xff] }
  0x9d   :  { %v278_v56 = vld [vmem:[#allocation2 + $0x448] sm:$0xff]  ;;  %1080 = vmatprep.subr.mxu1 %v542_v53  ;;  %v277_v58 = vld [vmem:[#allocation2 + $0x440] sm:$0xff]  ;;  %1010 = vmatpush2.msra.mxu0 %v285_v54  ;;  %v168_v53 = vld [vmem:[#allocation2 + $0xd8] sm:$0xff] }
  0x9e   :  { %v534_v57 = vld [vmem:[#allocation2 + $0xc48] sm:$0xff]  ;;  %v533_v59 = vld [vmem:[#allocation2 + $0xc40] sm:$0xff]  ;;  %1081 = vmatpush2.msra.mxu1 %v541_v55  ;;  %1011 = vmatprep.subr.mxu0 %v278_v56  ;;  %v167_v55 = vld [vmem:[#allocation2 + $0xd0] sm:$0xff] }
  0x9f   :  { %v270_v60 = vld [vmem:[#allocation2 + $0x408] sm:$0xff]  ;;  %1082 = vmatprep.subr.mxu1 %v534_v57  ;;  %v269_v62 = vld [vmem:[#allocation2 + $0x400] sm:$0xff]  ;;  %1012 = vmatpush2.msra.mxu0 %v277_v58  ;;  %v160_v57 = vld [vmem:[#allocation2 + $0x98] sm:$0xff] }
  0xa0   :  { %v526_v61 = vld [vmem:[#allocation2 + $0xc08] sm:$0xff]  ;;  %1083 = vmatpush2.msra.mxu1 %v533_v59  ;;  %v525_v0 = vld [vmem:[#allocation2 + $0xc00] sm:$0xff]  ;;  %1013 = vmatprep.subr.mxu0 %v270_v60  ;;  %v159_v59 = vld [vmem:[#allocation2 + $0x90] sm:$0xff] }
  0xa1   :  { %v5995_v63 = vld [vmem:[%s6278_s0 + $0x8] sm:$0xff]  ;;  %v6000_v1 = vld [vmem:[%s6278_s0] sm:$0xff]  ;;  %1084 = vmatprep.subr.mxu1 %v526_v61  ;;  %1014 = vmatpush2.msra.mxu0 %v269_v62  ;;  %v152_v61 = vld [vmem:[#allocation2 + $0x58] sm:$0xff] }
  0xa2   :  { %v774_v3 = vld [vmem:[#allocation2 + $0x13c8] sm:$0xff]  ;;  %1015 = vmatprep.mubr.f32.mxu0 %v5995_v63  ;;  %1085 = vmatpush2.msra.mxu1 %v525_v0  ;;  %v773_v6 = vld [vmem:[#allocation2 + $0x13c0] sm:$0xff]  ;;  %v151_v0 = vld [vmem:[#allocation2 + $0x50] sm:$0xff] }
  0xa3   :  { %1016 = vmatmul.mubr.f32.vlgmr.msra.gmra.mxu0 %v6000_v1  ;;  %1086 = vmatprep.mubr.f32.mxu1 %v138_v2  ;;  %v766_v8 = vld [vmem:[#allocation2 + $0x1388] sm:$0xff]  ;;  %v765_v10 = vld [vmem:[#allocation2 + $0x1380] sm:$0xff] }
  0xa4   :  { %1093 = vmatprep.subr.mxu0 %v774_v3  ;;  %1164 = vmatprep.subr.mxu1 %v264_v4  ;;  %v758_v12 = vld [vmem:[#allocation2 + $0x1348] sm:$0xff]  ;;  %v757_v14 = vld [vmem:[#allocation2 + $0x1340] sm:$0xff]  ;;  %v144_v3 = vld [vmem:[#allocation2 + $0x18] sm:$0xff] }
  0xa5   :  { %1087 = vmatmul.mubr.f32.vlgmr.msra.gmra.mxu1 %v137_v5  ;;  %1094 = vmatpush1.msra.mxu0 %v773_v6  ;;  %v750_v16 = vld [vmem:[#allocation2 + $0x1308] sm:$0xff]  ;;  %v749_v18 = vld [vmem:[#allocation2 + $0x1300] sm:$0xff]  ;;  %v143_v5 = vld [vmem:[#allocation2 + $0x10] sm:$0xff] }
  0xa6   :  { %1165 = vmatpush1.msra.mxu1 %v263_v7  ;;  %1095 = vmatprep.subr.mxu0 %v766_v8  ;;  %v742_v20 = vld [vmem:[#allocation2 + $0x12c8] sm:$0xff]  ;;  %v741_v22 = vld [vmem:[#allocation2 + $0x12c0] sm:$0xff]  ;;  %v392_v7 = vld [vmem:[#allocation2 + $0x7d8] sm:$0xff] }
  0xa7   :  { %1166 = vmatprep.subr.mxu1 %v256_v9  ;;  %1096 = vmatpush1.msra.mxu0 %v765_v10  ;;  %v734_v24 = vld [vmem:[#allocation2 + $0x1288] sm:$0xff]  ;;  %v733_v26 = vld [vmem:[#allocation2 + $0x1280] sm:$0xff]  ;;  %v391_v9 = vld [vmem:[#allocation2 + $0x7d0] sm:$0xff] }
  0xa8   :  { %1167 = vmatpush1.msra.mxu1 %v255_v11  ;;  %1097 = vmatprep.subr.mxu0 %v758_v12  ;;  %v726_v28 = vld [vmem:[#allocation2 + $0x1248] sm:$0xff]  ;;  %v725_v30 = vld [vmem:[#allocation2 + $0x1240] sm:$0xff]  ;;  %v384_v11 = vld [vmem:[#allocation2 + $0x798] sm:$0xff] }
  0xa9   :  { %1168 = vmatprep.subr.mxu1 %v248_v13  ;;  %1098 = vmatpush1.msra.mxu0 %v757_v14  ;;  %v718_v32 = vld [vmem:[#allocation2 + $0x1208] sm:$0xff]  ;;  %v717_v34 = vld [vmem:[#allocation2 + $0x1200] sm:$0xff]  ;;  %v383_v13 = vld [vmem:[#allocation2 + $0x790] sm:$0xff] }
  0xaa   :  { %1169 = vmatpush1.msra.mxu1 %v247_v15  ;;  %1099 = vmatprep.subr.mxu0 %v750_v16  ;;  %v710_v36 = vld [vmem:[#allocation2 + $0x11c8] sm:$0xff]  ;;  %v709_v38 = vld [vmem:[#allocation2 + $0x11c0] sm:$0xff]  ;;  %v376_v15 = vld [vmem:[#allocation2 + $0x758] sm:$0xff] }
  0xab   :  { %1170 = vmatprep.subr.mxu1 %v240_v17  ;;  %1100 = vmatpush1.msra.mxu0 %v749_v18  ;;  %v702_v40 = vld [vmem:[#allocation2 + $0x1188] sm:$0xff]  ;;  %v701_v42 = vld [vmem:[#allocation2 + $0x1180] sm:$0xff]  ;;  %v375_v17 = vld [vmem:[#allocation2 + $0x750] sm:$0xff] }
  0xac   :  { %1171 = vmatpush1.msra.mxu1 %v239_v19  ;;  %1101 = vmatprep.subr.mxu0 %v742_v20  ;;  %v694_v44 = vld [vmem:[#allocation2 + $0x1148] sm:$0xff]  ;;  %v693_v46 = vld [vmem:[#allocation2 + $0x1140] sm:$0xff]  ;;  %v368_v19 = vld [vmem:[#allocation2 + $0x718] sm:$0xff] }
  0xad   :  { %1172 = vmatprep.subr.mxu1 %v232_v21  ;;  %1102 = vmatpush1.msra.mxu0 %v741_v22  ;;  %v686_v48 = vld [vmem:[#allocation2 + $0x1108] sm:$0xff]  ;;  %v685_v50 = vld [vmem:[#allocation2 + $0x1100] sm:$0xff]  ;;  %v367_v21 = vld [vmem:[#allocation2 + $0x710] sm:$0xff] }
  0xae   :  { %1173 = vmatpush1.msra.mxu1 %v231_v23  ;;  %1103 = vmatprep.subr.mxu0 %v734_v24  ;;  %v678_v52 = vld [vmem:[#allocation2 + $0x10c8] sm:$0xff]  ;;  %v677_v54 = vld [vmem:[#allocation2 + $0x10c0] sm:$0xff]  ;;  %v360_v23 = vld [vmem:[#allocation2 + $0x6d8] sm:$0xff] }
  0xaf   :  { %1174 = vmatprep.subr.mxu1 %v224_v25  ;;  %1104 = vmatpush1.msra.mxu0 %v733_v26  ;;  %v670_v56 = vld [vmem:[#allocation2 + $0x1088] sm:$0xff]  ;;  %v669_v58 = vld [vmem:[#allocation2 + $0x1080] sm:$0xff]  ;;  %v359_v25 = vld [vmem:[#allocation2 + $0x6d0] sm:$0xff] }
  0xb0   :  { %1175 = vmatpush1.msra.mxu1 %v223_v27  ;;  %1105 = vmatprep.subr.mxu0 %v726_v28  ;;  %v662_v60 = vld [vmem:[#allocation2 + $0x1048] sm:$0xff]  ;;  %v661_v62 = vld [vmem:[#allocation2 + $0x1040] sm:$0xff]  ;;  %v352_v27 = vld [vmem:[#allocation2 + $0x698] sm:$0xff] }
  0xb1   :  { %1176 = vmatprep.subr.mxu1 %v216_v29  ;;  %1106 = vmatpush1.msra.mxu0 %v725_v30  ;;  %v654_v2 = vld [vmem:[#allocation2 + $0x1008] sm:$0xff]  ;;  %v653_v4 = vld [vmem:[#allocation2 + $0x1000] sm:$0xff]  ;;  %v351_v29 = vld [vmem:[#allocation2 + $0x690] sm:$0xff] }
  0xb2   :  { %1177 = vmatpush1.msra.mxu1 %v215_v31  ;;  %1107 = vmatprep.subr.mxu0 %v718_v32  ;;  %v902_v6 = vld [vmem:[#allocation2 + $0x17c8] sm:$0xff]  ;;  %v901_v8 = vld [vmem:[#allocation2 + $0x17c0] sm:$0xff]  ;;  %v344_v31 = vld [vmem:[#allocation2 + $0x658] sm:$0xff] }
  0xb3   :  { %1178 = vmatprep.subr.mxu1 %v208_v33  ;;  %1108 = vmatpush1.msra.mxu0 %v717_v34  ;;  %v894_v10 = vld [vmem:[#allocation2 + $0x1788] sm:$0xff]  ;;  %v893_v12 = vld [vmem:[#allocation2 + $0x1780] sm:$0xff]  ;;  %v343_v33 = vld [vmem:[#allocation2 + $0x650] sm:$0xff] }
  0xb4   :  { %1179 = vmatpush1.msra.mxu1 %v207_v35  ;;  %1109 = vmatprep.subr.mxu0 %v710_v36  ;;  %v886_v14 = vld [vmem:[#allocation2 + $0x1748] sm:$0xff]  ;;  %v885_v16 = vld [vmem:[#allocation2 + $0x1740] sm:$0xff]  ;;  %v336_v35 = vld [vmem:[#allocation2 + $0x618] sm:$0xff] }
  0xb5   :  { %1180 = vmatprep.subr.mxu1 %v200_v37  ;;  %1110 = vmatpush1.msra.mxu0 %v709_v38  ;;  %v878_v18 = vld [vmem:[#allocation2 + $0x1708] sm:$0xff]  ;;  %v877_v20 = vld [vmem:[#allocation2 + $0x1700] sm:$0xff]  ;;  %v335_v37 = vld [vmem:[#allocation2 + $0x610] sm:$0xff] }
  0xb6   :  { %1181 = vmatpush1.msra.mxu1 %v199_v39  ;;  %1111 = vmatprep.subr.mxu0 %v702_v40  ;;  %v870_v22 = vld [vmem:[#allocation2 + $0x16c8] sm:$0xff]  ;;  %v869_v24 = vld [vmem:[#allocation2 + $0x16c0] sm:$0xff]  ;;  %v328_v39 = vld [vmem:[#allocation2 + $0x5d8] sm:$0xff] }
  0xb7   :  { %1182 = vmatprep.subr.mxu1 %v192_v41  ;;  %1112 = vmatpush1.msra.mxu0 %v701_v42  ;;  %v862_v26 = vld [vmem:[#allocation2 + $0x1688] sm:$0xff]  ;;  %v861_v28 = vld [vmem:[#allocation2 + $0x1680] sm:$0xff]  ;;  %v327_v41 = vld [vmem:[#allocation2 + $0x5d0] sm:$0xff] }
  0xb8   :  { %1183 = vmatpush1.msra.mxu1 %v191_v43  ;;  %1113 = vmatprep.subr.mxu0 %v694_v44  ;;  %v854_v30 = vld [vmem:[#allocation2 + $0x1648] sm:$0xff]  ;;  %v853_v32 = vld [vmem:[#allocation2 + $0x1640] sm:$0xff]  ;;  %v320_v43 = vld [vmem:[#allocation2 + $0x598] sm:$0xff] }
  0xb9   :  { %1184 = vmatprep.subr.mxu1 %v184_v45  ;;  %1114 = vmatpush1.msra.mxu0 %v693_v46  ;;  %v846_v34 = vld [vmem:[#allocation2 + $0x1608] sm:$0xff]  ;;  %v845_v36 = vld [vmem:[#allocation2 + $0x1600] sm:$0xff]  ;;  %v319_v45 = vld [vmem:[#allocation2 + $0x590] sm:$0xff] }
  0xba   :  { %1185 = vmatpush1.msra.mxu1 %v183_v47  ;;  %1115 = vmatprep.subr.mxu0 %v686_v48  ;;  %v838_v38 = vld [vmem:[#allocation2 + $0x15c8] sm:$0xff]  ;;  %v837_v40 = vld [vmem:[#allocation2 + $0x15c0] sm:$0xff]  ;;  %v312_v47 = vld [vmem:[#allocation2 + $0x558] sm:$0xff] }
  0xbb   :  { %1186 = vmatprep.subr.mxu1 %v176_v49  ;;  %1116 = vmatpush1.msra.mxu0 %v685_v50  ;;  %v830_v42 = vld [vmem:[#allocation2 + $0x1588] sm:$0xff]  ;;  %v829_v44 = vld [vmem:[#allocation2 + $0x1580] sm:$0xff]  ;;  %v311_v49 = vld [vmem:[#allocation2 + $0x550] sm:$0xff] }
  0xbc   :  { %1187 = vmatpush1.msra.mxu1 %v175_v51  ;;  %1117 = vmatprep.subr.mxu0 %v678_v52  ;;  %v822_v46 = vld [vmem:[#allocation2 + $0x1548] sm:$0xff]  ;;  %v821_v48 = vld [vmem:[#allocation2 + $0x1540] sm:$0xff]  ;;  %v304_v51 = vld [vmem:[#allocation2 + $0x518] sm:$0xff] }
  0xbd   :  { %1188 = vmatprep.subr.mxu1 %v168_v53  ;;  %1118 = vmatpush1.msra.mxu0 %v677_v54  ;;  %v814_v50 = vld [vmem:[#allocation2 + $0x1508] sm:$0xff]  ;;  %v813_v52 = vld [vmem:[#allocation2 + $0x1500] sm:$0xff]  ;;  %v303_v53 = vld [vmem:[#allocation2 + $0x510] sm:$0xff] }
  0xbe   :  { %1189 = vmatpush1.msra.mxu1 %v167_v55  ;;  %1119 = vmatprep.subr.mxu0 %v670_v56  ;;  %v806_v54 = vld [vmem:[#allocation2 + $0x14c8] sm:$0xff]  ;;  %v296_v55 = vld [vmem:[#allocation2 + $0x4d8] sm:$0xff]  ;;  %v805_v56 = vld [vmem:[#allocation2 + $0x14c0] sm:$0xff] }
  0xbf   :  { %1190 = vmatprep.subr.mxu1 %v160_v57  ;;  %1120 = vmatpush1.msra.mxu0 %v669_v58  ;;  %v295_v57 = vld [vmem:[#allocation2 + $0x4d0] sm:$0xff]  ;;  %v798_v58 = vld [vmem:[#allocation2 + $0x1488] sm:$0xff] }
  0xc0   :  { %1191 = vmatpush1.msra.mxu1 %v159_v59  ;;  %1121 = vmatprep.subr.mxu0 %v662_v60  ;;  %v288_v59 = vld [vmem:[#allocation2 + $0x498] sm:$0xff]  ;;  %v797_v60 = vld [vmem:[#allocation2 + $0x1480] sm:$0xff] }
  0xc1   :  { %1192 = vmatprep.subr.mxu1 %v152_v61  ;;  %1122 = vmatpush1.msra.mxu0 %v661_v62  ;;  %v287_v61 = vld [vmem:[#allocation2 + $0x490] sm:$0xff]  ;;  %v790_v62 = vld [vmem:[#allocation2 + $0x1448] sm:$0xff] }
  0xc2   :  { %1193 = vmatpush1.msra.mxu1 %v151_v0  ;;  %1123 = vmatprep.subr.mxu0 %v654_v2  ;;  %v280_v0 = vld [vmem:[#allocation2 + $0x458] sm:$0xff]  ;;  %v789_v2 = vld [vmem:[#allocation2 + $0x1440] sm:$0xff] }
  0xc3   :  { %1194 = vmatprep.subr.mxu1 %v144_v3  ;;  %1124 = vmatpush1.msra.mxu0 %v653_v4  ;;  %v279_v3 = vld [vmem:[#allocation2 + $0x450] sm:$0xff]  ;;  %v782_v4 = vld [vmem:[#allocation2 + $0x1408] sm:$0xff] }
  0xc4   :  { %1195 = vmatpush1.msra.mxu1 %v143_v5  ;;  %1125 = vmatprep.subr.mxu0 %v902_v6  ;;  %v272_v5 = vld [vmem:[#allocation2 + $0x418] sm:$0xff]  ;;  %v781_v6 = vld [vmem:[#allocation2 + $0x1400] sm:$0xff] }
  0xc5   :  { %1196 = vmatprep.subr.mxu1 %v392_v7  ;;  %1126 = vmatpush2.msra.mxu0 %v901_v8  ;;  %v6013_v7 = vld [vmem:[%s6278_s0 + $0x28] sm:$0xff]  ;;  %v271_v8 = vld [vmem:[#allocation2 + $0x410] sm:$0xff] }
  0xc6   :  { %1197 = vmatpush2.msra.mxu1 %v391_v9  ;;  %1127 = vmatprep.subr.mxu0 %v894_v10  ;;  %v6018_v9 = vld [vmem:[%s6278_s0 + $0x20] sm:$0xff]  ;;  %v520_v10 = vld [vmem:[#allocation2 + $0xbd8] sm:$0xff] }
  0xc7   :  { %1198 = vmatprep.subr.mxu1 %v384_v11  ;;  %1128 = vmatpush2.msra.mxu0 %v893_v12  ;;  %v776_v11 = vld [vmem:[#allocation2 + $0x13d8] sm:$0xff]  ;;  %v519_v12 = vld [vmem:[#allocation2 + $0xbd0] sm:$0xff] }
  0xc8   :  { %1199 = vmatpush2.msra.mxu1 %v383_v13  ;;  %1129 = vmatprep.subr.mxu0 %v886_v14  ;;  %v775_v13 = vld [vmem:[#allocation2 + $0x13d0] sm:$0xff]  ;;  %v512_v14 = vld [vmem:[#allocation2 + $0xb98] sm:$0xff] }
  0xc9   :  { %1200 = vmatprep.subr.mxu1 %v376_v15  ;;  %1130 = vmatpush2.msra.mxu0 %v885_v16  ;;  %v768_v15 = vld [vmem:[#allocation2 + $0x1398] sm:$0xff]  ;;  %v511_v16 = vld [vmem:[#allocation2 + $0xb90] sm:$0xff] }
  0xca   :  { %1201 = vmatpush2.msra.mxu1 %v375_v17  ;;  %1131 = vmatprep.subr.mxu0 %v878_v18  ;;  %v767_v17 = vld [vmem:[#allocation2 + $0x1390] sm:$0xff]  ;;  %v504_v18 = vld [vmem:[#allocation2 + $0xb58] sm:$0xff] }
  0xcb   :  { %1202 = vmatprep.subr.mxu1 %v368_v19  ;;  %1132 = vmatpush2.msra.mxu0 %v877_v20  ;;  %v760_v19 = vld [vmem:[#allocation2 + $0x1358] sm:$0xff]  ;;  %v503_v20 = vld [vmem:[#allocation2 + $0xb50] sm:$0xff] }
  0xcc   :  { %1203 = vmatpush2.msra.mxu1 %v367_v21  ;;  %1133 = vmatprep.subr.mxu0 %v870_v22  ;;  %v759_v21 = vld [vmem:[#allocation2 + $0x1350] sm:$0xff]  ;;  %v496_v22 = vld [vmem:[#allocation2 + $0xb18] sm:$0xff] }
  0xcd   :  { %1204 = vmatprep.subr.mxu1 %v360_v23  ;;  %1134 = vmatpush2.msra.mxu0 %v869_v24  ;;  %v495_v23 = vld [vmem:[#allocation2 + $0xb10] sm:$0xff] }
  0xce   :  { %1205 = vmatpush2.msra.mxu1 %v359_v25  ;;  %1135 = vmatprep.subr.mxu0 %v862_v26  ;;  %v751_v24 = vld [vmem:[#allocation2 + $0x1310] sm:$0xff]  ;;  %v744_v25 = vld [vmem:[#allocation2 + $0x12d8] sm:$0xff] }
  0xcf   :  { %1206 = vmatprep.subr.mxu1 %v352_v27  ;;  %1136 = vmatpush2.msra.mxu0 %v861_v28  ;;  %v487_v26 = vld [vmem:[#allocation2 + $0xad0] sm:$0xff]  ;;  %v480_v28 = vld [vmem:[#allocation2 + $0xa98] sm:$0xff] }
  0xd0   :  { %1207 = vmatpush2.msra.mxu1 %v351_v29  ;;  %1137 = vmatprep.subr.mxu0 %v854_v30  ;;  %v743_v27 = vld [vmem:[#allocation2 + $0x12d0] sm:$0xff]  ;;  %v736_v29 = vld [vmem:[#allocation2 + $0x1298] sm:$0xff] }
  0xd1   :  { %1208 = vmatprep.subr.mxu1 %v344_v31  ;;  %1138 = vmatpush2.msra.mxu0 %v853_v32  ;;  %v479_v30 = vld [vmem:[#allocation2 + $0xa90] sm:$0xff]  ;;  %v472_v32 = vld [vmem:[#allocation2 + $0xa58] sm:$0xff] }
  0xd2   :  { %1209 = vmatpush2.msra.mxu1 %v343_v33  ;;  %1139 = vmatprep.subr.mxu0 %v846_v34  ;;  %v735_v31 = vld [vmem:[#allocation2 + $0x1290] sm:$0xff]  ;;  %v728_v33 = vld [vmem:[#allocation2 + $0x1258] sm:$0xff] }
  0xd3   :  { %1210 = vmatprep.subr.mxu1 %v336_v35  ;;  %1140 = vmatpush2.msra.mxu0 %v845_v36  ;;  %v471_v34 = vld [vmem:[#allocation2 + $0xa50] sm:$0xff]  ;;  %v464_v36 = vld [vmem:[#allocation2 + $0xa18] sm:$0xff] }
  0xd4   :  { %1211 = vmatpush2.msra.mxu1 %v335_v37  ;;  %1141 = vmatprep.subr.mxu0 %v838_v38  ;;  %v727_v35 = vld [vmem:[#allocation2 + $0x1250] sm:$0xff]  ;;  %v720_v37 = vld [vmem:[#allocation2 + $0x1218] sm:$0xff] }
  0xd5   :  { %1212 = vmatprep.subr.mxu1 %v328_v39  ;;  %1142 = vmatpush2.msra.mxu0 %v837_v40  ;;  %v463_v38 = vld [vmem:[#allocation2 + $0xa10] sm:$0xff]  ;;  %v456_v40 = vld [vmem:[#allocation2 + $0x9d8] sm:$0xff] }
  0xd6   :  { %1213 = vmatpush2.msra.mxu1 %v327_v41  ;;  %1143 = vmatprep.subr.mxu0 %v830_v42  ;;  %v719_v39 = vld [vmem:[#allocation2 + $0x1210] sm:$0xff]  ;;  %v712_v41 = vld [vmem:[#allocation2 + $0x11d8] sm:$0xff] }
  0xd7   :  { %1214 = vmatprep.subr.mxu1 %v320_v43  ;;  %1144 = vmatpush2.msra.mxu0 %v829_v44  ;;  %v455_v42 = vld [vmem:[#allocation2 + $0x9d0] sm:$0xff]  ;;  %v448_v44 = vld [vmem:[#allocation2 + $0x998] sm:$0xff] }
  0xd8   :  { %1215 = vmatpush2.msra.mxu1 %v319_v45  ;;  %1145 = vmatprep.subr.mxu0 %v822_v46  ;;  %v711_v43 = vld [vmem:[#allocation2 + $0x11d0] sm:$0xff]  ;;  %v704_v45 = vld [vmem:[#allocation2 + $0x1198] sm:$0xff] }
  0xd9   :  { %1216 = vmatprep.subr.mxu1 %v312_v47  ;;  %1146 = vmatpush2.msra.mxu0 %v821_v48  ;;  %v447_v46 = vld [vmem:[#allocation2 + $0x990] sm:$0xff]  ;;  %v440_v48 = vld [vmem:[#allocation2 + $0x958] sm:$0xff] }
  0xda   :  { %1217 = vmatpush2.msra.mxu1 %v311_v49  ;;  %1147 = vmatprep.subr.mxu0 %v814_v50  ;;  %v703_v47 = vld [vmem:[#allocation2 + $0x1190] sm:$0xff]  ;;  %v696_v49 = vld [vmem:[#allocation2 + $0x1158] sm:$0xff] }
  0xdb   :  { %1218 = vmatprep.subr.mxu1 %v304_v51  ;;  %1148 = vmatpush2.msra.mxu0 %v813_v52  ;;  %v439_v50 = vld [vmem:[#allocation2 + $0x950] sm:$0xff]  ;;  %v432_v52 = vld [vmem:[#allocation2 + $0x918] sm:$0xff] }
  0xdc   :  { %1219 = vmatpush2.msra.mxu1 %v303_v53  ;;  %1149 = vmatprep.subr.mxu0 %v806_v54  ;;  %v695_v51 = vld [vmem:[#allocation2 + $0x1150] sm:$0xff]  ;;  %v688_v53 = vld [vmem:[#allocation2 + $0x1118] sm:$0xff] }
  0xdd   :  { %1220 = vmatprep.subr.mxu1 %v296_v55  ;;  %1150 = vmatpush2.msra.mxu0 %v805_v56  ;;  %v431_v54 = vld [vmem:[#allocation2 + $0x910] sm:$0xff]  ;;  %v424_v56 = vld [vmem:[#allocation2 + $0x8d8] sm:$0xff] }
  0xde   :  { %1221 = vmatpush2.msra.mxu1 %v295_v57  ;;  %1151 = vmatprep.subr.mxu0 %v798_v58  ;;  %v687_v55 = vld [vmem:[#allocation2 + $0x1110] sm:$0xff]  ;;  %v680_v57 = vld [vmem:[#allocation2 + $0x10d8] sm:$0xff] }
  0xdf   :  { %1222 = vmatprep.subr.mxu1 %v288_v59  ;;  %1152 = vmatpush2.msra.mxu0 %v797_v60  ;;  %v423_v58 = vld [vmem:[#allocation2 + $0x8d0] sm:$0xff]  ;;  %v416_v60 = vld [vmem:[#allocation2 + $0x898] sm:$0xff] }
  0xe0   :  { %1223 = vmatpush2.msra.mxu1 %v287_v61  ;;  %1153 = vmatprep.subr.mxu0 %v790_v62  ;;  %v679_v59 = vld [vmem:[#allocation2 + $0x10d0] sm:$0xff]  ;;  %v672_v61 = vld [vmem:[#allocation2 + $0x1098] sm:$0xff] }
  0xe1   :  { %1224 = vmatprep.subr.mxu1 %v280_v0  ;;  %1154 = vmatpush2.msra.mxu0 %v789_v2  ;;  %v415_v62 = vld [vmem:[#allocation2 + $0x890] sm:$0xff]  ;;  %v408_v2 = vld [vmem:[#allocation2 + $0x858] sm:$0xff] }
  0xe2   :  { %1225 = vmatpush2.msra.mxu1 %v279_v3  ;;  %1155 = vmatprep.subr.mxu0 %v782_v4  ;;  %v671_v0 = vld [vmem:[#allocation2 + $0x1090] sm:$0xff]  ;;  %v664_v3 = vld [vmem:[#allocation2 + $0x1058] sm:$0xff] }
  0xe3   :  { %1226 = vmatprep.subr.mxu1 %v272_v5  ;;  %1156 = vmatpush2.msra.mxu0 %v781_v6  ;;  %v407_v4 = vld [vmem:[#allocation2 + $0x850] sm:$0xff]  ;;  %v400_v6 = vld [vmem:[#allocation2 + $0x818] sm:$0xff] }
  0xe4   :  { %1157 = vmatprep.mubr.f32.mxu0 %v6013_v7  ;;  %1227 = vmatpush2.msra.mxu1 %v271_v8  ;;  %v663_v5 = vld [vmem:[#allocation2 + $0x1050] sm:$0xff]  ;;  %v656_v8 = vld [vmem:[#allocation2 + $0x1018] sm:$0xff] }
  0xe5   :  { %1158 = vmatmul.mubr.f32.vlgmr.msra.gmra.mxu0 %v6018_v9  ;;  %1228 = vmatprep.mubr.f32.mxu1 %v5995_v63  ;;  %v752_v63 = vld [vmem:[#allocation2 + $0x1318] sm:$0xff] }
  0xe6   :  { %1235 = vmatprep.subr.mxu0 %v520_v10  ;;  %1306 = vmatprep.subr.mxu1 %v776_v11  ;;  %v399_v10 = vld [vmem:[#allocation2 + $0x810] sm:$0xff] }
  0xe7   :  { %1229 = vmatmul.mubr.f32.vlgmr.msra.gmra.mxu1 %v6000_v1  ;;  %1236 = vmatpush1.msra.mxu0 %v519_v12  ;;  %v488_v1 = vld [vmem:[#allocation2 + $0xad8] sm:$0xff]  ;;  %v655_v11 = vld [vmem:[#allocation2 + $0x1010] sm:$0xff] }
  0xe8   :  { %1307 = vmatpush1.msra.mxu1 %v775_v13  ;;  %1237 = vmatprep.subr.mxu0 %v512_v14  ;;  %v648_v12 = vld [vmem:[#allocation2 + $0xfd8] sm:$0xff]  ;;  %v647_v14 = vld [vmem:[#allocation2 + $0xfd0] sm:$0xff] }
  0xe9   :  { %1308 = vmatprep.subr.mxu1 %v768_v15  ;;  %1238 = vmatpush1.msra.mxu0 %v511_v16  ;;  %v904_v13 = vld [vmem:[#allocation2 + $0x17d8] sm:$0xff]  ;;  %v903_v15 = vld [vmem:[#allocation2 + $0x17d0] sm:$0xff] }
  0xea   :  { %1309 = vmatpush1.msra.mxu1 %v767_v17  ;;  %1239 = vmatprep.subr.mxu0 %v504_v18  ;;  %v640_v16 = vld [vmem:[#allocation2 + $0xf98] sm:$0xff]  ;;  %v639_v18 = vld [vmem:[#allocation2 + $0xf90] sm:$0xff] }
  0xeb   :  { %1310 = vmatprep.subr.mxu1 %v760_v19  ;;  %1240 = vmatpush1.msra.mxu0 %v503_v20  ;;  %v896_v17 = vld [vmem:[#allocation2 + $0x1798] sm:$0xff]  ;;  %v895_v19 = vld [vmem:[#allocation2 + $0x1790] sm:$0xff] }
  0xec   :  { %1311 = vmatpush1.msra.mxu1 %v759_v21  ;;  %1241 = vmatprep.subr.mxu0 %v496_v22  ;;  %v632_v20 = vld [vmem:[#allocation2 + $0xf58] sm:$0xff]  ;;  %v631_v22 = vld [vmem:[#allocation2 + $0xf50] sm:$0xff] }
  0xed   :  { %1312 = vmatprep.subr.mxu1 %v752_v63  ;;  %1242 = vmatpush1.msra.mxu0 %v495_v23  ;;  %v888_v21 = vld [vmem:[#allocation2 + $0x1758] sm:$0xff]  ;;  %v887_v63 = vld [vmem:[#allocation2 + $0x1750] sm:$0xff] }
  0xee   :  { %1313 = vmatpush1.msra.mxu1 %v751_v24  ;;  %1243 = vmatprep.subr.mxu0 %v488_v1  ;;  %v624_v23 = vld [vmem:[#allocation2 + $0xf18] sm:$0xff]  ;;  %v623_v1 = vld [vmem:[#allocation2 + $0xf10] sm:$0xff] }
  0xef   :  { %1314 = vmatprep.subr.mxu1 %v744_v25  ;;  %1244 = vmatpush1.msra.mxu0 %v487_v26  ;;  %v880_v24 = vld [vmem:[#allocation2 + $0x1718] sm:$0xff]  ;;  %v879_v25 = vld [vmem:[#allocation2 + $0x1710] sm:$0xff] }
  0xf0   :  { %1315 = vmatpush1.msra.mxu1 %v743_v27  ;;  %1245 = vmatprep.subr.mxu0 %v480_v28  ;;  %v616_v26 = vld [vmem:[#allocation2 + $0xed8] sm:$0xff]  ;;  %v615_v28 = vld [vmem:[#allocation2 + $0xed0] sm:$0xff] }
  0xf1   :  { %1316 = vmatprep.subr.mxu1 %v736_v29  ;;  %1246 = vmatpush1.msra.mxu0 %v479_v30  ;;  %v872_v27 = vld [vmem:[#allocation2 + $0x16d8] sm:$0xff]  ;;  %v871_v29 = vld [vmem:[#allocation2 + $0x16d0] sm:$0xff] }
  0xf2   :  { %1317 = vmatpush1.msra.mxu1 %v735_v31  ;;  %1247 = vmatprep.subr.mxu0 %v472_v32  ;;  %v608_v30 = vld [vmem:[#allocation2 + $0xe98] sm:$0xff]  ;;  %v607_v32 = vld [vmem:[#allocation2 + $0xe90] sm:$0xff] }
  0xf3   :  { %1318 = vmatprep.subr.mxu1 %v728_v33  ;;  %1248 = vmatpush1.msra.mxu0 %v471_v34  ;;  %v864_v31 = vld [vmem:[#allocation2 + $0x1698] sm:$0xff]  ;;  %v863_v33 = vld [vmem:[#allocation2 + $0x1690] sm:$0xff] }
  0xf4   :  { %1319 = vmatpush1.msra.mxu1 %v727_v35  ;;  %1249 = vmatprep.subr.mxu0 %v464_v36  ;;  %v600_v34 = vld [vmem:[#allocation2 + $0xe58] sm:$0xff]  ;;  %v599_v36 = vld [vmem:[#allocation2 + $0xe50] sm:$0xff] }
  0xf5   :  { %1320 = vmatprep.subr.mxu1 %v720_v37  ;;  %1250 = vmatpush1.msra.mxu0 %v463_v38  ;;  %v856_v35 = vld [vmem:[#allocation2 + $0x1658] sm:$0xff]  ;;  %v855_v37 = vld [vmem:[#allocation2 + $0x1650] sm:$0xff] }
  0xf6   :  { %1321 = vmatpush1.msra.mxu1 %v719_v39  ;;  %1251 = vmatprep.subr.mxu0 %v456_v40  ;;  %v592_v38 = vld [vmem:[#allocation2 + $0xe18] sm:$0xff]  ;;  %v591_v40 = vld [vmem:[#allocation2 + $0xe10] sm:$0xff] }
  0xf7   :  { %1322 = vmatprep.subr.mxu1 %v712_v41  ;;  %1252 = vmatpush1.msra.mxu0 %v455_v42  ;;  %v848_v39 = vld [vmem:[#allocation2 + $0x1618] sm:$0xff]  ;;  %v847_v41 = vld [vmem:[#allocation2 + $0x1610] sm:$0xff] }
  0xf8   :  { %1323 = vmatpush1.msra.mxu1 %v711_v43  ;;  %1253 = vmatprep.subr.mxu0 %v448_v44  ;;  %v584_v42 = vld [vmem:[#allocation2 + $0xdd8] sm:$0xff]  ;;  %v583_v44 = vld [vmem:[#allocation2 + $0xdd0] sm:$0xff] }
  0xf9   :  { %1324 = vmatprep.subr.mxu1 %v704_v45  ;;  %1254 = vmatpush1.msra.mxu0 %v447_v46  ;;  %v840_v43 = vld [vmem:[#allocation2 + $0x15d8] sm:$0xff]  ;;  %v839_v45 = vld [vmem:[#allocation2 + $0x15d0] sm:$0xff] }
  0xfa   :  { %1325 = vmatpush1.msra.mxu1 %v703_v47  ;;  %1255 = vmatprep.subr.mxu0 %v440_v48  ;;  %v576_v46 = vld [vmem:[#allocation2 + $0xd98] sm:$0xff]  ;;  %v575_v48 = vld [vmem:[#allocation2 + $0xd90] sm:$0xff] }
  0xfb   :  { %1326 = vmatprep.subr.mxu1 %v696_v49  ;;  %1256 = vmatpush1.msra.mxu0 %v439_v50  ;;  %v832_v47 = vld [vmem:[#allocation2 + $0x1598] sm:$0xff]  ;;  %v831_v49 = vld [vmem:[#allocation2 + $0x1590] sm:$0xff] }
  0xfc   :  { %1327 = vmatpush1.msra.mxu1 %v695_v51  ;;  %1257 = vmatprep.subr.mxu0 %v432_v52  ;;  %v568_v50 = vld [vmem:[#allocation2 + $0xd58] sm:$0xff]  ;;  %v567_v52 = vld [vmem:[#allocation2 + $0xd50] sm:$0xff] }
  0xfd   :  { %1328 = vmatprep.subr.mxu1 %v688_v53  ;;  %1258 = vmatpush1.msra.mxu0 %v431_v54  ;;  %v824_v51 = vld [vmem:[#allocation2 + $0x1558] sm:$0xff]  ;;  %v823_v53 = vld [vmem:[#allocation2 + $0x1550] sm:$0xff] }
  0xfe   :  { %1329 = vmatpush1.msra.mxu1 %v687_v55  ;;  %1259 = vmatprep.subr.mxu0 %v424_v56  ;;  %v560_v54 = vld [vmem:[#allocation2 + $0xd18] sm:$0xff]  ;;  %v559_v56 = vld [vmem:[#allocation2 + $0xd10] sm:$0xff] }
  0xff   :  { %1330 = vmatprep.subr.mxu1 %v680_v57  ;;  %1260 = vmatpush1.msra.mxu0 %v423_v58  ;;  %v816_v55 = vld [vmem:[#allocation2 + $0x1518] sm:$0xff]  ;;  %v815_v57 = vld [vmem:[#allocation2 + $0x1510] sm:$0xff] }
 0x100   :  { %1331 = vmatpush1.msra.mxu1 %v679_v59  ;;  %1261 = vmatprep.subr.mxu0 %v416_v60  ;;  %v552_v58 = vld [vmem:[#allocation2 + $0xcd8] sm:$0xff]  ;;  %v551_v60 = vld [vmem:[#allocation2 + $0xcd0] sm:$0xff] }
 0x101   :  { %1332 = vmatprep.subr.mxu1 %v672_v61  ;;  %1262 = vmatpush1.msra.mxu0 %v415_v62  ;;  %v808_v59 = vld [vmem:[#allocation2 + $0x14d8] sm:$0xff]  ;;  %v807_v61 = vld [vmem:[#allocation2 + $0x14d0] sm:$0xff] }
 0x102   :  { %1333 = vmatpush1.msra.mxu1 %v671_v0  ;;  %1263 = vmatprep.subr.mxu0 %v408_v2  ;;  %v544_v62 = vld [vmem:[#allocation2 + $0xc98] sm:$0xff]  ;;  %v543_v2 = vld [vmem:[#allocation2 + $0xc90] sm:$0xff] }
 0x103   :  { %1334 = vmatprep.subr.mxu1 %v664_v3  ;;  %1264 = vmatpush1.msra.mxu0 %v407_v4  ;;  %v800_v0 = vld [vmem:[#allocation2 + $0x1498] sm:$0xff]  ;;  %v799_v3 = vld [vmem:[#allocation2 + $0x1490] sm:$0xff] }
 0x104   :  { %1335 = vmatpush1.msra.mxu1 %v663_v5  ;;  %1265 = vmatprep.subr.mxu0 %v400_v6  ;;  %v536_v4 = vld [vmem:[#allocation2 + $0xc58] sm:$0xff]  ;;  %v535_v6 = vld [vmem:[#allocation2 + $0xc50] sm:$0xff] }
 0x105   :  { %1336 = vmatprep.subr.mxu1 %v656_v8  ;;  %1266 = vmatpush1.msra.mxu0 %v399_v10  ;;  %v792_v5 = vld [vmem:[#allocation2 + $0x1458] sm:$0xff]  ;;  %v791_v8 = vld [vmem:[#allocation2 + $0x1450] sm:$0xff] }
 0x106   :  { %1337 = vmatpush1.msra.mxu1 %v655_v11  ;;  %1267 = vmatprep.subr.mxu0 %v648_v12  ;;  %v528_v10 = vld [vmem:[#allocation2 + $0xc18] sm:$0xff]  ;;  %v527_v12 = vld [vmem:[#allocation2 + $0xc10] sm:$0xff] }
 0x107   :  { %1338 = vmatprep.subr.mxu1 %v904_v13  ;;  %1268 = vmatpush2.msra.mxu0 %v647_v14  ;;  %v784_v11 = vld [vmem:[#allocation2 + $0x1418] sm:$0xff]  ;;  %v783_v13 = vld [vmem:[#allocation2 + $0x1410] sm:$0xff]  ;;  %v266_v14 = vld [vmem:[#allocation2 + $0x3e8] sm:$0xff] }
 0x108   :  { %1339 = vmatpush2.msra.mxu1 %v903_v15  ;;  %1269 = vmatprep.subr.mxu0 %v640_v16  ;;  %v6027_v15 = vld [vmem:[%s6278_s0 + $0x18] sm:$0xff]  ;;  %v522_v16 = vld [vmem:[#allocation2 + $0xbe8] sm:$0xff] }
 0x109   :  { %1340 = vmatprep.subr.mxu1 %v896_v17  ;;  %1270 = vmatpush2.msra.mxu0 %v639_v18  ;;  %v6033_v17 = vld [vmem:[%s6278_s0 + $0x10] sm:$0xff]  ;;  %v265_v18 = vld [vmem:[#allocation2 + $0x3e0] sm:$0xff] }
 0x10a   :  { %1341 = vmatpush2.msra.mxu1 %v895_v19  ;;  %1271 = vmatprep.subr.mxu0 %v632_v20  ;;  %v521_v19 = vld [vmem:[#allocation2 + $0xbe0] sm:$0xff]  ;;  %v258_v20 = vld [vmem:[#allocation2 + $0x3a8] sm:$0xff] }
 0x10b   :  { %1342 = vmatprep.subr.mxu1 %v888_v21  ;;  %1272 = vmatpush2.msra.mxu0 %v631_v22  ;;  %v514_v21 = vld [vmem:[#allocation2 + $0xba8] sm:$0xff]  ;;  %v257_v22 = vld [vmem:[#allocation2 + $0x3a0] sm:$0xff] }
 0x10c   :  { %1343 = vmatpush2.msra.mxu1 %v887_v63  ;;  %1273 = vmatprep.subr.mxu0 %v624_v23  ;;  %v513_v63 = vld [vmem:[#allocation2 + $0xba0] sm:$0xff]  ;;  %v250_v23 = vld [vmem:[#allocation2 + $0x368] sm:$0xff] }
 0x10d   :  { %1344 = vmatprep.subr.mxu1 %v880_v24  ;;  %1274 = vmatpush2.msra.mxu0 %v623_v1  ;;  %v506_v24 = vld [vmem:[#allocation2 + $0xb68] sm:$0xff]  ;;  %v249_v1 = vld [vmem:[#allocation2 + $0x360] sm:$0xff] }
 0x10e   :  { %1345 = vmatpush2.msra.mxu1 %v879_v25  ;;  %1275 = vmatprep.subr.mxu0 %v616_v26  ;;  %v505_v25 = vld [vmem:[#allocation2 + $0xb60] sm:$0xff]  ;;  %v242_v26 = vld [vmem:[#allocation2 + $0x328] sm:$0xff] }
 0x10f   :  { %1346 = vmatprep.subr.mxu1 %v872_v27  ;;  %1276 = vmatpush2.msra.mxu0 %v615_v28  ;;  %v241_v27 = vld [vmem:[#allocation2 + $0x320] sm:$0xff] }
 0x110   :  { %1347 = vmatpush2.msra.mxu1 %v871_v29  ;;  %1277 = vmatprep.subr.mxu0 %v608_v30  ;;  %v497_v28 = vld [vmem:[#allocation2 + $0xb20] sm:$0xff]  ;;  %v490_v29 = vld [vmem:[#allocation2 + $0xae8] sm:$0xff] }
 0x111   :  { %1348 = vmatprep.subr.mxu1 %v864_v31  ;;  %1278 = vmatpush2.msra.mxu0 %v607_v32  ;;  %v233_v30 = vld [vmem:[#allocation2 + $0x2e0] sm:$0xff]  ;;  %v226_v32 = vld [vmem:[#allocation2 + $0x2a8] sm:$0xff] }
 0x112   :  { %1349 = vmatpush2.msra.mxu1 %v863_v33  ;;  %1279 = vmatprep.subr.mxu0 %v600_v34  ;;  %v489_v31 = vld [vmem:[#allocation2 + $0xae0] sm:$0xff]  ;;  %v482_v33 = vld [vmem:[#allocation2 + $0xaa8] sm:$0xff] }
 0x113   :  { %1350 = vmatprep.subr.mxu1 %v856_v35  ;;  %1280 = vmatpush2.msra.mxu0 %v599_v36  ;;  %v225_v34 = vld [vmem:[#allocation2 + $0x2a0] sm:$0xff]  ;;  %v218_v36 = vld [vmem:[#allocation2 + $0x268] sm:$0xff] }
 0x114   :  { %1351 = vmatpush2.msra.mxu1 %v855_v37  ;;  %1281 = vmatprep.subr.mxu0 %v592_v38  ;;  %v481_v35 = vld [vmem:[#allocation2 + $0xaa0] sm:$0xff]  ;;  %v474_v37 = vld [vmem:[#allocation2 + $0xa68] sm:$0xff] }
 0x115   :  { %1352 = vmatprep.subr.mxu1 %v848_v39  ;;  %1282 = vmatpush2.msra.mxu0 %v591_v40  ;;  %v217_v38 = vld [vmem:[#allocation2 + $0x260] sm:$0xff]  ;;  %v210_v40 = vld [vmem:[#allocation2 + $0x228] sm:$0xff] }
 0x116   :  { %1353 = vmatpush2.msra.mxu1 %v847_v41  ;;  %1283 = vmatprep.subr.mxu0 %v584_v42  ;;  %v473_v39 = vld [vmem:[#allocation2 + $0xa60] sm:$0xff]  ;;  %v466_v41 = vld [vmem:[#allocation2 + $0xa28] sm:$0xff] }
 0x117   :  { %1354 = vmatprep.subr.mxu1 %v840_v43  ;;  %1284 = vmatpush2.msra.mxu0 %v583_v44  ;;  %v209_v42 = vld [vmem:[#allocation2 + $0x220] sm:$0xff]  ;;  %v202_v44 = vld [vmem:[#allocation2 + $0x1e8] sm:$0xff] }
 0x118   :  { %1355 = vmatpush2.msra.mxu1 %v839_v45  ;;  %1285 = vmatprep.subr.mxu0 %v576_v46  ;;  %v465_v43 = vld [vmem:[#allocation2 + $0xa20] sm:$0xff]  ;;  %v458_v45 = vld [vmem:[#allocation2 + $0x9e8] sm:$0xff] }
 0x119   :  { %1356 = vmatprep.subr.mxu1 %v832_v47  ;;  %1286 = vmatpush2.msra.mxu0 %v575_v48  ;;  %v201_v46 = vld [vmem:[#allocation2 + $0x1e0] sm:$0xff]  ;;  %v194_v48 = vld [vmem:[#allocation2 + $0x1a8] sm:$0xff] }
 0x11a   :  { %1357 = vmatpush2.msra.mxu1 %v831_v49  ;;  %1287 = vmatprep.subr.mxu0 %v568_v50  ;;  %v457_v47 = vld [vmem:[#allocation2 + $0x9e0] sm:$0xff]  ;;  %v450_v49 = vld [vmem:[#allocation2 + $0x9a8] sm:$0xff] }
 0x11b   :  { %1358 = vmatprep.subr.mxu1 %v824_v51  ;;  %1288 = vmatpush2.msra.mxu0 %v567_v52  ;;  %v193_v50 = vld [vmem:[#allocation2 + $0x1a0] sm:$0xff]  ;;  %v186_v52 = vld [vmem:[#allocation2 + $0x168] sm:$0xff] }
 0x11c   :  { %1359 = vmatpush2.msra.mxu1 %v823_v53  ;;  %1289 = vmatprep.subr.mxu0 %v560_v54  ;;  %v449_v51 = vld [vmem:[#allocation2 + $0x9a0] sm:$0xff]  ;;  %v442_v53 = vld [vmem:[#allocation2 + $0x968] sm:$0xff] }
 0x11d   :  { %1360 = vmatprep.subr.mxu1 %v816_v55  ;;  %1290 = vmatpush2.msra.mxu0 %v559_v56  ;;  %v185_v54 = vld [vmem:[#allocation2 + $0x160] sm:$0xff]  ;;  %v178_v56 = vld [vmem:[#allocation2 + $0x128] sm:$0xff] }
 0x11e   :  { %1361 = vmatpush2.msra.mxu1 %v815_v57  ;;  %1291 = vmatprep.subr.mxu0 %v552_v58  ;;  %v441_v55 = vld [vmem:[#allocation2 + $0x960] sm:$0xff]  ;;  %v434_v57 = vld [vmem:[#allocation2 + $0x928] sm:$0xff] }
 0x11f   :  { %1362 = vmatprep.subr.mxu1 %v808_v59  ;;  %1292 = vmatpush2.msra.mxu0 %v551_v60  ;;  %v177_v58 = vld [vmem:[#allocation2 + $0x120] sm:$0xff]  ;;  %v170_v60 = vld [vmem:[#allocation2 + $0xe8] sm:$0xff] }
 0x120   :  { %1363 = vmatpush2.msra.mxu1 %v807_v61  ;;  %1293 = vmatprep.subr.mxu0 %v544_v62  ;;  %v433_v59 = vld [vmem:[#allocation2 + $0x920] sm:$0xff]  ;;  %v426_v61 = vld [vmem:[#allocation2 + $0x8e8] sm:$0xff] }
 0x121   :  { %1364 = vmatprep.subr.mxu1 %v800_v0  ;;  %1294 = vmatpush2.msra.mxu0 %v543_v2  ;;  %v169_v62 = vld [vmem:[#allocation2 + $0xe0] sm:$0xff]  ;;  %v162_v2 = vld [vmem:[#allocation2 + $0xa8] sm:$0xff] }
 0x122   :  { %1365 = vmatpush2.msra.mxu1 %v799_v3  ;;  %1295 = vmatprep.subr.mxu0 %v536_v4  ;;  %v425_v0 = vld [vmem:[#allocation2 + $0x8e0] sm:$0xff]  ;;  %v418_v3 = vld [vmem:[#allocation2 + $0x8a8] sm:$0xff] }
 0x123   :  { %1366 = vmatprep.subr.mxu1 %v792_v5  ;;  %1296 = vmatpush2.msra.mxu0 %v535_v6  ;;  %v161_v4 = vld [vmem:[#allocation2 + $0xa0] sm:$0xff]  ;;  %v154_v6 = vld [vmem:[#allocation2 + $0x68] sm:$0xff] }
 0x124   :  { %1367 = vmatpush2.msra.mxu1 %v791_v8  ;;  %1297 = vmatprep.subr.mxu0 %v528_v10  ;;  %v417_v5 = vld [vmem:[#allocation2 + $0x8a0] sm:$0xff]  ;;  %v410_v8 = vld [vmem:[#allocation2 + $0x868] sm:$0xff] }
 0x125   :  { %1368 = vmatprep.subr.mxu1 %v784_v11  ;;  %1298 = vmatpush2.msra.mxu0 %v527_v12  ;;  %v153_v10 = vld [vmem:[#allocation2 + $0x60] sm:$0xff]  ;;  %v146_v12 = vld [vmem:[#allocation2 + $0x28] sm:$0xff] }
 0x126   :  { %1299 = vmatprep.mubr.f32.mxu0 %v6027_v15  ;;  %1369 = vmatpush2.msra.mxu1 %v783_v13  ;;  %v409_v11 = vld [vmem:[#allocation2 + $0x860] sm:$0xff]  ;;  %v402_v13 = vld [vmem:[#allocation2 + $0x828] sm:$0xff] }
 0x127   :  { %1300 = vmatmul.mubr.f32.vlgmr.msra.gmra.mxu0 %v6033_v17  ;;  %1370 = vmatprep.mubr.f32.mxu1 %v6013_v7  ;;  %v498_v7 = vld [vmem:[#allocation2 + $0xb28] sm:$0xff] }
 0x128   :  { %1377 = vmatprep.subr.mxu0 %v266_v14  ;;  %1448 = vmatprep.subr.mxu1 %v522_v16  ;;  %v145_v14 = vld [vmem:[#allocation2 + $0x20] sm:$0xff] }
 0x129   :  { %1371 = vmatmul.mubr.f32.vlgmr.msra.gmra.mxu1 %v6018_v9  ;;  %1378 = vmatpush1.msra.mxu0 %v265_v18  ;;  %v234_v9 = vld [vmem:[#allocation2 + $0x2e8] sm:$0xff]  ;;  %v401_v16 = vld [vmem:[#allocation2 + $0x820] sm:$0xff] }
 0x12a   :  { %1449 = vmatpush1.msra.mxu1 %v521_v19  ;;  %1379 = vmatprep.subr.mxu0 %v258_v20  ;;  %v394_v18 = vld [vmem:[#allocation2 + $0x7e8] sm:$0xff]  ;;  %v393_v20 = vld [vmem:[#allocation2 + $0x7e0] sm:$0xff] }
 0x12b   :  { %1450 = vmatprep.subr.mxu1 %v514_v21  ;;  %1380 = vmatpush1.msra.mxu0 %v257_v22  ;;  %v650_v19 = vld [vmem:[#allocation2 + $0xfe8] sm:$0xff]  ;;  %v649_v21 = vld [vmem:[#allocation2 + $0xfe0] sm:$0xff] }
 0x12c   :  { %1451 = vmatpush1.msra.mxu1 %v513_v63  ;;  %1381 = vmatprep.subr.mxu0 %v250_v23  ;;  %v386_v22 = vld [vmem:[#allocation2 + $0x7a8] sm:$0xff]  ;;  %v385_v23 = vld [vmem:[#allocation2 + $0x7a0] sm:$0xff] }
 0x12d   :  { %1452 = vmatprep.subr.mxu1 %v506_v24  ;;  %1382 = vmatpush1.msra.mxu0 %v249_v1  ;;  %v642_v63 = vld [vmem:[#allocation2 + $0xfa8] sm:$0xff]  ;;  %v641_v24 = vld [vmem:[#allocation2 + $0xfa0] sm:$0xff] }
 0x12e   :  { %1453 = vmatpush1.msra.mxu1 %v505_v25  ;;  %1383 = vmatprep.subr.mxu0 %v242_v26  ;;  %v378_v1 = vld [vmem:[#allocation2 + $0x768] sm:$0xff]  ;;  %v377_v26 = vld [vmem:[#allocation2 + $0x760] sm:$0xff] }
 0x12f   :  { %1454 = vmatprep.subr.mxu1 %v498_v7  ;;  %1384 = vmatpush1.msra.mxu0 %v241_v27  ;;  %v634_v25 = vld [vmem:[#allocation2 + $0xf68] sm:$0xff]  ;;  %v633_v7 = vld [vmem:[#allocation2 + $0xf60] sm:$0xff] }
 0x130   :  { %1455 = vmatpush1.msra.mxu1 %v497_v28  ;;  %1385 = vmatprep.subr.mxu0 %v234_v9  ;;  %v370_v27 = vld [vmem:[#allocation2 + $0x728] sm:$0xff]  ;;  %v369_v9 = vld [vmem:[#allocation2 + $0x720] sm:$0xff] }
 0x131   :  { %1456 = vmatprep.subr.mxu1 %v490_v29  ;;  %1386 = vmatpush1.msra.mxu0 %v233_v30  ;;  %v626_v28 = vld [vmem:[#allocation2 + $0xf28] sm:$0xff]  ;;  %v625_v29 = vld [vmem:[#allocation2 + $0xf20] sm:$0xff] }
 0x132   :  { %1457 = vmatpush1.msra.mxu1 %v489_v31  ;;  %1387 = vmatprep.subr.mxu0 %v226_v32  ;;  %v362_v30 = vld [vmem:[#allocation2 + $0x6e8] sm:$0xff]  ;;  %v361_v32 = vld [vmem:[#allocation2 + $0x6e0] sm:$0xff] }
 0x133   :  { %1458 = vmatprep.subr.mxu1 %v482_v33  ;;  %1388 = vmatpush1.msra.mxu0 %v225_v34  ;;  %v618_v31 = vld [vmem:[#allocation2 + $0xee8] sm:$0xff]  ;;  %v617_v33 = vld [vmem:[#allocation2 + $0xee0] sm:$0xff] }
 0x134   :  { %1459 = vmatpush1.msra.mxu1 %v481_v35  ;;  %1389 = vmatprep.subr.mxu0 %v218_v36  ;;  %v354_v34 = vld [vmem:[#allocation2 + $0x6a8] sm:$0xff]  ;;  %v353_v36 = vld [vmem:[#allocation2 + $0x6a0] sm:$0xff] }
 0x135   :  { %1460 = vmatprep.subr.mxu1 %v474_v37  ;;  %1390 = vmatpush1.msra.mxu0 %v217_v38  ;;  %v610_v35 = vld [vmem:[#allocation2 + $0xea8] sm:$0xff]  ;;  %v609_v37 = vld [vmem:[#allocation2 + $0xea0] sm:$0xff] }
 0x136   :  { %1461 = vmatpush1.msra.mxu1 %v473_v39  ;;  %1391 = vmatprep.subr.mxu0 %v210_v40  ;;  %v346_v38 = vld [vmem:[#allocation2 + $0x668] sm:$0xff]  ;;  %v345_v40 = vld [vmem:[#allocation2 + $0x660] sm:$0xff] }
 0x137   :  { %1462 = vmatprep.subr.mxu1 %v466_v41  ;;  %1392 = vmatpush1.msra.mxu0 %v209_v42  ;;  %v602_v39 = vld [vmem:[#allocation2 + $0xe68] sm:$0xff]  ;;  %v601_v41 = vld [vmem:[#allocation2 + $0xe60] sm:$0xff] }
 0x138   :  { %1463 = vmatpush1.msra.mxu1 %v465_v43  ;;  %1393 = vmatprep.subr.mxu0 %v202_v44  ;;  %v338_v42 = vld [vmem:[#allocation2 + $0x628] sm:$0xff]  ;;  %v911_v44 = vlaneseq }
 0x139   :  { %1464 = vmatprep.subr.mxu1 %v458_v45  ;;  %1394 = vmatpush1.msra.mxu0 %v201_v46  ;;  %v594_v43 = vld [vmem:[#allocation2 + $0xe28] sm:$0xff]  ;;  %v337_v45 = vld [vmem:[#allocation2 + $0x620] sm:$0xff] }
 0x13a   :  { %1465 = vmatpush1.msra.mxu1 %v457_v47  ;;  %1395 = vmatprep.subr.mxu0 %v194_v48  ;;  %v593_v46 = vld [vmem:[#allocation2 + $0xe20] sm:$0xff]  ;;  %v330_v47 = vld [vmem:[#allocation2 + $0x5e8] sm:$0xff] }
 0x13b   :  { %1466 = vmatprep.subr.mxu1 %v450_v49  ;;  %1396 = vmatpush1.msra.mxu0 %v193_v50  ;;  %v586_v48 = vld [vmem:[#allocation2 + $0xde8] sm:$0xff]  ;;  %v329_v49 = vld [vmem:[#allocation2 + $0x5e0] sm:$0xff] }
 0x13c   :  { %1467 = vmatpush1.msra.mxu1 %v449_v51  ;;  %1397 = vmatprep.subr.mxu0 %v186_v52  ;;  %v585_v50 = vld [vmem:[#allocation2 + $0xde0] sm:$0xff]  ;;  %v322_v51 = vld [vmem:[#allocation2 + $0x5a8] sm:$0xff] }
 0x13d   :  { %1468 = vmatprep.subr.mxu1 %v442_v53  ;;  %1398 = vmatpush1.msra.mxu0 %v185_v54  ;;  %v578_v52 = vld [vmem:[#allocation2 + $0xda8] sm:$0xff]  ;;  %v6038_v53 = vshrl.u32 %v911_v44, 7  ;;  %v321_v54 = vld [vmem:[#allocation2 + $0x5a0] sm:$0xff]  ;;  %v235_v44 = vld [vmem:[#allocation2 + $0x2f0] sm:$0xff] }
 0x13e   :  { %1469 = vmatpush1.msra.mxu1 %v441_v55  ;;  %1399 = vmatprep.subr.mxu0 %v178_v56  ;;  %v577_v55 = vld [vmem:[#allocation2 + $0xda0] sm:$0xff]  ;;  %v314_v56 = vld [vmem:[#allocation2 + $0x568] sm:$0xff] }
 0x13f   :  { %1470 = vmatprep.subr.mxu1 %v434_v57  ;;  %1400 = vmatpush1.msra.mxu0 %v177_v58  ;;  %v570_v57 = vld [vmem:[#allocation2 + $0xd68] sm:$0xff]  ;;  %v313_v58 = vld [vmem:[#allocation2 + $0x560] sm:$0xff] }
 0x140   :  { %1471 = vmatpush1.msra.mxu1 %v433_v59  ;;  %1401 = vmatprep.subr.mxu0 %v170_v60  ;;  %v569_v59 = vld [vmem:[#allocation2 + $0xd60] sm:$0xff]  ;;  %v306_v60 = vld [vmem:[#allocation2 + $0x528] sm:$0xff] }
 0x141   :  { %1472 = vmatprep.subr.mxu1 %v426_v61  ;;  %1402 = vmatpush1.msra.mxu0 %v169_v62  ;;  %v562_v61 = vld [vmem:[#allocation2 + $0xd28] sm:$0xff]  ;;  %v6041_v62 = vsub.s32 0, %v6038_v53 }
 0x142   :  { %1473 = vmatpush1.msra.mxu1 %v425_v0  ;;  %1403 = vmatprep.subr.mxu0 %v162_v2  ;;  %v305_v0 = vld [vmem:[#allocation2 + $0x520] sm:$0xff] }
 0x143   :  { %1474 = vmatprep.subr.mxu1 %v418_v3  ;;  %1404 = vmatpush1.msra.mxu0 %v161_v4  ;;  %v561_v2 = vld [vmem:[#allocation2 + $0xd20] sm:$0xff]  ;;  %v298_v4 = vld [vmem:[#allocation2 + $0x4e8] sm:$0xff] }
 0x144   :  { %1475 = vmatpush1.msra.mxu1 %v417_v5  ;;  %1405 = vmatprep.subr.mxu0 %v154_v6  ;;  %v6043_v3 = vld [vmem:[#allocation4] sm:$0xff]  ;;  %v554_v5 = vld [vmem:[#allocation2 + $0xce8] sm:$0xff] }
 0x145   :  { %1476 = vmatprep.subr.mxu1 %v410_v8  ;;  %1406 = vmatpush1.msra.mxu0 %v153_v10  ;;  %v297_v6 = vld [vmem:[#allocation2 + $0x4e0] sm:$0xff]  ;;  %v290_v10 = vld [vmem:[#allocation2 + $0x4a8] sm:$0xff] }
 0x146   :  { %1477 = vmatpush1.msra.mxu1 %v409_v11  ;;  %1407 = vmatprep.subr.mxu0 %v146_v12  ;;  %v553_v8 = vld [vmem:[#allocation2 + $0xce0] sm:$0xff]  ;;  %v546_v11 = vld [vmem:[#allocation2 + $0xca8] sm:$0xff]  ;;  %v914_v12 = vrot.slane %v6043_v3, %v6041_v62 }
 0x147   :  { %1478 = vmatprep.subr.mxu1 %v402_v13  ;;  %1408 = vmatpush1.msra.mxu0 %v145_v14  ;;  %v289_v13 = vld [vmem:[#allocation2 + $0x4a0] sm:$0xff] }
 0x148   :  { %1479 = vmatpush1.msra.mxu1 %v401_v16  ;;  %1409 = vmatprep.subr.mxu0 %v394_v18  ;;  %v545_v14 = vld [vmem:[#allocation2 + $0xca0] sm:$0xff]  ;;  %v282_v16 = vld [vmem:[#allocation2 + $0x468] sm:$0xff] }
 0x149   :  { %1480 = vmatprep.subr.mxu1 %v650_v19  ;;  %1410 = vmatpush2.msra.mxu0 %v393_v20  ;;  %v538_v18 = vld [vmem:[#allocation2 + $0xc68] sm:$0xff]  ;;  %v281_v19 = vld [vmem:[#allocation2 + $0x460] sm:$0xff] }
 0x14a   :  { %1481 = vmatpush2.msra.mxu1 %v649_v21  ;;  %1411 = vmatprep.subr.mxu0 %v386_v22  ;;  %v537_v20 = vld [vmem:[#allocation2 + $0xc60] sm:$0xff]  ;;  %v274_v22 = vld [vmem:[#allocation2 + $0x428] sm:$0xff] }
 0x14b   :  { %1482 = vmatprep.subr.mxu1 %v642_v63  ;;  %1412 = vmatpush2.msra.mxu0 %v385_v23  ;;  %v530_v63 = vld [vmem:[#allocation2 + $0xc28] sm:$0xff] }
 0x14c   :  { %1483 = vmatpush2.msra.mxu1 %v641_v24  ;;  %1413 = vmatprep.subr.mxu0 %v378_v1  ;;  %v273_v24 = vld [vmem:[#allocation2 + $0x420] sm:$0xff] }
 0x14d   :  { %1484 = vmatprep.subr.mxu1 %v634_v25  ;;  %1414 = vmatpush2.msra.mxu0 %v377_v26  ;;  %v529_v25 = vld [vmem:[#allocation2 + $0xc20] sm:$0xff] }
 0x14e   :  { %1485 = vmatpush2.msra.mxu1 %v633_v7  ;;  %1415 = vmatprep.subr.mxu0 %v370_v27  ;;  %v778_v7 = vld [vmem:[#allocation2 + $0x13e8] sm:$0xff] }
 0x14f   :  { %1486 = vmatprep.subr.mxu1 %v626_v28  ;;  %1416 = vmatpush2.msra.mxu0 %v369_v9  ;;  %v6052_v27 = vld [vmem:[%s6278_s0 + $0x8] sm:$0xff]  ;;  %v268_v28 = vld [vmem:[#allocation2 + $0x3f8] sm:$0xff]  ;;  %v6058_v9 = vld [vmem:[%s6278_s0] sm:$0xff] }
 0x150   :  { %1487 = vmatpush2.msra.mxu1 %v625_v29  ;;  %1417 = vmatprep.subr.mxu0 %v362_v30  ;;  %v777_v29 = vld [vmem:[#allocation2 + $0x13e0] sm:$0xff]  ;;  %v267_v30 = vld [vmem:[#allocation2 + $0x3f0] sm:$0xff] }
 0x151   :  { %1488 = vmatprep.subr.mxu1 %v618_v31  ;;  %1418 = vmatpush2.msra.mxu0 %v361_v32  ;;  %v770_v31 = vld [vmem:[#allocation2 + $0x13a8] sm:$0xff]  ;;  %v260_v32 = vld [vmem:[#allocation2 + $0x3b8] sm:$0xff] }
 0x152   :  { %1489 = vmatpush2.msra.mxu1 %v617_v33  ;;  %1419 = vmatprep.subr.mxu0 %v354_v34  ;;  %v769_v33 = vld [vmem:[#allocation2 + $0x13a0] sm:$0xff]  ;;  %v259_v34 = vld [vmem:[#allocation2 + $0x3b0] sm:$0xff] }
 0x153   :  { %1490 = vmatprep.subr.mxu1 %v610_v35  ;;  %1420 = vmatpush2.msra.mxu0 %v353_v36  ;;  %v762_v35 = vld [vmem:[#allocation2 + $0x1368] sm:$0xff]  ;;  %v252_v36 = vld [vmem:[#allocation2 + $0x378] sm:$0xff] }
 0x154   :  { %1491 = vmatpush2.msra.mxu1 %v609_v37  ;;  %1421 = vmatprep.subr.mxu0 %v346_v38  ;;  %v761_v37 = vld [vmem:[#allocation2 + $0x1360] sm:$0xff]  ;;  %v251_v38 = vld [vmem:[#allocation2 + $0x370] sm:$0xff] }
 0x155   :  { %1492 = vmatprep.subr.mxu1 %v602_v39  ;;  %1422 = vmatpush2.msra.mxu0 %v345_v40  ;;  %v754_v39 = vld [vmem:[#allocation2 + $0x1328] sm:$0xff]  ;;  %v753_v40 = vld [vmem:[#allocation2 + $0x1320] sm:$0xff] }
 0x156   :  { %1493 = vmatpush2.msra.mxu1 %v601_v41  ;;  %1423 = vmatprep.subr.mxu0 %v338_v42  ;;  %v243_v41 = vld [vmem:[#allocation2 + $0x330] sm:$0xff]  ;;  %v236_v42 = vld [vmem:[#allocation2 + $0x2f8] sm:$0xff] }
 0x157   :  { %1494 = vmatprep.subr.mxu1 %v594_v43  ;;  %1424 = vmatpush2.msra.mxu0 %v337_v45  ;;  %v745_v43 = vld [vmem:[#allocation2 + $0x12e0] sm:$0xff]  ;;  %v738_v45 = vld [vmem:[#allocation2 + $0x12a8] sm:$0xff] }
 0x158   :  { %1495 = vmatpush2.msra.mxu1 %v593_v46  ;;  %1425 = vmatprep.subr.mxu0 %v330_v47  ;;  %v228_v46 = vld [vmem:[#allocation2 + $0x2b8] sm:$0xff]  ;;  %v737_v47 = vld [vmem:[#allocation2 + $0x12a0] sm:$0xff] }
 0x159   :  { %1496 = vmatprep.subr.mxu1 %v586_v48  ;;  %1426 = vmatpush2.msra.mxu0 %v329_v49  ;;  %v227_v48 = vld [vmem:[#allocation2 + $0x2b0] sm:$0xff]  ;;  %v730_v49 = vld [vmem:[#allocation2 + $0x1268] sm:$0xff] }
 0x15a   :  { %1497 = vmatpush2.msra.mxu1 %v585_v50  ;;  %1427 = vmatprep.subr.mxu0 %v322_v51  ;;  %v220_v50 = vld [vmem:[#allocation2 + $0x278] sm:$0xff]  ;;  %v729_v51 = vld [vmem:[#allocation2 + $0x1260] sm:$0xff] }
 0x15b   :  { %1498 = vmatprep.subr.mxu1 %v578_v52  ;;  %1428 = vmatpush2.msra.mxu0 %v321_v54  ;;  %v219_v52 = vld [vmem:[#allocation2 + $0x270] sm:$0xff]  ;;  %v722_v54 = vld [vmem:[#allocation2 + $0x1228] sm:$0xff] }
 0x15c   :  { %1499 = vmatpush2.msra.mxu1 %v577_v55  ;;  %1429 = vmatprep.subr.mxu0 %v314_v56  ;;  %v212_v55 = vld [vmem:[#allocation2 + $0x238] sm:$0xff]  ;;  %v721_v56 = vld [vmem:[#allocation2 + $0x1220] sm:$0xff] }
 0x15d   :  { %1500 = vmatprep.subr.mxu1 %v570_v57  ;;  %1430 = vmatpush2.msra.mxu0 %v313_v58  ;;  %v211_v57 = vld [vmem:[#allocation2 + $0x230] sm:$0xff]  ;;  %v714_v58 = vld [vmem:[#allocation2 + $0x11e8] sm:$0xff] }
 0x15e   :  { %1501 = vmatpush2.msra.mxu1 %v569_v59  ;;  %1431 = vmatprep.subr.mxu0 %v306_v60  ;;  %v204_v59 = vld [vmem:[#allocation2 + $0x1f8] sm:$0xff]  ;;  %v713_v60 = vld [vmem:[#allocation2 + $0x11e0] sm:$0xff] }
 0x15f   :  { %1502 = vmatprep.subr.mxu1 %v562_v61  ;;  %1432 = vmatpush2.msra.mxu0 %v305_v0  ;;  %v203_v61 = vld [vmem:[#allocation2 + $0x1f0] sm:$0xff]  ;;  %v706_v0 = vld [vmem:[#allocation2 + $0x11a8] sm:$0xff] }
 0x160   :  { %1503 = vmatpush2.msra.mxu1 %v561_v2  ;;  %1433 = vmatprep.subr.mxu0 %v298_v4  ;;  %v196_v2 = vld [vmem:[#allocation2 + $0x1b8] sm:$0xff]  ;;  %v705_v4 = vld [vmem:[#allocation2 + $0x11a0] sm:$0xff] }
 0x161   :  { %1504 = vmatprep.subr.mxu1 %v554_v5  ;;  %1434 = vmatpush2.msra.mxu0 %v297_v6  ;;  %v195_v5 = vld [vmem:[#allocation2 + $0x1b0] sm:$0xff]  ;;  %v698_v6 = vld [vmem:[#allocation2 + $0x1168] sm:$0xff] }
 0x162   :  { %1505 = vmatpush2.msra.mxu1 %v553_v8  ;;  %1435 = vmatprep.subr.mxu0 %v290_v10  ;;  %v188_v8 = vld [vmem:[#allocation2 + $0x178] sm:$0xff]  ;;  %v697_v10 = vld [vmem:[#allocation2 + $0x1160] sm:$0xff] }
 0x163   :  { %1506 = vmatprep.subr.mxu1 %v546_v11  ;;  %v1017_v21 = vpop.f32.mrf.mxu0  ;;  %1436 = vmatpush2.msra.mxu0 %v289_v13  ;;  %v187_v11 = vld [vmem:[#allocation2 + $0x170] sm:$0xff]  ;;  %v180_v13 = vld [vmem:[#allocation2 + $0x138] sm:$0xff] }
 0x164   :  { %1507 = vmatpush2.msra.mxu1 %v545_v14  ;;  %v1018_v23 = vadd.f32 %v1017_v21, %v914_v12  ;;  %1437 = vmatprep.subr.mxu0 %v282_v16  ;;  %v690_v12 = vld [vmem:[#allocation2 + $0x1128] sm:$0xff]  ;;  %v689_v14 = vld [vmem:[#allocation2 + $0x1120] sm:$0xff]  ;;  %v179_v16 = vld [vmem:[#allocation2 + $0x130] sm:$0xff] }
 0x165   :  { %1508 = vmatprep.subr.mxu1 %v538_v18  ;;  %v1088_v1 = vpop.f32.mrf.mxu1  ;;  %1438 = vmatpush2.msra.mxu0 %v281_v19  ;;  %v682_v18 = vld [vmem:[#allocation2 + $0x10e8] sm:$0xff]  ;;  %v172_v19 = vld [vmem:[#allocation2 + $0xf8] sm:$0xff]  ;;  %v171_v21 = vld [vmem:[#allocation2 + $0xf0] sm:$0xff] }
 0x166   :  { %1509 = vmatpush2.msra.mxu1 %v537_v20  ;;  %v6047_v26 = vadd.f32 %v1088_v1, %v1018_v23  ;;  %1439 = vmatprep.subr.mxu0 %v274_v22  ;;  %v681_v20 = vld [vmem:[#allocation2 + $0x10e0] sm:$0xff]  ;;  %v674_v22 = vld [vmem:[#allocation2 + $0x10a8] sm:$0xff] }
 0x167   :  { %1510 = vmatprep.subr.mxu1 %v530_v63  ;;  %1440 = vmatpush2.msra.mxu0 %v273_v24  ;;  %v164_v63 = vld [vmem:[#allocation2 + $0xb8] sm:$0xff]  ;;  %v673_v23 = vld [vmem:[#allocation2 + $0x10a0] sm:$0xff]  ;;  %v163_v24 = vld [vmem:[#allocation2 + $0xb0] sm:$0xff] }
 0x168   :  { %1441 = vmatprep.mubr.f32.mxu0 %v6052_v27  ;;  %1511 = vmatpush2.msra.mxu1 %v529_v25  ;;  %v666_v1 = vld [vmem:[#allocation2 + $0x1068] sm:$0xff]  ;;  %v156_v25 = vld [vmem:[#allocation2 + $0x78] sm:$0xff] }
 0x169   :  { %1442 = vmatmul.mubr.f32.vlgmr.msra.gmra.mxu0 %v6058_v9  ;;  %1512 = vmatprep.mubr.f32.mxu1 %v6027_v15  ;;  %v244_v15 = vld [vmem:[#allocation2 + $0x338] sm:$0xff] }
 0x16a   :  { %1519 = vmatprep.subr.mxu0 %v778_v7  ;;  %1590 = vmatprep.subr.mxu1 %v268_v28  ;;  %v665_v7 = vld [vmem:[#allocation2 + $0x1060] sm:$0xff]  ;;  %v155_v28 = vld [vmem:[#allocation2 + $0x70] sm:$0xff] }
 0x16b   :  { %1513 = vmatmul.mubr.f32.vlgmr.msra.gmra.mxu1 %v6033_v17  ;;  %1520 = vmatpush1.msra.mxu0 %v777_v29  ;;  %v746_v17 = vld [vmem:[#allocation2 + $0x12e8] sm:$0xff] }
 0x16c   :  { %1591 = vmatpush1.msra.mxu1 %v267_v30  ;;  %1521 = vmatprep.subr.mxu0 %v770_v31  ;;  %v658_v29 = vld [vmem:[#allocation2 + $0x1028] sm:$0xff]  ;;  %v148_v30 = vld [vmem:[#allocation2 + $0x38] sm:$0xff]  ;;  %v657_v31 = vld [vmem:[#allocation2 + $0x1020] sm:$0xff] }
 0x16d   :  { %1592 = vmatprep.subr.mxu1 %v260_v32  ;;  %1522 = vmatpush1.msra.mxu0 %v769_v33  ;;  %v147_v32 = vld [vmem:[#allocation2 + $0x30] sm:$0xff]  ;;  %v906_v33 = vld [vmem:[#allocation2 + $0x17e8] sm:$0xff] }
 0x16e   :  { %1593 = vmatpush1.msra.mxu1 %v259_v34  ;;  %1523 = vmatprep.subr.mxu0 %v762_v35  ;;  %v396_v34 = vld [vmem:[#allocation2 + $0x7f8] sm:$0xff]  ;;  %v905_v35 = vld [vmem:[#allocation2 + $0x17e0] sm:$0xff] }
 0x16f   :  { %1594 = vmatprep.subr.mxu1 %v252_v36  ;;  %1524 = vmatpush1.msra.mxu0 %v761_v37  ;;  %v395_v36 = vld [vmem:[#allocation2 + $0x7f0] sm:$0xff]  ;;  %v898_v37 = vld [vmem:[#allocation2 + $0x17a8] sm:$0xff] }
 0x170   :  { %1595 = vmatpush1.msra.mxu1 %v251_v38  ;;  %1525 = vmatprep.subr.mxu0 %v754_v39  ;;  %v388_v38 = vld [vmem:[#allocation2 + $0x7b8] sm:$0xff]  ;;  %v897_v39 = vld [vmem:[#allocation2 + $0x17a0] sm:$0xff] }
 0x171   :  { %1596 = vmatprep.subr.mxu1 %v244_v15  ;;  %1526 = vmatpush1.msra.mxu0 %v753_v40  ;;  %v387_v15 = vld [vmem:[#allocation2 + $0x7b0] sm:$0xff]  ;;  %v890_v40 = vld [vmem:[#allocation2 + $0x1768] sm:$0xff] }
 0x172   :  { %1597 = vmatpush1.msra.mxu1 %v243_v41  ;;  %1527 = vmatprep.subr.mxu0 %v746_v17  ;;  %v380_v41 = vld [vmem:[#allocation2 + $0x778] sm:$0xff]  ;;  %v889_v17 = vld [vmem:[#allocation2 + $0x1760] sm:$0xff] }
 0x173   :  { %1598 = vmatprep.subr.mxu1 %v236_v42  ;;  %1528 = vmatpush1.msra.mxu0 %v745_v43  ;;  %v379_v42 = vld [vmem:[#allocation2 + $0x770] sm:$0xff]  ;;  %v882_v43 = vld [vmem:[#allocation2 + $0x1728] sm:$0xff] }
 0x174   :  { %1599 = vmatpush1.msra.mxu1 %v235_v44  ;;  %1529 = vmatprep.subr.mxu0 %v738_v45  ;;  %v372_v44 = vld [vmem:[#allocation2 + $0x738] sm:$0xff]  ;;  %v881_v45 = vld [vmem:[#allocation2 + $0x1720] sm:$0xff] }
 0x175   :  { %1600 = vmatprep.subr.mxu1 %v228_v46  ;;  %1530 = vmatpush1.msra.mxu0 %v737_v47  ;;  %v371_v46 = vld [vmem:[#allocation2 + $0x730] sm:$0xff]  ;;  %v874_v47 = vld [vmem:[#allocation2 + $0x16e8] sm:$0xff] }
 0x176   :  { %1601 = vmatpush1.msra.mxu1 %v227_v48  ;;  %1531 = vmatprep.subr.mxu0 %v730_v49  ;;  %v364_v48 = vld [vmem:[#allocation2 + $0x6f8] sm:$0xff]  ;;  %v873_v49 = vld [vmem:[#allocation2 + $0x16e0] sm:$0xff] }
 0x177   :  { %1602 = vmatprep.subr.mxu1 %v220_v50  ;;  %1532 = vmatpush1.msra.mxu0 %v729_v51  ;;  %v363_v50 = vld [vmem:[#allocation2 + $0x6f0] sm:$0xff]  ;;  %v866_v51 = vld [vmem:[#allocation2 + $0x16a8] sm:$0xff] }
 0x178   :  { %1603 = vmatpush1.msra.mxu1 %v219_v52  ;;  %1533 = vmatprep.subr.mxu0 %v722_v54  ;;  %v356_v52 = vld [vmem:[#allocation2 + $0x6b8] sm:$0xff]  ;;  %v865_v54 = vld [vmem:[#allocation2 + $0x16a0] sm:$0xff] }
 0x179   :  { %1604 = vmatprep.subr.mxu1 %v212_v55  ;;  %1534 = vmatpush1.msra.mxu0 %v721_v56  ;;  %v355_v55 = vld [vmem:[#allocation2 + $0x6b0] sm:$0xff]  ;;  %v858_v56 = vld [vmem:[#allocation2 + $0x1668] sm:$0xff] }
 0x17a   :  { %1605 = vmatpush1.msra.mxu1 %v211_v57  ;;  %1535 = vmatprep.subr.mxu0 %v714_v58  ;;  %v348_v57 = vld [vmem:[#allocation2 + $0x678] sm:$0xff]  ;;  %v857_v58 = vld [vmem:[#allocation2 + $0x1660] sm:$0xff] }
 0x17b   :  { %1606 = vmatprep.subr.mxu1 %v204_v59  ;;  %1536 = vmatpush1.msra.mxu0 %v713_v60  ;;  %v347_v59 = vld [vmem:[#allocation2 + $0x670] sm:$0xff]  ;;  %v850_v60 = vld [vmem:[#allocation2 + $0x1628] sm:$0xff] }
 0x17c   :  { %1607 = vmatpush1.msra.mxu1 %v203_v61  ;;  %1537 = vmatprep.subr.mxu0 %v706_v0  ;;  %v340_v61 = vld [vmem:[#allocation2 + $0x638] sm:$0xff]  ;;  %v849_v0 = vld [vmem:[#allocation2 + $0x1620] sm:$0xff] }
 0x17d   :  { %1608 = vmatprep.subr.mxu1 %v196_v2  ;;  %1538 = vmatpush1.msra.mxu0 %v705_v4  ;;  %v339_v2 = vld [vmem:[#allocation2 + $0x630] sm:$0xff]  ;;  %v842_v4 = vld [vmem:[#allocation2 + $0x15e8] sm:$0xff] }
 0x17e   :  { %1609 = vmatpush1.msra.mxu1 %v195_v5  ;;  %1539 = vmatprep.subr.mxu0 %v698_v6  ;;  %v332_v5 = vld [vmem:[#allocation2 + $0x5f8] sm:$0xff]  ;;  %v841_v6 = vld [vmem:[#allocation2 + $0x15e0] sm:$0xff] }
 0x17f   :  { %1610 = vmatprep.subr.mxu1 %v188_v8  ;;  %1540 = vmatpush1.msra.mxu0 %v697_v10  ;;  %v331_v8 = vld [vmem:[#allocation2 + $0x5f0] sm:$0xff]  ;;  %v834_v10 = vld [vmem:[#allocation2 + $0x15a8] sm:$0xff] }
 0x180   :  { %1611 = vmatpush1.msra.mxu1 %v187_v11  ;;  %1541 = vmatprep.subr.mxu0 %v690_v12  ;;  %v324_v11 = vld [vmem:[#allocation2 + $0x5b8] sm:$0xff]  ;;  %v833_v12 = vld [vmem:[#allocation2 + $0x15a0] sm:$0xff] }
 0x181   :  { %1612 = vmatprep.subr.mxu1 %v180_v13  ;;  %1542 = vmatpush1.msra.mxu0 %v689_v14  ;;  %v323_v13 = vld [vmem:[#allocation2 + $0x5b0] sm:$0xff]  ;;  %v826_v14 = vld [vmem:[#allocation2 + $0x1568] sm:$0xff] }
 0x182   :  { %1613 = vmatpush1.msra.mxu1 %v179_v16  ;;  %1543 = vmatprep.subr.mxu0 %v682_v18  ;;  %v316_v16 = vld [vmem:[#allocation2 + $0x578] sm:$0xff]  ;;  %v825_v18 = vld [vmem:[#allocation2 + $0x1560] sm:$0xff] }
 0x183   :  { %1614 = vmatprep.subr.mxu1 %v172_v19  ;;  %1544 = vmatpush1.msra.mxu0 %v681_v20  ;;  %v315_v19 = vld [vmem:[#allocation2 + $0x570] sm:$0xff]  ;;  %v818_v20 = vld [vmem:[#allocation2 + $0x1528] sm:$0xff] }
 0x184   :  { %1615 = vmatpush1.msra.mxu1 %v171_v21  ;;  %1545 = vmatprep.subr.mxu0 %v674_v22  ;;  %v308_v21 = vld [vmem:[#allocation2 + $0x538] sm:$0xff]  ;;  %v817_v22 = vld [vmem:[#allocation2 + $0x1520] sm:$0xff] }
 0x185   :  { %1616 = vmatprep.subr.mxu1 %v164_v63  ;;  %1546 = vmatpush1.msra.mxu0 %v673_v23  ;;  %v307_v63 = vld [vmem:[#allocation2 + $0x530] sm:$0xff]  ;;  %v810_v23 = vld [vmem:[#allocation2 + $0x14e8] sm:$0xff] }
 0x186   :  { %1617 = vmatpush1.msra.mxu1 %v163_v24  ;;  %1547 = vmatprep.subr.mxu0 %v666_v1  ;;  %v300_v24 = vld [vmem:[#allocation2 + $0x4f8] sm:$0xff]  ;;  %v809_v1 = vld [vmem:[#allocation2 + $0x14e0] sm:$0xff] }
 0x187   :  { %1618 = vmatprep.subr.mxu1 %v156_v25  ;;  %1548 = vmatpush1.msra.mxu0 %v665_v7  ;;  %v299_v25 = vld [vmem:[#allocation2 + $0x4f0] sm:$0xff]  ;;  %v802_v7 = vld [vmem:[#allocation2 + $0x14a8] sm:$0xff] }
 0x188   :  { %1619 = vmatpush1.msra.mxu1 %v155_v28  ;;  %1549 = vmatprep.subr.mxu0 %v658_v29  ;;  %v292_v28 = vld [vmem:[#allocation2 + $0x4b8] sm:$0xff]  ;;  %v6063_v29 = vpop.f32.mrf.mxu0 }
 0x189   :  { %1620 = vmatprep.subr.mxu1 %v148_v30  ;;  %1550 = vmatpush1.msra.mxu0 %v657_v31  ;;  %v801_v30 = vld [vmem:[#allocation2 + $0x14a0] sm:$0xff]  ;;  %v291_v31 = vld [vmem:[#allocation2 + $0x4b0] sm:$0xff] }
 0x18a   :  { %1621 = vmatpush1.msra.mxu1 %v147_v32  ;;  %1551 = vmatprep.subr.mxu0 %v906_v33  ;;  %v794_v32 = vld [vmem:[#allocation2 + $0x1468] sm:$0xff]  ;;  %v284_v33 = vld [vmem:[#allocation2 + $0x478] sm:$0xff] }
 0x18b   :  { %1622 = vmatprep.subr.mxu1 %v396_v34  ;;  %1552 = vmatpush2.msra.mxu0 %v905_v35  ;;  %v793_v34 = vld [vmem:[#allocation2 + $0x1460] sm:$0xff]  ;;  %v283_v35 = vld [vmem:[#allocation2 + $0x470] sm:$0xff] }
 0x18c   :  { %1623 = vmatpush2.msra.mxu1 %v395_v36  ;;  %1553 = vmatprep.subr.mxu0 %v898_v37  ;;  %v786_v37 = vld [vmem:[#allocation2 + $0x1428] sm:$0xff] }
 0x18d   :  { %1624 = vmatprep.subr.mxu1 %v388_v38  ;;  %1554 = vmatpush2.msra.mxu0 %v897_v39  ;;  %v276_v38 = vld [vmem:[#allocation2 + $0x438] sm:$0xff] }
 0x18e   :  { %1625 = vmatpush2.msra.mxu1 %v387_v15  ;;  %1555 = vmatprep.subr.mxu0 %v890_v40  ;;  %v785_v15 = vld [vmem:[#allocation2 + $0x1420] sm:$0xff]  ;;  %v275_v40 = vld [vmem:[#allocation2 + $0x430] sm:$0xff] }
 0x18f   :  { %1626 = vmatprep.subr.mxu1 %v380_v41  ;;  %1556 = vmatpush2.msra.mxu0 %v889_v17  ;;  %v524_v41 = vld [vmem:[#allocation2 + $0xbf8] sm:$0xff]  ;;  %v6071_v17 = vld [vmem:[%s6278_s0 + $0x28] sm:$0xff] }
 0x190   :  { %1627 = vmatpush2.msra.mxu1 %v379_v42  ;;  %1557 = vmatprep.subr.mxu0 %v882_v43  ;;  %v780_v42 = vld [vmem:[#allocation2 + $0x13f8] sm:$0xff]  ;;  %v523_v43 = vld [vmem:[#allocation2 + $0xbf0] sm:$0xff] }
 0x191   :  { %1628 = vmatprep.subr.mxu1 %v372_v44  ;;  %1558 = vmatpush2.msra.mxu0 %v881_v45  ;;  %v779_v44 = vld [vmem:[#allocation2 + $0x13f0] sm:$0xff]  ;;  %v516_v45 = vld [vmem:[#allocation2 + $0xbb8] sm:$0xff] }
 0x192   :  { %1629 = vmatpush2.msra.mxu1 %v371_v46  ;;  %1559 = vmatprep.subr.mxu0 %v874_v47  ;;  %v772_v46 = vld [vmem:[#allocation2 + $0x13b8] sm:$0xff]  ;;  %v515_v47 = vld [vmem:[#allocation2 + $0xbb0] sm:$0xff] }
 0x193   :  { %1630 = vmatprep.subr.mxu1 %v364_v48  ;;  %1560 = vmatpush2.msra.mxu0 %v873_v49  ;;  %v771_v48 = vld [vmem:[#allocation2 + $0x13b0] sm:$0xff]  ;;  %v508_v49 = vld [vmem:[#allocation2 + $0xb78] sm:$0xff] }
 0x194   :  { %1631 = vmatpush2.msra.mxu1 %v363_v50  ;;  %1561 = vmatprep.subr.mxu0 %v866_v51  ;;  %v764_v50 = vld [vmem:[#allocation2 + $0x1378] sm:$0xff]  ;;  %v507_v51 = vld [vmem:[#allocation2 + $0xb70] sm:$0xff] }
 0x195   :  { %1632 = vmatprep.subr.mxu1 %v356_v52  ;;  %1562 = vmatpush2.msra.mxu0 %v865_v54  ;;  %v763_v52 = vld [vmem:[#allocation2 + $0x1370] sm:$0xff]  ;;  %v500_v54 = vld [vmem:[#allocation2 + $0xb38] sm:$0xff] }
 0x196   :  { %1633 = vmatpush2.msra.mxu1 %v355_v55  ;;  %1563 = vmatprep.subr.mxu0 %v858_v56  ;;  %v499_v55 = vld [vmem:[#allocation2 + $0xb30] sm:$0xff] }
 0x197   :  { %1634 = vmatprep.subr.mxu1 %v348_v57  ;;  %1564 = vmatpush2.msra.mxu0 %v857_v58  ;;  %v755_v56 = vld [vmem:[#allocation2 + $0x1330] sm:$0xff]  ;;  %v748_v57 = vld [vmem:[#allocation2 + $0x12f8] sm:$0xff] }
 0x198   :  { %1635 = vmatpush2.msra.mxu1 %v347_v59  ;;  %1565 = vmatprep.subr.mxu0 %v850_v60  ;;  %v491_v58 = vld [vmem:[#allocation2 + $0xaf0] sm:$0xff]  ;;  %v484_v60 = vld [vmem:[#allocation2 + $0xab8] sm:$0xff] }
 0x199   :  { %1636 = vmatprep.subr.mxu1 %v340_v61  ;;  %1566 = vmatpush2.msra.mxu0 %v849_v0  ;;  %v747_v59 = vld [vmem:[#allocation2 + $0x12f0] sm:$0xff]  ;;  %v740_v61 = vld [vmem:[#allocation2 + $0x12b8] sm:$0xff] }
 0x19a   :  { %1637 = vmatpush2.msra.mxu1 %v339_v2  ;;  %1567 = vmatprep.subr.mxu0 %v842_v4  ;;  %v483_v0 = vld [vmem:[#allocation2 + $0xab0] sm:$0xff]  ;;  %v476_v4 = vld [vmem:[#allocation2 + $0xa78] sm:$0xff] }
 0x19b   :  { %1638 = vmatprep.subr.mxu1 %v332_v5  ;;  %1568 = vmatpush2.msra.mxu0 %v841_v6  ;;  %v739_v2 = vld [vmem:[#allocation2 + $0x12b0] sm:$0xff]  ;;  %v732_v5 = vld [vmem:[#allocation2 + $0x1278] sm:$0xff] }
 0x19c   :  { %1639 = vmatpush2.msra.mxu1 %v331_v8  ;;  %1569 = vmatprep.subr.mxu0 %v834_v10  ;;  %v475_v6 = vld [vmem:[#allocation2 + $0xa70] sm:$0xff]  ;;  %v468_v10 = vld [vmem:[#allocation2 + $0xa38] sm:$0xff] }
 0x19d   :  { %1640 = vmatprep.subr.mxu1 %v324_v11  ;;  %1570 = vmatpush2.msra.mxu0 %v833_v12  ;;  %v731_v8 = vld [vmem:[#allocation2 + $0x1270] sm:$0xff]  ;;  %v724_v11 = vld [vmem:[#allocation2 + $0x1238] sm:$0xff] }
 0x19e   :  { %1641 = vmatpush2.msra.mxu1 %v323_v13  ;;  %1571 = vmatprep.subr.mxu0 %v826_v14  ;;  %v467_v12 = vld [vmem:[#allocation2 + $0xa30] sm:$0xff]  ;;  %v460_v14 = vld [vmem:[#allocation2 + $0x9f8] sm:$0xff] }
 0x19f   :  { %1642 = vmatprep.subr.mxu1 %v316_v16  ;;  %1572 = vmatpush2.msra.mxu0 %v825_v18  ;;  %v723_v13 = vld [vmem:[#allocation2 + $0x1230] sm:$0xff]  ;;  %v716_v16 = vld [vmem:[#allocation2 + $0x11f8] sm:$0xff] }
 0x1a0   :  { %1643 = vmatpush2.msra.mxu1 %v315_v19  ;;  %1573 = vmatprep.subr.mxu0 %v818_v20  ;;  %v459_v18 = vld [vmem:[#allocation2 + $0x9f0] sm:$0xff]  ;;  %v452_v20 = vld [vmem:[#allocation2 + $0x9b8] sm:$0xff] }
 0x1a1   :  { %1644 = vmatprep.subr.mxu1 %v308_v21  ;;  %1574 = vmatpush2.msra.mxu0 %v817_v22  ;;  %v715_v19 = vld [vmem:[#allocation2 + $0x11f0] sm:$0xff]  ;;  %v708_v21 = vld [vmem:[#allocation2 + $0x11b8] sm:$0xff] }
 0x1a2   :  { %1645 = vmatpush2.msra.mxu1 %v307_v63  ;;  %1575 = vmatprep.subr.mxu0 %v810_v23  ;;  %v451_v22 = vld [vmem:[#allocation2 + $0x9b0] sm:$0xff]  ;;  %v444_v23 = vld [vmem:[#allocation2 + $0x978] sm:$0xff] }
 0x1a3   :  { %1646 = vmatprep.subr.mxu1 %v300_v24  ;;  %1576 = vmatpush2.msra.mxu0 %v809_v1  ;;  %v707_v63 = vld [vmem:[#allocation2 + $0x11b0] sm:$0xff]  ;;  %v700_v24 = vld [vmem:[#allocation2 + $0x1178] sm:$0xff] }
 0x1a4   :  { %1647 = vmatpush2.msra.mxu1 %v299_v25  ;;  %1577 = vmatprep.subr.mxu0 %v802_v7  ;;  %v443_v1 = vld [vmem:[#allocation2 + $0x970] sm:$0xff]  ;;  %v436_v7 = vld [vmem:[#allocation2 + $0x938] sm:$0xff] }
 0x1a5   :  { %1648 = vmatprep.subr.mxu1 %v292_v28  ;;  %v1159_v36 = vpop.f32.mrf.mxu0  ;;  %1578 = vmatpush2.msra.mxu0 %v801_v30  ;;  %v699_v25 = vld [vmem:[#allocation2 + $0x1170] sm:$0xff]  ;;  %v692_v28 = vld [vmem:[#allocation2 + $0x1138] sm:$0xff] }
 0x1a6   :  { %1649 = vmatpush2.msra.mxu1 %v291_v31  ;;  %v6066_v39 = vadd.f32 %v1159_v36, %v6047_v26  ;;  %1579 = vmatprep.subr.mxu0 %v794_v32  ;;  %v6077_v26 = vld [vmem:[%s6278_s0 + $0x20] sm:$0xff]  ;;  %v435_v30 = vld [vmem:[#allocation2 + $0x930] sm:$0xff]  ;;  %v428_v32 = vld [vmem:[#allocation2 + $0x8f8] sm:$0xff] }
 0x1a7   :  { %1650 = vmatprep.subr.mxu1 %v284_v33  ;;  %1580 = vmatpush2.msra.mxu0 %v793_v34  ;;  %v691_v31 = vld [vmem:[#allocation2 + $0x1130] sm:$0xff]  ;;  %v684_v33 = vld [vmem:[#allocation2 + $0x10f8] sm:$0xff] }
 0x1a8   :  { %1651 = vmatpush2.msra.mxu1 %v283_v35  ;;  %1581 = vmatprep.subr.mxu0 %v786_v37  ;;  %v427_v34 = vld [vmem:[#allocation2 + $0x8f0] sm:$0xff]  ;;  %v420_v36 = vld [vmem:[#allocation2 + $0x8b8] sm:$0xff]  ;;  %vm1803_vm2 = vcmp.ge.f32.partialorder %v6066_v39, 0.0 }
 0x1a9   :  { %1652 = vmatprep.subr.mxu1 %v276_v38  ;;  %1582 = vmatpush2.msra.mxu0 %v785_v15  ;;  %v683_v35 = vld [vmem:[#allocation2 + $0x10f0] sm:$0xff]  ;;  %v676_v37 = vld [vmem:[#allocation2 + $0x10b8] sm:$0xff] }
 0x1aa   :  { %1583 = vmatprep.mubr.f32.mxu0 %v6071_v17  ;;  %1653 = vmatpush2.msra.mxu1 %v275_v40  ;;  %v419_v38 = vld [vmem:[#allocation2 + $0x8b0] sm:$0xff]  ;;  %v412_v40 = vld [vmem:[#allocation2 + $0x878] sm:$0xff] }
 0x1ab   :  { %1584 = vmatmul.mubr.f32.vlgmr.msra.gmra.mxu0 %v6077_v26  ;;  %1654 = vmatprep.mubr.f32.mxu1 %v6052_v27  ;;  %v756_v27 = vld [vmem:[#allocation2 + $0x1338] sm:$0xff]  ;;  %v675_v15 = vld [vmem:[#allocation2 + $0x10b0] sm:$0xff] }
 0x1ac   :  { %1661 = vmatprep.subr.mxu0 %v524_v41  ;;  %1732 = vmatprep.subr.mxu1 %v780_v42  ;;  %v668_v41 = vld [vmem:[#allocation2 + $0x1078] sm:$0xff]  ;;  %v411_v42 = vld [vmem:[#allocation2 + $0x870] sm:$0xff] }
 0x1ad   :  { %1655 = vmatmul.mubr.f32.vlgmr.msra.gmra.mxu1 %v6058_v9  ;;  %1662 = vmatpush1.msra.mxu0 %v523_v43  ;;  %v492_v9 = vld [vmem:[#allocation2 + $0xaf8] sm:$0xff]  ;;  %v667_v43 = vld [vmem:[#allocation2 + $0x1070] sm:$0xff] }
 0x1ae   :  { %1733 = vmatpush1.msra.mxu1 %v779_v44  ;;  %1663 = vmatprep.subr.mxu0 %v516_v45  ;;  %v404_v44 = vld [vmem:[#allocation2 + $0x838] sm:$0xff] }
 0x1af   :  { %1734 = vmatprep.subr.mxu1 %v772_v46  ;;  %1664 = vmatpush1.msra.mxu0 %v515_v47  ;;  %v660_v45 = vld [vmem:[#allocation2 + $0x1038] sm:$0xff]  ;;  %v403_v46 = vld [vmem:[#allocation2 + $0x830] sm:$0xff] }
 0x1b0   :  { %1735 = vmatpush1.msra.mxu1 %v771_v48  ;;  %1665 = vmatprep.subr.mxu0 %v508_v49  ;;  %v659_v47 = vld [vmem:[#allocation2 + $0x1030] sm:$0xff]  ;;  %v652_v48 = vld [vmem:[#allocation2 + $0xff8] sm:$0xff] }
 0x1b1   :  { %1736 = vmatprep.subr.mxu1 %v764_v50  ;;  %1666 = vmatpush1.msra.mxu0 %v507_v51  ;;  %v908_v49 = vld [vmem:[#allocation2 + $0x17f8] sm:$0xff]  ;;  %v651_v50 = vld [vmem:[#allocation2 + $0xff0] sm:$0xff] }
 0x1b2   :  { %1737 = vmatpush1.msra.mxu1 %v763_v52  ;;  %1667 = vmatprep.subr.mxu0 %v500_v54  ;;  %v907_v51 = vld [vmem:[#allocation2 + $0x17f0] sm:$0xff]  ;;  %v644_v52 = vld [vmem:[#allocation2 + $0xfb8] sm:$0xff] }
 0x1b3   :  { %1738 = vmatprep.subr.mxu1 %v756_v27  ;;  %1668 = vmatpush1.msra.mxu0 %v499_v55  ;;  %v900_v54 = vld [vmem:[#allocation2 + $0x17b8] sm:$0xff]  ;;  %v643_v27 = vld [vmem:[#allocation2 + $0xfb0] sm:$0xff] }
 0x1b4   :  { %1739 = vmatpush1.msra.mxu1 %v755_v56  ;;  %1669 = vmatprep.subr.mxu0 %v492_v9  ;;  %v899_v55 = vld [vmem:[#allocation2 + $0x17b0] sm:$0xff]  ;;  %v636_v56 = vld [vmem:[#allocation2 + $0xf78] sm:$0xff] }
 0x1b5   :  { %1740 = vmatprep.subr.mxu1 %v748_v57  ;;  %1670 = vmatpush1.msra.mxu0 %v491_v58  ;;  %v892_v9 = vld [vmem:[#allocation2 + $0x1778] sm:$0xff]  ;;  %v635_v57 = vld [vmem:[#allocation2 + $0xf70] sm:$0xff] }
 0x1b6   :  { %1741 = vmatpush1.msra.mxu1 %v747_v59  ;;  %1671 = vmatprep.subr.mxu0 %v484_v60  ;;  %v891_v58 = vld [vmem:[#allocation2 + $0x1770] sm:$0xff]  ;;  %v628_v59 = vld [vmem:[#allocation2 + $0xf38] sm:$0xff] }
 0x1b7   :  { %1742 = vmatprep.subr.mxu1 %v740_v61  ;;  %1672 = vmatpush1.msra.mxu0 %v483_v0  ;;  %v884_v60 = vld [vmem:[#allocation2 + $0x1738] sm:$0xff]  ;;  %v627_v61 = vld [vmem:[#allocation2 + $0xf30] sm:$0xff] }
 0x1b8   :  { %1743 = vmatpush1.msra.mxu1 %v739_v2  ;;  %1673 = vmatprep.subr.mxu0 %v476_v4  ;;  %v883_v0 = vld [vmem:[#allocation2 + $0x1730] sm:$0xff]  ;;  %v620_v2 = vld [vmem:[#allocation2 + $0xef8] sm:$0xff] }
 0x1b9   :  { %1744 = vmatprep.subr.mxu1 %v732_v5  ;;  %1674 = vmatpush1.msra.mxu0 %v475_v6  ;;  %v876_v4 = vld [vmem:[#allocation2 + $0x16f8] sm:$0xff]  ;;  %v619_v5 = vld [vmem:[#allocation2 + $0xef0] sm:$0xff] }
 0x1ba   :  { %1745 = vmatpush1.msra.mxu1 %v731_v8  ;;  %1675 = vmatprep.subr.mxu0 %v468_v10  ;;  %v875_v6 = vld [vmem:[#allocation2 + $0x16f0] sm:$0xff]  ;;  %v612_v8 = vld [vmem:[#allocation2 + $0xeb8] sm:$0xff] }
 0x1bb   :  { %1746 = vmatprep.subr.mxu1 %v724_v11  ;;  %1676 = vmatpush1.msra.mxu0 %v467_v12  ;;  %v868_v10 = vld [vmem:[#allocation2 + $0x16b8] sm:$0xff]  ;;  %v611_v11 = vld [vmem:[#allocation2 + $0xeb0] sm:$0xff] }
 0x1bc   :  { %1747 = vmatpush1.msra.mxu1 %v723_v13  ;;  %1677 = vmatprep.subr.mxu0 %v460_v14  ;;  %v867_v12 = vld [vmem:[#allocation2 + $0x16b0] sm:$0xff]  ;;  %v604_v13 = vld [vmem:[#allocation2 + $0xe78] sm:$0xff] }
 0x1bd   :  { %1748 = vmatprep.subr.mxu1 %v716_v16  ;;  %1678 = vmatpush1.msra.mxu0 %v459_v18  ;;  %v860_v14 = vld [vmem:[#allocation2 + $0x1678] sm:$0xff]  ;;  %v603_v16 = vld [vmem:[#allocation2 + $0xe70] sm:$0xff] }
 0x1be   :  { %1749 = vmatpush1.msra.mxu1 %v715_v19  ;;  %1679 = vmatprep.subr.mxu0 %v452_v20  ;;  %v859_v18 = vld [vmem:[#allocation2 + $0x1670] sm:$0xff]  ;;  %v596_v19 = vld [vmem:[#allocation2 + $0xe38] sm:$0xff] }
 0x1bf   :  { %1750 = vmatprep.subr.mxu1 %v708_v21  ;;  %1680 = vmatpush1.msra.mxu0 %v451_v22  ;;  %v852_v20 = vld [vmem:[#allocation2 + $0x1638] sm:$0xff]  ;;  %v6083_v21 = vsub.s32 1, %v6038_v53  ;;  %v595_v22 = vld [vmem:[#allocation2 + $0xe30] sm:$0xff] }
 0x1c0   :  { %1751 = vmatpush1.msra.mxu1 %v707_v63  ;;  %1681 = vmatprep.subr.mxu0 %v444_v23  ;;  %v851_v63 = vld [vmem:[#allocation2 + $0x1630] sm:$0xff]  ;;  %v588_v23 = vld [vmem:[#allocation2 + $0xdf8] sm:$0xff] }
 0x1c1   :  { %1752 = vmatprep.subr.mxu1 %v700_v24  ;;  %1682 = vmatpush1.msra.mxu0 %v443_v1  ;;  %v844_v24 = vld [vmem:[#allocation2 + $0x15f8] sm:$0xff]  ;;  %v587_v1 = vld [vmem:[#allocation2 + $0xdf0] sm:$0xff] }
 0x1c2   :  { %1753 = vmatpush1.msra.mxu1 %v699_v25  ;;  %1683 = vmatprep.subr.mxu0 %v436_v7  ;;  %v843_v25 = vld [vmem:[#allocation2 + $0x15f0] sm:$0xff]  ;;  %v580_v7 = vld [vmem:[#allocation2 + $0xdb8] sm:$0xff] }
 0x1c3   :  { %1754 = vmatprep.subr.mxu1 %v692_v28  ;;  %1684 = vmatpush1.msra.mxu0 %v435_v30  ;;  %v836_v28 = vld [vmem:[#allocation2 + $0x15b8] sm:$0xff]  ;;  %v918_v30 = vrot.slane %v6043_v3, %v6083_v21  ;;  %v6089_v3 = vsub.s32 3, %v6038_v53 }
 0x1c4   :  { %1755 = vmatpush1.msra.mxu1 %v691_v31  ;;  %1685 = vmatprep.subr.mxu0 %v428_v32  ;;  %v579_v31 = vld [vmem:[#allocation2 + $0xdb0] sm:$0xff] }
 0x1c5   :  { %1756 = vmatprep.subr.mxu1 %v684_v33  ;;  %1686 = vmatpush1.msra.mxu0 %v427_v34  ;;  %v835_v32 = vld [vmem:[#allocation2 + $0x15b0] sm:$0xff]  ;;  %v572_v33 = vld [vmem:[#allocation2 + $0xd78] sm:$0xff] }
 0x1c6   :  { %1757 = vmatpush1.msra.mxu1 %v683_v35  ;;  %1687 = vmatprep.subr.mxu0 %v420_v36  ;;  %v828_v34 = vld [vmem:[#allocation2 + $0x1578] sm:$0xff]  ;;  %v571_v35 = vld [vmem:[#allocation2 + $0xd70] sm:$0xff] }
 0x1c7   :  { %1758 = vmatprep.subr.mxu1 %v676_v37  ;;  %1688 = vmatpush1.msra.mxu0 %v419_v38  ;;  %v827_v36 = vld [vmem:[#allocation2 + $0x1570] sm:$0xff]  ;;  %v1090_v37 = vpop.f32.mrf.mxu1  ;;  %v564_v38 = vld [vmem:[#allocation2 + $0xd38] sm:$0xff] }
 0x1c8   :  { %1759 = vmatpush1.msra.mxu1 %v675_v15  ;;  %1689 = vmatprep.subr.mxu0 %v412_v40  ;;  %v820_v15 = vld [vmem:[#allocation2 + $0x1538] sm:$0xff]  ;;  %v1020_v40 = vadd.f32 %v6063_v29, %v918_v30  ;;  %v1876_v30 = vld [vmem:[#allocation6 + $0x188] sm:$0xff] }
 0x1c9   :  { %1760 = vmatprep.subr.mxu1 %v668_v41  ;;  %1690 = vmatpush1.msra.mxu0 %v411_v42  ;;  %v563_v41 = vld [vmem:[#allocation2 + $0xd30] sm:$0xff]  ;;  %v548_v29 = vld [vmem:[#allocation2 + $0xcb8] sm:$0xff] }
 0x1ca   :  { %1761 = vmatpush1.msra.mxu1 %v667_v43  ;;  %1691 = vmatprep.subr.mxu0 %v404_v44  ;;  %v819_v42 = vld [vmem:[#allocation2 + $0x1530] sm:$0xff]  ;;  %v6091_v43 = vpop.f32.mrf.mxu1  ;;  %v556_v44 = vld [vmem:[#allocation2 + $0xcf8] sm:$0xff] }
 0x1cb   :  { %1762 = vmatprep.subr.mxu1 %v660_v45  ;;  %1692 = vmatpush1.msra.mxu0 %v403_v46  ;;  %v812_v45 = vld [vmem:[#allocation2 + $0x14f8] sm:$0xff]  ;;  %v555_v46 = vld [vmem:[#allocation2 + $0xcf0] sm:$0xff] }
 0x1cc   :  { %1763 = vmatpush1.msra.mxu1 %v659_v47  ;;  %1693 = vmatprep.subr.mxu0 %v652_v48  ;;  %v811_v47 = vld [vmem:[#allocation2 + $0x14f0] sm:$0xff]  ;;  %v1161_v48 = vpop.f32.mrf.mxu0 }
 0x1cd   :  { %1764 = vmatprep.subr.mxu1 %v908_v49  ;;  %1694 = vmatpush2.msra.mxu0 %v651_v50  ;;  %v804_v49 = vld [vmem:[#allocation2 + $0x14b8] sm:$0xff]  ;;  %v1091_v50 = vadd.f32 %v1090_v37, %v1020_v40  ;;  %v1871_v37 = vld [vmem:[#allocation6 + $0x160] sm:$0xff]  ;;  %v1996_v40 = vld [vmem:[#allocation6 + $0x548] sm:$0xff] }
 0x1ce   :  { %1765 = vmatpush2.msra.mxu1 %v907_v51  ;;  %1695 = vmatprep.subr.mxu0 %v644_v52  ;;  %v6093_v51 = vld [vmem:[#allocation4] sm:$0xff] }
 0x1cf   :  { %1766 = vmatprep.subr.mxu1 %v900_v54  ;;  %1696 = vmatpush2.msra.mxu0 %v643_v27  ;;  %v926_v52 = vrot.slane %v6093_v51, %v6089_v3  ;;  %v547_v54 = vld [vmem:[#allocation2 + $0xcb0] sm:$0xff] }
 0x1d0   :  { %1767 = vmatpush2.msra.mxu1 %v899_v55  ;;  %1697 = vmatprep.subr.mxu0 %v636_v56  ;;  %v803_v27 = vld [vmem:[#allocation2 + $0x14b0] sm:$0xff]  ;;  %v1232_v55 = vpop.f32.mrf.mxu1  ;;  %v540_v56 = vld [vmem:[#allocation2 + $0xc78] sm:$0xff] }
 0x1d1   :  { %1768 = vmatprep.subr.mxu1 %v892_v9  ;;  %1698 = vmatpush2.msra.mxu0 %v635_v57  ;;  %v796_v9 = vld [vmem:[#allocation2 + $0x1478] sm:$0xff]  ;;  %v1162_v57 = vadd.f32 %v1161_v48, %v1091_v50  ;;  %v1991_v48 = vld [vmem:[#allocation6 + $0x520] sm:$0xff] }
 0x1d2   :  { %1769 = vmatpush2.msra.mxu1 %v891_v58  ;;  %1699 = vmatprep.subr.mxu0 %v628_v59  ;;  %v539_v58 = vld [vmem:[#allocation2 + $0xc70] sm:$0xff]  ;;  %v1859_v50 = vld [vmem:[#allocation6 + $0x100] sm:$0xff] }
 0x1d3   :  { %1770 = vmatprep.subr.mxu1 %v884_v60  ;;  %1700 = vmatpush2.msra.mxu0 %v627_v61  ;;  %v795_v59 = vld [vmem:[#allocation2 + $0x1470] sm:$0xff]  ;;  %v532_v61 = vld [vmem:[#allocation2 + $0xc38] sm:$0xff]  ;;  %vm1804_vm0 = vcmp.ge.f32.partialorder %v1162_v57, 0.0 }
 0x1d4   :  { %1771 = vmatpush2.msra.mxu1 %v883_v0  ;;  %1701 = vmatprep.subr.mxu0 %v620_v2  ;;  %v788_v0 = vld [vmem:[#allocation2 + $0x1438] sm:$0xff]  ;;  %v1233_v2 = vadd.f32 %v1232_v55, %v926_v52  ;;  %v1987_v52 = vld [vmem:[#allocation6 + $0x500] sm:$0xff] }
 0x1d5   :  { %1772 = vmatprep.subr.mxu1 %v876_v4  ;;  %1702 = vmatpush2.msra.mxu0 %v619_v5  ;;  %v531_v4 = vld [vmem:[#allocation2 + $0xc30] sm:$0xff]  ;;  %v1855_v55 = vld [vmem:[#allocation6 + $0xe0] sm:$0xff] }
 0x1d6   :  { %1773 = vmatpush2.msra.mxu1 %v875_v6  ;;  %1703 = vmatprep.subr.mxu0 %v612_v8  ;;  %v787_v8 = vld [vmem:[#allocation2 + $0x1430] sm:$0xff] }
 0x1d7   :  { %1774 = vmatprep.subr.mxu1 %v868_v10  ;;  %1704 = vmatpush2.msra.mxu0 %v611_v11  ;;  %v1812_v10 = vmul.f32 0.01, %v1162_v57 }
 0x1d8   :  { %1775 = vmatpush2.msra.mxu1 %v867_v12  ;;  %1705 = vmatprep.subr.mxu0 %v604_v13  ;;  %v5721_v12 = vld [vmem:[%s6278_s0 + $0x18] sm:$0xff]  ;;  %v1888_v13 = vld [vmem:[#allocation6 + $0x1e8] sm:$0xff] }
 0x1d9   :  { %1776 = vmatprep.subr.mxu1 %v860_v14  ;;  %1706 = vmatpush2.msra.mxu0 %v603_v16  ;;  %v2016_v14 = vld [vmem:[#allocation6 + $0x5e8] sm:$0xff] }
 0x1da   :  { %1777 = vmatpush2.msra.mxu1 %v859_v18  ;;  %1707 = vmatprep.subr.mxu0 %v596_v19  ;;  %v1887_v18 = vld [vmem:[#allocation6 + $0x1e0] sm:$0xff]  ;;  %v5722_v19 = vld [vmem:[%s6278_s0 + $0x10] sm:$0xff] }
 0x1db   :  { %1778 = vmatprep.subr.mxu1 %v852_v20  ;;  %1708 = vmatpush2.msra.mxu0 %v595_v22  ;;  %v2015_v20 = vld [vmem:[#allocation6 + $0x5e0] sm:$0xff]  ;;  %v1884_v22 = vld [vmem:[#allocation6 + $0x1c8] sm:$0xff] }
 0x1dc   :  { %1779 = vmatpush2.msra.mxu1 %v851_v63  ;;  %1709 = vmatprep.subr.mxu0 %v588_v23  ;;  %v6109_v63 = vsel %vm1804_vm0, %v1162_v57, %v1812_v10  ;;  %v2012_v23 = vld [vmem:[#allocation6 + $0x5c8] sm:$0xff]  ;;  %v1843_v10 = vld [vmem:[#allocation6 + $0x80] sm:$0xff] }
 0x1dd   :  { %1780 = vmatprep.subr.mxu1 %v844_v24  ;;  %1710 = vmatpush2.msra.mxu0 %v587_v1  ;;  %v1883_v1 = vld [vmem:[#allocation6 + $0x1c0] sm:$0xff]  ;;  %v1980_v57 = vld [vmem:[#allocation6 + $0x4c8] sm:$0xff] }
 0x1de   :  { %1781 = vmatpush2.msra.mxu1 %v843_v25  ;;  %1711 = vmatprep.subr.mxu0 %v580_v7  ;;  %v1880_v25 = vld [vmem:[#allocation6 + $0x1a8] sm:$0xff] }
 0x1df   :  { %1782 = vmatprep.subr.mxu1 %v836_v28  ;;  %1712 = vmatpush2.msra.mxu0 %v579_v31  ;;  %v2008_v7 = vld [vmem:[#allocation6 + $0x5a8] sm:$0xff]  ;;  %v1879_v28 = vld [vmem:[#allocation6 + $0x1a0] sm:$0xff] }
 0x1e0   :  { %1783 = vmatpush2.msra.mxu1 %v835_v32  ;;  %1713 = vmatprep.subr.mxu0 %v572_v33  ;;  %v2004_v32 = vld [vmem:[#allocation6 + $0x588] sm:$0xff]  ;;  %v1875_v33 = vld [vmem:[#allocation6 + $0x180] sm:$0xff] }
 0x1e1   :  { %1784 = vmatprep.subr.mxu1 %v828_v34  ;;  %1714 = vmatpush2.msra.mxu0 %v571_v35  ;;  %v2003_v34 = vld [vmem:[#allocation6 + $0x580] sm:$0xff]  ;;  %v1872_v35 = vld [vmem:[#allocation6 + $0x168] sm:$0xff] }
 0x1e2   :  { %1785 = vmatpush2.msra.mxu1 %v827_v36  ;;  %1715 = vmatprep.subr.mxu0 %v564_v38  ;;  %v2000_v36 = vld [vmem:[#allocation6 + $0x568] sm:$0xff]  ;;  %v1999_v38 = vld [vmem:[#allocation6 + $0x560] sm:$0xff] }
 0x1e3   :  { %1786 = vmatprep.subr.mxu1 %v820_v15  ;;  %1716 = vmatpush2.msra.mxu0 %v563_v41  ;;  %v1868_v15 = vld [vmem:[#allocation6 + $0x148] sm:$0xff] }
 0x1e4   :  { %1787 = vmatpush2.msra.mxu1 %v819_v42  ;;  %1717 = vmatprep.subr.mxu0 %v556_v44  ;;  %v1867_v42 = vld [vmem:[#allocation6 + $0x140] sm:$0xff] }
 0x1e5   :  { %1788 = vmatprep.subr.mxu1 %v812_v45  ;;  %1718 = vmatpush2.msra.mxu0 %v555_v46  ;;  %v1995_v44 = vld [vmem:[#allocation6 + $0x540] sm:$0xff]  ;;  %v1864_v45 = vld [vmem:[#allocation6 + $0x128] sm:$0xff] }
 0x1e6   :  { %1789 = vmatpush2.msra.mxu1 %v811_v47  ;;  %1719 = vmatprep.subr.mxu0 %v548_v29  ;;  %v1992_v46 = vld [vmem:[#allocation6 + $0x528] sm:$0xff]  ;;  %v1863_v47 = vld [vmem:[#allocation6 + $0x120] sm:$0xff] }
 0x1e7   :  { %1790 = vmatprep.subr.mxu1 %v804_v49  ;;  %v6097_v60 = vpop.f32.mrf.mxu0  ;;  %1720 = vmatpush2.msra.mxu0 %v547_v54  ;;  %v1860_v29 = vld [vmem:[#allocation6 + $0x108] sm:$0xff] }
 0x1e8   :  { %1791 = vmatpush2.msra.mxu1 %v803_v27  ;;  %1721 = vmatprep.subr.mxu0 %v540_v56  ;;  %v1988_v49 = vld [vmem:[#allocation6 + $0x508] sm:$0xff]  ;;  %v1983_v56 = vld [vmem:[#allocation6 + $0x4e0] sm:$0xff] }
 0x1e9   :  { %1792 = vmatprep.subr.mxu1 %v796_v9  ;;  %v6099_v5 = vpop.f32.mrf.mxu1  ;;  %v1303_v6 = vpop.f32.mrf.mxu0  ;;  %1722 = vmatpush2.msra.mxu0 %v539_v58  ;;  %v1856_v54 = vld [vmem:[#allocation6 + $0xe8] sm:$0xff]  ;;  %v1851_v58 = vld [vmem:[#allocation6 + $0xc0] sm:$0xff] }
 0x1ea   :  { %1793 = vmatpush2.msra.mxu1 %v795_v59  ;;  %1723 = vmatprep.subr.mxu0 %v532_v61  ;;  %v1304_v11 = vadd.f32 %v1303_v6, %v1233_v2  ;;  %v1984_v27 = vld [vmem:[#allocation6 + $0x4e8] sm:$0xff]  ;;  %v1979_v59 = vld [vmem:[#allocation6 + $0x4c0] sm:$0xff] }
 0x1eb   :  { %1794 = vmatprep.subr.mxu1 %v788_v0  ;;  %1724 = vmatpush2.msra.mxu0 %v531_v4  ;;  %v1374_v16 = vpop.f32.mrf.mxu1  ;;  %v1852_v9 = vld [vmem:[#allocation6 + $0xc8] sm:$0xff]  ;;  %v1847_v2 = vld [vmem:[#allocation6 + $0xa0] sm:$0xff] }
 0x1ec   :  { %1725 = vmatprep.mubr.f32.mxu0 %v5721_v12  ;;  %1795 = vmatpush2.msra.mxu1 %v787_v8  ;;  %v1375_v24 = vadd.f32 %v1374_v16, %v1304_v11  ;;  %v1848_v61 = vld [vmem:[#allocation6 + $0xa8] sm:$0xff]  ;;  %v1975_v4 = vld [vmem:[#allocation6 + $0x4a0] sm:$0xff] }
 0x1ed   :  { %1796 = vmatprep.mubr.f32.mxu1 %v6071_v17  ;;  %1726 = vmatmul.mubr.f32.vlgmr.msra.gmra.mxu0 %v5722_v19  ;;  %v2011_v17 = vld [vmem:[#allocation6 + $0x5c0] sm:$0xff]  ;;  %v1976_v0 = vld [vmem:[#allocation6 + $0x4a8] sm:$0xff] }
 0x1ee   :  { %1797 = vmatmul.mubr.f32.vlgmr.msra.gmra.mxu1 %v6077_v26  ;;  %2361 = vmatprep.subr.mxu0 %v1888_v13  ;;  %v2007_v26 = vld [vmem:[#allocation6 + $0x5a0] sm:$0xff]  ;;  %v1814_v31 = vmul.f32 0.01, %v1375_v24  ;;  %vm1806_vm1 = vcmp.ge.f32.partialorder %v1375_v24, 0.0  ;;  %v1844_v6 = vld [vmem:[#allocation6 + $0x88] sm:$0xff] }
 0x1ef   :  { %2432 = vmatprep.subr.mxu1 %v2016_v14  ;;  %2362 = vmatpush1.msra.mxu0 %v1887_v18  ;;  %v1972_v8 = vld [vmem:[#allocation6 + $0x488] sm:$0xff]  ;;  %v1971_v11 = vld [vmem:[#allocation6 + $0x480] sm:$0xff] }
 0x1f0   :  { %2425 = vmatprep.mubr.f32.mxu0 %v6109_v63  ;;  %2433 = vmatpush1.msra.mxu1 %v2015_v20  ;;  %v6112_v41 = vsel %vm1806_vm1, %v1375_v24, %v1814_v31  ;;  %v1840_v12 = vld [vmem:[#allocation6 + $0x68] sm:$0xff]  ;;  %v1839_v14 = vld [vmem:[#allocation6 + $0x60] sm:$0xff] }
 0x1f1   :  { %2363 = vmatprep.subr.mxu0 %v1884_v22  ;;  %2434 = vmatprep.subr.mxu1 %v2012_v23  ;;  %v1968_v13 = vld [vmem:[#allocation6 + $0x468] sm:$0xff]  ;;  %v1967_v16 = vld [vmem:[#allocation6 + $0x460] sm:$0xff] }
 0x1f2   :  { %2364 = vmatpush1.msra.mxu0 %v1883_v1  ;;  %2435 = vmatpush1.msra.mxu1 %v2011_v17  ;;  %v1836_v18 = vld [vmem:[#allocation6 + $0x48] sm:$0xff]  ;;  %v1835_v20 = vld [vmem:[#allocation6 + $0x40] sm:$0xff] }
 0x1f3   :  { %2365 = vmatprep.subr.mxu0 %v1880_v25  ;;  %2436 = vmatprep.subr.mxu1 %v2008_v7  ;;  %v1964_v19 = vld [vmem:[#allocation6 + $0x448] sm:$0xff]  ;;  %v1963_v22 = vld [vmem:[#allocation6 + $0x440] sm:$0xff] }
 0x1f4   :  { %2366 = vmatpush1.msra.mxu0 %v1879_v28  ;;  %2437 = vmatpush1.msra.mxu1 %v2007_v26  ;;  %v1832_v23 = vld [vmem:[#allocation6 + $0x28] sm:$0xff]  ;;  %v1831_v1 = vld [vmem:[#allocation6 + $0x20] sm:$0xff] }
 0x1f5   :  { %2367 = vmatprep.subr.mxu0 %v1876_v30  ;;  %2438 = vmatprep.subr.mxu1 %v2004_v32  ;;  %v1960_v24 = vld [vmem:[#allocation6 + $0x428] sm:$0xff]  ;;  %v1959_v17 = vld [vmem:[#allocation6 + $0x420] sm:$0xff] }
 0x1f6   :  { %2368 = vmatpush1.msra.mxu0 %v1875_v33  ;;  %2439 = vmatpush1.msra.mxu1 %v2003_v34  ;;  %v1828_v25 = vld [vmem:[#allocation6 + $0x8] sm:$0xff]  ;;  %v1827_v28 = vld [vmem:[#allocation6] sm:$0xff] }
 0x1f7   :  { %2369 = vmatprep.subr.mxu0 %v1872_v35  ;;  %2440 = vmatprep.subr.mxu1 %v2000_v36  ;;  %v1956_v7 = vld [vmem:[#allocation6 + $0x408] sm:$0xff]  ;;  %v1955_v26 = vld [vmem:[#allocation6 + $0x400] sm:$0xff] }
 0x1f8   :  { %2370 = vmatpush1.msra.mxu0 %v1871_v37  ;;  %2441 = vmatpush1.msra.mxu1 %v1999_v38  ;;  %v1952_v30 = vld [vmem:[#allocation6 + $0x3e8] sm:$0xff]  ;;  %v1951_v32 = vld [vmem:[#allocation6 + $0x3e0] sm:$0xff] }
 0x1f9   :  { %2371 = vmatprep.subr.mxu0 %v1868_v15  ;;  %2442 = vmatprep.subr.mxu1 %v1996_v40  ;;  %v2080_v31 = vld [vmem:[#allocation6 + $0x7e8] sm:$0xff]  ;;  %v2079_v33 = vld [vmem:[#allocation6 + $0x7e0] sm:$0xff] }
 0x1fa   :  { %2496 = vmatprep.mubr.f32.mxu1 %v6112_v41  ;;  %2372 = vmatpush1.msra.mxu0 %v1867_v42  ;;  %v1948_v34 = vld [vmem:[#allocation6 + $0x3c8] sm:$0xff]  ;;  %v1947_v36 = vld [vmem:[#allocation6 + $0x3c0] sm:$0xff] }
 0x1fb   :  { %2443 = vmatpush1.msra.mxu1 %v1995_v44  ;;  %2373 = vmatprep.subr.mxu0 %v1864_v45  ;;  %v2076_v35 = vld [vmem:[#allocation6 + $0x7c8] sm:$0xff]  ;;  %v2075_v37 = vld [vmem:[#allocation6 + $0x7c0] sm:$0xff] }
 0x1fc   :  { %2444 = vmatprep.subr.mxu1 %v1992_v46  ;;  %2374 = vmatpush1.msra.mxu0 %v1863_v47  ;;  %v1944_v38 = vld [vmem:[#allocation6 + $0x3a8] sm:$0xff]  ;;  %v1943_v40 = vld [vmem:[#allocation6 + $0x3a0] sm:$0xff] }
 0x1fd   :  { %2445 = vmatpush1.msra.mxu1 %v1991_v48  ;;  %2375 = vmatprep.subr.mxu0 %v1860_v29  ;;  %v2072_v15 = vld [vmem:[#allocation6 + $0x7a8] sm:$0xff]  ;;  %v2071_v42 = vld [vmem:[#allocation6 + $0x7a0] sm:$0xff] }
 0x1fe   :  { %2446 = vmatprep.subr.mxu1 %v1988_v49  ;;  %2376 = vmatpush1.msra.mxu0 %v1859_v50  ;;  %v1940_v44 = vld [vmem:[#allocation6 + $0x388] sm:$0xff]  ;;  %v1939_v46 = vld [vmem:[#allocation6 + $0x380] sm:$0xff] }
 0x1ff   :  { %2447 = vmatpush1.msra.mxu1 %v1987_v52  ;;  %2377 = vmatprep.subr.mxu0 %v1856_v54  ;;  %v2068_v45 = vld [vmem:[#allocation6 + $0x788] sm:$0xff]  ;;  %v2067_v47 = vld [vmem:[#allocation6 + $0x780] sm:$0xff] }
 0x200   :  { %2448 = vmatprep.subr.mxu1 %v1984_v27  ;;  %2378 = vmatpush1.msra.mxu0 %v1855_v55  ;;  %v1936_v48 = vld [vmem:[#allocation6 + $0x368] sm:$0xff]  ;;  %v1935_v49 = vld [vmem:[#allocation6 + $0x360] sm:$0xff] }
 0x201   :  { %2449 = vmatpush1.msra.mxu1 %v1983_v56  ;;  %2379 = vmatprep.subr.mxu0 %v1852_v9  ;;  %v2064_v29 = vld [vmem:[#allocation6 + $0x768] sm:$0xff]  ;;  %v2063_v50 = vld [vmem:[#allocation6 + $0x760] sm:$0xff]  ;;  %v6116_v56 = vsub.s32 2, %v6038_v53 }
 0x202   :  { %2450 = vmatprep.subr.mxu1 %v1980_v57  ;;  %2380 = vmatpush1.msra.mxu0 %v1851_v58  ;;  %v1932_v52 = vld [vmem:[#allocation6 + $0x348] sm:$0xff]  ;;  %v1931_v27 = vld [vmem:[#allocation6 + $0x340] sm:$0xff] }
 0x203   :  { %2451 = vmatpush1.msra.mxu1 %v1979_v59  ;;  %2381 = vmatprep.subr.mxu0 %v1848_v61  ;;  %v2060_v54 = vld [vmem:[#allocation6 + $0x748] sm:$0xff]  ;;  %v2059_v55 = vld [vmem:[#allocation6 + $0x740] sm:$0xff] }
 0x204   :  { %2452 = vmatprep.subr.mxu1 %v1976_v0  ;;  %2382 = vmatpush1.msra.mxu0 %v1847_v2  ;;  %v1928_v9 = vld [vmem:[#allocation6 + $0x328] sm:$0xff]  ;;  %v1927_v58 = vld [vmem:[#allocation6 + $0x320] sm:$0xff] }
 0x205   :  { %2453 = vmatpush1.msra.mxu1 %v1975_v4  ;;  %2383 = vmatprep.subr.mxu0 %v1844_v6  ;;  %v2056_v57 = vld [vmem:[#allocation6 + $0x728] sm:$0xff]  ;;  %v2055_v59 = vld [vmem:[#allocation6 + $0x720] sm:$0xff]  ;;  %v922_v6 = vrot.slane %v6093_v51, %v6116_v56 }
 0x206   :  { %2454 = vmatprep.subr.mxu1 %v1972_v8  ;;  %2384 = vmatpush1.msra.mxu0 %v1843_v10  ;;  %v1924_v61 = vld [vmem:[#allocation6 + $0x308] sm:$0xff]  ;;  %v1923_v2 = vld [vmem:[#allocation6 + $0x300] sm:$0xff] }
 0x207   :  { %2455 = vmatpush1.msra.mxu1 %v1971_v11  ;;  %2385 = vmatprep.subr.mxu0 %v1840_v12  ;;  %v2052_v0 = vld [vmem:[#allocation6 + $0x708] sm:$0xff]  ;;  %v2051_v4 = vld [vmem:[#allocation6 + $0x700] sm:$0xff] }
 0x208   :  { %2456 = vmatprep.subr.mxu1 %v1968_v13  ;;  %2386 = vmatpush1.msra.mxu0 %v1839_v14  ;;  %v1920_v8 = vld [vmem:[#allocation6 + $0x2e8] sm:$0xff]  ;;  %v1919_v11 = vld [vmem:[#allocation6 + $0x2e0] sm:$0xff] }
 0x209   :  { %2457 = vmatpush1.msra.mxu1 %v1967_v16  ;;  %2387 = vmatprep.subr.mxu0 %v1836_v18  ;;  %v2048_v10 = vld [vmem:[#allocation6 + $0x6e8] sm:$0xff]  ;;  %v2047_v12 = vld [vmem:[#allocation6 + $0x6e0] sm:$0xff] }
 0x20a   :  { %2458 = vmatprep.subr.mxu1 %v1964_v19  ;;  %2388 = vmatpush1.msra.mxu0 %v1835_v20  ;;  %v1916_v13 = vld [vmem:[#allocation6 + $0x2c8] sm:$0xff]  ;;  %v1915_v16 = vld [vmem:[#allocation6 + $0x2c0] sm:$0xff]  ;;  %v1231_v19 = vadd.f32 %v6091_v43, %v922_v6 }
 0x20b   :  { %2459 = vmatpush1.msra.mxu1 %v1963_v22  ;;  %2389 = vmatprep.subr.mxu0 %v1832_v23  ;;  %v2044_v14 = vld [vmem:[#allocation6 + $0x6c8] sm:$0xff]  ;;  %v2043_v18 = vld [vmem:[#allocation6 + $0x6c0] sm:$0xff] }
 0x20c   :  { %2460 = vmatprep.subr.mxu1 %v1960_v24  ;;  %2390 = vmatpush1.msra.mxu0 %v1831_v1  ;;  %v1912_v51 = vld [vmem:[#allocation6 + $0x2a8] sm:$0xff]  ;;  %v1911_v22 = vld [vmem:[#allocation6 + $0x2a0] sm:$0xff]  ;;  %v1302_v24 = vadd.f32 %v6097_v60, %v1231_v19 }
 0x20d   :  { %2461 = vmatpush1.msra.mxu1 %v1959_v17  ;;  %2391 = vmatprep.subr.mxu0 %v1828_v25  ;;  %v2040_v20 = vld [vmem:[#allocation6 + $0x6a8] sm:$0xff]  ;;  %v2039_v23 = vld [vmem:[#allocation6 + $0x6a0] sm:$0xff] }
 0x20e   :  { %2462 = vmatprep.subr.mxu1 %v1956_v7  ;;  %2392 = vmatpush1.msra.mxu0 %v1827_v28  ;;  %v1908_v1 = vld [vmem:[#allocation6 + $0x288] sm:$0xff]  ;;  %v1907_v25 = vld [vmem:[#allocation6 + $0x280] sm:$0xff] }
 0x20f   :  { %2463 = vmatpush1.msra.mxu1 %v1955_v26  ;;  %2393 = vmatprep.subr.mxu0 %v1952_v30  ;;  %v2036_v17 = vld [vmem:[#allocation6 + $0x688] sm:$0xff]  ;;  %v2035_v7 = vld [vmem:[#allocation6 + $0x680] sm:$0xff] }
 0x210   :  { %2464 = vmatprep.subr.mxu1 %v2080_v31  ;;  %2394 = vmatpush2.msra.mxu0 %v1951_v32  ;;  %v1904_v43 = vld [vmem:[#allocation6 + $0x268] sm:$0xff]  ;;  %v1903_v26 = vld [vmem:[#allocation6 + $0x260] sm:$0xff]  ;;  %v1373_v31 = vadd.f32 %v6099_v5, %v1302_v24 }
 0x211   :  { %2465 = vmatpush2.msra.mxu1 %v2079_v33  ;;  %2395 = vmatprep.subr.mxu0 %v1948_v34  ;;  %v2032_v28 = vld [vmem:[#allocation6 + $0x668] sm:$0xff]  ;;  %v2031_v30 = vld [vmem:[#allocation6 + $0x660] sm:$0xff] }
 0x212   :  { %2466 = vmatprep.subr.mxu1 %v2076_v35  ;;  %2396 = vmatpush2.msra.mxu0 %v1947_v36  ;;  %v1900_v60 = vld [vmem:[#allocation6 + $0x248] sm:$0xff]  ;;  %v1899_v33 = vld [vmem:[#allocation6 + $0x240] sm:$0xff]  ;;  %vm1805_vm3 = vcmp.ge.f32.partialorder %v1373_v31, 0.0 }
 0x213   :  { %2467 = vmatpush2.msra.mxu1 %v2075_v37  ;;  %2397 = vmatprep.subr.mxu0 %v1944_v38  ;;  %v2028_v32 = vld [vmem:[#allocation6 + $0x648] sm:$0xff]  ;;  %v2027_v34 = vld [vmem:[#allocation6 + $0x640] sm:$0xff] }
 0x214   :  { %2468 = vmatprep.subr.mxu1 %v2072_v15  ;;  %2398 = vmatpush2.msra.mxu0 %v1943_v40  ;;  %v1896_v35 = vld [vmem:[#allocation6 + $0x228] sm:$0xff]  ;;  %v1895_v37 = vld [vmem:[#allocation6 + $0x220] sm:$0xff]  ;;  %v1811_v15 = vmul.f32 0.01, %v6066_v39  ;;  %v1813_v40 = vmul.f32 0.01, %v1373_v31 }
 0x215   :  { %2469 = vmatpush2.msra.mxu1 %v2071_v42  ;;  %2399 = vmatprep.subr.mxu0 %v1940_v44  ;;  %v2024_v36 = vld [vmem:[#allocation6 + $0x628] sm:$0xff]  ;;  %v2023_v38 = vld [vmem:[#allocation6 + $0x620] sm:$0xff] }
 0x216   :  { %2470 = vmatprep.subr.mxu1 %v2068_v45  ;;  %2400 = vmatpush2.msra.mxu0 %v1939_v46  ;;  %v1892_v5 = vld [vmem:[#allocation6 + $0x208] sm:$0xff]  ;;  %v1891_v44 = vld [vmem:[#allocation6 + $0x200] sm:$0xff] }
 0x217   :  { %2471 = vmatpush2.msra.mxu1 %v2067_v47  ;;  %2401 = vmatprep.subr.mxu0 %v1936_v48  ;;  %v2020_v42 = vld [vmem:[#allocation6 + $0x608] sm:$0xff]  ;;  %v2019_v45 = vld [vmem:[#allocation6 + $0x600] sm:$0xff]  ;;  %v6126_v48 = vsel %vm1803_vm2, %v6066_v39, %v1811_v15 }
 0x218   :  { %2472 = vmatprep.subr.mxu1 %v2064_v29  ;;  %2402 = vmatpush2.msra.mxu0 %v1935_v49  ;;  %v2144_v46 = vld [vmem:[#allocation6 + $0x9e8] sm:$0xff]  ;;  %v6128_v29 = vsel %vm1805_vm3, %v1373_v31, %v1813_v40  ;;  %v2143_v49 = vld [vmem:[#allocation6 + $0x9e0] sm:$0xff] }
 0x219   :  { %2473 = vmatpush2.msra.mxu1 %v2063_v50  ;;  %2403 = vmatprep.subr.mxu0 %v1932_v52  ;;  %v2272_v47 = vld [vmem:[#allocation6 + $0xde8] sm:$0xff]  ;;  %v2271_v50 = vld [vmem:[#allocation6 + $0xde0] sm:$0xff] }
 0x21a   :  { %2474 = vmatprep.subr.mxu1 %v2060_v54  ;;  %2404 = vmatpush2.msra.mxu0 %v1931_v27  ;;  %v2140_v52 = vld [vmem:[#allocation6 + $0x9c8] sm:$0xff]  ;;  %v2139_v27 = vld [vmem:[#allocation6 + $0x9c0] sm:$0xff] }
 0x21b   :  { %2475 = vmatpush2.msra.mxu1 %v2059_v55  ;;  %2405 = vmatprep.subr.mxu0 %v1928_v9  ;;  %v2268_v54 = vld [vmem:[#allocation6 + $0xdc8] sm:$0xff]  ;;  %v2267_v55 = vld [vmem:[#allocation6 + $0xdc0] sm:$0xff] }
 0x21c   :  { %2476 = vmatprep.subr.mxu1 %v2056_v57  ;;  %2406 = vmatpush2.msra.mxu0 %v1927_v58  ;;  %v2136_v9 = vld [vmem:[#allocation6 + $0x9a8] sm:$0xff]  ;;  %v2135_v39 = vld [vmem:[#allocation6 + $0x9a0] sm:$0xff] }
 0x21d   :  { %2477 = vmatpush2.msra.mxu1 %v2055_v59  ;;  %2407 = vmatprep.subr.mxu0 %v1924_v61  ;;  %v2264_v57 = vld [vmem:[#allocation6 + $0xda8] sm:$0xff]  ;;  %v2263_v58 = vld [vmem:[#allocation6 + $0xda0] sm:$0xff] }
 0x21e   :  { %2478 = vmatprep.subr.mxu1 %v2052_v0  ;;  %2408 = vmatpush2.msra.mxu0 %v1923_v2  ;;  %v2132_v59 = vld [vmem:[#allocation6 + $0x988] sm:$0xff]  ;;  %v2131_v0 = vld [vmem:[#allocation6 + $0x980] sm:$0xff] }
 0x21f   :  { %2479 = vmatpush2.msra.mxu1 %v2051_v4  ;;  %2409 = vmatprep.subr.mxu0 %v1920_v8  ;;  %v2260_v61 = vld [vmem:[#allocation6 + $0xd88] sm:$0xff]  ;;  %v2259_v2 = vld [vmem:[#allocation6 + $0xd80] sm:$0xff] }
 0x220   :  { %2480 = vmatprep.subr.mxu1 %v2048_v10  ;;  %2410 = vmatpush2.msra.mxu0 %v1919_v11  ;;  %v2128_v4 = vld [vmem:[#allocation6 + $0x968] sm:$0xff]  ;;  %v2127_v8 = vld [vmem:[#allocation6 + $0x960] sm:$0xff] }
 0x221   :  { %2481 = vmatpush2.msra.mxu1 %v2047_v12  ;;  %2411 = vmatprep.subr.mxu0 %v1916_v13  ;;  %v2256_v6 = vld [vmem:[#allocation6 + $0xd68] sm:$0xff]  ;;  %v2255_v10 = vld [vmem:[#allocation6 + $0xd60] sm:$0xff] }
 0x222   :  { %2482 = vmatprep.subr.mxu1 %v2044_v14  ;;  %2412 = vmatpush2.msra.mxu0 %v1915_v16  ;;  %v2124_v11 = vld [vmem:[#allocation6 + $0x948] sm:$0xff]  ;;  %v2123_v13 = vld [vmem:[#allocation6 + $0x940] sm:$0xff] }
 0x223   :  { %2483 = vmatpush2.msra.mxu1 %v2043_v18  ;;  %2413 = vmatprep.subr.mxu0 %v1912_v51  ;;  %v2252_v12 = vld [vmem:[#allocation6 + $0xd48] sm:$0xff]  ;;  %v2251_v14 = vld [vmem:[#allocation6 + $0xd40] sm:$0xff] }
 0x224   :  { %2484 = vmatprep.subr.mxu1 %v2040_v20  ;;  %2414 = vmatpush2.msra.mxu0 %v1911_v22  ;;  %v2120_v16 = vld [vmem:[#allocation6 + $0x928] sm:$0xff]  ;;  %v2119_v19 = vld [vmem:[#allocation6 + $0x920] sm:$0xff] }
 0x225   :  { %2485 = vmatpush2.msra.mxu1 %v2039_v23  ;;  %2415 = vmatprep.subr.mxu0 %v1908_v1  ;;  %v2248_v18 = vld [vmem:[#allocation6 + $0xd28] sm:$0xff]  ;;  %v2247_v51 = vld [vmem:[#allocation6 + $0xd20] sm:$0xff] }
 0x226   :  { %2486 = vmatprep.subr.mxu1 %v2036_v17  ;;  %2416 = vmatpush2.msra.mxu0 %v1907_v25  ;;  %v2116_v20 = vld [vmem:[#allocation6 + $0x908] sm:$0xff]  ;;  %v2115_v23 = vld [vmem:[#allocation6 + $0x900] sm:$0xff] }
 0x227   :  { %2487 = vmatpush2.msra.mxu1 %v2035_v7  ;;  %2417 = vmatprep.subr.mxu0 %v1904_v43  ;;  %v2244_v22 = vld [vmem:[#allocation6 + $0xd08] sm:$0xff]  ;;  %v2243_v24 = vld [vmem:[#allocation6 + $0xd00] sm:$0xff] }
 0x228   :  { %2488 = vmatprep.subr.mxu1 %v2032_v28  ;;  %2418 = vmatpush2.msra.mxu0 %v1903_v26  ;;  %v2112_v1 = vld [vmem:[#allocation6 + $0x8e8] sm:$0xff]  ;;  %v2111_v25 = vld [vmem:[#allocation6 + $0x8e0] sm:$0xff] }
 0x229   :  { %2489 = vmatpush2.msra.mxu1 %v2031_v30  ;;  %2419 = vmatprep.subr.mxu0 %v1900_v60  ;;  %v2240_v17 = vld [vmem:[#allocation6 + $0xce8] sm:$0xff]  ;;  %v2239_v7 = vld [vmem:[#allocation6 + $0xce0] sm:$0xff] }
 0x22a   :  { %2490 = vmatprep.subr.mxu1 %v2028_v32  ;;  %2420 = vmatpush2.msra.mxu0 %v1899_v33  ;;  %v2108_v43 = vld [vmem:[#allocation6 + $0x8c8] sm:$0xff]  ;;  %v2107_v26 = vld [vmem:[#allocation6 + $0x8c0] sm:$0xff] }
 0x22b   :  { %2491 = vmatpush2.msra.mxu1 %v2027_v34  ;;  %2421 = vmatprep.subr.mxu0 %v1896_v35  ;;  %v2236_v28 = vld [vmem:[#allocation6 + $0xcc8] sm:$0xff]  ;;  %v2235_v30 = vld [vmem:[#allocation6 + $0xcc0] sm:$0xff] }
 0x22c   :  { %2492 = vmatprep.subr.mxu1 %v2024_v36  ;;  %2422 = vmatpush2.msra.mxu0 %v1895_v37  ;;  %v2104_v31 = vld [vmem:[#allocation6 + $0x8a8] sm:$0xff]  ;;  %v2103_v32 = vld [vmem:[#allocation6 + $0x8a0] sm:$0xff] }
 0x22d   :  { %2493 = vmatpush2.msra.mxu1 %v2023_v38  ;;  %2423 = vmatprep.subr.mxu0 %v1892_v5  ;;  %v2232_v60 = vld [vmem:[#allocation6 + $0xca8] sm:$0xff]  ;;  %v2231_v33 = vld [vmem:[#allocation6 + $0xca0] sm:$0xff] }
 0x22e   :  { %2494 = vmatprep.subr.mxu1 %v2020_v42  ;;  %2424 = vmatpush2.msra.mxu0 %v1891_v44  ;;  %v2100_v34 = vld [vmem:[#allocation6 + $0x888] sm:$0xff]  ;;  %v2099_v36 = vld [vmem:[#allocation6 + $0x880] sm:$0xff] }
 0x22f   :  { %2495 = vmatpush2.msra.mxu1 %v2019_v45  ;;  %2426 = vmatmul.mubr.f32.vlgmr.msra.gmra.mxu0 %v6126_v48  ;;  %v2228_v35 = vld [vmem:[#allocation6 + $0xc88] sm:$0xff]  ;;  %v2227_v37 = vld [vmem:[#allocation6 + $0xc80] sm:$0xff] }
 0x230   :  { %2497 = vmatmul.mubr.f32.vlgmr.msra.gmra.mxu1 %v6128_v29  ;;  %2503 = vmatprep.subr.mxu0 %v2144_v46  ;;  %v2096_v38 = vld [vmem:[#allocation6 + $0x868] sm:$0xff]  ;;  %v2095_v40 = vld [vmem:[#allocation6 + $0x860] sm:$0xff] }
 0x231   :  { %2574 = vmatprep.subr.mxu1 %v2272_v47  ;;  %2504 = vmatpush1.msra.mxu0 %v2143_v49  ;;  %v2224_v15 = vld [vmem:[#allocation6 + $0xc68] sm:$0xff]  ;;  %v2223_v5 = vld [vmem:[#allocation6 + $0xc60] sm:$0xff] }
 0x232   :  { %2575 = vmatpush1.msra.mxu1 %v2271_v50  ;;  %2505 = vmatprep.subr.mxu0 %v2140_v52  ;;  %v2092_v42 = vld [vmem:[#allocation6 + $0x848] sm:$0xff]  ;;  %v2091_v45 = vld [vmem:[#allocation6 + $0x840] sm:$0xff] }
 0x233   :  { %2576 = vmatprep.subr.mxu1 %v2268_v54  ;;  %2506 = vmatpush1.msra.mxu0 %v2139_v27  ;;  %v2220_v44 = vld [vmem:[#allocation6 + $0xc48] sm:$0xff]  ;;  %v2219_v46 = vld [vmem:[#allocation6 + $0xc40] sm:$0xff] }
 0x234   :  { %2577 = vmatpush1.msra.mxu1 %v2267_v55  ;;  %2507 = vmatprep.subr.mxu0 %v2136_v9  ;;  %v2088_v47 = vld [vmem:[#allocation6 + $0x828] sm:$0xff]  ;;  %v2087_v50 = vld [vmem:[#allocation6 + $0x820] sm:$0xff] }
 0x235   :  { %2578 = vmatprep.subr.mxu1 %v2264_v57  ;;  %2508 = vmatpush1.msra.mxu0 %v2135_v39  ;;  %v2216_v49 = vld [vmem:[#allocation6 + $0xc28] sm:$0xff]  ;;  %v2215_v52 = vld [vmem:[#allocation6 + $0xc20] sm:$0xff] }
 0x236   :  { %2579 = vmatpush1.msra.mxu1 %v2263_v58  ;;  %2509 = vmatprep.subr.mxu0 %v2132_v59  ;;  %v2084_v54 = vld [vmem:[#allocation6 + $0x808] sm:$0xff]  ;;  %v2083_v55 = vld [vmem:[#allocation6 + $0x800] sm:$0xff] }
 0x237   :  { %2580 = vmatprep.subr.mxu1 %v2260_v61  ;;  %2510 = vmatpush1.msra.mxu0 %v2131_v0  ;;  %v2212_v27 = vld [vmem:[#allocation6 + $0xc08] sm:$0xff]  ;;  %v2211_v9 = vld [vmem:[#allocation6 + $0xc00] sm:$0xff] }
 0x238   :  { %2581 = vmatpush1.msra.mxu1 %v2259_v2  ;;  %2511 = vmatprep.subr.mxu0 %v2128_v4  ;;  %v2208_v57 = vld [vmem:[#allocation6 + $0xbe8] sm:$0xff]  ;;  %v2207_v58 = vld [vmem:[#allocation6 + $0xbe0] sm:$0xff] }
 0x239   :  { %2582 = vmatprep.subr.mxu1 %v2256_v6  ;;  %2512 = vmatpush1.msra.mxu0 %v2127_v8  ;;  %v2336_v39 = vld [vmem:[#allocation6 + $0xfe8] sm:$0xff]  ;;  %v2335_v59 = vld [vmem:[#allocation6 + $0xfe0] sm:$0xff] }
 0x23a   :  { %2583 = vmatpush1.msra.mxu1 %v2255_v10  ;;  %2513 = vmatprep.subr.mxu0 %v2124_v11  ;;  %v2204_v61 = vld [vmem:[#allocation6 + $0xbc8] sm:$0xff]  ;;  %v2203_v2 = vld [vmem:[#allocation6 + $0xbc0] sm:$0xff] }
 0x23b   :  { %2584 = vmatprep.subr.mxu1 %v2252_v12  ;;  %2514 = vmatpush1.msra.mxu0 %v2123_v13  ;;  %v2332_v0 = vld [vmem:[#allocation6 + $0xfc8] sm:$0xff]  ;;  %v2331_v4 = vld [vmem:[#allocation6 + $0xfc0] sm:$0xff] }
 0x23c   :  { %2585 = vmatpush1.msra.mxu1 %v2251_v14  ;;  %2515 = vmatprep.subr.mxu0 %v2120_v16  ;;  %v2200_v6 = vld [vmem:[#allocation6 + $0xba8] sm:$0xff]  ;;  %v2199_v10 = vld [vmem:[#allocation6 + $0xba0] sm:$0xff] }
 0x23d   :  { %2586 = vmatprep.subr.mxu1 %v2248_v18  ;;  %2516 = vmatpush1.msra.mxu0 %v2119_v19  ;;  %v2328_v8 = vld [vmem:[#allocation6 + $0xfa8] sm:$0xff]  ;;  %v2327_v11 = vld [vmem:[#allocation6 + $0xfa0] sm:$0xff] }
 0x23e   :  { %2587 = vmatpush1.msra.mxu1 %v2247_v51  ;;  %2517 = vmatprep.subr.mxu0 %v2116_v20  ;;  %v2196_v12 = vld [vmem:[#allocation6 + $0xb88] sm:$0xff]  ;;  %v2195_v14 = vld [vmem:[#allocation6 + $0xb80] sm:$0xff] }
 0x23f   :  { %2588 = vmatprep.subr.mxu1 %v2244_v22  ;;  %2518 = vmatpush1.msra.mxu0 %v2115_v23  ;;  %v2324_v13 = vld [vmem:[#allocation6 + $0xf88] sm:$0xff]  ;;  %v2323_v16 = vld [vmem:[#allocation6 + $0xf80] sm:$0xff] }
 0x240   :  { %2589 = vmatpush1.msra.mxu1 %v2243_v24  ;;  %2519 = vmatprep.subr.mxu0 %v2112_v1  ;;  %v2192_v18 = vld [vmem:[#allocation6 + $0xb68] sm:$0xff]  ;;  %v2191_v51 = vld [vmem:[#allocation6 + $0xb60] sm:$0xff] }
 0x241   :  { %2590 = vmatprep.subr.mxu1 %v2240_v17  ;;  %2520 = vmatpush1.msra.mxu0 %v2111_v25  ;;  %v2320_v19 = vld [vmem:[#allocation6 + $0xf68] sm:$0xff]  ;;  %v2319_v20 = vld [vmem:[#allocation6 + $0xf60] sm:$0xff] }
 0x242   :  { %2591 = vmatpush1.msra.mxu1 %v2239_v7  ;;  %2521 = vmatprep.subr.mxu0 %v2108_v43  ;;  %v2188_v22 = vld [vmem:[#allocation6 + $0xb48] sm:$0xff]  ;;  %v2187_v24 = vld [vmem:[#allocation6 + $0xb40] sm:$0xff] }
 0x243   :  { %2592 = vmatprep.subr.mxu1 %v2236_v28  ;;  %2522 = vmatpush1.msra.mxu0 %v2107_v26  ;;  %v2316_v23 = vld [vmem:[#allocation6 + $0xf48] sm:$0xff]  ;;  %v2315_v1 = vld [vmem:[#allocation6 + $0xf40] sm:$0xff] }
 0x244   :  { %2593 = vmatpush1.msra.mxu1 %v2235_v30  ;;  %2523 = vmatprep.subr.mxu0 %v2104_v31  ;;  %v2184_v17 = vld [vmem:[#allocation6 + $0xb28] sm:$0xff]  ;;  %v2183_v7 = vld [vmem:[#allocation6 + $0xb20] sm:$0xff] }
 0x245   :  { %2594 = vmatprep.subr.mxu1 %v2232_v60  ;;  %2524 = vmatpush1.msra.mxu0 %v2103_v32  ;;  %v2312_v25 = vld [vmem:[#allocation6 + $0xf28] sm:$0xff]  ;;  %v2311_v43 = vld [vmem:[#allocation6 + $0xf20] sm:$0xff]  ;;  %v929_v60 = vsub.s32 4, %v6038_v53 }
 0x246   :  { %2595 = vmatpush1.msra.mxu1 %v2231_v33  ;;  %2525 = vmatprep.subr.mxu0 %v2100_v34  ;;  %v2180_v28 = vld [vmem:[#allocation6 + $0xb08] sm:$0xff]  ;;  %v2179_v30 = vld [vmem:[#allocation6 + $0xb00] sm:$0xff] }
 0x247   :  { %2596 = vmatprep.subr.mxu1 %v2228_v35  ;;  %2526 = vmatpush1.msra.mxu0 %v2099_v36  ;;  %v2308_v26 = vld [vmem:[#allocation6 + $0xf08] sm:$0xff]  ;;  %v2307_v31 = vld [vmem:[#allocation6 + $0xf00] sm:$0xff]  ;;  %v933_v36 = vsub.s32 5, %v6038_v53 }
 0x248   :  { %2597 = vmatpush1.msra.mxu1 %v2227_v37  ;;  %2527 = vmatprep.subr.mxu0 %v2096_v38  ;;  %v2176_v32 = vld [vmem:[#allocation6 + $0xae8] sm:$0xff]  ;;  %v2175_v34 = vld [vmem:[#allocation6 + $0xae0] sm:$0xff] }
 0x249   :  { %2598 = vmatprep.subr.mxu1 %v2224_v15  ;;  %2528 = vmatpush1.msra.mxu0 %v2095_v40  ;;  %v2304_v33 = vld [vmem:[#allocation6 + $0xee8] sm:$0xff]  ;;  %v2303_v35 = vld [vmem:[#allocation6 + $0xee0] sm:$0xff]  ;;  %v1443_v15 = vpop.f32.mrf.mxu0 }
 0x24a   :  { %2599 = vmatpush1.msra.mxu1 %v2223_v5  ;;  %2529 = vmatprep.subr.mxu0 %v2092_v42  ;;  %v2172_v37 = vld [vmem:[#allocation6 + $0xac8] sm:$0xff]  ;;  %v2171_v40 = vld [vmem:[#allocation6 + $0xac0] sm:$0xff]  ;;  %v6134_v42 = vld [vmem:[#allocation4] sm:$0xff] }
 0x24b   :  { %2600 = vmatprep.subr.mxu1 %v2220_v44  ;;  %2530 = vmatpush1.msra.mxu0 %v2091_v45  ;;  %v2300_v38 = vld [vmem:[#allocation6 + $0xec8] sm:$0xff]  ;;  %v2299_v5 = vld [vmem:[#allocation6 + $0xec0] sm:$0xff]  ;;  %v930_v44 = vrot.slane %v6134_v42, %v929_v60 }
 0x24c   :  { %2601 = vmatpush1.msra.mxu1 %v2219_v46  ;;  %2531 = vmatprep.subr.mxu0 %v2088_v47  ;;  %v2168_v45 = vld [vmem:[#allocation6 + $0xaa8] sm:$0xff]  ;;  %v2167_v47 = vld [vmem:[#allocation6 + $0xaa0] sm:$0xff] }
 0x24d   :  { %2602 = vmatprep.subr.mxu1 %v2216_v49  ;;  %2532 = vmatpush1.msra.mxu0 %v2087_v50  ;;  %v2296_v46 = vld [vmem:[#allocation6 + $0xea8] sm:$0xff]  ;;  %v2295_v49 = vld [vmem:[#allocation6 + $0xea0] sm:$0xff]  ;;  %v934_v50 = vrot.slane %v6134_v42, %v933_v36  ;;  %v1878_v36 = vld [vmem:[#allocation6 + $0x198] sm:$0xff] }
 0x24e   :  { %2603 = vmatpush1.msra.mxu1 %v2215_v52  ;;  %2533 = vmatprep.subr.mxu0 %v2084_v54  ;;  %v2164_v52 = vld [vmem:[#allocation6 + $0xa88] sm:$0xff] }
 0x24f   :  { %2604 = vmatprep.subr.mxu1 %v2212_v27  ;;  %2534 = vmatpush1.msra.mxu0 %v2083_v55  ;;  %v2292_v54 = vld [vmem:[#allocation6 + $0xe88] sm:$0xff]  ;;  %v1514_v27 = vpop.f32.mrf.mxu1  ;;  %v1445_v55 = vpop.f32.mrf.mxu0 }
 0x250   :  { %2605 = vmatpush1.msra.mxu1 %v2211_v9  ;;  %2535 = vmatprep.subr.mxu0 %v2208_v57  ;;  %v2163_v9 = vld [vmem:[#allocation6 + $0xa80] sm:$0xff] }
 0x251   :  { %2606 = vmatprep.subr.mxu1 %v2336_v39  ;;  %2536 = vmatpush2.msra.mxu0 %v2207_v58  ;;  %v2291_v57 = vld [vmem:[#allocation6 + $0xe80] sm:$0xff]  ;;  %v1444_v39 = vadd.f32 %v1443_v15, %v930_v44  ;;  %v2160_v58 = vld [vmem:[#allocation6 + $0xa68] sm:$0xff]  ;;  %v1873_v15 = vld [vmem:[#allocation6 + $0x170] sm:$0xff] }
 0x252   :  { %2607 = vmatpush2.msra.mxu1 %v2335_v59  ;;  %2537 = vmatprep.subr.mxu0 %v2204_v61  ;;  %v2288_v59 = vld [vmem:[#allocation6 + $0xe68] sm:$0xff]  ;;  %v2159_v61 = vld [vmem:[#allocation6 + $0xa60] sm:$0xff]  ;;  %v1866_v44 = vld [vmem:[#allocation6 + $0x138] sm:$0xff] }
 0x253   :  { %2608 = vmatprep.subr.mxu1 %v2332_v0  ;;  %2538 = vmatpush2.msra.mxu0 %v2203_v2  ;;  %v2287_v0 = vld [vmem:[#allocation6 + $0xe60] sm:$0xff]  ;;  %v1446_v2 = vadd.f32 %v1445_v55, %v934_v50  ;;  %v1854_v50 = vld [vmem:[#allocation6 + $0xd8] sm:$0xff] }
 0x254   :  { %2609 = vmatpush2.msra.mxu1 %v2331_v4  ;;  %2539 = vmatprep.subr.mxu0 %v2200_v6  ;;  %v2156_v4 = vld [vmem:[#allocation6 + $0xa48] sm:$0xff]  ;;  %v1846_v55 = vld [vmem:[#allocation6 + $0x98] sm:$0xff] }
 0x255   :  { %2610 = vmatprep.subr.mxu1 %v2328_v8  ;;  %2540 = vmatpush2.msra.mxu0 %v2199_v10  ;;  %v2284_v6 = vld [vmem:[#allocation6 + $0xe48] sm:$0xff]  ;;  %v1516_v8 = vpop.f32.mrf.mxu1  ;;  %v2155_v10 = vld [vmem:[#allocation6 + $0xa40] sm:$0xff] }
 0x256   :  { %2611 = vmatpush2.msra.mxu1 %v2327_v11  ;;  %2541 = vmatprep.subr.mxu0 %v2196_v12  ;;  %v2283_v11 = vld [vmem:[#allocation6 + $0xe40] sm:$0xff]  ;;  %v1515_v12 = vadd.f32 %v1514_v27, %v1444_v39  ;;  %v1849_v27 = vld [vmem:[#allocation6 + $0xb0] sm:$0xff] }
 0x257   :  { %2612 = vmatprep.subr.mxu1 %v2324_v13  ;;  %2542 = vmatpush2.msra.mxu0 %v2195_v14  ;;  %v2152_v13 = vld [vmem:[#allocation6 + $0xa28] sm:$0xff]  ;;  %v1841_v39 = vld [vmem:[#allocation6 + $0x70] sm:$0xff] }
 0x258   :  { %2613 = vmatpush2.msra.mxu1 %v2323_v16  ;;  %2543 = vmatprep.subr.mxu0 %v2192_v18  ;;  %v2280_v14 = vld [vmem:[#allocation6 + $0xe28] sm:$0xff]  ;;  %v2151_v18 = vld [vmem:[#allocation6 + $0xa20] sm:$0xff] }
 0x259   :  { %2614 = vmatprep.subr.mxu1 %v2320_v19  ;;  %2544 = vmatpush2.msra.mxu0 %v2191_v51  ;;  %v2279_v19 = vld [vmem:[#allocation6 + $0xe20] sm:$0xff]  ;;  %v1517_v51 = vadd.f32 %v1516_v8, %v1446_v2  ;;  %v1830_v2 = vld [vmem:[#allocation6 + $0x18] sm:$0xff]  ;;  %v1953_v8 = vld [vmem:[#allocation6 + $0x3f0] sm:$0xff] }
 0x25a   :  { %2615 = vmatpush2.msra.mxu1 %v2319_v20  ;;  %2545 = vmatprep.subr.mxu0 %v2188_v22  ;;  %v2148_v22 = vld [vmem:[#allocation6 + $0xa08] sm:$0xff] }
 0x25b   :  { %2616 = vmatprep.subr.mxu1 %v2316_v23  ;;  %2546 = vmatpush2.msra.mxu0 %v2187_v24  ;;  %v2276_v23 = vld [vmem:[#allocation6 + $0xe08] sm:$0xff] }
 0x25c   :  { %2617 = vmatpush2.msra.mxu1 %v2315_v1  ;;  %2547 = vmatprep.subr.mxu0 %v2184_v17  ;;  %v2147_v1 = vld [vmem:[#allocation6 + $0xa00] sm:$0xff] }
 0x25d   :  { %2618 = vmatprep.subr.mxu1 %v2312_v25  ;;  %2548 = vmatpush2.msra.mxu0 %v2183_v7  ;;  %v2275_v17 = vld [vmem:[#allocation6 + $0xe00] sm:$0xff]  ;;  %v1890_v7 = vld [vmem:[#allocation6 + $0x1f8] sm:$0xff] }
 0x25e   :  { %2619 = vmatpush2.msra.mxu1 %v2311_v43  ;;  %2549 = vmatprep.subr.mxu0 %v2180_v28  ;;  %v2018_v43 = vld [vmem:[#allocation6 + $0x5f8] sm:$0xff] }
 0x25f   :  { %2620 = vmatprep.subr.mxu1 %v2308_v26  ;;  %2550 = vmatpush2.msra.mxu0 %v2179_v30 }
 0x260   :  { %2621 = vmatpush2.msra.mxu1 %v2307_v31  ;;  %2551 = vmatprep.subr.mxu0 %v2176_v32  ;;  %v1889_v31 = vld [vmem:[#allocation6 + $0x1f0] sm:$0xff]  ;;  %v1886_v32 = vld [vmem:[#allocation6 + $0x1d8] sm:$0xff] }
 0x261   :  { %2622 = vmatprep.subr.mxu1 %v2304_v33  ;;  %2552 = vmatpush2.msra.mxu0 %v2175_v34  ;;  %v1885_v33 = vld [vmem:[#allocation6 + $0x1d0] sm:$0xff]  ;;  %v1882_v34 = vld [vmem:[#allocation6 + $0x1b8] sm:$0xff] }
 0x262   :  { %2623 = vmatpush2.msra.mxu1 %v2303_v35  ;;  %2553 = vmatprep.subr.mxu0 %v2172_v37  ;;  %v1881_v35 = vld [vmem:[#allocation6 + $0x1b0] sm:$0xff] }
 0x263   :  { %2624 = vmatprep.subr.mxu1 %v2300_v38  ;;  %2554 = vmatpush2.msra.mxu0 %v2171_v40  ;;  %v1877_v37 = vld [vmem:[#allocation6 + $0x190] sm:$0xff]  ;;  %v1874_v38 = vld [vmem:[#allocation6 + $0x178] sm:$0xff] }
 0x264   :  { %2625 = vmatpush2.msra.mxu1 %v2299_v5  ;;  %2555 = vmatprep.subr.mxu0 %v2168_v45  ;;  %v1870_v40 = vld [vmem:[#allocation6 + $0x158] sm:$0xff]  ;;  %v1869_v5 = vld [vmem:[#allocation6 + $0x150] sm:$0xff] }
 0x265   :  { %2626 = vmatprep.subr.mxu1 %v2296_v46  ;;  %2556 = vmatpush2.msra.mxu0 %v2167_v47  ;;  %v1865_v45 = vld [vmem:[#allocation6 + $0x130] sm:$0xff]  ;;  %v1858_v47 = vld [vmem:[#allocation6 + $0xf8] sm:$0xff] }
 0x266   :  { %2627 = vmatpush2.msra.mxu1 %v2295_v49  ;;  %2557 = vmatprep.subr.mxu0 %v2164_v52  ;;  %v1861_v46 = vld [vmem:[#allocation6 + $0x110] sm:$0xff] }
 0x267   :  { %2628 = vmatprep.subr.mxu1 %v2292_v54  ;;  %2558 = vmatpush2.msra.mxu0 %v2163_v9  ;;  %v1857_v49 = vld [vmem:[#allocation6 + $0xf0] sm:$0xff]  ;;  %v1850_v54 = vld [vmem:[#allocation6 + $0xb8] sm:$0xff] }
 0x268   :  { %2629 = vmatpush2.msra.mxu1 %v2291_v57  ;;  %2559 = vmatprep.subr.mxu0 %v2160_v58  ;;  %v1853_v52 = vld [vmem:[#allocation6 + $0xd0] sm:$0xff]  ;;  %v1842_v57 = vld [vmem:[#allocation6 + $0x78] sm:$0xff] }
 0x269   :  { %2630 = vmatprep.subr.mxu1 %v2288_v59  ;;  %2560 = vmatpush2.msra.mxu0 %v2159_v61  ;;  %v1845_v9 = vld [vmem:[#allocation6 + $0x90] sm:$0xff]  ;;  %v1838_v58 = vld [vmem:[#allocation6 + $0x58] sm:$0xff] }
 0x26a   :  { %2631 = vmatpush2.msra.mxu1 %v2287_v0  ;;  %2561 = vmatprep.subr.mxu0 %v2156_v4  ;;  %v1837_v59 = vld [vmem:[#allocation6 + $0x50] sm:$0xff]  ;;  %v1834_v61 = vld [vmem:[#allocation6 + $0x38] sm:$0xff] }
 0x26b   :  { %v1585_v16 = vpop.f32.mrf.mxu0  ;;  %2632 = vmatprep.subr.mxu1 %v2284_v6  ;;  %2562 = vmatpush2.msra.mxu0 %v2155_v10  ;;  %v1833_v0 = vld [vmem:[#allocation6 + $0x30] sm:$0xff]  ;;  %v1954_v6 = vld [vmem:[#allocation6 + $0x3f8] sm:$0xff] }
 0x26c   :  { %v1586_v20 = vadd.f32 %v1585_v16, %v1515_v12  ;;  %2633 = vmatpush2.msra.mxu1 %v2283_v11  ;;  %2563 = vmatprep.subr.mxu0 %v2152_v13  ;;  %v1829_v4 = vld [vmem:[#allocation6 + $0x10] sm:$0xff]  ;;  %v1950_v10 = vld [vmem:[#allocation6 + $0x3d8] sm:$0xff] }
 0x26d   :  { %v1587_v24 = vpop.f32.mrf.mxu0  ;;  %2634 = vmatprep.subr.mxu1 %v2280_v14  ;;  %2564 = vmatpush2.msra.mxu0 %v2151_v18  ;;  %v1949_v11 = vld [vmem:[#allocation6 + $0x3d0] sm:$0xff]  ;;  %v1946_v12 = vld [vmem:[#allocation6 + $0x3b8] sm:$0xff] }
 0x26e   :  { %v1588_v25 = vadd.f32 %v1587_v24, %v1517_v51  ;;  %2635 = vmatpush2.msra.mxu1 %v2279_v19  ;;  %v1815_v28 = vmul.f32 0.01, %v1586_v20  ;;  %2565 = vmatprep.subr.mxu0 %v2148_v22  ;;  %vm1807_vm4 = vcmp.ge.f32.partialorder %v1586_v20, 0.0  ;;  %v1945_v13 = vld [vmem:[#allocation6 + $0x3b0] sm:$0xff]  ;;  %v1942_v14 = vld [vmem:[#allocation6 + $0x398] sm:$0xff] }
 0x26f   :  { %2636 = vmatprep.subr.mxu1 %v2276_v23  ;;  %2566 = vmatpush2.msra.mxu0 %v2147_v1  ;;  %v1941_v16 = vld [vmem:[#allocation6 + $0x390] sm:$0xff]  ;;  %v1938_v18 = vld [vmem:[#allocation6 + $0x378] sm:$0xff] }
 0x270   :  { %v1816_v26 = vmul.f32 0.01, %v1588_v25  ;;  %vm1808_vm5 = vcmp.ge.f32.partialorder %v1588_v25, 0.0  ;;  %2637 = vmatpush2.msra.mxu1 %v2275_v17  ;;  %2645 = vmatprep.subr.mxu0 %v1890_v7  ;;  %v6141_v60 = vsel %vm1807_vm4, %v1586_v20, %v1815_v28  ;;  %v1937_v19 = vld [vmem:[#allocation6 + $0x370] sm:$0xff]  ;;  %v1934_v51 = vld [vmem:[#allocation6 + $0x358] sm:$0xff]  ;;  %v937_v28 = vsub.s32 6, %v6038_v53 }
 0x271   :  { %2716 = vmatprep.subr.mxu1 %v2018_v43  ;;  %v1933_v20 = vld [vmem:[#allocation6 + $0x350] sm:$0xff]  ;;  %v1930_v22 = vld [vmem:[#allocation6 + $0x338] sm:$0xff] }
 0x272   :  { %v6138_v30 = vsel %vm1808_vm5, %v1588_v25, %v1816_v26  ;;  %v1929_v23 = vld [vmem:[#allocation6 + $0x330] sm:$0xff]  ;;  %v1926_v24 = vld [vmem:[#allocation6 + $0x318] sm:$0xff] }
 0x273   :  { %2567 = vmatprep.mubr.f32.mxu0 %v6138_v30  ;;  %v1925_v1 = vld [vmem:[#allocation6 + $0x310] sm:$0xff]  ;;  %v1922_v17 = vld [vmem:[#allocation6 + $0x2f8] sm:$0xff] }
 0x274   :  { %2568 = vmatmul.mubr.f32.vlgmr.msra.gmra.mxu0 %v6141_v60  ;;  %v1921_v25 = vld [vmem:[#allocation6 + $0x2f0] sm:$0xff]  ;;  %v1918_v7 = vld [vmem:[#allocation6 + $0x2d8] sm:$0xff] }
 0x275   :  { %2646 = vmatpush1.msra.mxu0 %v1889_v31  ;;  %2709 = vmatprep.mubr.f32.mxu0 %v6109_v63  ;;  %v1862_v63 = vld [vmem:[#allocation6 + $0x118] sm:$0xff]  ;;  %v1917_v43 = vld [vmem:[#allocation6 + $0x2d0] sm:$0xff] }
 0x276   :  { %2647 = vmatprep.subr.mxu0 %v1886_v32  ;;  %v1914_v26 = vld [vmem:[#allocation6 + $0x2b8] sm:$0xff]  ;;  %v1913_v31 = vld [vmem:[#allocation6 + $0x2b0] sm:$0xff]  ;;  %v941_v32 = vsub.s32 7, %v6038_v53 }
 0x277   :  { %2648 = vmatpush1.msra.mxu0 %v1885_v33  ;;  %v1910_v33 = vld [vmem:[#allocation6 + $0x298] sm:$0xff] }
 0x278   :  { %2649 = vmatprep.subr.mxu0 %v1882_v34  ;;  %v1656_v34 = vpop.f32.mrf.mxu1  ;;  %v1898_v53 = vld [vmem:[#allocation6 + $0x238] sm:$0xff] }
 0x279   :  { %2650 = vmatpush1.msra.mxu0 %v1881_v35  ;;  %v1909_v35 = vld [vmem:[#allocation6 + $0x290] sm:$0xff] }
 0x27a   :  { %2651 = vmatprep.subr.mxu0 %v1878_v36  ;;  %v938_v36 = vrot.slane %v6134_v42, %v937_v28  ;;  %v2117_v28 = vld [vmem:[#allocation6 + $0x910] sm:$0xff] }
 0x27b   :  { %2652 = vmatpush1.msra.mxu0 %v1877_v37  ;;  %v1906_v37 = vld [vmem:[#allocation6 + $0x278] sm:$0xff] }
 0x27c   :  { %2653 = vmatprep.subr.mxu0 %v1874_v38  ;;  %v1905_v38 = vld [vmem:[#allocation6 + $0x270] sm:$0xff] }
 0x27d   :  { %2654 = vmatpush1.msra.mxu0 %v1873_v15  ;;  %v942_v15 = vrot.slane %v6134_v42, %v941_v32  ;;  %v1993_v32 = vld [vmem:[#allocation6 + $0x530] sm:$0xff] }
 0x27e   :  { %2655 = vmatprep.subr.mxu0 %v1870_v40  ;;  %v1902_v40 = vld [vmem:[#allocation6 + $0x258] sm:$0xff] }
 0x27f   :  { %2656 = vmatpush1.msra.mxu0 %v1869_v5  ;;  %v1658_v5 = vpop.f32.mrf.mxu1 }
 0x280   :  { %2657 = vmatprep.subr.mxu0 %v1866_v44  ;;  %v1901_v44 = vld [vmem:[#allocation6 + $0x250] sm:$0xff] }
 0x281   :  { %2658 = vmatpush1.msra.mxu0 %v1865_v45  ;;  %v1657_v45 = vadd.f32 %v1656_v34, %v938_v36  ;;  %v1990_v34 = vld [vmem:[#allocation6 + $0x518] sm:$0xff]  ;;  %v1989_v36 = vld [vmem:[#allocation6 + $0x510] sm:$0xff] }
 0x282   :  { %2659 = vmatprep.subr.mxu0 %v1862_v63 }
 0x283   :  { %2660 = vmatpush1.msra.mxu0 %v1861_v46 }
 0x284   :  { %2661 = vmatprep.subr.mxu0 %v1858_v47  ;;  %v1897_v47 = vld [vmem:[#allocation6 + $0x230] sm:$0xff] }
 0x285   :  { %2662 = vmatpush1.msra.mxu0 %v1857_v49  ;;  %v1659_v49 = vadd.f32 %v1658_v5, %v942_v15  ;;  %v2106_v15 = vld [vmem:[#allocation6 + $0x8b8] sm:$0xff]  ;;  %v2105_v5 = vld [vmem:[#allocation6 + $0x8b0] sm:$0xff] }
 0x286   :  { %2663 = vmatprep.subr.mxu0 %v1854_v50 }
 0x287   :  { %2664 = vmatpush1.msra.mxu0 %v1853_v52  ;;  %v1894_v52 = vld [vmem:[#allocation6 + $0x218] sm:$0xff] }
 0x288   :  { %2665 = vmatprep.subr.mxu0 %v1850_v54 }
 0x289   :  { %2666 = vmatpush1.msra.mxu0 %v1849_v27  ;;  %v1893_v27 = vld [vmem:[#allocation6 + $0x210] sm:$0xff] }
 0x28a   :  { %2667 = vmatprep.subr.mxu0 %v1846_v55 }
 0x28b   :  { %2668 = vmatpush1.msra.mxu0 %v1845_v9  ;;  %v2146_v9 = vld [vmem:[#allocation6 + $0x9f8] sm:$0xff] }
 0x28c   :  { %2669 = vmatprep.subr.mxu0 %v1842_v57 }
 0x28d   :  { %2670 = vmatpush1.msra.mxu0 %v1841_v39  ;;  %v2145_v39 = vld [vmem:[#allocation6 + $0x9f0] sm:$0xff] }
 0x28e   :  { %2671 = vmatprep.subr.mxu0 %v1838_v58 }
 0x28f   :  { %2672 = vmatpush1.msra.mxu0 %v1837_v59  ;;  %v2142_v59 = vld [vmem:[#allocation6 + $0x9d8] sm:$0xff] }
 0x290   :  { %2673 = vmatprep.subr.mxu0 %v1834_v61 }
 0x291   :  { %2674 = vmatpush1.msra.mxu0 %v1833_v0  ;;  %v2141_v0 = vld [vmem:[#allocation6 + $0x9d0] sm:$0xff] }
 0x292   :  { %2675 = vmatprep.subr.mxu0 %v1830_v2 }
 0x293   :  { %2676 = vmatpush1.msra.mxu0 %v1829_v4  ;;  %v2138_v4 = vld [vmem:[#allocation6 + $0x9b8] sm:$0xff] }
 0x294   :  { %2677 = vmatprep.subr.mxu0 %v1954_v6  ;;  %v2137_v6 = vld [vmem:[#allocation6 + $0x9b0] sm:$0xff] }
 0x295   :  { %2678 = vmatpush2.msra.mxu0 %v1953_v8 }
 0x296   :  { %2679 = vmatprep.subr.mxu0 %v1950_v10  ;;  %v2017_v10 = vld [vmem:[#allocation6 + $0x5f0] sm:$0xff] }
 0x297   :  { %2680 = vmatpush2.msra.mxu0 %v1949_v11 }
 0x298   :  { %2681 = vmatprep.subr.mxu0 %v1946_v12  ;;  %v2134_v12 = vld [vmem:[#allocation6 + $0x998] sm:$0xff] }
 0x299   :  { %2682 = vmatpush2.msra.mxu0 %v1945_v13  ;;  %v2013_v13 = vld [vmem:[#allocation6 + $0x5d0] sm:$0xff] }
 0x29a   :  { %2683 = vmatprep.subr.mxu0 %v1942_v14  ;;  %v2010_v14 = vld [vmem:[#allocation6 + $0x5b8] sm:$0xff] }
 0x29b   :  { %2684 = vmatpush2.msra.mxu0 %v1941_v16  ;;  %v2130_v16 = vld [vmem:[#allocation6 + $0x978] sm:$0xff] }
 0x29c   :  { %2685 = vmatprep.subr.mxu0 %v1938_v18  ;;  %v2009_v18 = vld [vmem:[#allocation6 + $0x5b0] sm:$0xff] }
 0x29d   :  { %2686 = vmatpush2.msra.mxu0 %v1937_v19  ;;  %v2129_v19 = vld [vmem:[#allocation6 + $0x970] sm:$0xff] }
 0x29e   :  { %2687 = vmatprep.subr.mxu0 %v1934_v51  ;;  %v2006_v51 = vld [vmem:[#allocation6 + $0x598] sm:$0xff] }
 0x29f   :  { %2688 = vmatpush2.msra.mxu0 %v1933_v20  ;;  %v2126_v20 = vld [vmem:[#allocation6 + $0x958] sm:$0xff] }
 0x2a0   :  { %2689 = vmatprep.subr.mxu0 %v1930_v22  ;;  %v2005_v22 = vld [vmem:[#allocation6 + $0x590] sm:$0xff] }
 0x2a1   :  { %2690 = vmatpush2.msra.mxu0 %v1929_v23  ;;  %v2125_v23 = vld [vmem:[#allocation6 + $0x950] sm:$0xff] }
 0x2a2   :  { %2691 = vmatprep.subr.mxu0 %v1926_v24  ;;  %v2002_v24 = vld [vmem:[#allocation6 + $0x578] sm:$0xff] }
 0x2a3   :  { %2692 = vmatpush2.msra.mxu0 %v1925_v1  ;;  %v2122_v1 = vld [vmem:[#allocation6 + $0x938] sm:$0xff] }
 0x2a4   :  { %2693 = vmatprep.subr.mxu0 %v1922_v17  ;;  %v2121_v17 = vld [vmem:[#allocation6 + $0x930] sm:$0xff] }
 0x2a5   :  { %2694 = vmatpush2.msra.mxu0 %v1921_v25  ;;  %v1998_v25 = vld [vmem:[#allocation6 + $0x558] sm:$0xff] }
 0x2a6   :  { %2695 = vmatprep.subr.mxu0 %v1918_v7  ;;  %v2118_v7 = vld [vmem:[#allocation6 + $0x918] sm:$0xff] }
 0x2a7   :  { %2696 = vmatpush2.msra.mxu0 %v1917_v43  ;;  %v1997_v43 = vld [vmem:[#allocation6 + $0x550] sm:$0xff] }
 0x2a8   :  { %2697 = vmatprep.subr.mxu0 %v1914_v26  ;;  %v1994_v26 = vld [vmem:[#allocation6 + $0x538] sm:$0xff] }
 0x2a9   :  { %2698 = vmatpush2.msra.mxu0 %v1913_v31  ;;  %v2114_v31 = vld [vmem:[#allocation6 + $0x8f8] sm:$0xff] }
 0x2aa   :  { %2699 = vmatprep.subr.mxu0 %v1910_v33  ;;  %v2113_v33 = vld [vmem:[#allocation6 + $0x8f0] sm:$0xff] }
 0x2ab   :  { %2700 = vmatpush2.msra.mxu0 %v1909_v35  ;;  %v2110_v35 = vld [vmem:[#allocation6 + $0x8d8] sm:$0xff] }
 0x2ac   :  { %2701 = vmatprep.subr.mxu0 %v1906_v37  ;;  %v2109_v37 = vld [vmem:[#allocation6 + $0x8d0] sm:$0xff] }
 0x2ad   :  { %2702 = vmatpush2.msra.mxu0 %v1905_v38  ;;  %v1727_v63 = vpop.f32.mrf.mxu0  ;;  %v1986_v38 = vld [vmem:[#allocation6 + $0x4f8] sm:$0xff] }
 0x2ae   :  { %v1798_v46 = vpop.f32.mrf.mxu1  ;;  %2703 = vmatprep.subr.mxu0 %v1902_v40  ;;  %v1728_v50 = vadd.f32 %v1727_v63, %v1657_v45  ;;  %v1985_v40 = vld [vmem:[#allocation6 + $0x4f0] sm:$0xff]  ;;  %v2102_v45 = vld [vmem:[#allocation6 + $0x898] sm:$0xff] }
 0x2af   :  { %2704 = vmatpush2.msra.mxu0 %v1901_v44  ;;  %v1729_v54 = vpop.f32.mrf.mxu0  ;;  %v1982_v44 = vld [vmem:[#allocation6 + $0x4d8] sm:$0xff]  ;;  %v2101_v63 = vld [vmem:[#allocation6 + $0x890] sm:$0xff] }
 0x2b0   :  { %2705 = vmatprep.subr.mxu0 %v1898_v53  ;;  %v1799_v42 = vadd.f32 %v1798_v46, %v1728_v50  ;;  %v1730_v55 = vadd.f32 %v1729_v54, %v1659_v49  ;;  %v1800_v57 = vpop.f32.mrf.mxu1  ;;  %v1981_v53 = vld [vmem:[#allocation6 + $0x4d0] sm:$0xff]  ;;  %v1978_v46 = vld [vmem:[#allocation6 + $0x4b8] sm:$0xff] }
 0x2b1   :  { %2706 = vmatpush2.msra.mxu0 %v1897_v47  ;;  %v2098_v47 = vld [vmem:[#allocation6 + $0x878] sm:$0xff]  ;;  %v1977_v49 = vld [vmem:[#allocation6 + $0x4b0] sm:$0xff] }
 0x2b2   :  { %2707 = vmatprep.subr.mxu0 %v1894_v52  ;;  %v1801_v58 = vadd.f32 %v1800_v57, %v1730_v55  ;;  %v1817_v61 = vmul.f32 0.01, %v1799_v42  ;;  %vm1809_vm6 = vcmp.ge.f32.partialorder %v1799_v42, 0.0  ;;  %v2097_v50 = vld [vmem:[#allocation6 + $0x870] sm:$0xff]  ;;  %v1974_v52 = vld [vmem:[#allocation6 + $0x498] sm:$0xff] }
 0x2b3   :  { %2708 = vmatpush2.msra.mxu0 %v1893_v27  ;;  %v2094_v54 = vld [vmem:[#allocation6 + $0x858] sm:$0xff]  ;;  %v1973_v27 = vld [vmem:[#allocation6 + $0x490] sm:$0xff] }
 0x2b4   :  { %2710 = vmatmul.mubr.f32.vlgmr.msra.gmra.mxu0 %v6126_v48  ;;  %2787 = vmatprep.subr.mxu0 %v2146_v9  ;;  %v1818_v2 = vmul.f32 0.01, %v1801_v58  ;;  %vm1810_vm7 = vcmp.ge.f32.partialorder %v1801_v58, 0.0  ;;  %v6154_v11 = vsel %vm1809_vm6, %v1799_v42, %v1817_v61  ;;  %v2014_v48 = vld [vmem:[#allocation6 + $0x5d8] sm:$0xff]  ;;  %v2093_v42 = vld [vmem:[#allocation6 + $0x850] sm:$0xff] }
 0x2b5   :  { %2788 = vmatpush1.msra.mxu0 %v2145_v39  ;;  %2851 = vmatprep.mubr.f32.mxu0 %v6138_v30  ;;  %v2133_v30 = vld [vmem:[#allocation6 + $0x990] sm:$0xff]  ;;  %v1970_v55 = vld [vmem:[#allocation6 + $0x478] sm:$0xff] }
 0x2b6   :  { %2789 = vmatprep.subr.mxu0 %v2142_v59  ;;  %v6151_v8 = vsel %vm1810_vm7, %v1801_v58, %v1818_v2  ;;  %v2090_v9 = vld [vmem:[#allocation6 + $0x838] sm:$0xff]  ;;  %v1969_v57 = vld [vmem:[#allocation6 + $0x470] sm:$0xff] }
 0x2b7   :  { %2790 = vmatpush1.msra.mxu0 %v2141_v0  ;;  %2638 = vmatprep.mubr.f32.mxu1 %v6151_v8  ;;  %v2089_v39 = vld [vmem:[#allocation6 + $0x830] sm:$0xff]  ;;  %v1966_v58 = vld [vmem:[#allocation6 + $0x458] sm:$0xff] }
 0x2b8   :  { %2791 = vmatprep.subr.mxu0 %v2138_v4  ;;  %2639 = vmatmul.mubr.f32.vlgmr.msra.gmra.mxu1 %v6154_v11  ;;  %v2086_v59 = vld [vmem:[#allocation6 + $0x818] sm:$0xff]  ;;  %v1965_v61 = vld [vmem:[#allocation6 + $0x450] sm:$0xff] }
 0x2b9   :  { %2792 = vmatpush1.msra.mxu0 %v2137_v6  ;;  %2717 = vmatpush1.msra.mxu1 %v2017_v10  ;;  %v2085_v0 = vld [vmem:[#allocation6 + $0x810] sm:$0xff]  ;;  %v1962_v2 = vld [vmem:[#allocation6 + $0x438] sm:$0xff] }
 0x2ba   :  { %2780 = vmatprep.mubr.f32.mxu1 %v6112_v41  ;;  %2718 = vmatprep.subr.mxu1 %v2014_v48  ;;  %v2001_v41 = vld [vmem:[#allocation6 + $0x570] sm:$0xff]  ;;  %v2210_v4 = vld [vmem:[#allocation6 + $0xbf8] sm:$0xff] }
 0x2bb   :  { %2793 = vmatprep.subr.mxu0 %v2134_v12  ;;  %2719 = vmatpush1.msra.mxu1 %v2013_v13  ;;  %v1961_v6 = vld [vmem:[#allocation6 + $0x430] sm:$0xff]  ;;  %v1958_v48 = vld [vmem:[#allocation6 + $0x418] sm:$0xff] }
 0x2bc   :  { %2794 = vmatpush1.msra.mxu0 %v2133_v30  ;;  %2720 = vmatprep.subr.mxu1 %v2010_v14  ;;  %v2209_v10 = vld [vmem:[#allocation6 + $0xbf0] sm:$0xff]  ;;  %v2206_v12 = vld [vmem:[#allocation6 + $0xbd8] sm:$0xff] }
 0x2bd   :  { %2795 = vmatprep.subr.mxu0 %v2130_v16  ;;  %2721 = vmatpush1.msra.mxu1 %v2009_v18  ;;  %v1957_v13 = vld [vmem:[#allocation6 + $0x410] sm:$0xff]  ;;  %v2082_v14 = vld [vmem:[#allocation6 + $0x7f8] sm:$0xff] }
 0x2be   :  { %2796 = vmatpush1.msra.mxu0 %v2129_v19  ;;  %2722 = vmatprep.subr.mxu1 %v2006_v51  ;;  %v2205_v30 = vld [vmem:[#allocation6 + $0xbd0] sm:$0xff]  ;;  %v2202_v16 = vld [vmem:[#allocation6 + $0xbb8] sm:$0xff] }
 0x2bf   :  { %2797 = vmatprep.subr.mxu0 %v2126_v20  ;;  %2723 = vmatpush1.msra.mxu1 %v2005_v22  ;;  %v2081_v18 = vld [vmem:[#allocation6 + $0x7f0] sm:$0xff]  ;;  %v2078_v51 = vld [vmem:[#allocation6 + $0x7d8] sm:$0xff] }
 0x2c0   :  { %2798 = vmatpush1.msra.mxu0 %v2125_v23  ;;  %2724 = vmatprep.subr.mxu1 %v2002_v24  ;;  %v2201_v19 = vld [vmem:[#allocation6 + $0xbb0] sm:$0xff]  ;;  %v2198_v20 = vld [vmem:[#allocation6 + $0xb98] sm:$0xff] }
 0x2c1   :  { %2799 = vmatprep.subr.mxu0 %v2122_v1  ;;  %2725 = vmatpush1.msra.mxu1 %v2001_v41  ;;  %v2077_v22 = vld [vmem:[#allocation6 + $0x7d0] sm:$0xff]  ;;  %v2074_v24 = vld [vmem:[#allocation6 + $0x7b8] sm:$0xff] }
 0x2c2   :  { %2800 = vmatpush1.msra.mxu0 %v2121_v17  ;;  %2726 = vmatprep.subr.mxu1 %v1998_v25  ;;  %v2197_v23 = vld [vmem:[#allocation6 + $0xb90] sm:$0xff]  ;;  %v2194_v1 = vld [vmem:[#allocation6 + $0xb78] sm:$0xff] }
 0x2c3   :  { %2801 = vmatprep.subr.mxu0 %v2118_v7  ;;  %2727 = vmatpush1.msra.mxu1 %v1997_v43  ;;  %v2073_v41 = vld [vmem:[#allocation6 + $0x7b0] sm:$0xff]  ;;  %v2070_v25 = vld [vmem:[#allocation6 + $0x798] sm:$0xff] }
 0x2c4   :  { %2802 = vmatpush1.msra.mxu0 %v2117_v28  ;;  %2728 = vmatprep.subr.mxu1 %v1994_v26  ;;  %v2193_v17 = vld [vmem:[#allocation6 + $0xb70] sm:$0xff]  ;;  %v2190_v7 = vld [vmem:[#allocation6 + $0xb58] sm:$0xff] }
 0x2c5   :  { %2803 = vmatprep.subr.mxu0 %v2114_v31  ;;  %2729 = vmatpush1.msra.mxu1 %v1993_v32  ;;  %v2069_v43 = vld [vmem:[#allocation6 + $0x790] sm:$0xff]  ;;  %v2066_v26 = vld [vmem:[#allocation6 + $0x778] sm:$0xff] }
 0x2c6   :  { %2804 = vmatpush1.msra.mxu0 %v2113_v33  ;;  %2730 = vmatprep.subr.mxu1 %v1990_v34  ;;  %v2189_v28 = vld [vmem:[#allocation6 + $0xb50] sm:$0xff]  ;;  %v2186_v31 = vld [vmem:[#allocation6 + $0xb38] sm:$0xff] }
 0x2c7   :  { %2805 = vmatprep.subr.mxu0 %v2110_v35  ;;  %2731 = vmatpush1.msra.mxu1 %v1989_v36  ;;  %v2065_v32 = vld [vmem:[#allocation6 + $0x770] sm:$0xff]  ;;  %v2062_v34 = vld [vmem:[#allocation6 + $0x758] sm:$0xff] }
 0x2c8   :  { %2806 = vmatpush1.msra.mxu0 %v2109_v37  ;;  %2732 = vmatprep.subr.mxu1 %v1986_v38  ;;  %v2185_v33 = vld [vmem:[#allocation6 + $0xb30] sm:$0xff]  ;;  %v2182_v35 = vld [vmem:[#allocation6 + $0xb18] sm:$0xff] }
 0x2c9   :  { %2807 = vmatprep.subr.mxu0 %v2106_v15  ;;  %2733 = vmatpush1.msra.mxu1 %v1985_v40  ;;  %v2061_v36 = vld [vmem:[#allocation6 + $0x750] sm:$0xff]  ;;  %v2058_v38 = vld [vmem:[#allocation6 + $0x738] sm:$0xff] }
 0x2ca   :  { %2808 = vmatpush1.msra.mxu0 %v2105_v5  ;;  %2734 = vmatprep.subr.mxu1 %v1982_v44  ;;  %v2181_v37 = vld [vmem:[#allocation6 + $0xb10] sm:$0xff]  ;;  %v2178_v15 = vld [vmem:[#allocation6 + $0xaf8] sm:$0xff] }
 0x2cb   :  { %2809 = vmatprep.subr.mxu0 %v2102_v45  ;;  %2735 = vmatpush1.msra.mxu1 %v1981_v53  ;;  %v2057_v40 = vld [vmem:[#allocation6 + $0x730] sm:$0xff]  ;;  %v2054_v44 = vld [vmem:[#allocation6 + $0x718] sm:$0xff] }
 0x2cc   :  { %2810 = vmatpush1.msra.mxu0 %v2101_v63  ;;  %2736 = vmatprep.subr.mxu1 %v1978_v46  ;;  %v2177_v5 = vld [vmem:[#allocation6 + $0xaf0] sm:$0xff]  ;;  %v2174_v45 = vld [vmem:[#allocation6 + $0xad8] sm:$0xff] }
 0x2cd   :  { %2811 = vmatprep.subr.mxu0 %v2098_v47  ;;  %2737 = vmatpush1.msra.mxu1 %v1977_v49  ;;  %v2053_v53 = vld [vmem:[#allocation6 + $0x710] sm:$0xff]  ;;  %v2050_v46 = vld [vmem:[#allocation6 + $0x6f8] sm:$0xff] }
 0x2ce   :  { %2812 = vmatpush1.msra.mxu0 %v2097_v50  ;;  %2738 = vmatprep.subr.mxu1 %v1974_v52  ;;  %v2173_v63 = vld [vmem:[#allocation6 + $0xad0] sm:$0xff]  ;;  %v2170_v47 = vld [vmem:[#allocation6 + $0xab8] sm:$0xff] }
 0x2cf   :  { %2813 = vmatprep.subr.mxu0 %v2094_v54  ;;  %2739 = vmatpush1.msra.mxu1 %v1973_v27  ;;  %v2049_v49 = vld [vmem:[#allocation6 + $0x6f0] sm:$0xff]  ;;  %v2046_v52 = vld [vmem:[#allocation6 + $0x6d8] sm:$0xff] }
 0x2d0   :  { %2814 = vmatpush1.msra.mxu0 %v2093_v42  ;;  %2740 = vmatprep.subr.mxu1 %v1970_v55  ;;  %v2169_v50 = vld [vmem:[#allocation6 + $0xab0] sm:$0xff]  ;;  %v2166_v54 = vld [vmem:[#allocation6 + $0xa98] sm:$0xff] }
 0x2d1   :  { %2815 = vmatprep.subr.mxu0 %v2090_v9  ;;  %2741 = vmatpush1.msra.mxu1 %v1969_v57  ;;  %v2045_v27 = vld [vmem:[#allocation6 + $0x6d0] sm:$0xff]  ;;  %v2042_v55 = vld [vmem:[#allocation6 + $0x6b8] sm:$0xff] }
 0x2d2   :  { %2816 = vmatpush1.msra.mxu0 %v2089_v39  ;;  %2742 = vmatprep.subr.mxu1 %v1966_v58  ;;  %v2165_v42 = vld [vmem:[#allocation6 + $0xa90] sm:$0xff]  ;;  %v2162_v9 = vld [vmem:[#allocation6 + $0xa78] sm:$0xff] }
 0x2d3   :  { %2817 = vmatprep.subr.mxu0 %v2086_v59  ;;  %2743 = vmatpush1.msra.mxu1 %v1965_v61  ;;  %v2041_v57 = vld [vmem:[#allocation6 + $0x6b0] sm:$0xff]  ;;  %v2038_v58 = vld [vmem:[#allocation6 + $0x698] sm:$0xff] }
 0x2d4   :  { %2818 = vmatpush1.msra.mxu0 %v2085_v0  ;;  %2744 = vmatprep.subr.mxu1 %v1962_v2  ;;  %v2161_v39 = vld [vmem:[#allocation6 + $0xa70] sm:$0xff]  ;;  %v2158_v59 = vld [vmem:[#allocation6 + $0xa58] sm:$0xff] }
 0x2d5   :  { %2819 = vmatprep.subr.mxu0 %v2210_v4  ;;  %2745 = vmatpush1.msra.mxu1 %v1961_v6  ;;  %v2037_v61 = vld [vmem:[#allocation6 + $0x690] sm:$0xff]  ;;  %v2034_v2 = vld [vmem:[#allocation6 + $0x678] sm:$0xff] }
 0x2d6   :  { %2820 = vmatpush2.msra.mxu0 %v2209_v10  ;;  %2746 = vmatprep.subr.mxu1 %v1958_v48  ;;  %v2157_v0 = vld [vmem:[#allocation6 + $0xa50] sm:$0xff]  ;;  %v2154_v4 = vld [vmem:[#allocation6 + $0xa38] sm:$0xff] }
 0x2d7   :  { %2821 = vmatprep.subr.mxu0 %v2206_v12  ;;  %2747 = vmatpush1.msra.mxu1 %v1957_v13  ;;  %v2033_v6 = vld [vmem:[#allocation6 + $0x670] sm:$0xff]  ;;  %v2030_v48 = vld [vmem:[#allocation6 + $0x658] sm:$0xff] }
 0x2d8   :  { %2822 = vmatpush2.msra.mxu0 %v2205_v30  ;;  %2748 = vmatprep.subr.mxu1 %v2082_v14  ;;  %v2153_v10 = vld [vmem:[#allocation6 + $0xa30] sm:$0xff]  ;;  %v2150_v12 = vld [vmem:[#allocation6 + $0xa18] sm:$0xff] }
 0x2d9   :  { %2823 = vmatprep.subr.mxu0 %v2202_v16  ;;  %2749 = vmatpush2.msra.mxu1 %v2081_v18  ;;  %v2029_v13 = vld [vmem:[#allocation6 + $0x650] sm:$0xff]  ;;  %v2026_v14 = vld [vmem:[#allocation6 + $0x638] sm:$0xff] }
 0x2da   :  { %2824 = vmatpush2.msra.mxu0 %v2201_v19  ;;  %2750 = vmatprep.subr.mxu1 %v2078_v51  ;;  %v2149_v30 = vld [vmem:[#allocation6 + $0xa10] sm:$0xff]  ;;  %v2022_v19 = vld [vmem:[#allocation6 + $0x618] sm:$0xff]  ;;  %v3001_v51 = vld [vmem:[#allocation9 + $0x1e0] sm:$0xff] }
 0x2db   :  { %2825 = vmatprep.subr.mxu0 %v2198_v20  ;;  %2751 = vmatpush2.msra.mxu1 %v2077_v22  ;;  %v2025_v16 = vld [vmem:[#allocation6 + $0x630] sm:$0xff] }
 0x2dc   :  { %2826 = vmatpush2.msra.mxu0 %v2197_v23  ;;  %2752 = vmatprep.subr.mxu1 %v2074_v24  ;;  %v3002_v18 = vld [vmem:[#allocation9 + $0x1e8] sm:$0xff]  ;;  %v2274_v23 = vld [vmem:[#allocation6 + $0xdf8] sm:$0xff] }
 0x2dd   :  { %2827 = vmatprep.subr.mxu0 %v2194_v1  ;;  %2753 = vmatpush2.msra.mxu1 %v2073_v41  ;;  %v2021_v20 = vld [vmem:[#allocation6 + $0x610] sm:$0xff]  ;;  %v2270_v1 = vld [vmem:[#allocation6 + $0xdd8] sm:$0xff]  ;;  %v2997_v41 = vld [vmem:[#allocation9 + $0x1c0] sm:$0xff] }
 0x2de   :  { %2828 = vmatpush2.msra.mxu0 %v2193_v17  ;;  %2754 = vmatprep.subr.mxu1 %v2070_v25  ;;  %v2998_v22 = vld [vmem:[#allocation9 + $0x1c8] sm:$0xff] }
 0x2df   :  { %2829 = vmatprep.subr.mxu0 %v2190_v7  ;;  %2755 = vmatpush2.msra.mxu1 %v2069_v43  ;;  %v2273_v24 = vld [vmem:[#allocation6 + $0xdf0] sm:$0xff]  ;;  %v2993_v7 = vld [vmem:[#allocation9 + $0x1a0] sm:$0xff] }
 0x2e0   :  { %2830 = vmatpush2.msra.mxu0 %v2189_v28  ;;  %2756 = vmatprep.subr.mxu1 %v2066_v26  ;;  %v2269_v17 = vld [vmem:[#allocation6 + $0xdd0] sm:$0xff]  ;;  %v2262_v26 = vld [vmem:[#allocation6 + $0xd98] sm:$0xff] }
 0x2e1   :  { %2831 = vmatprep.subr.mxu0 %v2186_v31  ;;  %2757 = vmatpush2.msra.mxu1 %v2065_v32  ;;  %v2994_v25 = vld [vmem:[#allocation9 + $0x1a8] sm:$0xff]  ;;  %v2989_v31 = vld [vmem:[#allocation9 + $0x180] sm:$0xff] }
 0x2e2   :  { %2832 = vmatpush2.msra.mxu0 %v2185_v33  ;;  %2758 = vmatprep.subr.mxu1 %v2062_v34  ;;  %v2265_v43 = vld [vmem:[#allocation6 + $0xdb0] sm:$0xff]  ;;  %v2258_v33 = vld [vmem:[#allocation6 + $0xd78] sm:$0xff]  ;;  %v2985_v34 = vld [vmem:[#allocation9 + $0x160] sm:$0xff] }
 0x2e3   :  { %2833 = vmatprep.subr.mxu0 %v2182_v35  ;;  %2759 = vmatpush2.msra.mxu1 %v2061_v36  ;;  %v2990_v28 = vld [vmem:[#allocation9 + $0x188] sm:$0xff]  ;;  %v2254_v36 = vld [vmem:[#allocation6 + $0xd58] sm:$0xff] }
 0x2e4   :  { %2834 = vmatpush2.msra.mxu0 %v2181_v37  ;;  %2760 = vmatprep.subr.mxu1 %v2058_v38  ;;  %v2261_v32 = vld [vmem:[#allocation6 + $0xd90] sm:$0xff]  ;;  %v2981_v37 = vld [vmem:[#allocation9 + $0x140] sm:$0xff] }
 0x2e5   :  { %2835 = vmatprep.subr.mxu0 %v2178_v15  ;;  %2761 = vmatpush2.msra.mxu1 %v2057_v40  ;;  %v2982_v35 = vld [vmem:[#allocation9 + $0x148] sm:$0xff]  ;;  %v2250_v40 = vld [vmem:[#allocation6 + $0xd38] sm:$0xff] }
 0x2e6   :  { %2836 = vmatpush2.msra.mxu0 %v2177_v5  ;;  %2762 = vmatprep.subr.mxu1 %v2054_v44  ;;  %v2253_v38 = vld [vmem:[#allocation6 + $0xd50] sm:$0xff]  ;;  %v2977_v5 = vld [vmem:[#allocation9 + $0x120] sm:$0xff] }
 0x2e7   :  { %2837 = vmatprep.subr.mxu0 %v2174_v45  ;;  %2763 = vmatpush2.msra.mxu1 %v2053_v53  ;;  %v2978_v15 = vld [vmem:[#allocation9 + $0x128] sm:$0xff]  ;;  %v2246_v53 = vld [vmem:[#allocation6 + $0xd18] sm:$0xff] }
 0x2e8   :  { %2838 = vmatpush2.msra.mxu0 %v2173_v63  ;;  %2764 = vmatprep.subr.mxu1 %v2050_v46  ;;  %v2249_v44 = vld [vmem:[#allocation6 + $0xd30] sm:$0xff]  ;;  %v2973_v63 = vld [vmem:[#allocation9 + $0x100] sm:$0xff] }
 0x2e9   :  { %2839 = vmatprep.subr.mxu0 %v2170_v47  ;;  %2765 = vmatpush2.msra.mxu1 %v2049_v49  ;;  %v2974_v45 = vld [vmem:[#allocation9 + $0x108] sm:$0xff]  ;;  %v2242_v49 = vld [vmem:[#allocation6 + $0xcf8] sm:$0xff] }
 0x2ea   :  { %2840 = vmatpush2.msra.mxu0 %v2169_v50  ;;  %2766 = vmatprep.subr.mxu1 %v2046_v52  ;;  %v2245_v46 = vld [vmem:[#allocation6 + $0xd10] sm:$0xff]  ;;  %v2969_v50 = vld [vmem:[#allocation9 + $0xe0] sm:$0xff] }
 0x2eb   :  { %2841 = vmatprep.subr.mxu0 %v2166_v54  ;;  %2767 = vmatpush2.msra.mxu1 %v2045_v27  ;;  %v2970_v47 = vld [vmem:[#allocation9 + $0xe8] sm:$0xff]  ;;  %v2238_v27 = vld [vmem:[#allocation6 + $0xcd8] sm:$0xff] }
 0x2ec   :  { %2842 = vmatpush2.msra.mxu0 %v2165_v42  ;;  %2768 = vmatprep.subr.mxu1 %v2042_v55  ;;  %v2241_v52 = vld [vmem:[#allocation6 + $0xcf0] sm:$0xff]  ;;  %v2965_v42 = vld [vmem:[#allocation9 + $0xc0] sm:$0xff] }
 0x2ed   :  { %2843 = vmatprep.subr.mxu0 %v2162_v9  ;;  %2769 = vmatpush2.msra.mxu1 %v2041_v57  ;;  %v2966_v54 = vld [vmem:[#allocation9 + $0xc8] sm:$0xff]  ;;  %v2234_v57 = vld [vmem:[#allocation6 + $0xcb8] sm:$0xff] }
 0x2ee   :  { %2844 = vmatpush2.msra.mxu0 %v2161_v39  ;;  %2770 = vmatprep.subr.mxu1 %v2038_v58  ;;  %v2237_v55 = vld [vmem:[#allocation6 + $0xcd0] sm:$0xff]  ;;  %v2961_v39 = vld [vmem:[#allocation9 + $0xa0] sm:$0xff] }
 0x2ef   :  { %2845 = vmatprep.subr.mxu0 %v2158_v59  ;;  %2771 = vmatpush2.msra.mxu1 %v2037_v61  ;;  %v2962_v9 = vld [vmem:[#allocation9 + $0xa8] sm:$0xff]  ;;  %v2230_v61 = vld [vmem:[#allocation6 + $0xc98] sm:$0xff] }
 0x2f0   :  { %2846 = vmatpush2.msra.mxu0 %v2157_v0  ;;  %2772 = vmatprep.subr.mxu1 %v2034_v2  ;;  %v2233_v58 = vld [vmem:[#allocation6 + $0xcb0] sm:$0xff]  ;;  %v2957_v0 = vld [vmem:[#allocation9 + $0x80] sm:$0xff] }
 0x2f1   :  { %2847 = vmatprep.subr.mxu0 %v2154_v4  ;;  %2773 = vmatpush2.msra.mxu1 %v2033_v6  ;;  %v2958_v59 = vld [vmem:[#allocation9 + $0x88] sm:$0xff]  ;;  %v2226_v6 = vld [vmem:[#allocation6 + $0xc78] sm:$0xff] }
 0x2f2   :  { %2848 = vmatpush2.msra.mxu0 %v2153_v10  ;;  %2774 = vmatprep.subr.mxu1 %v2030_v48  ;;  %v2229_v2 = vld [vmem:[#allocation6 + $0xc90] sm:$0xff]  ;;  %v2953_v10 = vld [vmem:[#allocation9 + $0x60] sm:$0xff] }
 0x2f3   :  { %2849 = vmatprep.subr.mxu0 %v2150_v12  ;;  %2775 = vmatpush2.msra.mxu1 %v2029_v13  ;;  %v2954_v4 = vld [vmem:[#allocation9 + $0x68] sm:$0xff]  ;;  %v2222_v13 = vld [vmem:[#allocation6 + $0xc58] sm:$0xff] }
 0x2f4   :  { %2850 = vmatpush2.msra.mxu0 %v2149_v30  ;;  %2776 = vmatprep.subr.mxu1 %v2026_v14  ;;  %v2225_v48 = vld [vmem:[#allocation6 + $0xc70] sm:$0xff]  ;;  %v2949_v30 = vld [vmem:[#allocation9 + $0x40] sm:$0xff] }
 0x2f5   :  { %2852 = vmatmul.mubr.f32.vlgmr.msra.gmra.mxu0 %v6141_v60  ;;  %2777 = vmatpush2.msra.mxu1 %v2025_v16  ;;  %v2266_v60 = vld [vmem:[#allocation6 + $0xdb8] sm:$0xff]  ;;  %v2950_v12 = vld [vmem:[#allocation9 + $0x48] sm:$0xff] }
 0x2f6   :  { %3219 = vmatprep.subr.mxu0 %v3002_v18  ;;  %2778 = vmatprep.subr.mxu1 %v2022_v19  ;;  %v2221_v14 = vld [vmem:[#allocation6 + $0xc50] sm:$0xff]  ;;  %v2218_v18 = vld [vmem:[#allocation6 + $0xc38] sm:$0xff]  ;;  %v2945_v19 = vld [vmem:[#allocation9 + $0x20] sm:$0xff] }
 0x2f7   :  { %3220 = vmatpush1.msra.mxu0 %v3001_v51  ;;  %2779 = vmatpush2.msra.mxu1 %v2021_v20  ;;  %v2946_v16 = vld [vmem:[#allocation9 + $0x28] sm:$0xff] }
 0x2f8   :  { %3221 = vmatprep.subr.mxu0 %v2998_v22  ;;  %2781 = vmatmul.mubr.f32.vlgmr.msra.gmra.mxu1 %v6128_v29  ;;  %v2986_v29 = vld [vmem:[#allocation9 + $0x168] sm:$0xff]  ;;  %v2214_v22 = vld [vmem:[#allocation6 + $0xc18] sm:$0xff] }
 0x2f9   :  { %2858 = vmatprep.subr.mxu1 %v2274_v23  ;;  %2922 = vmatprep.mubr.f32.mxu1 %v6151_v8  ;;  %v2257_v8 = vld [vmem:[#allocation6 + $0xd70] sm:$0xff]  ;;  %v2941_v23 = vld [vmem:[#allocation9] sm:$0xff] }
 0x2fa   :  { %2859 = vmatpush1.msra.mxu1 %v2273_v24  ;;  %3222 = vmatpush1.msra.mxu0 %v2997_v41  ;;  %v2217_v51 = vld [vmem:[#allocation6 + $0xc30] sm:$0xff]  ;;  %v2338_v41 = vld [vmem:[#allocation6 + $0xff8] sm:$0xff] }
 0x2fb   :  { %2860 = vmatprep.subr.mxu1 %v2270_v1  ;;  %3223 = vmatprep.subr.mxu0 %v2994_v25  ;;  %v2942_v20 = vld [vmem:[#allocation9 + $0x8] sm:$0xff] }
 0x2fc   :  { %2861 = vmatpush1.msra.mxu1 %v2269_v17  ;;  %3224 = vmatpush1.msra.mxu0 %v2993_v7  ;;  %v2213_v24 = vld [vmem:[#allocation6 + $0xc10] sm:$0xff]  ;;  %v3065_v17 = vld [vmem:[#allocation9 + $0x3e0] sm:$0xff]  ;;  %v2334_v7 = vld [vmem:[#allocation6 + $0xfd8] sm:$0xff] }
 0x2fd   :  { %2862 = vmatprep.subr.mxu1 %v2266_v60  ;;  %3225 = vmatprep.subr.mxu0 %v2990_v28  ;;  %v3066_v1 = vld [vmem:[#allocation9 + $0x3e8] sm:$0xff] }
 0x2fe   :  { %2863 = vmatpush1.msra.mxu1 %v2265_v43  ;;  %3226 = vmatpush1.msra.mxu0 %v2989_v31  ;;  %v2337_v25 = vld [vmem:[#allocation6 + $0xff0] sm:$0xff]  ;;  %v3061_v43 = vld [vmem:[#allocation9 + $0x3c0] sm:$0xff]  ;;  %v2330_v31 = vld [vmem:[#allocation6 + $0xfb8] sm:$0xff] }
 0x2ff   :  { %2864 = vmatprep.subr.mxu1 %v2262_v26  ;;  %3227 = vmatprep.subr.mxu0 %v2986_v29  ;;  %v3062_v60 = vld [vmem:[#allocation9 + $0x3c8] sm:$0xff] }
 0x300   :  { %2865 = vmatpush1.msra.mxu1 %v2261_v32  ;;  %3228 = vmatpush1.msra.mxu0 %v2985_v34  ;;  %v2333_v28 = vld [vmem:[#allocation6 + $0xfd0] sm:$0xff]  ;;  %v3057_v32 = vld [vmem:[#allocation9 + $0x3a0] sm:$0xff]  ;;  %v2326_v34 = vld [vmem:[#allocation6 + $0xf98] sm:$0xff] }
 0x301   :  { %2866 = vmatprep.subr.mxu1 %v2258_v33  ;;  %3229 = vmatprep.subr.mxu0 %v2982_v35  ;;  %v3058_v26 = vld [vmem:[#allocation9 + $0x3a8] sm:$0xff] }
 0x302   :  { %2867 = vmatpush1.msra.mxu1 %v2257_v8  ;;  %3230 = vmatpush1.msra.mxu0 %v2981_v37  ;;  %v2329_v29 = vld [vmem:[#allocation6 + $0xfb0] sm:$0xff]  ;;  %v3053_v8 = vld [vmem:[#allocation9 + $0x380] sm:$0xff]  ;;  %v2322_v37 = vld [vmem:[#allocation6 + $0xf78] sm:$0xff] }
 0x303   :  { %2868 = vmatprep.subr.mxu1 %v2254_v36  ;;  %3231 = vmatprep.subr.mxu0 %v2978_v15  ;;  %v3054_v33 = vld [vmem:[#allocation9 + $0x388] sm:$0xff] }
 0x304   :  { %2869 = vmatpush1.msra.mxu1 %v2253_v38  ;;  %3232 = vmatpush1.msra.mxu0 %v2977_v5  ;;  %v2325_v35 = vld [vmem:[#allocation6 + $0xf90] sm:$0xff]  ;;  %v3049_v38 = vld [vmem:[#allocation9 + $0x360] sm:$0xff]  ;;  %v2318_v5 = vld [vmem:[#allocation6 + $0xf58] sm:$0xff] }
 0x305   :  { %2870 = vmatprep.subr.mxu1 %v2250_v40  ;;  %3233 = vmatprep.subr.mxu0 %v2974_v45  ;;  %v3050_v36 = vld [vmem:[#allocation9 + $0x368] sm:$0xff] }
 0x306   :  { %2871 = vmatpush1.msra.mxu1 %v2249_v44  ;;  %3234 = vmatpush1.msra.mxu0 %v2973_v63  ;;  %v2321_v15 = vld [vmem:[#allocation6 + $0xf70] sm:$0xff]  ;;  %v3045_v44 = vld [vmem:[#allocation9 + $0x340] sm:$0xff]  ;;  %v2314_v63 = vld [vmem:[#allocation6 + $0xf38] sm:$0xff] }
 0x307   :  { %2872 = vmatprep.subr.mxu1 %v2246_v53  ;;  %3235 = vmatprep.subr.mxu0 %v2970_v47  ;;  %v3046_v40 = vld [vmem:[#allocation9 + $0x348] sm:$0xff] }
 0x308   :  { %2873 = vmatpush1.msra.mxu1 %v2245_v46  ;;  %3236 = vmatpush1.msra.mxu0 %v2969_v50  ;;  %v2317_v45 = vld [vmem:[#allocation6 + $0xf50] sm:$0xff]  ;;  %v3041_v46 = vld [vmem:[#allocation9 + $0x320] sm:$0xff]  ;;  %v2310_v50 = vld [vmem:[#allocation6 + $0xf18] sm:$0xff] }
 0x309   :  { %2874 = vmatprep.subr.mxu1 %v2242_v49  ;;  %3237 = vmatprep.subr.mxu0 %v2966_v54  ;;  %v3042_v53 = vld [vmem:[#allocation9 + $0x328] sm:$0xff] }
 0x30a   :  { %2875 = vmatpush1.msra.mxu1 %v2241_v52  ;;  %3238 = vmatpush1.msra.mxu0 %v2965_v42  ;;  %v2313_v47 = vld [vmem:[#allocation6 + $0xf30] sm:$0xff]  ;;  %v3037_v52 = vld [vmem:[#allocation9 + $0x300] sm:$0xff]  ;;  %v2306_v42 = vld [vmem:[#allocation6 + $0xef8] sm:$0xff] }
 0x30b   :  { %2876 = vmatprep.subr.mxu1 %v2238_v27  ;;  %3239 = vmatprep.subr.mxu0 %v2962_v9  ;;  %v3038_v49 = vld [vmem:[#allocation9 + $0x308] sm:$0xff] }
 0x30c   :  { %2877 = vmatpush1.msra.mxu1 %v2237_v55  ;;  %3240 = vmatpush1.msra.mxu0 %v2961_v39  ;;  %v2309_v54 = vld [vmem:[#allocation6 + $0xf10] sm:$0xff]  ;;  %v3033_v55 = vld [vmem:[#allocation9 + $0x2e0] sm:$0xff]  ;;  %v2302_v39 = vld [vmem:[#allocation6 + $0xed8] sm:$0xff] }
 0x30d   :  { %2878 = vmatprep.subr.mxu1 %v2234_v57  ;;  %3241 = vmatprep.subr.mxu0 %v2958_v59  ;;  %v3034_v27 = vld [vmem:[#allocation9 + $0x2e8] sm:$0xff] }
 0x30e   :  { %2879 = vmatpush1.msra.mxu1 %v2233_v58  ;;  %3242 = vmatpush1.msra.mxu0 %v2957_v0  ;;  %v2305_v9 = vld [vmem:[#allocation6 + $0xef0] sm:$0xff]  ;;  %v3029_v58 = vld [vmem:[#allocation9 + $0x2c0] sm:$0xff]  ;;  %v2298_v0 = vld [vmem:[#allocation6 + $0xeb8] sm:$0xff] }
 0x30f   :  { %2880 = vmatprep.subr.mxu1 %v2230_v61  ;;  %3243 = vmatprep.subr.mxu0 %v2954_v4  ;;  %v3030_v57 = vld [vmem:[#allocation9 + $0x2c8] sm:$0xff] }
 0x310   :  { %2881 = vmatpush1.msra.mxu1 %v2229_v2  ;;  %3244 = vmatpush1.msra.mxu0 %v2953_v10  ;;  %v2301_v59 = vld [vmem:[#allocation6 + $0xed0] sm:$0xff]  ;;  %v3025_v2 = vld [vmem:[#allocation9 + $0x2a0] sm:$0xff]  ;;  %v2294_v10 = vld [vmem:[#allocation6 + $0xe98] sm:$0xff] }
 0x311   :  { %2882 = vmatprep.subr.mxu1 %v2226_v6  ;;  %3245 = vmatprep.subr.mxu0 %v2950_v12  ;;  %v3026_v61 = vld [vmem:[#allocation9 + $0x2a8] sm:$0xff] }
 0x312   :  { %2883 = vmatpush1.msra.mxu1 %v2225_v48  ;;  %3246 = vmatpush1.msra.mxu0 %v2949_v30  ;;  %v2297_v4 = vld [vmem:[#allocation6 + $0xeb0] sm:$0xff]  ;;  %v3021_v48 = vld [vmem:[#allocation9 + $0x280] sm:$0xff]  ;;  %v2290_v30 = vld [vmem:[#allocation6 + $0xe78] sm:$0xff] }
 0x313   :  { %2884 = vmatprep.subr.mxu1 %v2222_v13  ;;  %3247 = vmatprep.subr.mxu0 %v2946_v16  ;;  %v3022_v6 = vld [vmem:[#allocation9 + $0x288] sm:$0xff] }
 0x314   :  { %2885 = vmatpush1.msra.mxu1 %v2221_v14  ;;  %3248 = vmatpush1.msra.mxu0 %v2945_v19  ;;  %v2293_v12 = vld [vmem:[#allocation6 + $0xe90] sm:$0xff]  ;;  %v3017_v14 = vld [vmem:[#allocation9 + $0x260] sm:$0xff]  ;;  %v2286_v19 = vld [vmem:[#allocation6 + $0xe58] sm:$0xff] }
 0x315   :  { %2886 = vmatprep.subr.mxu1 %v2218_v18  ;;  %3249 = vmatprep.subr.mxu0 %v2942_v20  ;;  %v3018_v13 = vld [vmem:[#allocation9 + $0x268] sm:$0xff] }
 0x316   :  { %2887 = vmatpush1.msra.mxu1 %v2217_v51  ;;  %3250 = vmatpush1.msra.mxu0 %v2941_v23  ;;  %v2289_v16 = vld [vmem:[#allocation6 + $0xe70] sm:$0xff]  ;;  %v3013_v51 = vld [vmem:[#allocation9 + $0x240] sm:$0xff]  ;;  %v2282_v23 = vld [vmem:[#allocation6 + $0xe38] sm:$0xff] }
 0x317   :  { %2888 = vmatprep.subr.mxu1 %v2214_v22  ;;  %3251 = vmatprep.subr.mxu0 %v3066_v1  ;;  %v3014_v18 = vld [vmem:[#allocation9 + $0x248] sm:$0xff] }
 0x318   :  { %2889 = vmatpush1.msra.mxu1 %v2213_v24  ;;  %3252 = vmatpush2.msra.mxu0 %v3065_v17  ;;  %v2285_v20 = vld [vmem:[#allocation6 + $0xe50] sm:$0xff]  ;;  %v3009_v24 = vld [vmem:[#allocation9 + $0x220] sm:$0xff]  ;;  %v2278_v17 = vld [vmem:[#allocation6 + $0xe18] sm:$0xff] }
 0x319   :  { %2890 = vmatprep.subr.mxu1 %v2338_v41  ;;  %3253 = vmatprep.subr.mxu0 %v3062_v60  ;;  %v3010_v22 = vld [vmem:[#allocation9 + $0x228] sm:$0xff] }
 0x31a   :  { %2891 = vmatpush2.msra.mxu1 %v2337_v25  ;;  %3254 = vmatpush2.msra.mxu0 %v3061_v43  ;;  %v2281_v1 = vld [vmem:[#allocation6 + $0xe30] sm:$0xff]  ;;  %v3005_v25 = vld [vmem:[#allocation9 + $0x200] sm:$0xff] }
 0x31b   :  { %2892 = vmatprep.subr.mxu1 %v2334_v7  ;;  %3255 = vmatprep.subr.mxu0 %v3058_v26  ;;  %v3006_v41 = vld [vmem:[#allocation9 + $0x208] sm:$0xff]  ;;  %v3004_v7 = vld [vmem:[#allocation9 + $0x1f8] sm:$0xff] }
 0x31c   :  { %2893 = vmatpush2.msra.mxu1 %v2333_v28  ;;  %3256 = vmatpush2.msra.mxu0 %v3057_v32  ;;  %v2277_v60 = vld [vmem:[#allocation6 + $0xe10] sm:$0xff]  ;;  %v3129_v28 = vld [vmem:[#allocation9 + $0x5e0] sm:$0xff] }
 0x31d   :  { %2894 = vmatprep.subr.mxu1 %v2330_v31  ;;  %3257 = vmatprep.subr.mxu0 %v3054_v33  ;;  %v3130_v43 = vld [vmem:[#allocation9 + $0x5e8] sm:$0xff]  ;;  %v3125_v31 = vld [vmem:[#allocation9 + $0x5c0] sm:$0xff] }
 0x31e   :  { %2895 = vmatpush2.msra.mxu1 %v2329_v29  ;;  %3258 = vmatpush2.msra.mxu0 %v3053_v8  ;;  %v3126_v26 = vld [vmem:[#allocation9 + $0x5c8] sm:$0xff]  ;;  %v3121_v29 = vld [vmem:[#allocation9 + $0x5a0] sm:$0xff] }
 0x31f   :  { %2896 = vmatprep.subr.mxu1 %v2326_v34  ;;  %3259 = vmatprep.subr.mxu0 %v3050_v36  ;;  %v3122_v32 = vld [vmem:[#allocation9 + $0x5a8] sm:$0xff]  ;;  %v3117_v34 = vld [vmem:[#allocation9 + $0x580] sm:$0xff] }
 0x320   :  { %2897 = vmatpush2.msra.mxu1 %v2325_v35  ;;  %3260 = vmatpush2.msra.mxu0 %v3049_v38  ;;  %v3118_v33 = vld [vmem:[#allocation9 + $0x588] sm:$0xff]  ;;  %v3113_v35 = vld [vmem:[#allocation9 + $0x560] sm:$0xff] }
 0x321   :  { %2898 = vmatprep.subr.mxu1 %v2322_v37  ;;  %3261 = vmatprep.subr.mxu0 %v3046_v40  ;;  %v3114_v8 = vld [vmem:[#allocation9 + $0x568] sm:$0xff]  ;;  %v3105_v38 = vld [vmem:[#allocation9 + $0x520] sm:$0xff] }
 0x322   :  { %2899 = vmatpush2.msra.mxu1 %v2321_v15  ;;  %3262 = vmatpush2.msra.mxu0 %v3045_v44  ;;  %v3110_v36 = vld [vmem:[#allocation9 + $0x548] sm:$0xff]  ;;  %v3101_v40 = vld [vmem:[#allocation9 + $0x500] sm:$0xff] }
 0x323   :  { %2900 = vmatprep.subr.mxu1 %v2318_v5  ;;  %3263 = vmatprep.subr.mxu0 %v3042_v53  ;;  %v3106_v37 = vld [vmem:[#allocation9 + $0x528] sm:$0xff]  ;;  %v3097_v44 = vld [vmem:[#allocation9 + $0x4e0] sm:$0xff] }
 0x324   :  { %2901 = vmatpush2.msra.mxu1 %v2317_v45  ;;  %3264 = vmatpush2.msra.mxu0 %v3041_v46  ;;  %v3102_v15 = vld [vmem:[#allocation9 + $0x508] sm:$0xff]  ;;  %v3093_v53 = vld [vmem:[#allocation9 + $0x4c0] sm:$0xff] }
 0x325   :  { %2902 = vmatprep.subr.mxu1 %v2314_v63  ;;  %3265 = vmatprep.subr.mxu0 %v3038_v49  ;;  %v3098_v5 = vld [vmem:[#allocation9 + $0x4e8] sm:$0xff]  ;;  %v3089_v46 = vld [vmem:[#allocation9 + $0x4a0] sm:$0xff] }
 0x326   :  { %2903 = vmatpush2.msra.mxu1 %v2313_v47  ;;  %3266 = vmatpush2.msra.mxu0 %v3037_v52  ;;  %v3094_v45 = vld [vmem:[#allocation9 + $0x4c8] sm:$0xff]  ;;  %v3085_v49 = vld [vmem:[#allocation9 + $0x480] sm:$0xff] }
 0x327   :  { %2904 = vmatprep.subr.mxu1 %v2310_v50  ;;  %3267 = vmatprep.subr.mxu0 %v3034_v27  ;;  %v3090_v63 = vld [vmem:[#allocation9 + $0x4a8] sm:$0xff]  ;;  %v3081_v52 = vld [vmem:[#allocation9 + $0x460] sm:$0xff] }
 0x328   :  { %2905 = vmatpush2.msra.mxu1 %v2309_v54  ;;  %3268 = vmatpush2.msra.mxu0 %v3033_v55  ;;  %v3086_v47 = vld [vmem:[#allocation9 + $0x488] sm:$0xff]  ;;  %v3077_v27 = vld [vmem:[#allocation9 + $0x440] sm:$0xff] }
 0x329   :  { %2906 = vmatprep.subr.mxu1 %v2306_v42  ;;  %3269 = vmatprep.subr.mxu0 %v3030_v57  ;;  %v3082_v50 = vld [vmem:[#allocation9 + $0x468] sm:$0xff]  ;;  %v3073_v55 = vld [vmem:[#allocation9 + $0x420] sm:$0xff] }
 0x32a   :  { %2907 = vmatpush2.msra.mxu1 %v2305_v9  ;;  %3270 = vmatpush2.msra.mxu0 %v3029_v58  ;;  %v3078_v54 = vld [vmem:[#allocation9 + $0x448] sm:$0xff]  ;;  %v3069_v57 = vld [vmem:[#allocation9 + $0x400] sm:$0xff] }
 0x32b   :  { %2908 = vmatprep.subr.mxu1 %v2302_v39  ;;  %3271 = vmatprep.subr.mxu0 %v3026_v61  ;;  %v3074_v42 = vld [vmem:[#allocation9 + $0x428] sm:$0xff]  ;;  %v3193_v58 = vld [vmem:[#allocation9 + $0x7e0] sm:$0xff] }
 0x32c   :  { %2909 = vmatpush2.msra.mxu1 %v2301_v59  ;;  %3272 = vmatpush2.msra.mxu0 %v3025_v2  ;;  %v3070_v9 = vld [vmem:[#allocation9 + $0x408] sm:$0xff]  ;;  %v3189_v61 = vld [vmem:[#allocation9 + $0x7c0] sm:$0xff] }
 0x32d   :  { %2910 = vmatprep.subr.mxu1 %v2298_v0  ;;  %3273 = vmatprep.subr.mxu0 %v3022_v6  ;;  %v3194_v39 = vld [vmem:[#allocation9 + $0x7e8] sm:$0xff]  ;;  %v3185_v2 = vld [vmem:[#allocation9 + $0x7a0] sm:$0xff] }
 0x32e   :  { %2911 = vmatpush2.msra.mxu1 %v2297_v4  ;;  %3274 = vmatpush2.msra.mxu0 %v3021_v48  ;;  %v3190_v59 = vld [vmem:[#allocation9 + $0x7c8] sm:$0xff]  ;;  %v3181_v6 = vld [vmem:[#allocation9 + $0x780] sm:$0xff] }
 0x32f   :  { %2912 = vmatprep.subr.mxu1 %v2294_v10  ;;  %3275 = vmatprep.subr.mxu0 %v3018_v13  ;;  %v3186_v0 = vld [vmem:[#allocation9 + $0x7a8] sm:$0xff]  ;;  %v3177_v48 = vld [vmem:[#allocation9 + $0x760] sm:$0xff] }
 0x330   :  { %2913 = vmatpush2.msra.mxu1 %v2293_v12  ;;  %3276 = vmatpush2.msra.mxu0 %v3017_v14  ;;  %v3182_v4 = vld [vmem:[#allocation9 + $0x788] sm:$0xff]  ;;  %v3173_v13 = vld [vmem:[#allocation9 + $0x740] sm:$0xff]  ;;  %v6162_v14 = vld [vmem:[#allocation7] sm:$0xf] }
 0x331   :  { %2914 = vmatprep.subr.mxu1 %v2290_v30  ;;  %3277 = vmatprep.subr.mxu0 %v3014_v18  ;;  %v3178_v10 = vld [vmem:[#allocation9 + $0x768] sm:$0xff] }
 0x332   :  { %2915 = vmatpush2.msra.mxu1 %v2289_v16  ;;  %3278 = vmatpush2.msra.mxu0 %v3013_v51  ;;  %v3174_v12 = vld [vmem:[#allocation9 + $0x748] sm:$0xff]  ;;  %v3169_v16 = vld [vmem:[#allocation9 + $0x720] sm:$0xff] }
 0x333   :  { %2916 = vmatprep.subr.mxu1 %v2286_v19  ;;  %3279 = vmatprep.subr.mxu0 %v3010_v22  ;;  %v3170_v30 = vld [vmem:[#allocation9 + $0x728] sm:$0xff]  ;;  %v2427_v19 = vpop.f32.mrf.mxu0  ;;  %v3165_v51 = vld [vmem:[#allocation9 + $0x700] sm:$0xff] }
 0x334   :  { %2917 = vmatpush2.msra.mxu1 %v2285_v20  ;;  %3280 = vmatpush2.msra.mxu0 %v3009_v24  ;;  %v3166_v18 = vld [vmem:[#allocation9 + $0x708] sm:$0xff]  ;;  %v2344_v20 = vrot.slane %v6162_v14, %v6041_v62  ;;  %v2348_v24 = vrot.slane %v6162_v14, %v6083_v21 }
 0x335   :  { %2918 = vmatprep.subr.mxu1 %v2282_v23  ;;  %3281 = vmatprep.subr.mxu0 %v3006_v41  ;;  %v3162_v22 = vld [vmem:[#allocation9 + $0x6e8] sm:$0xff]  ;;  %v3161_v23 = vld [vmem:[#allocation9 + $0x6e0] sm:$0xff]  ;;  %v2429_v41 = vpop.f32.mrf.mxu0 }
 0x336   :  { %2919 = vmatpush2.msra.mxu1 %v2281_v1  ;;  %3282 = vmatpush2.msra.mxu0 %v3005_v25  ;;  %v3158_v1 = vld [vmem:[#allocation9 + $0x6c8] sm:$0xff]  ;;  %v2428_v25 = vadd.f32 %v2427_v19, %v2344_v20  ;;  %v2964_v19 = vld [vmem:[#allocation9 + $0xb8] sm:$0xff] }
 0x337   :  { %2920 = vmatprep.subr.mxu1 %v2278_v17  ;;  %3361 = vmatprep.subr.mxu0 %v3004_v7  ;;  %v3157_v17 = vld [vmem:[#allocation9 + $0x6c0] sm:$0xff]  ;;  %v2498_v7 = vpop.f32.mrf.mxu1  ;;  %v2960_v20 = vld [vmem:[#allocation9 + $0x98] sm:$0xff] }
 0x338   :  { %2921 = vmatpush2.msra.mxu1 %v2277_v60  ;;  %v3154_v60 = vld [vmem:[#allocation9 + $0x6a8] sm:$0xff] }
 0x339   :  { %2923 = vmatmul.mubr.f32.vlgmr.msra.gmra.mxu1 %v6154_v11  ;;  %3290 = vmatprep.subr.mxu1 %v3130_v43  ;;  %v3109_v11 = vld [vmem:[#allocation9 + $0x540] sm:$0xff]  ;;  %v2569_v43 = vpop.f32.mrf.mxu0 }
 0x33a   :  { %3291 = vmatpush1.msra.mxu1 %v3129_v28  ;;  %v3153_v28 = vld [vmem:[#allocation9 + $0x6a0] sm:$0xff] }
 0x33b   :  { %3292 = vmatprep.subr.mxu1 %v3126_v26  ;;  %v2430_v26 = vadd.f32 %v2429_v41, %v2348_v24  ;;  %v2955_v24 = vld [vmem:[#allocation9 + $0x70] sm:$0xff] }
 0x33c   :  { %3293 = vmatpush1.msra.mxu1 %v3125_v31  ;;  %v3150_v31 = vld [vmem:[#allocation9 + $0x688] sm:$0xff]  ;;  %v2951_v41 = vld [vmem:[#allocation9 + $0x50] sm:$0xff] }
 0x33d   :  { %3294 = vmatprep.subr.mxu1 %v3122_v32  ;;  %v3149_v32 = vld [vmem:[#allocation9 + $0x680] sm:$0xff] }
 0x33e   :  { %3295 = vmatpush1.msra.mxu1 %v3121_v29  ;;  %v2499_v29 = vadd.f32 %v2498_v7, %v2428_v25  ;;  %v2947_v25 = vld [vmem:[#allocation9 + $0x30] sm:$0xff] }
 0x33f   :  { %3296 = vmatprep.subr.mxu1 %v3118_v33  ;;  %v2500_v33 = vpop.f32.mrf.mxu1  ;;  %v2943_v7 = vld [vmem:[#allocation9 + $0x10] sm:$0xff] }
 0x340   :  { %3297 = vmatpush1.msra.mxu1 %v3117_v34  ;;  %v2571_v34 = vpop.f32.mrf.mxu0 }
 0x341   :  { %3298 = vmatprep.subr.mxu1 %v3114_v8  ;;  %v2501_v8 = vadd.f32 %v2500_v33, %v2430_v26  ;;  %v3064_v26 = vld [vmem:[#allocation9 + $0x3d8] sm:$0xff] }
 0x342   :  { %3299 = vmatpush1.msra.mxu1 %v3113_v35  ;;  %v2570_v35 = vadd.f32 %v2569_v43, %v2499_v29  ;;  %v3068_v43 = vld [vmem:[#allocation9 + $0x3f8] sm:$0xff]  ;;  %v3059_v29 = vld [vmem:[#allocation9 + $0x3b0] sm:$0xff] }
 0x343   :  { %3300 = vmatprep.subr.mxu1 %v3110_v36  ;;  %v3056_v33 = vld [vmem:[#allocation9 + $0x398] sm:$0xff] }
 0x344   :  { %3301 = vmatpush1.msra.mxu1 %v3109_v11  ;;  %v3146_v11 = vld [vmem:[#allocation9 + $0x668] sm:$0xff] }
 0x345   :  { %3302 = vmatprep.subr.mxu1 %v3106_v37  ;;  %v2572_v37 = vadd.f32 %v2571_v34, %v2501_v8  ;;  %v3055_v34 = vld [vmem:[#allocation9 + $0x390] sm:$0xff]  ;;  %v3052_v8 = vld [vmem:[#allocation9 + $0x378] sm:$0xff] }
 0x346   :  { %3303 = vmatpush1.msra.mxu1 %v3105_v38 }
 0x347   :  { %3304 = vmatprep.subr.mxu1 %v3102_v15  ;;  %v3145_v15 = vld [vmem:[#allocation9 + $0x660] sm:$0xff] }
 0x348   :  { %3305 = vmatpush1.msra.mxu1 %v3101_v40 }
 0x349   :  { %3306 = vmatprep.subr.mxu1 %v3098_v5  ;;  %v3142_v5 = vld [vmem:[#allocation9 + $0x648] sm:$0xff] }
 0x34a   :  { %3307 = vmatpush1.msra.mxu1 %v3097_v44 }
 0x34b   :  { %3308 = vmatprep.subr.mxu1 %v3094_v45  ;;  %v3141_v45 = vld [vmem:[#allocation9 + $0x640] sm:$0xff] }
 0x34c   :  { %3309 = vmatpush1.msra.mxu1 %v3093_v53 }
 0x34d   :  { %3310 = vmatprep.subr.mxu1 %v3090_v63  ;;  %v3138_v63 = vld [vmem:[#allocation9 + $0x628] sm:$0xff] }
 0x34e   :  { %3311 = vmatpush1.msra.mxu1 %v3089_v46 }
 0x34f   :  { %3312 = vmatprep.subr.mxu1 %v3086_v47  ;;  %v3137_v47 = vld [vmem:[#allocation9 + $0x620] sm:$0xff] }
 0x350   :  { %3313 = vmatpush1.msra.mxu1 %v3085_v49  ;;  %v3134_v49 = vld [vmem:[#allocation9 + $0x608] sm:$0xff] }
 0x351   :  { %3314 = vmatprep.subr.mxu1 %v3082_v50  ;;  %v3133_v50 = vld [vmem:[#allocation9 + $0x600] sm:$0xff] }
 0x352   :  { %3315 = vmatpush1.msra.mxu1 %v3081_v52 }
 0x353   :  { %3316 = vmatprep.subr.mxu1 %v3078_v54  ;;  %v3003_v54 = vld [vmem:[#allocation9 + $0x1f0] sm:$0xff] }
 0x354   :  { %3317 = vmatpush1.msra.mxu1 %v3077_v27 }
 0x355   :  { %3318 = vmatprep.subr.mxu1 %v3074_v42  ;;  %v3000_v42 = vld [vmem:[#allocation9 + $0x1d8] sm:$0xff] }
 0x356   :  { %3319 = vmatpush1.msra.mxu1 %v3073_v55  ;;  %v3132_v55 = vld [vmem:[#allocation9 + $0x5f8] sm:$0xff] }
 0x357   :  { %3320 = vmatprep.subr.mxu1 %v3070_v9  ;;  %v2999_v9 = vld [vmem:[#allocation9 + $0x1d0] sm:$0xff] }
 0x358   :  { %3321 = vmatpush1.msra.mxu1 %v3069_v57  ;;  %v2996_v57 = vld [vmem:[#allocation9 + $0x1b8] sm:$0xff] }
 0x359   :  { %3322 = vmatprep.subr.mxu1 %v3194_v39  ;;  %v2995_v39 = vld [vmem:[#allocation9 + $0x1b0] sm:$0xff] }
 0x35a   :  { %3323 = vmatpush2.msra.mxu1 %v3193_v58  ;;  %v2992_v58 = vld [vmem:[#allocation9 + $0x198] sm:$0xff] }
 0x35b   :  { %3324 = vmatprep.subr.mxu1 %v3190_v59  ;;  %v2991_v59 = vld [vmem:[#allocation9 + $0x190] sm:$0xff] }
 0x35c   :  { %3325 = vmatpush2.msra.mxu1 %v3189_v61  ;;  %v2988_v61 = vld [vmem:[#allocation9 + $0x178] sm:$0xff] }
 0x35d   :  { %3326 = vmatprep.subr.mxu1 %v3186_v0  ;;  %v2987_v0 = vld [vmem:[#allocation9 + $0x170] sm:$0xff] }
 0x35e   :  { %3327 = vmatpush2.msra.mxu1 %v3185_v2  ;;  %v2984_v2 = vld [vmem:[#allocation9 + $0x158] sm:$0xff] }
 0x35f   :  { %3328 = vmatprep.subr.mxu1 %v3182_v4  ;;  %v2983_v4 = vld [vmem:[#allocation9 + $0x150] sm:$0xff] }
 0x360   :  { %3329 = vmatpush2.msra.mxu1 %v3181_v6  ;;  %v2980_v6 = vld [vmem:[#allocation9 + $0x138] sm:$0xff] }
 0x361   :  { %3330 = vmatprep.subr.mxu1 %v3178_v10  ;;  %v2979_v10 = vld [vmem:[#allocation9 + $0x130] sm:$0xff] }
 0x362   :  { %3331 = vmatpush2.msra.mxu1 %v3177_v48  ;;  %v2976_v48 = vld [vmem:[#allocation9 + $0x118] sm:$0xff] }
 0x363   :  { %3332 = vmatprep.subr.mxu1 %v3174_v12  ;;  %v2975_v12 = vld [vmem:[#allocation9 + $0x110] sm:$0xff] }
 0x364   :  { %3333 = vmatpush2.msra.mxu1 %v3173_v13  ;;  %v2972_v13 = vld [vmem:[#allocation9 + $0xf8] sm:$0xff] }
 0x365   :  { %3334 = vmatprep.subr.mxu1 %v3170_v30  ;;  %v2971_v30 = vld [vmem:[#allocation9 + $0xf0] sm:$0xff] }
 0x366   :  { %3335 = vmatpush2.msra.mxu1 %v3169_v16  ;;  %v2968_v16 = vld [vmem:[#allocation9 + $0xd8] sm:$0xff] }
 0x367   :  { %3336 = vmatprep.subr.mxu1 %v3166_v18  ;;  %v2967_v18 = vld [vmem:[#allocation9 + $0xd0] sm:$0xff] }
 0x368   :  { %3337 = vmatpush2.msra.mxu1 %v3165_v51  ;;  %v2963_v51 = vld [vmem:[#allocation9 + $0xb0] sm:$0xff] }
 0x369   :  { %3338 = vmatprep.subr.mxu1 %v3162_v22  ;;  %v2959_v22 = vld [vmem:[#allocation9 + $0x90] sm:$0xff] }
 0x36a   :  { %3339 = vmatpush2.msra.mxu1 %v3161_v23  ;;  %v2956_v23 = vld [vmem:[#allocation9 + $0x78] sm:$0xff] }
 0x36b   :  { %3340 = vmatprep.subr.mxu1 %v3158_v1  ;;  %v2952_v1 = vld [vmem:[#allocation9 + $0x58] sm:$0xff] }
 0x36c   :  { %3341 = vmatpush2.msra.mxu1 %v3157_v17  ;;  %v2948_v17 = vld [vmem:[#allocation9 + $0x38] sm:$0xff] }
 0x36d   :  { %3342 = vmatprep.subr.mxu1 %v3154_v60  ;;  %v2944_v60 = vld [vmem:[#allocation9 + $0x18] sm:$0xff] }
 0x36e   :  { %3343 = vmatpush2.msra.mxu1 %v3153_v28  ;;  %v3067_v28 = vld [vmem:[#allocation9 + $0x3f0] sm:$0xff] }
 0x36f   :  { %3344 = vmatprep.subr.mxu1 %v3150_v31  ;;  %v3063_v31 = vld [vmem:[#allocation9 + $0x3d0] sm:$0xff] }
 0x370   :  { %3345 = vmatpush2.msra.mxu1 %v3149_v32  ;;  %v3060_v32 = vld [vmem:[#allocation9 + $0x3b8] sm:$0xff] }
 0x371   :  { %3346 = vmatprep.subr.mxu1 %v3146_v11  ;;  %v3047_v11 = vld [vmem:[#allocation9 + $0x350] sm:$0xff] }
 0x372   :  { %3347 = vmatpush2.msra.mxu1 %v3145_v15  ;;  %v3040_v15 = vld [vmem:[#allocation9 + $0x318] sm:$0xff] }
 0x373   :  { %3348 = vmatprep.subr.mxu1 %v3142_v5  ;;  %v3036_v5 = vld [vmem:[#allocation9 + $0x2f8] sm:$0xff] }
 0x374   :  { %3349 = vmatpush2.msra.mxu1 %v3141_v45  ;;  %v3032_v45 = vld [vmem:[#allocation9 + $0x2d8] sm:$0xff] }
 0x375   :  { %3350 = vmatprep.subr.mxu1 %v3138_v63  ;;  %v3028_v63 = vld [vmem:[#allocation9 + $0x2b8] sm:$0xff] }
 0x376   :  { %3351 = vmatpush2.msra.mxu1 %v3137_v47  ;;  %v3024_v47 = vld [vmem:[#allocation9 + $0x298] sm:$0xff] }
 0x377   :  { %3352 = vmatprep.subr.mxu1 %v3134_v49  ;;  %v3023_v49 = vld [vmem:[#allocation9 + $0x290] sm:$0xff] }
 0x378   :  { %v2640_v36 = vpop.f32.mrf.mxu1  ;;  %3353 = vmatpush2.msra.mxu1 %v3133_v50  ;;  %v3020_v50 = vld [vmem:[#allocation9 + $0x278] sm:$0xff] }
 0x379   :  { %v2641_v38 = vadd.f32 %v2640_v36, %v2570_v35  ;;  %3432 = vmatprep.subr.mxu1 %v3132_v55  ;;  %v3051_v35 = vld [vmem:[#allocation9 + $0x370] sm:$0xff]  ;;  %v3048_v36 = vld [vmem:[#allocation9 + $0x358] sm:$0xff] }
 0x37a   :  { %v2642_v40 = vpop.f32.mrf.mxu1  ;;  %v3012_v55 = vld [vmem:[#allocation9 + $0x238] sm:$0xff] }
 0x37b   :  { %v2643_v44 = vadd.f32 %v2642_v40, %v2572_v37  ;;  %vm2929_vm8 = vcmp.ge.f32.partialorder %v2641_v38, 0.0  ;;  %v2933_v53 = vmul.f32 0.01, %v2641_v38  ;;  %v3044_v37 = vld [vmem:[#allocation9 + $0x338] sm:$0xff]  ;;  %v3039_v40 = vld [vmem:[#allocation9 + $0x310] sm:$0xff] }
 0x37d   :  { %v2934_v46 = vmul.f32 0.01, %v2643_v44  ;;  %vm2930_vm9 = vcmp.ge.f32.partialorder %v2643_v44, 0.0  ;;  %v6168_v27 = vsel %vm2929_vm8, %v2641_v38, %v2933_v53  ;;  %v3043_v38 = vld [vmem:[#allocation9 + $0x330] sm:$0xff] }
 0x37e   :  { %v3031_v53 = vld [vmem:[#allocation9 + $0x2d0] sm:$0xff] }
 0x37f   :  { %v2938_v52 = vsel %vm2930_vm9, %v2643_v44, %v2934_v46  ;;  %v3035_v44 = vld [vmem:[#allocation9 + $0x2f0] sm:$0xff] }
 0x380   :  { %3283 = vmatprep.mubr.f32.mxu0 %v2938_v52  ;;  %v3027_v46 = vld [vmem:[#allocation9 + $0x2b0] sm:$0xff] }
 0x381   :  { %3284 = vmatmul.mubr.f32.vlgmr.msra.gmra.mxu0 %v6168_v27 }
 0x382   :  { %3362 = vmatpush1.msra.mxu0 %v3003_v54  ;;  %3425 = vmatprep.mubr.f32.mxu0 %v2938_v52  ;;  %v3019_v52 = vld [vmem:[#allocation9 + $0x270] sm:$0xff]  ;;  %v3016_v54 = vld [vmem:[#allocation9 + $0x258] sm:$0xff] }
 0x383   :  { %3363 = vmatprep.subr.mxu0 %v3000_v42  ;;  %v3015_v42 = vld [vmem:[#allocation9 + $0x250] sm:$0xff] }
 0x384   :  { %3364 = vmatpush1.msra.mxu0 %v2999_v9  ;;  %v3011_v9 = vld [vmem:[#allocation9 + $0x230] sm:$0xff] }
 0x385   :  { %3365 = vmatprep.subr.mxu0 %v2996_v57  ;;  %v3008_v57 = vld [vmem:[#allocation9 + $0x218] sm:$0xff] }
 0x386   :  { %3366 = vmatpush1.msra.mxu0 %v2995_v39  ;;  %v3007_v39 = vld [vmem:[#allocation9 + $0x210] sm:$0xff] }
 0x387   :  { %3367 = vmatprep.subr.mxu0 %v2992_v58  ;;  %v2711_v58 = vpop.f32.mrf.mxu0 }
 0x388   :  { %3368 = vmatpush1.msra.mxu0 %v2991_v59  ;;  %v2352_v59 = vrot.slane %v6162_v14, %v6116_v56 }
 0x389   :  { %3369 = vmatprep.subr.mxu0 %v2988_v61 }
 0x38a   :  { %3370 = vmatpush1.msra.mxu0 %v2987_v0  ;;  %v2356_v0 = vrot.slane %v6162_v14, %v6089_v3  ;;  %v3131_v14 = vld [vmem:[#allocation9 + $0x5f0] sm:$0xff] }
 0x38b   :  { %3371 = vmatprep.subr.mxu0 %v2984_v2  ;;  %v2713_v2 = vpop.f32.mrf.mxu0 }
 0x38c   :  { %3372 = vmatpush1.msra.mxu0 %v2983_v4  ;;  %v2712_v4 = vadd.f32 %v2711_v58, %v2352_v59  ;;  %v3535_v58 = vld [vmem:[#allocation12 + $0xe0] sm:$0xff]  ;;  %v3088_v59 = vld [vmem:[#allocation9 + $0x498] sm:$0xff] }
 0x38d   :  { %3373 = vmatprep.subr.mxu0 %v2980_v6 }
 0x38e   :  { %3374 = vmatpush1.msra.mxu0 %v2979_v10  ;;  %v2714_v10 = vadd.f32 %v2713_v2, %v2356_v0  ;;  %v3087_v0 = vld [vmem:[#allocation9 + $0x490] sm:$0xff]  ;;  %v3531_v2 = vld [vmem:[#allocation12 + $0xc0] sm:$0xff] }
 0x38f   :  { %3375 = vmatprep.subr.mxu0 %v2976_v48 }
 0x390   :  { %3376 = vmatpush1.msra.mxu0 %v2975_v12 }
 0x391   :  { %3377 = vmatprep.subr.mxu0 %v2972_v13 }
 0x392   :  { %3378 = vmatpush1.msra.mxu0 %v2971_v30 }
 0x393   :  { %3379 = vmatprep.subr.mxu0 %v2968_v16 }
 0x394   :  { %3380 = vmatpush1.msra.mxu0 %v2967_v18 }
 0x395   :  { %3381 = vmatprep.subr.mxu0 %v2964_v19 }
 0x396   :  { %3382 = vmatpush1.msra.mxu0 %v2963_v51 }
 0x397   :  { %3383 = vmatprep.subr.mxu0 %v2960_v20 }
 0x398   :  { %3384 = vmatpush1.msra.mxu0 %v2959_v22 }
 0x399   :  { %3385 = vmatprep.subr.mxu0 %v2956_v23 }
 0x39a   :  { %3386 = vmatpush1.msra.mxu0 %v2955_v24 }
 0x39b   :  { %3387 = vmatprep.subr.mxu0 %v2952_v1 }
 0x39c   :  { %3388 = vmatpush1.msra.mxu0 %v2951_v41  ;;  %v3128_v41 = vld [vmem:[#allocation9 + $0x5d8] sm:$0xff] }
 0x39d   :  { %3389 = vmatprep.subr.mxu0 %v2948_v17  ;;  %v3127_v17 = vld [vmem:[#allocation9 + $0x5d0] sm:$0xff] }
 0x39e   :  { %3390 = vmatpush1.msra.mxu0 %v2947_v25  ;;  %v3124_v25 = vld [vmem:[#allocation9 + $0x5b8] sm:$0xff] }
 0x39f   :  { %3391 = vmatprep.subr.mxu0 %v2944_v60  ;;  %v3123_v60 = vld [vmem:[#allocation9 + $0x5b0] sm:$0xff] }
 0x3a0   :  { %3392 = vmatpush1.msra.mxu0 %v2943_v7  ;;  %v3120_v7 = vld [vmem:[#allocation9 + $0x598] sm:$0xff] }
 0x3a1   :  { %3393 = vmatprep.subr.mxu0 %v3068_v43  ;;  %v3568_v43 = vld [vmem:[#allocation12 + $0x1e8] sm:$0xff] }
 0x3a2   :  { %3394 = vmatpush2.msra.mxu0 %v3067_v28  ;;  %v3567_v28 = vld [vmem:[#allocation12 + $0x1e0] sm:$0xff] }
 0x3a3   :  { %3395 = vmatprep.subr.mxu0 %v3064_v26  ;;  %v3564_v26 = vld [vmem:[#allocation12 + $0x1c8] sm:$0xff] }
 0x3a4   :  { %3396 = vmatpush2.msra.mxu0 %v3063_v31  ;;  %v3119_v31 = vld [vmem:[#allocation9 + $0x590] sm:$0xff] }
 0x3a5   :  { %3397 = vmatprep.subr.mxu0 %v3060_v32  ;;  %v3563_v32 = vld [vmem:[#allocation12 + $0x1c0] sm:$0xff] }
 0x3a6   :  { %3398 = vmatpush2.msra.mxu0 %v3059_v29  ;;  %v3116_v29 = vld [vmem:[#allocation9 + $0x578] sm:$0xff] }
 0x3a7   :  { %3399 = vmatprep.subr.mxu0 %v3056_v33  ;;  %v3560_v33 = vld [vmem:[#allocation12 + $0x1a8] sm:$0xff] }
 0x3a8   :  { %3400 = vmatpush2.msra.mxu0 %v3055_v34  ;;  %v3115_v34 = vld [vmem:[#allocation9 + $0x570] sm:$0xff] }
 0x3a9   :  { %3401 = vmatprep.subr.mxu0 %v3052_v8  ;;  %v3559_v8 = vld [vmem:[#allocation12 + $0x1a0] sm:$0xff] }
 0x3aa   :  { %3402 = vmatpush2.msra.mxu0 %v3051_v35  ;;  %v3112_v35 = vld [vmem:[#allocation9 + $0x558] sm:$0xff] }
 0x3ab   :  { %3403 = vmatprep.subr.mxu0 %v3048_v36  ;;  %v3556_v36 = vld [vmem:[#allocation12 + $0x188] sm:$0xff] }
 0x3ac   :  { %3404 = vmatpush2.msra.mxu0 %v3047_v11  ;;  %v3111_v11 = vld [vmem:[#allocation9 + $0x550] sm:$0xff] }
 0x3ad   :  { %3405 = vmatprep.subr.mxu0 %v3044_v37  ;;  %v3555_v37 = vld [vmem:[#allocation12 + $0x180] sm:$0xff] }
 0x3ae   :  { %3406 = vmatpush2.msra.mxu0 %v3043_v38  ;;  %v3108_v38 = vld [vmem:[#allocation9 + $0x538] sm:$0xff] }
 0x3af   :  { %3407 = vmatprep.subr.mxu0 %v3040_v15  ;;  %v3552_v15 = vld [vmem:[#allocation12 + $0x168] sm:$0xff] }
 0x3b0   :  { %3408 = vmatpush2.msra.mxu0 %v3039_v40  ;;  %v3107_v40 = vld [vmem:[#allocation9 + $0x530] sm:$0xff] }
 0x3b1   :  { %3409 = vmatprep.subr.mxu0 %v3036_v5  ;;  %v3551_v5 = vld [vmem:[#allocation12 + $0x160] sm:$0xff] }
 0x3b2   :  { %3410 = vmatpush2.msra.mxu0 %v3035_v44  ;;  %v3104_v44 = vld [vmem:[#allocation9 + $0x518] sm:$0xff] }
 0x3b3   :  { %3411 = vmatprep.subr.mxu0 %v3032_v45  ;;  %v3548_v45 = vld [vmem:[#allocation12 + $0x148] sm:$0xff] }
 0x3b4   :  { %3412 = vmatpush2.msra.mxu0 %v3031_v53  ;;  %v3103_v53 = vld [vmem:[#allocation9 + $0x510] sm:$0xff] }
 0x3b5   :  { %3413 = vmatprep.subr.mxu0 %v3028_v63  ;;  %v2853_v12 = vpop.f32.mrf.mxu0  ;;  %v3547_v63 = vld [vmem:[#allocation12 + $0x140] sm:$0xff] }
 0x3b6   :  { %3414 = vmatpush2.msra.mxu0 %v3027_v46  ;;  %v3100_v46 = vld [vmem:[#allocation9 + $0x4f8] sm:$0xff] }
 0x3b7   :  { %3415 = vmatprep.subr.mxu0 %v3024_v47  ;;  %v2855_v16 = vpop.f32.mrf.mxu0  ;;  %v3544_v47 = vld [vmem:[#allocation12 + $0x128] sm:$0xff] }
 0x3b8   :  { %3416 = vmatpush2.msra.mxu0 %v3023_v49  ;;  %v2782_v61 = vpop.f32.mrf.mxu1  ;;  %v3099_v49 = vld [vmem:[#allocation9 + $0x4f0] sm:$0xff] }
 0x3b9   :  { %3417 = vmatprep.subr.mxu0 %v3020_v50  ;;  %v2783_v48 = vadd.f32 %v2782_v61, %v2712_v4  ;;  %v3543_v50 = vld [vmem:[#allocation12 + $0x120] sm:$0xff]  ;;  %v3532_v61 = vld [vmem:[#allocation12 + $0xc8] sm:$0xff]  ;;  %v3084_v4 = vld [vmem:[#allocation9 + $0x478] sm:$0xff] }
 0x3ba   :  { %3418 = vmatpush2.msra.mxu0 %v3019_v52  ;;  %v2784_v6 = vpop.f32.mrf.mxu1  ;;  %v3096_v52 = vld [vmem:[#allocation9 + $0x4d8] sm:$0xff] }
 0x3bb   :  { %3419 = vmatprep.subr.mxu0 %v3016_v54  ;;  %v2785_v13 = vadd.f32 %v2784_v6, %v2714_v10  ;;  %v2854_v30 = vadd.f32 %v2853_v12, %v2783_v48  ;;  %v3540_v54 = vld [vmem:[#allocation12 + $0x108] sm:$0xff]  ;;  %v3527_v48 = vld [vmem:[#allocation12 + $0xa0] sm:$0xff]  ;;  %v3080_v12 = vld [vmem:[#allocation9 + $0x458] sm:$0xff] }
 0x3bc   :  { %3420 = vmatpush2.msra.mxu0 %v3015_v42  ;;  %v3095_v42 = vld [vmem:[#allocation9 + $0x4d0] sm:$0xff] }
 0x3bd   :  { %3421 = vmatprep.subr.mxu0 %v3012_v55  ;;  %v3539_v55 = vld [vmem:[#allocation12 + $0x100] sm:$0xff]  ;;  %v3528_v6 = vld [vmem:[#allocation12 + $0xa8] sm:$0xff] }
 0x3be   :  { %3422 = vmatpush2.msra.mxu0 %v3011_v9  ;;  %v3092_v9 = vld [vmem:[#allocation9 + $0x4b8] sm:$0xff]  ;;  %v3083_v10 = vld [vmem:[#allocation9 + $0x470] sm:$0xff] }
 0x3bf   :  { %3423 = vmatprep.subr.mxu0 %v3008_v57  ;;  %v3536_v57 = vld [vmem:[#allocation12 + $0xe8] sm:$0xff] }
 0x3c0   :  { %3424 = vmatpush2.msra.mxu0 %v3007_v39  ;;  %v3091_v39 = vld [vmem:[#allocation9 + $0x4b0] sm:$0xff] }
 0x3c1   :  { %3426 = vmatmul.mubr.f32.vlgmr.msra.gmra.mxu0 %v6168_v27  ;;  %v2856_v27 = vadd.f32 %v2855_v16, %v2785_v13  ;;  %3763 = vmatprep.subr.mxu0 %v3568_v43  ;;  %v3524_v13 = vld [vmem:[#allocation12 + $0x88] sm:$0xff]  ;;  %v3523_v16 = vld [vmem:[#allocation12 + $0x80] sm:$0xff] }
 0x3c2   :  { %3764 = vmatpush1.msra.mxu0 %v3567_v28  ;;  %v3191_v43 = vld [vmem:[#allocation9 + $0x7d0] sm:$0xff]  ;;  %v3507_v28 = vld [vmem:[#allocation12] sm:$0xff] }
 0x3c3   :  { %3765 = vmatprep.subr.mxu0 %v3564_v26  ;;  %v3188_v26 = vld [vmem:[#allocation9 + $0x7b8] sm:$0xff] }
 0x3c4   :  { %3766 = vmatpush1.msra.mxu0 %v3563_v32  ;;  %v3187_v32 = vld [vmem:[#allocation9 + $0x7b0] sm:$0xff] }
 0x3c5   :  { %3767 = vmatprep.subr.mxu0 %v3560_v33  ;;  %v3184_v33 = vld [vmem:[#allocation9 + $0x798] sm:$0xff] }
 0x3c6   :  { %3768 = vmatpush1.msra.mxu0 %v3559_v8  ;;  %v3183_v8 = vld [vmem:[#allocation9 + $0x790] sm:$0xff] }
 0x3c7   :  { %3769 = vmatprep.subr.mxu0 %v3556_v36  ;;  %v3180_v36 = vld [vmem:[#allocation9 + $0x778] sm:$0xff] }
 0x3c8   :  { %3770 = vmatpush1.msra.mxu0 %v3555_v37  ;;  %v3179_v37 = vld [vmem:[#allocation9 + $0x770] sm:$0xff] }
 0x3c9   :  { %3771 = vmatprep.subr.mxu0 %v3552_v15  ;;  %v3176_v15 = vld [vmem:[#allocation9 + $0x758] sm:$0xff] }
 0x3ca   :  { %3772 = vmatpush1.msra.mxu0 %v3551_v5  ;;  %v3175_v5 = vld [vmem:[#allocation9 + $0x750] sm:$0xff] }
 0x3cb   :  { %3773 = vmatprep.subr.mxu0 %v3548_v45  ;;  %v3172_v45 = vld [vmem:[#allocation9 + $0x738] sm:$0xff] }
 0x3cc   :  { %3774 = vmatpush1.msra.mxu0 %v3547_v63  ;;  %v3171_v63 = vld [vmem:[#allocation9 + $0x730] sm:$0xff] }
 0x3cd   :  { %3775 = vmatprep.subr.mxu0 %v3544_v47  ;;  %v3168_v47 = vld [vmem:[#allocation9 + $0x718] sm:$0xff] }
 0x3ce   :  { %3776 = vmatpush1.msra.mxu0 %v3543_v50  ;;  %v3167_v50 = vld [vmem:[#allocation9 + $0x710] sm:$0xff] }
 0x3cf   :  { %3777 = vmatprep.subr.mxu0 %v3540_v54  ;;  %v3164_v54 = vld [vmem:[#allocation9 + $0x6f8] sm:$0xff] }
 0x3d0   :  { %3778 = vmatpush1.msra.mxu0 %v3539_v55  ;;  %v3163_v55 = vld [vmem:[#allocation9 + $0x6f0] sm:$0xff] }
 0x3d1   :  { %3779 = vmatprep.subr.mxu0 %v3536_v57  ;;  %v3160_v57 = vld [vmem:[#allocation9 + $0x6d8] sm:$0xff] }
 0x3d2   :  { %3780 = vmatpush1.msra.mxu0 %v3535_v58  ;;  %v3159_v58 = vld [vmem:[#allocation9 + $0x6d0] sm:$0xff] }
 0x3d3   :  { %3781 = vmatprep.subr.mxu0 %v3532_v61  ;;  %v3156_v61 = vld [vmem:[#allocation9 + $0x6b8] sm:$0xff] }
 0x3d4   :  { %3782 = vmatpush1.msra.mxu0 %v3531_v2  ;;  %v3155_v2 = vld [vmem:[#allocation9 + $0x6b0] sm:$0xff] }
 0x3d5   :  { %3783 = vmatprep.subr.mxu0 %v3528_v6  ;;  %v3152_v6 = vld [vmem:[#allocation9 + $0x698] sm:$0xff] }
 0x3d6   :  { %3784 = vmatpush1.msra.mxu0 %v3527_v48  ;;  %v3151_v48 = vld [vmem:[#allocation9 + $0x690] sm:$0xff] }
 0x3d7   :  { %3785 = vmatprep.subr.mxu0 %v3524_v13  ;;  %v3148_v13 = vld [vmem:[#allocation9 + $0x678] sm:$0xff] }
 0x3d8   :  { %3786 = vmatpush1.msra.mxu0 %v3523_v16  ;;  %v3147_v16 = vld [vmem:[#allocation9 + $0x670] sm:$0xff] }
 0x3f9   :  { %v2924_v18 = vpop.f32.mrf.mxu1 }
 0x3fa   :  { %v2925_v19 = vadd.f32 %v2924_v18, %v2854_v30  ;;  %v3079_v30 = vld [vmem:[#allocation9 + $0x450] sm:$0xff]  ;;  %v3076_v18 = vld [vmem:[#allocation9 + $0x438] sm:$0xff] }
 0x3fb   :  { %v2926_v51 = vpop.f32.mrf.mxu1 }
 0x3fc   :  { %v2927_v20 = vadd.f32 %v2926_v51, %v2856_v27  ;;  %v2935_v22 = vmul.f32 0.01, %v2925_v19  ;;  %vm2931_vm10 = vcmp.ge.f32.partialorder %v2925_v19, 0.0  ;;  %v3075_v27 = vld [vmem:[#allocation9 + $0x430] sm:$0xff]  ;;  %v3519_v51 = vld [vmem:[#allocation12 + $0x60] sm:$0xff] }
 0x3fe   :  { %v2936_v23 = vmul.f32 0.01, %v2927_v20  ;;  %vm2932_vm11 = vcmp.ge.f32.partialorder %v2927_v20, 0.0  ;;  %v6176_v1 = vsel %vm2931_vm10, %v2925_v19, %v2935_v22  ;;  %v3520_v19 = vld [vmem:[#allocation12 + $0x68] sm:$0xff] }
 0x3ff   :  { %v3516_v22 = vld [vmem:[#allocation12 + $0x48] sm:$0xff]  ;;  %3787 = vmatprep.subr.mxu0 %v3520_v19  ;;  %v3144_v19 = vld [vmem:[#allocation9 + $0x658] sm:$0xff] }
 0x400   :  { %v2940_v24 = vsel %vm2932_vm11, %v2927_v20, %v2936_v23  ;;  %v3072_v20 = vld [vmem:[#allocation9 + $0x418] sm:$0xff]  ;;  %v3071_v23 = vld [vmem:[#allocation9 + $0x410] sm:$0xff]  ;;  %3788 = vmatpush1.msra.mxu0 %v3519_v51 }
 0x401   :  { %3354 = vmatprep.mubr.f32.mxu1 %v2940_v24  ;;  %3789 = vmatprep.subr.mxu0 %v3516_v22  ;;  %v3143_v51 = vld [vmem:[#allocation9 + $0x650] sm:$0xff]  ;;  %v3140_v22 = vld [vmem:[#allocation9 + $0x638] sm:$0xff] }
 0x402   :  { %3355 = vmatmul.mubr.f32.vlgmr.msra.gmra.mxu1 %v6176_v1 }
 0x403   :  { %3433 = vmatpush1.msra.mxu1 %v3131_v14  ;;  %3496 = vmatprep.mubr.f32.mxu1 %v2940_v24  ;;  %v3515_v24 = vld [vmem:[#allocation12 + $0x40] sm:$0xff]  ;;  %v3196_v14 = vld [vmem:[#allocation9 + $0x7f8] sm:$0xff] }
 0x404   :  { %3434 = vmatprep.subr.mxu1 %v3128_v41  ;;  %v3512_v41 = vld [vmem:[#allocation12 + $0x28] sm:$0xff]  ;;  %3790 = vmatpush1.msra.mxu0 %v3515_v24 }
 0x405   :  { %3435 = vmatpush1.msra.mxu1 %v3127_v17  ;;  %v3195_v17 = vld [vmem:[#allocation9 + $0x7f0] sm:$0xff]  ;;  %3791 = vmatprep.subr.mxu0 %v3512_v41 }
 0x406   :  { %3436 = vmatprep.subr.mxu1 %v3124_v25  ;;  %v3511_v25 = vld [vmem:[#allocation12 + $0x20] sm:$0xff]  ;;  %v3139_v24 = vld [vmem:[#allocation9 + $0x630] sm:$0xff] }
 0x407   :  { %3437 = vmatpush1.msra.mxu1 %v3123_v60  ;;  %v3192_v60 = vld [vmem:[#allocation9 + $0x7d8] sm:$0xff]  ;;  %3792 = vmatpush1.msra.mxu0 %v3511_v25  ;;  %v3135_v41 = vld [vmem:[#allocation9 + $0x610] sm:$0xff] }
 0x408   :  { %3438 = vmatprep.subr.mxu1 %v3120_v7  ;;  %v3508_v7 = vld [vmem:[#allocation12 + $0x8] sm:$0xff] }
 0x409   :  { %3439 = vmatpush1.msra.mxu1 %v3119_v31  ;;  %v3632_v31 = vld [vmem:[#allocation12 + $0x3e8] sm:$0xff]  ;;  %3793 = vmatprep.subr.mxu0 %v3508_v7 }
 0x40a   :  { %3440 = vmatprep.subr.mxu1 %v3116_v29  ;;  %v3631_v29 = vld [vmem:[#allocation12 + $0x3e0] sm:$0xff]  ;;  %3794 = vmatpush1.msra.mxu0 %v3507_v28  ;;  %v3580_v25 = vld [vmem:[#allocation12 + $0x248] sm:$0xff] }
 0x40b   :  { %3441 = vmatpush1.msra.mxu1 %v3115_v34  ;;  %v3628_v34 = vld [vmem:[#allocation12 + $0x3c8] sm:$0xff]  ;;  %3795 = vmatprep.subr.mxu0 %v3632_v31 }
 0x40c   :  { %3442 = vmatprep.subr.mxu1 %v3112_v35  ;;  %v3627_v35 = vld [vmem:[#allocation12 + $0x3c0] sm:$0xff]  ;;  %3796 = vmatpush2.msra.mxu0 %v3631_v29  ;;  %v3576_v7 = vld [vmem:[#allocation12 + $0x228] sm:$0xff]  ;;  %v3570_v29 = vld [vmem:[#allocation12 + $0x1f8] sm:$0xff] }
 0x40d   :  { %3443 = vmatpush1.msra.mxu1 %v3111_v11  ;;  %v3624_v11 = vld [vmem:[#allocation12 + $0x3a8] sm:$0xff]  ;;  %3797 = vmatprep.subr.mxu0 %v3628_v34 }
 0x40e   :  { %3444 = vmatprep.subr.mxu1 %v3108_v38  ;;  %v3623_v38 = vld [vmem:[#allocation12 + $0x3a0] sm:$0xff]  ;;  %3798 = vmatpush2.msra.mxu0 %v3627_v35  ;;  %v3572_v28 = vld [vmem:[#allocation12 + $0x208] sm:$0xff] }
 0x40f   :  { %3445 = vmatpush1.msra.mxu1 %v3107_v40  ;;  %v3620_v40 = vld [vmem:[#allocation12 + $0x388] sm:$0xff]  ;;  %3799 = vmatprep.subr.mxu0 %v3624_v11 }
 0x410   :  { %3446 = vmatprep.subr.mxu1 %v3104_v44  ;;  %v3619_v44 = vld [vmem:[#allocation12 + $0x380] sm:$0xff]  ;;  %3800 = vmatpush2.msra.mxu0 %v3623_v38  ;;  %v3696_v31 = vld [vmem:[#allocation12 + $0x5e8] sm:$0xff] }
 0x411   :  { %3447 = vmatpush1.msra.mxu1 %v3103_v53  ;;  %v3616_v53 = vld [vmem:[#allocation12 + $0x368] sm:$0xff]  ;;  %3801 = vmatprep.subr.mxu0 %v3620_v40 }
 0x412   :  { %3448 = vmatprep.subr.mxu1 %v3100_v46  ;;  %v3615_v46 = vld [vmem:[#allocation12 + $0x360] sm:$0xff]  ;;  %3802 = vmatpush2.msra.mxu0 %v3619_v44  ;;  %v3688_v34 = vld [vmem:[#allocation12 + $0x5a8] sm:$0xff] }
 0x413   :  { %3449 = vmatpush1.msra.mxu1 %v3099_v49  ;;  %v3612_v49 = vld [vmem:[#allocation12 + $0x348] sm:$0xff]  ;;  %3803 = vmatprep.subr.mxu0 %v3616_v53 }
 0x414   :  { %3450 = vmatprep.subr.mxu1 %v3096_v52  ;;  %v3611_v52 = vld [vmem:[#allocation12 + $0x340] sm:$0xff]  ;;  %3804 = vmatpush2.msra.mxu0 %v3615_v46  ;;  %v3684_v35 = vld [vmem:[#allocation12 + $0x588] sm:$0xff] }
 0x415   :  { %3451 = vmatpush1.msra.mxu1 %v3095_v42  ;;  %v3608_v42 = vld [vmem:[#allocation12 + $0x328] sm:$0xff]  ;;  %3805 = vmatprep.subr.mxu0 %v3612_v49 }
 0x416   :  { %3452 = vmatprep.subr.mxu1 %v3092_v9  ;;  %v3607_v9 = vld [vmem:[#allocation12 + $0x320] sm:$0xff]  ;;  %3806 = vmatpush2.msra.mxu0 %v3611_v52  ;;  %v3680_v11 = vld [vmem:[#allocation12 + $0x568] sm:$0xff] }
 0x417   :  { %3453 = vmatpush1.msra.mxu1 %v3091_v39  ;;  %v3604_v39 = vld [vmem:[#allocation12 + $0x308] sm:$0xff]  ;;  %3807 = vmatprep.subr.mxu0 %v3608_v42 }
 0x418   :  { %3454 = vmatprep.subr.mxu1 %v3088_v59  ;;  %v3603_v59 = vld [vmem:[#allocation12 + $0x300] sm:$0xff]  ;;  %3808 = vmatpush2.msra.mxu0 %v3607_v9  ;;  %v3676_v38 = vld [vmem:[#allocation12 + $0x548] sm:$0xff] }
 0x419   :  { %3455 = vmatpush1.msra.mxu1 %v3087_v0  ;;  %v3600_v0 = vld [vmem:[#allocation12 + $0x2e8] sm:$0xff]  ;;  %3809 = vmatprep.subr.mxu0 %v3604_v39 }
 0x41a   :  { %3456 = vmatprep.subr.mxu1 %v3084_v4  ;;  %v3599_v4 = vld [vmem:[#allocation12 + $0x2e0] sm:$0xff]  ;;  %3810 = vmatpush2.msra.mxu0 %v3603_v59  ;;  %v3672_v40 = vld [vmem:[#allocation12 + $0x528] sm:$0xff] }
 0x41b   :  { %3457 = vmatpush1.msra.mxu1 %v3083_v10  ;;  %v3596_v10 = vld [vmem:[#allocation12 + $0x2c8] sm:$0xff]  ;;  %3811 = vmatprep.subr.mxu0 %v3600_v0 }
 0x41c   :  { %3458 = vmatprep.subr.mxu1 %v3080_v12  ;;  %v3595_v12 = vld [vmem:[#allocation12 + $0x2c0] sm:$0xff]  ;;  %3812 = vmatpush2.msra.mxu0 %v3599_v4  ;;  %v3668_v44 = vld [vmem:[#allocation12 + $0x508] sm:$0xff] }
 0x41d   :  { %3459 = vmatpush1.msra.mxu1 %v3079_v30  ;;  %v3592_v30 = vld [vmem:[#allocation12 + $0x2a8] sm:$0xff]  ;;  %3813 = vmatprep.subr.mxu0 %v3596_v10 }
 0x41e   :  { %3460 = vmatprep.subr.mxu1 %v3076_v18  ;;  %v3591_v18 = vld [vmem:[#allocation12 + $0x2a0] sm:$0xff]  ;;  %3814 = vmatpush2.msra.mxu0 %v3595_v12  ;;  %v3664_v53 = vld [vmem:[#allocation12 + $0x4e8] sm:$0xff] }
 0x41f   :  { %3461 = vmatpush1.msra.mxu1 %v3075_v27  ;;  %v3588_v27 = vld [vmem:[#allocation12 + $0x288] sm:$0xff]  ;;  %3815 = vmatprep.subr.mxu0 %v3592_v30 }
 0x420   :  { %3462 = vmatprep.subr.mxu1 %v3072_v20  ;;  %v3587_v20 = vld [vmem:[#allocation12 + $0x280] sm:$0xff]  ;;  %3816 = vmatpush2.msra.mxu0 %v3591_v18  ;;  %v3660_v46 = vld [vmem:[#allocation12 + $0x4c8] sm:$0xff] }
 0x421   :  { %3463 = vmatpush1.msra.mxu1 %v3071_v23  ;;  %v3584_v23 = vld [vmem:[#allocation12 + $0x268] sm:$0xff]  ;;  %3817 = vmatprep.subr.mxu0 %v3588_v27 }
 0x422   :  { %3464 = vmatprep.subr.mxu1 %v3196_v14  ;;  %v3136_v14 = vld [vmem:[#allocation9 + $0x618] sm:$0xff]  ;;  %3818 = vmatpush2.msra.mxu0 %v3587_v20  ;;  %v3656_v49 = vld [vmem:[#allocation12 + $0x4a8] sm:$0xff] }
 0x423   :  { %3465 = vmatpush2.msra.mxu1 %v3195_v17  ;;  %3819 = vmatprep.subr.mxu0 %v3584_v23  ;;  %v3583_v17 = vld [vmem:[#allocation12 + $0x260] sm:$0xff]  ;;  %v3652_v52 = vld [vmem:[#allocation12 + $0x488] sm:$0xff] }
 0x424   :  { %3466 = vmatprep.subr.mxu1 %v3192_v60  ;;  %3820 = vmatpush2.msra.mxu0 %v3583_v17  ;;  %v3579_v60 = vld [vmem:[#allocation12 + $0x240] sm:$0xff]  ;;  %v3648_v42 = vld [vmem:[#allocation12 + $0x468] sm:$0xff] }
 0x425   :  { %3467 = vmatpush2.msra.mxu1 %v3191_v43  ;;  %3821 = vmatprep.subr.mxu0 %v3580_v25  ;;  %v3575_v43 = vld [vmem:[#allocation12 + $0x220] sm:$0xff]  ;;  %v3644_v9 = vld [vmem:[#allocation12 + $0x448] sm:$0xff] }
 0x426   :  { %3468 = vmatprep.subr.mxu1 %v3188_v26  ;;  %3822 = vmatpush2.msra.mxu0 %v3579_v60  ;;  %v3571_v26 = vld [vmem:[#allocation12 + $0x200] sm:$0xff]  ;;  %v3640_v39 = vld [vmem:[#allocation12 + $0x428] sm:$0xff] }
 0x427   :  { %3469 = vmatpush2.msra.mxu1 %v3187_v32  ;;  %3823 = vmatprep.subr.mxu0 %v3576_v7  ;;  %v3695_v32 = vld [vmem:[#allocation12 + $0x5e0] sm:$0xff]  ;;  %v3636_v59 = vld [vmem:[#allocation12 + $0x408] sm:$0xff] }
 0x428   :  { %3470 = vmatprep.subr.mxu1 %v3184_v33  ;;  %3824 = vmatpush2.msra.mxu0 %v3575_v43  ;;  %v3691_v33 = vld [vmem:[#allocation12 + $0x5c0] sm:$0xff]  ;;  %v3760_v0 = vld [vmem:[#allocation12 + $0x7e8] sm:$0xff] }
 0x429   :  { %3471 = vmatpush2.msra.mxu1 %v3183_v8  ;;  %3825 = vmatprep.subr.mxu0 %v3572_v28  ;;  %v3687_v8 = vld [vmem:[#allocation12 + $0x5a0] sm:$0xff]  ;;  %v3756_v4 = vld [vmem:[#allocation12 + $0x7c8] sm:$0xff] }
 0x42a   :  { %3472 = vmatprep.subr.mxu1 %v3180_v36  ;;  %3826 = vmatpush2.msra.mxu0 %v3571_v26  ;;  %v3683_v36 = vld [vmem:[#allocation12 + $0x580] sm:$0xff]  ;;  %v3752_v10 = vld [vmem:[#allocation12 + $0x7a8] sm:$0xff] }
 0x42b   :  { %3473 = vmatpush2.msra.mxu1 %v3179_v37  ;;  %3905 = vmatprep.subr.mxu0 %v3570_v29  ;;  %v3679_v37 = vld [vmem:[#allocation12 + $0x560] sm:$0xff]  ;;  %v3748_v12 = vld [vmem:[#allocation12 + $0x788] sm:$0xff] }
 0x42c   :  { %3474 = vmatprep.subr.mxu1 %v3176_v15  ;;  %v3675_v15 = vld [vmem:[#allocation12 + $0x540] sm:$0xff]  ;;  %v3744_v30 = vld [vmem:[#allocation12 + $0x768] sm:$0xff] }
 0x42d   :  { %3475 = vmatpush2.msra.mxu1 %v3175_v5  ;;  %v3671_v5 = vld [vmem:[#allocation12 + $0x520] sm:$0xff]  ;;  %v3740_v18 = vld [vmem:[#allocation12 + $0x748] sm:$0xff] }
 0x42e   :  { %3476 = vmatprep.subr.mxu1 %v3172_v45  ;;  %v3667_v45 = vld [vmem:[#allocation12 + $0x500] sm:$0xff]  ;;  %v3736_v27 = vld [vmem:[#allocation12 + $0x728] sm:$0xff] }
 0x42f   :  { %3477 = vmatpush2.msra.mxu1 %v3171_v63  ;;  %v3663_v63 = vld [vmem:[#allocation12 + $0x4e0] sm:$0xff]  ;;  %v3732_v20 = vld [vmem:[#allocation12 + $0x708] sm:$0xff] }
 0x430   :  { %3478 = vmatprep.subr.mxu1 %v3168_v47  ;;  %v3659_v47 = vld [vmem:[#allocation12 + $0x4c0] sm:$0xff]  ;;  %v3728_v23 = vld [vmem:[#allocation12 + $0x6e8] sm:$0xff] }
 0x431   :  { %3479 = vmatpush2.msra.mxu1 %v3167_v50  ;;  %v3655_v50 = vld [vmem:[#allocation12 + $0x4a0] sm:$0xff]  ;;  %v3720_v17 = vld [vmem:[#allocation12 + $0x6a8] sm:$0xff] }
 0x432   :  { %3480 = vmatprep.subr.mxu1 %v3164_v54  ;;  %v3651_v54 = vld [vmem:[#allocation12 + $0x480] sm:$0xff]  ;;  %v3716_v60 = vld [vmem:[#allocation12 + $0x688] sm:$0xff] }
 0x433   :  { %3481 = vmatpush2.msra.mxu1 %v3163_v55  ;;  %v3647_v55 = vld [vmem:[#allocation12 + $0x460] sm:$0xff]  ;;  %v3712_v43 = vld [vmem:[#allocation12 + $0x668] sm:$0xff] }
 0x434   :  { %3482 = vmatprep.subr.mxu1 %v3160_v57  ;;  %v3643_v57 = vld [vmem:[#allocation12 + $0x440] sm:$0xff]  ;;  %v3708_v26 = vld [vmem:[#allocation12 + $0x648] sm:$0xff] }
 0x435   :  { %3483 = vmatpush2.msra.mxu1 %v3159_v58  ;;  %v3639_v58 = vld [vmem:[#allocation12 + $0x420] sm:$0xff] }
 0x436   :  { %3484 = vmatprep.subr.mxu1 %v3156_v61  ;;  %v3635_v61 = vld [vmem:[#allocation12 + $0x400] sm:$0xff] }
 0x437   :  { %3485 = vmatpush2.msra.mxu1 %v3155_v2  ;;  %v3759_v2 = vld [vmem:[#allocation12 + $0x7e0] sm:$0xff] }
 0x438   :  { %3486 = vmatprep.subr.mxu1 %v3152_v6  ;;  %v3755_v6 = vld [vmem:[#allocation12 + $0x7c0] sm:$0xff] }
 0x439   :  { %3487 = vmatpush2.msra.mxu1 %v3151_v48  ;;  %v3751_v48 = vld [vmem:[#allocation12 + $0x7a0] sm:$0xff] }
 0x43a   :  { %3488 = vmatprep.subr.mxu1 %v3148_v13  ;;  %v3747_v13 = vld [vmem:[#allocation12 + $0x780] sm:$0xff] }
 0x43b   :  { %3489 = vmatpush2.msra.mxu1 %v3147_v16  ;;  %v3743_v16 = vld [vmem:[#allocation12 + $0x760] sm:$0xff] }
 0x43c   :  { %3490 = vmatprep.subr.mxu1 %v3144_v19  ;;  %v3739_v19 = vld [vmem:[#allocation12 + $0x740] sm:$0xff] }
 0x43d   :  { %3491 = vmatpush2.msra.mxu1 %v3143_v51  ;;  %v3735_v51 = vld [vmem:[#allocation12 + $0x720] sm:$0xff] }
 0x43e   :  { %3492 = vmatprep.subr.mxu1 %v3140_v22  ;;  %v3731_v22 = vld [vmem:[#allocation12 + $0x700] sm:$0xff] }
 0x43f   :  { %3493 = vmatpush2.msra.mxu1 %v3139_v24  ;;  %v3727_v24 = vld [vmem:[#allocation12 + $0x6e0] sm:$0xff] }
 0x440   :  { %3494 = vmatprep.subr.mxu1 %v3136_v14  ;;  %v3724_v14 = vld [vmem:[#allocation12 + $0x6c8] sm:$0xff]  ;;  %v3719_v25 = vld [vmem:[#allocation12 + $0x6a0] sm:$0xff] }
 0x441   :  { %3495 = vmatpush2.msra.mxu1 %v3135_v41  ;;  %v3723_v41 = vld [vmem:[#allocation12 + $0x6c0] sm:$0xff] }
 0x442   :  { %3497 = vmatmul.mubr.f32.vlgmr.msra.gmra.mxu1 %v6176_v1  ;;  %3834 = vmatprep.subr.mxu1 %v3696_v31  ;;  %v3692_v1 = vld [vmem:[#allocation12 + $0x5c8] sm:$0xff]  ;;  %v3715_v7 = vld [vmem:[#allocation12 + $0x680] sm:$0xff] }
 0x443   :  { %3835 = vmatpush1.msra.mxu1 %v3695_v32  ;;  %v3711_v28 = vld [vmem:[#allocation12 + $0x660] sm:$0xff]  ;;  %v3704_v32 = vld [vmem:[#allocation12 + $0x628] sm:$0xff] }
 0x444   :  { %3836 = vmatprep.subr.mxu1 %v3692_v1  ;;  %v3707_v31 = vld [vmem:[#allocation12 + $0x640] sm:$0xff]  ;;  %v3700_v1 = vld [vmem:[#allocation12 + $0x608] sm:$0xff] }
 0x445   :  { %3837 = vmatpush1.msra.mxu1 %v3691_v33  ;;  %v3703_v29 = vld [vmem:[#allocation12 + $0x620] sm:$0xff] }
 0x446   :  { %3838 = vmatprep.subr.mxu1 %v3688_v34  ;;  %v3699_v33 = vld [vmem:[#allocation12 + $0x600] sm:$0xff]  ;;  %v3698_v34 = vld [vmem:[#allocation12 + $0x5f8] sm:$0xff] }
 0x447   :  { %3839 = vmatpush1.msra.mxu1 %v3687_v8  ;;  %v6180_v8 = vld [vmem:[#allocation10] sm:$0xf] }
 0x448   :  { %3840 = vmatprep.subr.mxu1 %v3684_v35  ;;  %v3285_v35 = vpop.f32.mrf.mxu0 }
 0x449   :  { %3841 = vmatpush1.msra.mxu1 %v3683_v36  ;;  %v3202_v36 = vrot.slane %v6180_v8, %v6041_v62  ;;  %v3565_v62 = vld [vmem:[#allocation12 + $0x1d0] sm:$0xff] }
 0x44a   :  { %3842 = vmatprep.subr.mxu1 %v3680_v11  ;;  %v3206_v11 = vrot.slane %v6180_v8, %v6083_v21  ;;  %v3562_v21 = vld [vmem:[#allocation12 + $0x1b8] sm:$0xff] }
 0x44b   :  { %3843 = vmatpush1.msra.mxu1 %v3679_v37  ;;  %v3287_v37 = vpop.f32.mrf.mxu0 }
 0x44c   :  { %3844 = vmatprep.subr.mxu1 %v3676_v38  ;;  %v3286_v38 = vadd.f32 %v3285_v35, %v3202_v36  ;;  %v3598_v35 = vld [vmem:[#allocation12 + $0x2d8] sm:$0xff]  ;;  %v3597_v36 = vld [vmem:[#allocation12 + $0x2d0] sm:$0xff] }
 0x44d   :  { %3845 = vmatpush1.msra.mxu1 %v3675_v15 }
 0x44e   :  { %3846 = vmatprep.subr.mxu1 %v3672_v40  ;;  %v3288_v40 = vadd.f32 %v3287_v37, %v3206_v11  ;;  %v3594_v11 = vld [vmem:[#allocation12 + $0x2b8] sm:$0xff] }
 0x44f   :  { %3847 = vmatpush1.msra.mxu1 %v3671_v5 }
 0x450   :  { %3848 = vmatprep.subr.mxu1 %v3668_v44 }
 0x451   :  { %3849 = vmatpush1.msra.mxu1 %v3667_v45 }
 0x452   :  { %3850 = vmatprep.subr.mxu1 %v3664_v53 }
 0x453   :  { %3851 = vmatpush1.msra.mxu1 %v3663_v63 }
 0x454   :  { %3852 = vmatprep.subr.mxu1 %v3660_v46  ;;  %v3569_v46 = vld [vmem:[#allocation12 + $0x1f0] sm:$0xff] }
 0x455   :  { %3853 = vmatpush1.msra.mxu1 %v3659_v47  ;;  %v3566_v47 = vld [vmem:[#allocation12 + $0x1d8] sm:$0xff] }
 0x456   :  { %3854 = vmatprep.subr.mxu1 %v3656_v49  ;;  %v3561_v49 = vld [vmem:[#allocation12 + $0x1b0] sm:$0xff] }
 0x457   :  { %3855 = vmatpush1.msra.mxu1 %v3655_v50  ;;  %v3558_v50 = vld [vmem:[#allocation12 + $0x198] sm:$0xff] }
 0x458   :  { %3856 = vmatprep.subr.mxu1 %v3652_v52  ;;  %v3557_v52 = vld [vmem:[#allocation12 + $0x190] sm:$0xff] }
 0x459   :  { %3857 = vmatpush1.msra.mxu1 %v3651_v54  ;;  %v3554_v54 = vld [vmem:[#allocation12 + $0x178] sm:$0xff] }
 0x45a   :  { %3858 = vmatprep.subr.mxu1 %v3648_v42  ;;  %v3553_v42 = vld [vmem:[#allocation12 + $0x170] sm:$0xff] }
 0x45b   :  { %3859 = vmatpush1.msra.mxu1 %v3647_v55  ;;  %v3550_v55 = vld [vmem:[#allocation12 + $0x158] sm:$0xff] }
 0x45c   :  { %3860 = vmatprep.subr.mxu1 %v3644_v9  ;;  %v3549_v9 = vld [vmem:[#allocation12 + $0x150] sm:$0xff] }
 0x45d   :  { %3861 = vmatpush1.msra.mxu1 %v3643_v57  ;;  %v3546_v57 = vld [vmem:[#allocation12 + $0x138] sm:$0xff] }
 0x45e   :  { %3862 = vmatprep.subr.mxu1 %v3640_v39  ;;  %v3545_v39 = vld [vmem:[#allocation12 + $0x130] sm:$0xff] }
 0x45f   :  { %3863 = vmatpush1.msra.mxu1 %v3639_v58  ;;  %v3542_v58 = vld [vmem:[#allocation12 + $0x118] sm:$0xff] }
 0x460   :  { %3864 = vmatprep.subr.mxu1 %v3636_v59  ;;  %v3541_v59 = vld [vmem:[#allocation12 + $0x110] sm:$0xff] }
 0x461   :  { %3865 = vmatpush1.msra.mxu1 %v3635_v61  ;;  %v3538_v61 = vld [vmem:[#allocation12 + $0xf8] sm:$0xff] }
 0x462   :  { %3866 = vmatprep.subr.mxu1 %v3760_v0  ;;  %v3537_v0 = vld [vmem:[#allocation12 + $0xf0] sm:$0xff] }
 0x463   :  { %3867 = vmatpush2.msra.mxu1 %v3759_v2  ;;  %v3534_v2 = vld [vmem:[#allocation12 + $0xd8] sm:$0xff] }
 0x464   :  { %3868 = vmatprep.subr.mxu1 %v3756_v4  ;;  %v3533_v4 = vld [vmem:[#allocation12 + $0xd0] sm:$0xff] }
 0x465   :  { %3869 = vmatpush2.msra.mxu1 %v3755_v6  ;;  %v3530_v6 = vld [vmem:[#allocation12 + $0xb8] sm:$0xff] }
 0x466   :  { %3870 = vmatprep.subr.mxu1 %v3752_v10  ;;  %v3529_v10 = vld [vmem:[#allocation12 + $0xb0] sm:$0xff] }
 0x467   :  { %3871 = vmatpush2.msra.mxu1 %v3751_v48  ;;  %v3526_v48 = vld [vmem:[#allocation12 + $0x98] sm:$0xff] }
 0x468   :  { %3872 = vmatprep.subr.mxu1 %v3748_v12  ;;  %v3525_v12 = vld [vmem:[#allocation12 + $0x90] sm:$0xff] }
 0x469   :  { %3873 = vmatpush2.msra.mxu1 %v3747_v13  ;;  %v3522_v13 = vld [vmem:[#allocation12 + $0x78] sm:$0xff] }
 0x46a   :  { %3874 = vmatprep.subr.mxu1 %v3744_v30  ;;  %v3521_v30 = vld [vmem:[#allocation12 + $0x70] sm:$0xff] }
 0x46b   :  { %3875 = vmatpush2.msra.mxu1 %v3743_v16  ;;  %v3518_v16 = vld [vmem:[#allocation12 + $0x58] sm:$0xff] }
 0x46c   :  { %3876 = vmatprep.subr.mxu1 %v3740_v18  ;;  %v3517_v18 = vld [vmem:[#allocation12 + $0x50] sm:$0xff] }
 0x46d   :  { %3877 = vmatpush2.msra.mxu1 %v3739_v19  ;;  %v3514_v19 = vld [vmem:[#allocation12 + $0x38] sm:$0xff] }
 0x46e   :  { %3878 = vmatprep.subr.mxu1 %v3736_v27  ;;  %v3513_v27 = vld [vmem:[#allocation12 + $0x30] sm:$0xff] }
 0x46f   :  { %3879 = vmatpush2.msra.mxu1 %v3735_v51  ;;  %v3510_v51 = vld [vmem:[#allocation12 + $0x18] sm:$0xff] }
 0x470   :  { %3880 = vmatprep.subr.mxu1 %v3732_v20  ;;  %v3509_v20 = vld [vmem:[#allocation12 + $0x10] sm:$0xff] }
 0x471   :  { %3881 = vmatpush2.msra.mxu1 %v3731_v22  ;;  %v3634_v22 = vld [vmem:[#allocation12 + $0x3f8] sm:$0xff] }
 0x472   :  { %3882 = vmatprep.subr.mxu1 %v3728_v23  ;;  %v3633_v23 = vld [vmem:[#allocation12 + $0x3f0] sm:$0xff] }
 0x473   :  { %3883 = vmatpush2.msra.mxu1 %v3727_v24  ;;  %v3630_v24 = vld [vmem:[#allocation12 + $0x3d8] sm:$0xff] }
 0x474   :  { %3884 = vmatprep.subr.mxu1 %v3724_v14  ;;  %v3629_v14 = vld [vmem:[#allocation12 + $0x3d0] sm:$0xff] }
 0x475   :  { %3885 = vmatpush2.msra.mxu1 %v3723_v41  ;;  %v3626_v41 = vld [vmem:[#allocation12 + $0x3b8] sm:$0xff] }
 0x476   :  { %3886 = vmatprep.subr.mxu1 %v3720_v17  ;;  %v3625_v17 = vld [vmem:[#allocation12 + $0x3b0] sm:$0xff] }
 0x477   :  { %3887 = vmatpush2.msra.mxu1 %v3719_v25  ;;  %v3622_v25 = vld [vmem:[#allocation12 + $0x398] sm:$0xff] }
 0x478   :  { %3888 = vmatprep.subr.mxu1 %v3716_v60  ;;  %v3621_v60 = vld [vmem:[#allocation12 + $0x390] sm:$0xff] }
 0x479   :  { %3889 = vmatpush2.msra.mxu1 %v3715_v7  ;;  %v3618_v7 = vld [vmem:[#allocation12 + $0x378] sm:$0xff] }
 0x47a   :  { %3890 = vmatprep.subr.mxu1 %v3712_v43  ;;  %v3617_v43 = vld [vmem:[#allocation12 + $0x370] sm:$0xff] }
 0x47b   :  { %3891 = vmatpush2.msra.mxu1 %v3711_v28  ;;  %v3614_v28 = vld [vmem:[#allocation12 + $0x358] sm:$0xff] }
 0x47c   :  { %3892 = vmatprep.subr.mxu1 %v3708_v26  ;;  %v3613_v26 = vld [vmem:[#allocation12 + $0x350] sm:$0xff] }
 0x47d   :  { %3893 = vmatpush2.msra.mxu1 %v3707_v31  ;;  %v3610_v31 = vld [vmem:[#allocation12 + $0x338] sm:$0xff] }
 0x47e   :  { %3894 = vmatprep.subr.mxu1 %v3704_v32  ;;  %v3609_v32 = vld [vmem:[#allocation12 + $0x330] sm:$0xff] }
 0x47f   :  { %3895 = vmatpush2.msra.mxu1 %v3703_v29  ;;  %v3606_v29 = vld [vmem:[#allocation12 + $0x318] sm:$0xff] }
 0x480   :  { %3896 = vmatprep.subr.mxu1 %v3700_v1  ;;  %v3605_v1 = vld [vmem:[#allocation12 + $0x310] sm:$0xff] }
 0x481   :  { %3897 = vmatpush2.msra.mxu1 %v3699_v33  ;;  %v3602_v33 = vld [vmem:[#allocation12 + $0x2f8] sm:$0xff]  ;;  %v3427_v37 = vpop.f32.mrf.mxu0 }
 0x482   :  { %3976 = vmatprep.subr.mxu1 %v3698_v34  ;;  %v3601_v34 = vld [vmem:[#allocation12 + $0x2f0] sm:$0xff] }
 0x4c2   :  { %v3356_v15 = vpop.f32.mrf.mxu1 }
 0x4c3   :  { %v6186_v5 = vadd.f32 %v3356_v15, %v3286_v38  ;;  %v3593_v38 = vld [vmem:[#allocation12 + $0x2b0] sm:$0xff]  ;;  %v3590_v15 = vld [vmem:[#allocation12 + $0x298] sm:$0xff] }
 0x4c4   :  { %v3358_v44 = vpop.f32.mrf.mxu1 }
 0x4c5   :  { %v6188_v45 = vadd.f32 %v3358_v44, %v3288_v40  ;;  %v3503_v63 = vmax.f32 %v6186_v5, 0.0  ;;  %v3210_v40 = vrot.slane %v6180_v8, %v6116_v56  ;;  %v3589_v44 = vld [vmem:[#allocation12 + $0x290] sm:$0xff] }
 0x4c7   :  { %v3504_v53 = vmax.f32 %v6188_v45, 0.0 }
 0x4c9   :  { %3827 = vmatprep.mubr.f32.mxu0 %v3504_v53 }
 0x4ca   :  { %3828 = vmatmul.mubr.f32.vlgmr.msra.gmra.mxu0 %v3503_v63 }
 0x4cb   :  { %3906 = vmatpush1.msra.mxu0 %v3569_v46  ;;  %3969 = vmatprep.mubr.f32.mxu0 %v3504_v53  ;;  %v3214_v53 = vrot.slane %v6180_v8, %v6089_v3  ;;  %v3586_v46 = vld [vmem:[#allocation12 + $0x278] sm:$0xff] }
 0x4cc   :  { %3907 = vmatprep.subr.mxu0 %v3566_v47  ;;  %v3429_v47 = vpop.f32.mrf.mxu0  ;;  %v3574_v8 = vld [vmem:[#allocation12 + $0x218] sm:$0xff] }
 0x4cd   :  { %3908 = vmatpush1.msra.mxu0 %v3565_v62  ;;  %v3585_v62 = vld [vmem:[#allocation12 + $0x270] sm:$0xff] }
 0x4ce   :  { %3909 = vmatprep.subr.mxu0 %v3562_v21  ;;  %v3582_v21 = vld [vmem:[#allocation12 + $0x258] sm:$0xff] }
 0x4cf   :  { %3910 = vmatpush1.msra.mxu0 %v3561_v49  ;;  %v3428_v49 = vadd.f32 %v3427_v37, %v3210_v40  ;;  %v4076_v37 = vld [vmem:[#allocation13 + $0xc8] sm:$0xff]  ;;  %v3653_v40 = vld [vmem:[#allocation12 + $0x490] sm:$0xff] }
 0x4d0   :  { %3911 = vmatprep.subr.mxu0 %v3558_v50 }
 0x4d1   :  { %3912 = vmatpush1.msra.mxu0 %v3557_v52  ;;  %v3581_v52 = vld [vmem:[#allocation12 + $0x250] sm:$0xff] }
 0x4d2   :  { %3913 = vmatprep.subr.mxu0 %v3554_v54  ;;  %v3430_v54 = vadd.f32 %v3429_v47, %v3214_v53  ;;  %v3650_v53 = vld [vmem:[#allocation12 + $0x478] sm:$0xff]  ;;  %v3649_v47 = vld [vmem:[#allocation12 + $0x470] sm:$0xff] }
 0x4d3   :  { %3914 = vmatpush1.msra.mxu0 %v3553_v42  ;;  %v3578_v42 = vld [vmem:[#allocation12 + $0x238] sm:$0xff] }
 0x4d4   :  { %3915 = vmatprep.subr.mxu0 %v3550_v55 }
 0x4d5   :  { %3916 = vmatpush1.msra.mxu0 %v3549_v9  ;;  %v3577_v9 = vld [vmem:[#allocation12 + $0x230] sm:$0xff] }
 0x4d6   :  { %3917 = vmatprep.subr.mxu0 %v3546_v57  ;;  %v3573_v57 = vld [vmem:[#allocation12 + $0x210] sm:$0xff] }
 0x4d7   :  { %3918 = vmatpush1.msra.mxu0 %v3545_v39 }
 0x4d8   :  { %3919 = vmatprep.subr.mxu0 %v3542_v58 }
 0x4d9   :  { %3920 = vmatpush1.msra.mxu0 %v3541_v59  ;;  %v3697_v59 = vld [vmem:[#allocation12 + $0x5f0] sm:$0xff] }
 0x4da   :  { %3921 = vmatprep.subr.mxu0 %v3538_v61  ;;  %v3694_v61 = vld [vmem:[#allocation12 + $0x5d8] sm:$0xff] }
 0x4db   :  { %3922 = vmatpush1.msra.mxu0 %v3537_v0  ;;  %v3693_v0 = vld [vmem:[#allocation12 + $0x5d0] sm:$0xff] }
 0x4dc   :  { %3923 = vmatprep.subr.mxu0 %v3534_v2  ;;  %v3690_v2 = vld [vmem:[#allocation12 + $0x5b8] sm:$0xff] }
 0x4dd   :  { %3924 = vmatpush1.msra.mxu0 %v3533_v4  ;;  %v3689_v4 = vld [vmem:[#allocation12 + $0x5b0] sm:$0xff] }
 0x4de   :  { %3925 = vmatprep.subr.mxu0 %v3530_v6  ;;  %v4112_v6 = vld [vmem:[#allocation13 + $0x1e8] sm:$0xff] }
 0x4df   :  { %3926 = vmatpush1.msra.mxu0 %v3529_v10  ;;  %v4111_v10 = vld [vmem:[#allocation13 + $0x1e0] sm:$0xff] }
 0x4e0   :  { %3927 = vmatprep.subr.mxu0 %v3526_v48  ;;  %v4108_v48 = vld [vmem:[#allocation13 + $0x1c8] sm:$0xff] }
 0x4e1   :  { %3928 = vmatpush1.msra.mxu0 %v3525_v12  ;;  %v3686_v12 = vld [vmem:[#allocation12 + $0x598] sm:$0xff] }
 0x4e2   :  { %3929 = vmatprep.subr.mxu0 %v3522_v13  ;;  %v4107_v13 = vld [vmem:[#allocation13 + $0x1c0] sm:$0xff] }
 0x4e3   :  { %3930 = vmatpush1.msra.mxu0 %v3521_v30  ;;  %v3685_v30 = vld [vmem:[#allocation12 + $0x590] sm:$0xff] }
 0x4e4   :  { %3931 = vmatprep.subr.mxu0 %v3518_v16  ;;  %v4104_v16 = vld [vmem:[#allocation13 + $0x1a8] sm:$0xff] }
 0x4e5   :  { %3932 = vmatpush1.msra.mxu0 %v3517_v18  ;;  %v3682_v18 = vld [vmem:[#allocation12 + $0x578] sm:$0xff] }
 0x4e6   :  { %3933 = vmatprep.subr.mxu0 %v3514_v19  ;;  %v3681_v19 = vld [vmem:[#allocation12 + $0x570] sm:$0xff] }
 0x4e7   :  { %3934 = vmatpush1.msra.mxu0 %v3513_v27  ;;  %v4100_v27 = vld [vmem:[#allocation13 + $0x188] sm:$0xff] }
 0x4e8   :  { %3935 = vmatprep.subr.mxu0 %v3510_v51  ;;  %v3678_v51 = vld [vmem:[#allocation12 + $0x558] sm:$0xff] }
 0x4e9   :  { %3936 = vmatpush1.msra.mxu0 %v3509_v20  ;;  %v4099_v20 = vld [vmem:[#allocation13 + $0x180] sm:$0xff] }
 0x4ea   :  { %3937 = vmatprep.subr.mxu0 %v3634_v22  ;;  %v3677_v22 = vld [vmem:[#allocation12 + $0x550] sm:$0xff] }
 0x4eb   :  { %3938 = vmatpush2.msra.mxu0 %v3633_v23  ;;  %v4096_v23 = vld [vmem:[#allocation13 + $0x168] sm:$0xff] }
 0x4ec   :  { %3939 = vmatprep.subr.mxu0 %v3630_v24  ;;  %v3674_v24 = vld [vmem:[#allocation12 + $0x538] sm:$0xff] }
 0x4ed   :  { %3940 = vmatpush2.msra.mxu0 %v3629_v14  ;;  %v4095_v14 = vld [vmem:[#allocation13 + $0x160] sm:$0xff] }
 0x4ee   :  { %3941 = vmatprep.subr.mxu0 %v3626_v41  ;;  %v3673_v41 = vld [vmem:[#allocation12 + $0x530] sm:$0xff] }
 0x4ef   :  { %3942 = vmatpush2.msra.mxu0 %v3625_v17  ;;  %v4092_v17 = vld [vmem:[#allocation13 + $0x148] sm:$0xff] }
 0x4f0   :  { %3943 = vmatprep.subr.mxu0 %v3622_v25  ;;  %v3670_v25 = vld [vmem:[#allocation12 + $0x518] sm:$0xff] }
 0x4f1   :  { %3944 = vmatpush2.msra.mxu0 %v3621_v60  ;;  %v4091_v60 = vld [vmem:[#allocation13 + $0x140] sm:$0xff] }
 0x4f2   :  { %3945 = vmatprep.subr.mxu0 %v3618_v7  ;;  %v3669_v7 = vld [vmem:[#allocation12 + $0x510] sm:$0xff] }
 0x4f3   :  { %3946 = vmatpush2.msra.mxu0 %v3617_v43  ;;  %v4088_v43 = vld [vmem:[#allocation13 + $0x128] sm:$0xff] }
 0x4f4   :  { %3947 = vmatprep.subr.mxu0 %v3614_v28  ;;  %v3666_v28 = vld [vmem:[#allocation12 + $0x4f8] sm:$0xff] }
 0x4f5   :  { %3948 = vmatpush2.msra.mxu0 %v3613_v26  ;;  %v4087_v26 = vld [vmem:[#allocation13 + $0x120] sm:$0xff] }
 0x4f6   :  { %3949 = vmatprep.subr.mxu0 %v3610_v31  ;;  %v3665_v31 = vld [vmem:[#allocation12 + $0x4f0] sm:$0xff] }
 0x4f7   :  { %3950 = vmatpush2.msra.mxu0 %v3609_v32  ;;  %v4084_v32 = vld [vmem:[#allocation13 + $0x108] sm:$0xff] }
 0x4f8   :  { %3951 = vmatprep.subr.mxu0 %v3606_v29  ;;  %v3662_v29 = vld [vmem:[#allocation12 + $0x4d8] sm:$0xff] }
 0x4f9   :  { %3952 = vmatpush2.msra.mxu0 %v3605_v1  ;;  %v4083_v1 = vld [vmem:[#allocation13 + $0x100] sm:$0xff] }
 0x4fa   :  { %3953 = vmatprep.subr.mxu0 %v3602_v33  ;;  %v3661_v33 = vld [vmem:[#allocation12 + $0x4d0] sm:$0xff] }
 0x4fb   :  { %3954 = vmatpush2.msra.mxu0 %v3601_v34  ;;  %v4080_v34 = vld [vmem:[#allocation13 + $0xe8] sm:$0xff] }
 0x4fc   :  { %3955 = vmatprep.subr.mxu0 %v3598_v35  ;;  %v3658_v35 = vld [vmem:[#allocation12 + $0x4b8] sm:$0xff] }
 0x4fd   :  { %3956 = vmatpush2.msra.mxu0 %v3597_v36  ;;  %v4079_v36 = vld [vmem:[#allocation13 + $0xe0] sm:$0xff] }
 0x4fe   :  { %3957 = vmatprep.subr.mxu0 %v3594_v11  ;;  %v3657_v11 = vld [vmem:[#allocation12 + $0x4b0] sm:$0xff] }
 0x4ff   :  { %3958 = vmatpush2.msra.mxu0 %v3593_v38  ;;  %v3654_v38 = vld [vmem:[#allocation12 + $0x498] sm:$0xff] }
 0x500   :  { %3959 = vmatprep.subr.mxu0 %v3590_v15  ;;  %v4075_v15 = vld [vmem:[#allocation13 + $0xc0] sm:$0xff] }
 0x501   :  { %3960 = vmatpush2.msra.mxu0 %v3589_v44  ;;  %v4072_v44 = vld [vmem:[#allocation13 + $0xa8] sm:$0xff] }
 0x502   :  { %v3498_v50 = vpop.f32.mrf.mxu1  ;;  %3961 = vmatprep.subr.mxu0 %v3586_v46  ;;  %v4071_v46 = vld [vmem:[#allocation13 + $0xa0] sm:$0xff] }
 0x503   :  { %3962 = vmatpush2.msra.mxu0 %v3585_v62  ;;  %v6198_v56 = vadd.f32 %v3498_v50, %v3428_v49  ;;  %v4068_v62 = vld [vmem:[#allocation13 + $0x88] sm:$0xff]  ;;  %v4067_v49 = vld [vmem:[#allocation13 + $0x80] sm:$0xff]  ;;  %v3645_v50 = vld [vmem:[#allocation12 + $0x450] sm:$0xff] }
 0x504   :  { %v3500_v55 = vpop.f32.mrf.mxu1  ;;  %3963 = vmatprep.subr.mxu0 %v3582_v21  ;;  %v3646_v21 = vld [vmem:[#allocation12 + $0x458] sm:$0xff] }
 0x505   :  { %v6200_v3 = vadd.f32 %v3500_v55, %v3430_v54  ;;  %3964 = vmatpush2.msra.mxu0 %v3581_v52  ;;  %v3505_v58 = vmax.f32 %v6198_v56, 0.0  ;;  %v4064_v52 = vld [vmem:[#allocation13 + $0x68] sm:$0xff]  ;;  %v3642_v54 = vld [vmem:[#allocation12 + $0x438] sm:$0xff]  ;;  %v3641_v55 = vld [vmem:[#allocation12 + $0x430] sm:$0xff] }
 0x506   :  { %3965 = vmatprep.subr.mxu0 %v3578_v42  ;;  %v4063_v42 = vld [vmem:[#allocation13 + $0x60] sm:$0xff] }
 0x507   :  { %v3506_v39 = vmax.f32 %v6200_v3, 0.0  ;;  %3966 = vmatpush2.msra.mxu0 %v3577_v9  ;;  %v4060_v9 = vld [vmem:[#allocation13 + $0x48] sm:$0xff] }
 0x508   :  { %3967 = vmatprep.subr.mxu0 %v3574_v8  ;;  %v3638_v8 = vld [vmem:[#allocation12 + $0x418] sm:$0xff] }
 0x509   :  { %3898 = vmatprep.mubr.f32.mxu1 %v3506_v39  ;;  %3968 = vmatpush2.msra.mxu0 %v3573_v57  ;;  %v4059_v57 = vld [vmem:[#allocation13 + $0x40] sm:$0xff] }
 0x50a   :  { %3899 = vmatmul.mubr.f32.vlgmr.msra.gmra.mxu1 %v3505_v58  ;;  %3970 = vmatmul.mubr.f32.vlgmr.msra.gmra.mxu0 %v3503_v63  ;;  %v4103_v63 = vld [vmem:[#allocation13 + $0x1a0] sm:$0xff] }
 0x50b   :  { %3977 = vmatpush1.msra.mxu1 %v3697_v59  ;;  %4040 = vmatprep.mubr.f32.mxu1 %v3506_v39  ;;  %v3637_v39 = vld [vmem:[#allocation12 + $0x410] sm:$0xff]  ;;  %v4056_v59 = vld [vmem:[#allocation13 + $0x28] sm:$0xff] }
 0x50c   :  { %3978 = vmatprep.subr.mxu1 %v3694_v61  ;;  %4307 = vmatprep.subr.mxu0 %v4112_v6  ;;  %v3762_v61 = vld [vmem:[#allocation12 + $0x7f8] sm:$0xff] }
 0x50d   :  { %3979 = vmatpush1.msra.mxu1 %v3693_v0  ;;  %4308 = vmatpush1.msra.mxu0 %v4111_v10  ;;  %v4055_v0 = vld [vmem:[#allocation13 + $0x20] sm:$0xff]  ;;  %v3758_v6 = vld [vmem:[#allocation12 + $0x7d8] sm:$0xff] }
 0x50e   :  { %3980 = vmatprep.subr.mxu1 %v3690_v2  ;;  %4309 = vmatprep.subr.mxu0 %v4108_v48  ;;  %v3761_v2 = vld [vmem:[#allocation12 + $0x7f0] sm:$0xff]  ;;  %v4051_v10 = vld [vmem:[#allocation13] sm:$0xff] }
 0x50f   :  { %3981 = vmatpush1.msra.mxu1 %v3689_v4  ;;  %4310 = vmatpush1.msra.mxu0 %v4107_v13  ;;  %v4052_v4 = vld [vmem:[#allocation13 + $0x8] sm:$0xff]  ;;  %v3757_v48 = vld [vmem:[#allocation12 + $0x7d0] sm:$0xff]  ;;  %v3754_v13 = vld [vmem:[#allocation12 + $0x7b8] sm:$0xff] }
 0x510   :  { %3982 = vmatprep.subr.mxu1 %v3686_v12  ;;  %4311 = vmatprep.subr.mxu0 %v4104_v16  ;;  %v4176_v12 = vld [vmem:[#allocation13 + $0x3e8] sm:$0xff]  ;;  %v3753_v16 = vld [vmem:[#allocation12 + $0x7b0] sm:$0xff] }
 0x511   :  { %3983 = vmatpush1.msra.mxu1 %v3685_v30  ;;  %4312 = vmatpush1.msra.mxu0 %v4103_v63  ;;  %v4175_v30 = vld [vmem:[#allocation13 + $0x3e0] sm:$0xff]  ;;  %v3750_v63 = vld [vmem:[#allocation12 + $0x798] sm:$0xff] }
 0x512   :  { %3984 = vmatprep.subr.mxu1 %v3682_v18  ;;  %4313 = vmatprep.subr.mxu0 %v4100_v27  ;;  %v4172_v18 = vld [vmem:[#allocation13 + $0x3c8] sm:$0xff]  ;;  %v3749_v27 = vld [vmem:[#allocation12 + $0x790] sm:$0xff] }
 0x513   :  { %3985 = vmatpush1.msra.mxu1 %v3681_v19  ;;  %4314 = vmatpush1.msra.mxu0 %v4099_v20  ;;  %v4171_v19 = vld [vmem:[#allocation13 + $0x3c0] sm:$0xff]  ;;  %v3746_v20 = vld [vmem:[#allocation12 + $0x778] sm:$0xff] }
 0x514   :  { %3986 = vmatprep.subr.mxu1 %v3678_v51  ;;  %4315 = vmatprep.subr.mxu0 %v4096_v23  ;;  %v4168_v51 = vld [vmem:[#allocation13 + $0x3a8] sm:$0xff]  ;;  %v3745_v23 = vld [vmem:[#allocation12 + $0x770] sm:$0xff] }
 0x515   :  { %3987 = vmatpush1.msra.mxu1 %v3677_v22  ;;  %4316 = vmatpush1.msra.mxu0 %v4095_v14  ;;  %v4167_v22 = vld [vmem:[#allocation13 + $0x3a0] sm:$0xff]  ;;  %v3742_v14 = vld [vmem:[#allocation12 + $0x758] sm:$0xff] }
 0x516   :  { %3988 = vmatprep.subr.mxu1 %v3674_v24  ;;  %4317 = vmatprep.subr.mxu0 %v4092_v17  ;;  %v4164_v24 = vld [vmem:[#allocation13 + $0x388] sm:$0xff]  ;;  %v3741_v17 = vld [vmem:[#allocation12 + $0x750] sm:$0xff] }
 0x517   :  { %3989 = vmatpush1.msra.mxu1 %v3673_v41  ;;  %4318 = vmatpush1.msra.mxu0 %v4091_v60  ;;  %v4163_v41 = vld [vmem:[#allocation13 + $0x380] sm:$0xff]  ;;  %v3738_v60 = vld [vmem:[#allocation12 + $0x738] sm:$0xff] }
 0x518   :  { %3990 = vmatprep.subr.mxu1 %v3670_v25  ;;  %4319 = vmatprep.subr.mxu0 %v4088_v43  ;;  %v4160_v25 = vld [vmem:[#allocation13 + $0x368] sm:$0xff]  ;;  %v3737_v43 = vld [vmem:[#allocation12 + $0x730] sm:$0xff] }
 0x519   :  { %3991 = vmatpush1.msra.mxu1 %v3669_v7  ;;  %4320 = vmatpush1.msra.mxu0 %v4087_v26  ;;  %v4159_v7 = vld [vmem:[#allocation13 + $0x360] sm:$0xff]  ;;  %v3734_v26 = vld [vmem:[#allocation12 + $0x718] sm:$0xff] }
 0x51a   :  { %3992 = vmatprep.subr.mxu1 %v3666_v28  ;;  %4321 = vmatprep.subr.mxu0 %v4084_v32  ;;  %v4156_v28 = vld [vmem:[#allocation13 + $0x348] sm:$0xff]  ;;  %v3733_v32 = vld [vmem:[#allocation12 + $0x710] sm:$0xff] }
 0x51b   :  { %3993 = vmatpush1.msra.mxu1 %v3665_v31  ;;  %4322 = vmatpush1.msra.mxu0 %v4083_v1  ;;  %v4155_v31 = vld [vmem:[#allocation13 + $0x340] sm:$0xff]  ;;  %v3730_v1 = vld [vmem:[#allocation12 + $0x6f8] sm:$0xff] }
 0x51c   :  { %3994 = vmatprep.subr.mxu1 %v3662_v29  ;;  %4323 = vmatprep.subr.mxu0 %v4080_v34  ;;  %v4152_v29 = vld [vmem:[#allocation13 + $0x328] sm:$0xff]  ;;  %v3729_v34 = vld [vmem:[#allocation12 + $0x6f0] sm:$0xff] }
 0x51d   :  { %3995 = vmatpush1.msra.mxu1 %v3661_v33  ;;  %4324 = vmatpush1.msra.mxu0 %v4079_v36  ;;  %v4151_v33 = vld [vmem:[#allocation13 + $0x320] sm:$0xff]  ;;  %v3726_v36 = vld [vmem:[#allocation12 + $0x6d8] sm:$0xff] }
 0x51e   :  { %3996 = vmatprep.subr.mxu1 %v3658_v35  ;;  %4325 = vmatprep.subr.mxu0 %v4076_v37  ;;  %v4148_v35 = vld [vmem:[#allocation13 + $0x308] sm:$0xff]  ;;  %v3725_v37 = vld [vmem:[#allocation12 + $0x6d0] sm:$0xff] }
 0x51f   :  { %3997 = vmatpush1.msra.mxu1 %v3657_v11  ;;  %4326 = vmatpush1.msra.mxu0 %v4075_v15  ;;  %v4147_v11 = vld [vmem:[#allocation13 + $0x300] sm:$0xff]  ;;  %v3722_v15 = vld [vmem:[#allocation12 + $0x6b8] sm:$0xff] }
 0x520   :  { %3998 = vmatprep.subr.mxu1 %v3654_v38  ;;  %4327 = vmatprep.subr.mxu0 %v4072_v44  ;;  %v4144_v38 = vld [vmem:[#allocation13 + $0x2e8] sm:$0xff]  ;;  %v3721_v44 = vld [vmem:[#allocation12 + $0x6b0] sm:$0xff] }
 0x521   :  { %3999 = vmatpush1.msra.mxu1 %v3653_v40  ;;  %4328 = vmatpush1.msra.mxu0 %v4071_v46  ;;  %v4143_v40 = vld [vmem:[#allocation13 + $0x2e0] sm:$0xff]  ;;  %v3718_v46 = vld [vmem:[#allocation12 + $0x698] sm:$0xff] }
 0x522   :  { %4000 = vmatprep.subr.mxu1 %v3650_v53  ;;  %4329 = vmatprep.subr.mxu0 %v4068_v62  ;;  %v4140_v53 = vld [vmem:[#allocation13 + $0x2c8] sm:$0xff]  ;;  %v3717_v62 = vld [vmem:[#allocation12 + $0x690] sm:$0xff] }
 0x523   :  { %4001 = vmatpush1.msra.mxu1 %v3649_v47  ;;  %4330 = vmatpush1.msra.mxu0 %v4067_v49  ;;  %v4139_v47 = vld [vmem:[#allocation13 + $0x2c0] sm:$0xff]  ;;  %v3714_v49 = vld [vmem:[#allocation12 + $0x678] sm:$0xff] }
 0x524   :  { %4002 = vmatprep.subr.mxu1 %v3646_v21  ;;  %4331 = vmatprep.subr.mxu0 %v4064_v52  ;;  %v4136_v21 = vld [vmem:[#allocation13 + $0x2a8] sm:$0xff]  ;;  %v3713_v52 = vld [vmem:[#allocation12 + $0x670] sm:$0xff] }
 0x525   :  { %4003 = vmatpush1.msra.mxu1 %v3645_v50  ;;  %4332 = vmatpush1.msra.mxu0 %v4063_v42  ;;  %v4135_v50 = vld [vmem:[#allocation13 + $0x2a0] sm:$0xff]  ;;  %v3710_v42 = vld [vmem:[#allocation12 + $0x658] sm:$0xff] }
 0x526   :  { %4004 = vmatprep.subr.mxu1 %v3642_v54  ;;  %4333 = vmatprep.subr.mxu0 %v4060_v9  ;;  %v4132_v54 = vld [vmem:[#allocation13 + $0x288] sm:$0xff]  ;;  %v3709_v9 = vld [vmem:[#allocation12 + $0x650] sm:$0xff] }
 0x527   :  { %4005 = vmatpush1.msra.mxu1 %v3641_v55  ;;  %4334 = vmatpush1.msra.mxu0 %v4059_v57  ;;  %v4131_v55 = vld [vmem:[#allocation13 + $0x280] sm:$0xff]  ;;  %v3706_v57 = vld [vmem:[#allocation12 + $0x638] sm:$0xff] }
 0x528   :  { %4006 = vmatprep.subr.mxu1 %v3638_v8  ;;  %4335 = vmatprep.subr.mxu0 %v4056_v59  ;;  %v4128_v8 = vld [vmem:[#allocation13 + $0x268] sm:$0xff]  ;;  %v3702_v59 = vld [vmem:[#allocation12 + $0x618] sm:$0xff] }
 0x529   :  { %4007 = vmatpush1.msra.mxu1 %v3637_v39  ;;  %4336 = vmatpush1.msra.mxu0 %v4055_v0  ;;  %v3705_v39 = vld [vmem:[#allocation12 + $0x630] sm:$0xff]  ;;  %v4127_v0 = vld [vmem:[#allocation13 + $0x260] sm:$0xff] }
 0x52a   :  { %4008 = vmatprep.subr.mxu1 %v3762_v61  ;;  %4337 = vmatprep.subr.mxu0 %v4052_v4  ;;  %v3701_v61 = vld [vmem:[#allocation12 + $0x610] sm:$0xff]  ;;  %v4123_v4 = vld [vmem:[#allocation13 + $0x240] sm:$0xff] }
 0x52b   :  { %4009 = vmatpush2.msra.mxu1 %v3761_v2  ;;  %4338 = vmatpush1.msra.mxu0 %v4051_v10  ;;  %v4124_v2 = vld [vmem:[#allocation13 + $0x248] sm:$0xff]  ;;  %v4119_v10 = vld [vmem:[#allocation13 + $0x220] sm:$0xff] }
 0x52c   :  { %4010 = vmatprep.subr.mxu1 %v3758_v6  ;;  %4339 = vmatprep.subr.mxu0 %v4176_v12  ;;  %v4120_v6 = vld [vmem:[#allocation13 + $0x228] sm:$0xff]  ;;  %v4115_v12 = vld [vmem:[#allocation13 + $0x200] sm:$0xff] }
 0x52d   :  { %4011 = vmatpush2.msra.mxu1 %v3757_v48  ;;  %4340 = vmatpush2.msra.mxu0 %v4175_v30  ;;  %v4116_v48 = vld [vmem:[#allocation13 + $0x208] sm:$0xff]  ;;  %v4239_v30 = vld [vmem:[#allocation13 + $0x5e0] sm:$0xff] }
 0x52e   :  { %4012 = vmatprep.subr.mxu1 %v3754_v13  ;;  %4341 = vmatprep.subr.mxu0 %v4172_v18  ;;  %v4240_v13 = vld [vmem:[#allocation13 + $0x5e8] sm:$0xff]  ;;  %v4235_v18 = vld [vmem:[#allocation13 + $0x5c0] sm:$0xff] }
 0x52f   :  { %4013 = vmatpush2.msra.mxu1 %v3753_v16  ;;  %4342 = vmatpush2.msra.mxu0 %v4171_v19  ;;  %v4114_v16 = vld [vmem:[#allocation13 + $0x1f8] sm:$0xff]  ;;  %v4231_v19 = vld [vmem:[#allocation13 + $0x5a0] sm:$0xff] }
 0x530   :  { %4014 = vmatprep.subr.mxu1 %v3750_v63  ;;  %4343 = vmatprep.subr.mxu0 %v4168_v51  ;;  %v4232_v63 = vld [vmem:[#allocation13 + $0x5a8] sm:$0xff]  ;;  %v4227_v51 = vld [vmem:[#allocation13 + $0x580] sm:$0xff] }
 0x531   :  { %4015 = vmatpush2.msra.mxu1 %v3749_v27  ;;  %4344 = vmatpush2.msra.mxu0 %v4167_v22  ;;  %v4228_v27 = vld [vmem:[#allocation13 + $0x588] sm:$0xff]  ;;  %v4223_v22 = vld [vmem:[#allocation13 + $0x560] sm:$0xff] }
 0x532   :  { %4016 = vmatprep.subr.mxu1 %v3746_v20  ;;  %4345 = vmatprep.subr.mxu0 %v4164_v24  ;;  %v4224_v20 = vld [vmem:[#allocation13 + $0x568] sm:$0xff]  ;;  %v4219_v24 = vld [vmem:[#allocation13 + $0x540] sm:$0xff] }
 0x533   :  { %4017 = vmatpush2.msra.mxu1 %v3745_v23  ;;  %4346 = vmatpush2.msra.mxu0 %v4163_v41  ;;  %v4220_v23 = vld [vmem:[#allocation13 + $0x548] sm:$0xff]  ;;  %v4215_v41 = vld [vmem:[#allocation13 + $0x520] sm:$0xff] }
 0x534   :  { %4018 = vmatprep.subr.mxu1 %v3742_v14  ;;  %4347 = vmatprep.subr.mxu0 %v4160_v25  ;;  %v4216_v14 = vld [vmem:[#allocation13 + $0x528] sm:$0xff]  ;;  %v4211_v25 = vld [vmem:[#allocation13 + $0x500] sm:$0xff] }
 0x535   :  { %4019 = vmatpush2.msra.mxu1 %v3741_v17  ;;  %4348 = vmatpush2.msra.mxu0 %v4159_v7  ;;  %v4212_v17 = vld [vmem:[#allocation13 + $0x508] sm:$0xff]  ;;  %v4207_v7 = vld [vmem:[#allocation13 + $0x4e0] sm:$0xff] }
 0x536   :  { %4020 = vmatprep.subr.mxu1 %v3738_v60  ;;  %4349 = vmatprep.subr.mxu0 %v4156_v28  ;;  %v4208_v60 = vld [vmem:[#allocation13 + $0x4e8] sm:$0xff]  ;;  %v4203_v28 = vld [vmem:[#allocation13 + $0x4c0] sm:$0xff] }
 0x537   :  { %4021 = vmatpush2.msra.mxu1 %v3737_v43  ;;  %4350 = vmatpush2.msra.mxu0 %v4155_v31  ;;  %v4204_v43 = vld [vmem:[#allocation13 + $0x4c8] sm:$0xff]  ;;  %v4199_v31 = vld [vmem:[#allocation13 + $0x4a0] sm:$0xff] }
 0x538   :  { %4022 = vmatprep.subr.mxu1 %v3734_v26  ;;  %4351 = vmatprep.subr.mxu0 %v4152_v29  ;;  %v4200_v26 = vld [vmem:[#allocation13 + $0x4a8] sm:$0xff]  ;;  %v4195_v29 = vld [vmem:[#allocation13 + $0x480] sm:$0xff] }
 0x539   :  { %4023 = vmatpush2.msra.mxu1 %v3733_v32  ;;  %4352 = vmatpush2.msra.mxu0 %v4151_v33  ;;  %v4196_v32 = vld [vmem:[#allocation13 + $0x488] sm:$0xff]  ;;  %v4191_v33 = vld [vmem:[#allocation13 + $0x460] sm:$0xff] }
 0x53a   :  { %4024 = vmatprep.subr.mxu1 %v3730_v1  ;;  %4353 = vmatprep.subr.mxu0 %v4148_v35  ;;  %v4192_v1 = vld [vmem:[#allocation13 + $0x468] sm:$0xff]  ;;  %v4187_v35 = vld [vmem:[#allocation13 + $0x440] sm:$0xff] }
 0x53b   :  { %4025 = vmatpush2.msra.mxu1 %v3729_v34  ;;  %4354 = vmatpush2.msra.mxu0 %v4147_v11  ;;  %v4188_v34 = vld [vmem:[#allocation13 + $0x448] sm:$0xff]  ;;  %v4183_v11 = vld [vmem:[#allocation13 + $0x420] sm:$0xff] }
 0x53c   :  { %4026 = vmatprep.subr.mxu1 %v3726_v36  ;;  %4355 = vmatprep.subr.mxu0 %v4144_v38  ;;  %v4184_v36 = vld [vmem:[#allocation13 + $0x428] sm:$0xff]  ;;  %v4179_v38 = vld [vmem:[#allocation13 + $0x400] sm:$0xff] }
 0x53d   :  { %4027 = vmatpush2.msra.mxu1 %v3725_v37  ;;  %4356 = vmatpush2.msra.mxu0 %v4143_v40  ;;  %v4180_v37 = vld [vmem:[#allocation13 + $0x408] sm:$0xff]  ;;  %v4303_v40 = vld [vmem:[#allocation13 + $0x7e0] sm:$0xff] }
 0x53e   :  { %4028 = vmatprep.subr.mxu1 %v3722_v15  ;;  %4357 = vmatprep.subr.mxu0 %v4140_v53  ;;  %v4304_v15 = vld [vmem:[#allocation13 + $0x7e8] sm:$0xff]  ;;  %v4299_v53 = vld [vmem:[#allocation13 + $0x7c0] sm:$0xff] }
 0x53f   :  { %4029 = vmatpush2.msra.mxu1 %v3721_v44  ;;  %4358 = vmatpush2.msra.mxu0 %v4139_v47  ;;  %v4300_v44 = vld [vmem:[#allocation13 + $0x7c8] sm:$0xff]  ;;  %v4295_v47 = vld [vmem:[#allocation13 + $0x7a0] sm:$0xff] }
 0x540   :  { %4030 = vmatprep.subr.mxu1 %v3718_v46  ;;  %4359 = vmatprep.subr.mxu0 %v4136_v21  ;;  %v4296_v46 = vld [vmem:[#allocation13 + $0x7a8] sm:$0xff]  ;;  %v4291_v21 = vld [vmem:[#allocation13 + $0x780] sm:$0xff] }
 0x541   :  { %4031 = vmatpush2.msra.mxu1 %v3717_v62  ;;  %4360 = vmatpush2.msra.mxu0 %v4135_v50  ;;  %v4292_v62 = vld [vmem:[#allocation13 + $0x788] sm:$0xff]  ;;  %v4287_v50 = vld [vmem:[#allocation13 + $0x760] sm:$0xff] }
 0x542   :  { %4032 = vmatprep.subr.mxu1 %v3714_v49  ;;  %4361 = vmatprep.subr.mxu0 %v4132_v54  ;;  %v4288_v49 = vld [vmem:[#allocation13 + $0x768] sm:$0xff]  ;;  %v4283_v54 = vld [vmem:[#allocation13 + $0x740] sm:$0xff] }
 0x543   :  { %4033 = vmatpush2.msra.mxu1 %v3713_v52  ;;  %4362 = vmatpush2.msra.mxu0 %v4131_v55  ;;  %v4284_v52 = vld [vmem:[#allocation13 + $0x748] sm:$0xff]  ;;  %v4279_v55 = vld [vmem:[#allocation13 + $0x720] sm:$0xff] }
 0x544   :  { %4034 = vmatprep.subr.mxu1 %v3710_v42  ;;  %4363 = vmatprep.subr.mxu0 %v4128_v8  ;;  %v4280_v42 = vld [vmem:[#allocation13 + $0x728] sm:$0xff]  ;;  %v4275_v8 = vld [vmem:[#allocation13 + $0x700] sm:$0xff] }
 0x545   :  { %4035 = vmatpush2.msra.mxu1 %v3709_v9  ;;  %4364 = vmatpush2.msra.mxu0 %v4127_v0  ;;  %v4276_v9 = vld [vmem:[#allocation13 + $0x708] sm:$0xff] }
 0x546   :  { %4036 = vmatprep.subr.mxu1 %v3706_v57  ;;  %4365 = vmatprep.subr.mxu0 %v4124_v2  ;;  %v4272_v57 = vld [vmem:[#allocation13 + $0x6e8] sm:$0xff]  ;;  %v4263_v2 = vld [vmem:[#allocation13 + $0x6a0] sm:$0xff] }
 0x547   :  { %4037 = vmatpush2.msra.mxu1 %v3705_v39  ;;  %4366 = vmatpush2.msra.mxu0 %v4123_v4  ;;  %v4271_v39 = vld [vmem:[#allocation13 + $0x6e0] sm:$0xff]  ;;  %v4264_v0 = vld [vmem:[#allocation13 + $0x6a8] sm:$0xff] }
 0x548   :  { %4038 = vmatprep.subr.mxu1 %v3702_v59  ;;  %4367 = vmatprep.subr.mxu0 %v4120_v6  ;;  %v4268_v59 = vld [vmem:[#allocation13 + $0x6c8] sm:$0xff]  ;;  %v4259_v6 = vld [vmem:[#allocation13 + $0x680] sm:$0xff] }
 0x549   :  { %4039 = vmatpush2.msra.mxu1 %v3701_v61  ;;  %4368 = vmatpush2.msra.mxu0 %v4119_v10  ;;  %v4267_v61 = vld [vmem:[#allocation13 + $0x6c0] sm:$0xff]  ;;  %v4260_v4 = vld [vmem:[#allocation13 + $0x688] sm:$0xff] }
 0x54a   :  { %4041 = vmatmul.mubr.f32.vlgmr.msra.gmra.mxu1 %v3505_v58  ;;  %4369 = vmatprep.subr.mxu0 %v4116_v48  ;;  %v4236_v58 = vld [vmem:[#allocation13 + $0x5c8] sm:$0xff]  ;;  %v4255_v48 = vld [vmem:[#allocation13 + $0x660] sm:$0xff] }
 0x54b   :  { %4378 = vmatprep.subr.mxu1 %v4240_v13  ;;  %4370 = vmatpush2.msra.mxu0 %v4115_v12  ;;  %v4256_v10 = vld [vmem:[#allocation13 + $0x668] sm:$0xff]  ;;  %v4251_v13 = vld [vmem:[#allocation13 + $0x640] sm:$0xff] }
 0x54c   :  { %4379 = vmatpush1.msra.mxu1 %v4239_v30  ;;  %4449 = vmatprep.subr.mxu0 %v4114_v16  ;;  %v4252_v12 = vld [vmem:[#allocation13 + $0x648] sm:$0xff]  ;;  %v4247_v16 = vld [vmem:[#allocation13 + $0x620] sm:$0xff] }
 0x54d   :  { %4380 = vmatprep.subr.mxu1 %v4236_v58  ;;  %v4248_v30 = vld [vmem:[#allocation13 + $0x628] sm:$0xff] }
 0x54e   :  { %4381 = vmatpush1.msra.mxu1 %v4235_v18  ;;  %v4244_v58 = vld [vmem:[#allocation13 + $0x608] sm:$0xff]  ;;  %v4243_v18 = vld [vmem:[#allocation13 + $0x600] sm:$0xff] }
 0x54f   :  { %4382 = vmatprep.subr.mxu1 %v4232_v63  ;;  %v4242_v63 = vld [vmem:[#allocation13 + $0x5f8] sm:$0xff] }
 0x550   :  { %4383 = vmatpush1.msra.mxu1 %v4231_v19 }
 0x551   :  { %4384 = vmatprep.subr.mxu1 %v4228_v27 }
 0x552   :  { %4385 = vmatpush1.msra.mxu1 %v4227_v51 }
 0x553   :  { %4386 = vmatprep.subr.mxu1 %v4224_v20 }
 0x554   :  { %4387 = vmatpush1.msra.mxu1 %v4223_v22 }
 0x555   :  { %4388 = vmatprep.subr.mxu1 %v4220_v23 }
 0x556   :  { %4389 = vmatpush1.msra.mxu1 %v4219_v24 }
 0x557   :  { %4390 = vmatprep.subr.mxu1 %v4216_v14 }
 0x558   :  { %4391 = vmatpush1.msra.mxu1 %v4215_v41  ;;  %v4113_v41 = vld [vmem:[#allocation13 + $0x1f0] sm:$0xff] }
 0x559   :  { %4392 = vmatprep.subr.mxu1 %v4212_v17  ;;  %v4110_v17 = vld [vmem:[#allocation13 + $0x1d8] sm:$0xff] }
 0x55a   :  { %4393 = vmatpush1.msra.mxu1 %v4211_v25  ;;  %v4109_v25 = vld [vmem:[#allocation13 + $0x1d0] sm:$0xff] }
 0x55b   :  { %4394 = vmatprep.subr.mxu1 %v4208_v60  ;;  %v4106_v60 = vld [vmem:[#allocation13 + $0x1b8] sm:$0xff] }
 0x55c   :  { %4395 = vmatpush1.msra.mxu1 %v4207_v7  ;;  %v4105_v7 = vld [vmem:[#allocation13 + $0x1b0] sm:$0xff] }
 0x55d   :  { %4396 = vmatprep.subr.mxu1 %v4204_v43  ;;  %v4102_v43 = vld [vmem:[#allocation13 + $0x198] sm:$0xff] }
 0x55e   :  { %4397 = vmatpush1.msra.mxu1 %v4203_v28  ;;  %v4101_v28 = vld [vmem:[#allocation13 + $0x190] sm:$0xff] }
 0x55f   :  { %4398 = vmatprep.subr.mxu1 %v4200_v26  ;;  %v4098_v26 = vld [vmem:[#allocation13 + $0x178] sm:$0xff] }
 0x560   :  { %4399 = vmatpush1.msra.mxu1 %v4199_v31  ;;  %v4097_v31 = vld [vmem:[#allocation13 + $0x170] sm:$0xff] }
 0x561   :  { %4400 = vmatprep.subr.mxu1 %v4196_v32  ;;  %v4094_v32 = vld [vmem:[#allocation13 + $0x158] sm:$0xff] }
 0x562   :  { %4401 = vmatpush1.msra.mxu1 %v4195_v29  ;;  %v4093_v29 = vld [vmem:[#allocation13 + $0x150] sm:$0xff] }
 0x563   :  { %4402 = vmatprep.subr.mxu1 %v4192_v1  ;;  %v4090_v1 = vld [vmem:[#allocation13 + $0x138] sm:$0xff] }
 0x564   :  { %4403 = vmatpush1.msra.mxu1 %v4191_v33  ;;  %v4089_v33 = vld [vmem:[#allocation13 + $0x130] sm:$0xff] }
 0x565   :  { %4404 = vmatprep.subr.mxu1 %v4188_v34  ;;  %v4086_v34 = vld [vmem:[#allocation13 + $0x118] sm:$0xff] }
 0x566   :  { %4405 = vmatpush1.msra.mxu1 %v4187_v35  ;;  %v4085_v35 = vld [vmem:[#allocation13 + $0x110] sm:$0xff] }
 0x567   :  { %4406 = vmatprep.subr.mxu1 %v4184_v36  ;;  %v4082_v36 = vld [vmem:[#allocation13 + $0xf8] sm:$0xff] }
 0x568   :  { %4407 = vmatpush1.msra.mxu1 %v4183_v11  ;;  %v4081_v11 = vld [vmem:[#allocation13 + $0xf0] sm:$0xff] }
 0x569   :  { %4408 = vmatprep.subr.mxu1 %v4180_v37  ;;  %v4078_v37 = vld [vmem:[#allocation13 + $0xd8] sm:$0xff] }
 0x56a   :  { %4409 = vmatpush1.msra.mxu1 %v4179_v38  ;;  %v4077_v38 = vld [vmem:[#allocation13 + $0xd0] sm:$0xff] }
 0x56b   :  { %4410 = vmatprep.subr.mxu1 %v4304_v15  ;;  %v4074_v15 = vld [vmem:[#allocation13 + $0xb8] sm:$0xff] }
 0x56c   :  { %4411 = vmatpush2.msra.mxu1 %v4303_v40  ;;  %v4073_v40 = vld [vmem:[#allocation13 + $0xb0] sm:$0xff] }
 0x56d   :  { %4412 = vmatprep.subr.mxu1 %v4300_v44  ;;  %v4070_v44 = vld [vmem:[#allocation13 + $0x98] sm:$0xff] }
 0x56e   :  { %4413 = vmatpush2.msra.mxu1 %v4299_v53  ;;  %v4069_v53 = vld [vmem:[#allocation13 + $0x90] sm:$0xff] }
 0x56f   :  { %4414 = vmatprep.subr.mxu1 %v4296_v46  ;;  %v4066_v46 = vld [vmem:[#allocation13 + $0x78] sm:$0xff] }
 0x570   :  { %4415 = vmatpush2.msra.mxu1 %v4295_v47  ;;  %v4065_v47 = vld [vmem:[#allocation13 + $0x70] sm:$0xff] }
 0x571   :  { %4416 = vmatprep.subr.mxu1 %v4292_v62  ;;  %v4062_v62 = vld [vmem:[#allocation13 + $0x58] sm:$0xff] }
 0x572   :  { %4417 = vmatpush2.msra.mxu1 %v4291_v21  ;;  %v4061_v21 = vld [vmem:[#allocation13 + $0x50] sm:$0xff] }
 0x573   :  { %4418 = vmatprep.subr.mxu1 %v4288_v49  ;;  %v4058_v49 = vld [vmem:[#allocation13 + $0x38] sm:$0xff] }
 0x574   :  { %4419 = vmatpush2.msra.mxu1 %v4287_v50  ;;  %v4057_v50 = vld [vmem:[#allocation13 + $0x30] sm:$0xff] }
 0x575   :  { %4420 = vmatprep.subr.mxu1 %v4284_v52  ;;  %v4054_v52 = vld [vmem:[#allocation13 + $0x18] sm:$0xff] }
 0x576   :  { %4421 = vmatpush2.msra.mxu1 %v4283_v54  ;;  %v4053_v54 = vld [vmem:[#allocation13 + $0x10] sm:$0xff] }
 0x577   :  { %4422 = vmatprep.subr.mxu1 %v4280_v42  ;;  %v4178_v42 = vld [vmem:[#allocation13 + $0x3f8] sm:$0xff] }
 0x578   :  { %4423 = vmatpush2.msra.mxu1 %v4279_v55  ;;  %v4177_v55 = vld [vmem:[#allocation13 + $0x3f0] sm:$0xff] }
 0x579   :  { %4424 = vmatprep.subr.mxu1 %v4276_v9  ;;  %v4174_v9 = vld [vmem:[#allocation13 + $0x3d8] sm:$0xff] }
 0x57a   :  { %4425 = vmatpush2.msra.mxu1 %v4275_v8  ;;  %v4173_v8 = vld [vmem:[#allocation13 + $0x3d0] sm:$0xff] }
 0x57b   :  { %4426 = vmatprep.subr.mxu1 %v4272_v57  ;;  %v4170_v57 = vld [vmem:[#allocation13 + $0x3b8] sm:$0xff] }
 0x57c   :  { %4427 = vmatpush2.msra.mxu1 %v4271_v39  ;;  %v4169_v39 = vld [vmem:[#allocation13 + $0x3b0] sm:$0xff] }
 0x57d   :  { %4428 = vmatprep.subr.mxu1 %v4268_v59  ;;  %v4166_v59 = vld [vmem:[#allocation13 + $0x398] sm:$0xff] }
 0x57e   :  { %4429 = vmatpush2.msra.mxu1 %v4267_v61  ;;  %v4165_v61 = vld [vmem:[#allocation13 + $0x390] sm:$0xff] }
 0x57f   :  { %4430 = vmatprep.subr.mxu1 %v4264_v0  ;;  %v4162_v0 = vld [vmem:[#allocation13 + $0x378] sm:$0xff] }
 0x580   :  { %4431 = vmatpush2.msra.mxu1 %v4263_v2  ;;  %v4161_v2 = vld [vmem:[#allocation13 + $0x370] sm:$0xff] }
 0x581   :  { %4432 = vmatprep.subr.mxu1 %v4260_v4  ;;  %v4158_v4 = vld [vmem:[#allocation13 + $0x358] sm:$0xff] }
 0x582   :  { %4433 = vmatpush2.msra.mxu1 %v4259_v6  ;;  %v4157_v6 = vld [vmem:[#allocation13 + $0x350] sm:$0xff] }
 0x583   :  { %4434 = vmatprep.subr.mxu1 %v4256_v10  ;;  %v4154_v10 = vld [vmem:[#allocation13 + $0x338] sm:$0xff] }
 0x584   :  { %4435 = vmatpush2.msra.mxu1 %v4255_v48  ;;  %v4153_v48 = vld [vmem:[#allocation13 + $0x330] sm:$0xff] }
 0x585   :  { %4436 = vmatprep.subr.mxu1 %v4252_v12  ;;  %v4150_v12 = vld [vmem:[#allocation13 + $0x318] sm:$0xff] }
 0x586   :  { %4437 = vmatpush2.msra.mxu1 %v4251_v13  ;;  %v4149_v13 = vld [vmem:[#allocation13 + $0x310] sm:$0xff] }
 0x587   :  { %4438 = vmatprep.subr.mxu1 %v4248_v30  ;;  %v4146_v30 = vld [vmem:[#allocation13 + $0x2f8] sm:$0xff] }
 0x588   :  { %4439 = vmatpush2.msra.mxu1 %v4247_v16  ;;  %v4145_v16 = vld [vmem:[#allocation13 + $0x2f0] sm:$0xff] }
 0x589   :  { %4440 = vmatprep.subr.mxu1 %v4244_v58  ;;  %v4142_v58 = vld [vmem:[#allocation13 + $0x2d8] sm:$0xff] }
 0x58a   :  { %4441 = vmatpush2.msra.mxu1 %v4243_v18  ;;  %v3829_v19 = vpop.f32.mrf.mxu0  ;;  %v4141_v18 = vld [vmem:[#allocation13 + $0x2d0] sm:$0xff] }
 0x58b   :  { %4520 = vmatprep.subr.mxu1 %v4242_v63  ;;  %v4138_v63 = vld [vmem:[#allocation13 + $0x2b8] sm:$0xff] }
 0x58c   :  { %v3831_v51 = vpop.f32.mrf.mxu0 }
 0x5ca   :  { %v3900_v27 = vpop.f32.mrf.mxu1 }
 0x5cb   :  { %v6210_v20 = vadd.f32 %v3900_v27, %v3829_v19  ;;  %v4137_v19 = vld [vmem:[#allocation13 + $0x2b0] sm:$0xff]  ;;  %v4134_v27 = vld [vmem:[#allocation13 + $0x298] sm:$0xff] }
 0x5cc   :  { %v3902_v22 = vpop.f32.mrf.mxu1 }
 0x5cd   :  { %v3903_v23 = vadd.f32 %v3902_v22, %v3831_v51  ;;  %v4047_v14 = vmax.f32 %v6210_v20, 0.0  ;;  %v4133_v51 = vld [vmem:[#allocation13 + $0x290] sm:$0xff]  ;;  %v4130_v22 = vld [vmem:[#allocation13 + $0x278] sm:$0xff] }
 0x5ce   :  { %v4226_v20 = vld [vmem:[#allocation13 + $0x578] sm:$0xff] }
 0x5cf   :  { %v4048_v24 = vmax.f32 %v3903_v23, 0.0  ;;  %v3971_v23 = vpop.f32.mrf.mxu0 }
 0x5d1   :  { %4371 = vmatprep.mubr.f32.mxu0 %v4048_v24 }
 0x5d2   :  { %4372 = vmatmul.mubr.f32.vlgmr.msra.gmra.mxu0 %v4047_v14 }
 0x5d3   :  { %4450 = vmatpush1.msra.mxu0 %v4113_v41  ;;  %4513 = vmatprep.mubr.f32.mxu0 %v4048_v24  ;;  %v4129_v24 = vld [vmem:[#allocation13 + $0x270] sm:$0xff]  ;;  %v4126_v41 = vld [vmem:[#allocation13 + $0x258] sm:$0xff] }
 0x5d4   :  { %4451 = vmatprep.subr.mxu0 %v4110_v17 }
 0x5d5   :  { %4452 = vmatpush1.msra.mxu0 %v4109_v25  ;;  %v4125_v25 = vld [vmem:[#allocation13 + $0x250] sm:$0xff] }
 0x5d6   :  { %4453 = vmatprep.subr.mxu0 %v4106_v60  ;;  %v4122_v60 = vld [vmem:[#allocation13 + $0x238] sm:$0xff] }
 0x5d7   :  { %4454 = vmatpush1.msra.mxu0 %v4105_v7  ;;  %v3973_v7 = vpop.f32.mrf.mxu0 }
 0x5d8   :  { %4455 = vmatprep.subr.mxu0 %v4102_v43 }
 0x5d9   :  { %4456 = vmatpush1.msra.mxu0 %v4101_v28 }
 0x5da   :  { %4457 = vmatprep.subr.mxu0 %v4098_v26  ;;  %v4121_v26 = vld [vmem:[#allocation13 + $0x230] sm:$0xff] }
 0x5db   :  { %4458 = vmatpush1.msra.mxu0 %v4097_v31 }
 0x5dc   :  { %4459 = vmatprep.subr.mxu0 %v4094_v32  ;;  %v4118_v32 = vld [vmem:[#allocation13 + $0x218] sm:$0xff] }
 0x5dd   :  { %4460 = vmatpush1.msra.mxu0 %v4093_v29  ;;  %v4117_v29 = vld [vmem:[#allocation13 + $0x210] sm:$0xff] }
 0x5de   :  { %4461 = vmatprep.subr.mxu0 %v4090_v1 }
 0x5df   :  { %4462 = vmatpush1.msra.mxu0 %v4089_v33 }
 0x5e0   :  { %4463 = vmatprep.subr.mxu0 %v4086_v34  ;;  %v4241_v34 = vld [vmem:[#allocation13 + $0x5f0] sm:$0xff] }
 0x5e1   :  { %4464 = vmatpush1.msra.mxu0 %v4085_v35  ;;  %v4238_v35 = vld [vmem:[#allocation13 + $0x5d8] sm:$0xff] }
 0x5e2   :  { %4465 = vmatprep.subr.mxu0 %v4082_v36  ;;  %v4237_v36 = vld [vmem:[#allocation13 + $0x5d0] sm:$0xff] }
 0x5e3   :  { %4466 = vmatpush1.msra.mxu0 %v4081_v11  ;;  %v4234_v11 = vld [vmem:[#allocation13 + $0x5b8] sm:$0xff] }
 0x5e4   :  { %4467 = vmatprep.subr.mxu0 %v4078_v37  ;;  %v4233_v37 = vld [vmem:[#allocation13 + $0x5b0] sm:$0xff] }
 0x5e5   :  { %4468 = vmatpush1.msra.mxu0 %v4077_v38  ;;  %v4661_v38 = vld [vmem:[#allocation12 + $0x9e8] sm:$0xff] }
 0x5e6   :  { %4469 = vmatprep.subr.mxu0 %v4074_v15  ;;  %v4660_v15 = vld [vmem:[#allocation12 + $0x9e0] sm:$0xff] }
 0x5e7   :  { %4470 = vmatpush1.msra.mxu0 %v4073_v40  ;;  %v4657_v40 = vld [vmem:[#allocation12 + $0x9c8] sm:$0xff] }
 0x5e8   :  { %4471 = vmatprep.subr.mxu0 %v4070_v44  ;;  %v4230_v44 = vld [vmem:[#allocation13 + $0x598] sm:$0xff] }
 0x5e9   :  { %4472 = vmatpush1.msra.mxu0 %v4069_v53  ;;  %v4656_v53 = vld [vmem:[#allocation12 + $0x9c0] sm:$0xff] }
 0x5ea   :  { %4473 = vmatprep.subr.mxu0 %v4066_v46  ;;  %v4229_v46 = vld [vmem:[#allocation13 + $0x590] sm:$0xff] }
 0x5eb   :  { %4474 = vmatpush1.msra.mxu0 %v4065_v47  ;;  %v4653_v47 = vld [vmem:[#allocation12 + $0x9a8] sm:$0xff] }
 0x5ec   :  { %4475 = vmatprep.subr.mxu0 %v4062_v62  ;;  %v4225_v62 = vld [vmem:[#allocation13 + $0x570] sm:$0xff] }
 0x5ed   :  { %4476 = vmatpush1.msra.mxu0 %v4061_v21  ;;  %v4649_v21 = vld [vmem:[#allocation12 + $0x988] sm:$0xff] }
 0x5ee   :  { %4477 = vmatprep.subr.mxu0 %v4058_v49  ;;  %v4222_v49 = vld [vmem:[#allocation13 + $0x558] sm:$0xff] }
 0x5ef   :  { %4478 = vmatpush1.msra.mxu0 %v4057_v50  ;;  %v4648_v50 = vld [vmem:[#allocation12 + $0x980] sm:$0xff] }
 0x5f0   :  { %4479 = vmatprep.subr.mxu0 %v4054_v52  ;;  %v4221_v52 = vld [vmem:[#allocation13 + $0x550] sm:$0xff] }
 0x5f1   :  { %4480 = vmatpush1.msra.mxu0 %v4053_v54  ;;  %v4645_v54 = vld [vmem:[#allocation12 + $0x968] sm:$0xff] }
 0x5f2   :  { %4481 = vmatprep.subr.mxu0 %v4178_v42  ;;  %v4218_v42 = vld [vmem:[#allocation13 + $0x538] sm:$0xff] }
 0x5f3   :  { %4482 = vmatpush2.msra.mxu0 %v4177_v55  ;;  %v4644_v55 = vld [vmem:[#allocation12 + $0x960] sm:$0xff] }
 0x5f4   :  { %4483 = vmatprep.subr.mxu0 %v4174_v9  ;;  %v4217_v9 = vld [vmem:[#allocation13 + $0x530] sm:$0xff] }
 0x5f5   :  { %4484 = vmatpush2.msra.mxu0 %v4173_v8  ;;  %v4641_v8 = vld [vmem:[#allocation12 + $0x948] sm:$0xff] }
 0x5f6   :  { %4485 = vmatprep.subr.mxu0 %v4170_v57  ;;  %v4214_v57 = vld [vmem:[#allocation13 + $0x518] sm:$0xff] }
 0x5f7   :  { %4486 = vmatpush2.msra.mxu0 %v4169_v39  ;;  %v4640_v39 = vld [vmem:[#allocation12 + $0x940] sm:$0xff] }
 0x5f8   :  { %4487 = vmatprep.subr.mxu0 %v4166_v59  ;;  %v4213_v59 = vld [vmem:[#allocation13 + $0x510] sm:$0xff] }
 0x5f9   :  { %4488 = vmatpush2.msra.mxu0 %v4165_v61  ;;  %v4637_v61 = vld [vmem:[#allocation12 + $0x928] sm:$0xff] }
 0x5fa   :  { %4489 = vmatprep.subr.mxu0 %v4162_v0  ;;  %v4210_v0 = vld [vmem:[#allocation13 + $0x4f8] sm:$0xff] }
 0x5fb   :  { %4490 = vmatpush2.msra.mxu0 %v4161_v2  ;;  %v4636_v2 = vld [vmem:[#allocation12 + $0x920] sm:$0xff] }
 0x5fc   :  { %4491 = vmatprep.subr.mxu0 %v4158_v4  ;;  %v4209_v4 = vld [vmem:[#allocation13 + $0x4f0] sm:$0xff] }
 0x5fd   :  { %4492 = vmatpush2.msra.mxu0 %v4157_v6  ;;  %v4633_v6 = vld [vmem:[#allocation12 + $0x908] sm:$0xff] }
 0x5fe   :  { %4493 = vmatprep.subr.mxu0 %v4154_v10  ;;  %v4206_v10 = vld [vmem:[#allocation13 + $0x4d8] sm:$0xff] }
 0x5ff   :  { %4494 = vmatpush2.msra.mxu0 %v4153_v48  ;;  %v4632_v48 = vld [vmem:[#allocation12 + $0x900] sm:$0xff] }
 0x600   :  { %4495 = vmatprep.subr.mxu0 %v4150_v12  ;;  %v4205_v12 = vld [vmem:[#allocation13 + $0x4d0] sm:$0xff] }
 0x601   :  { %4496 = vmatpush2.msra.mxu0 %v4149_v13  ;;  %v4629_v13 = vld [vmem:[#allocation12 + $0x8e8] sm:$0xff] }
 0x602   :  { %4497 = vmatprep.subr.mxu0 %v4146_v30  ;;  %v4202_v30 = vld [vmem:[#allocation13 + $0x4b8] sm:$0xff] }
 0x603   :  { %4498 = vmatpush2.msra.mxu0 %v4145_v16  ;;  %v4628_v16 = vld [vmem:[#allocation12 + $0x8e0] sm:$0xff] }
 0x604   :  { %4499 = vmatprep.subr.mxu0 %v4142_v58  ;;  %v4201_v58 = vld [vmem:[#allocation13 + $0x4b0] sm:$0xff] }
 0x605   :  { %4500 = vmatpush2.msra.mxu0 %v4141_v18  ;;  %v4625_v18 = vld [vmem:[#allocation12 + $0x8c8] sm:$0xff] }
 0x606   :  { %4501 = vmatprep.subr.mxu0 %v4138_v63  ;;  %v4198_v63 = vld [vmem:[#allocation13 + $0x498] sm:$0xff] }
 0x607   :  { %4502 = vmatpush2.msra.mxu0 %v4137_v19  ;;  %v4624_v19 = vld [vmem:[#allocation12 + $0x8c0] sm:$0xff] }
 0x608   :  { %4503 = vmatprep.subr.mxu0 %v4134_v27  ;;  %v4197_v27 = vld [vmem:[#allocation13 + $0x490] sm:$0xff] }
 0x609   :  { %4504 = vmatpush2.msra.mxu0 %v4133_v51  ;;  %v4621_v51 = vld [vmem:[#allocation12 + $0x8a8] sm:$0xff] }
 0x60a   :  { %v4042_v17 = vpop.f32.mrf.mxu1  ;;  %4505 = vmatprep.subr.mxu0 %v4130_v22  ;;  %v4194_v22 = vld [vmem:[#allocation13 + $0x478] sm:$0xff] }
 0x60b   :  { %4506 = vmatpush2.msra.mxu0 %v4129_v24  ;;  %v6215_v43 = vadd.f32 %v4042_v17, %v3971_v23  ;;  %v4620_v23 = vld [vmem:[#allocation12 + $0x8a0] sm:$0xff]  ;;  %v4193_v24 = vld [vmem:[#allocation13 + $0x470] sm:$0xff]  ;;  %v4190_v17 = vld [vmem:[#allocation13 + $0x458] sm:$0xff] }
 0x60c   :  { %v4044_v28 = vpop.f32.mrf.mxu1  ;;  %4507 = vmatprep.subr.mxu0 %v4126_v41  ;;  %v4617_v41 = vld [vmem:[#allocation12 + $0x888] sm:$0xff] }
 0x60d   :  { %v4045_v31 = vadd.f32 %v4044_v28, %v3973_v7  ;;  %4508 = vmatpush2.msra.mxu0 %v4125_v25  ;;  %v4049_v33 = vmax.f32 %v6215_v43, 0.0  ;;  %v4616_v25 = vld [vmem:[#allocation12 + $0x880] sm:$0xff]  ;;  %v4613_v7 = vld [vmem:[#allocation12 + $0x868] sm:$0xff]  ;;  %v4186_v28 = vld [vmem:[#allocation13 + $0x438] sm:$0xff] }
 0x60e   :  { %4509 = vmatprep.subr.mxu0 %v4122_v60  ;;  %v4189_v60 = vld [vmem:[#allocation13 + $0x450] sm:$0xff]  ;;  %v4788_v43 = vld [vmem:[#allocation12 + $0xde0] sm:$0xff] }
 0x60f   :  { %v4050_v1 = vmax.f32 %v4045_v31, 0.0  ;;  %4510 = vmatpush2.msra.mxu0 %v4121_v26  ;;  %v4612_v26 = vld [vmem:[#allocation12 + $0x860] sm:$0xff]  ;;  %v4185_v31 = vld [vmem:[#allocation13 + $0x430] sm:$0xff] }
 0x610   :  { %4511 = vmatprep.subr.mxu0 %v4118_v32  ;;  %v4609_v32 = vld [vmem:[#allocation12 + $0x848] sm:$0xff] }
 0x611   :  { %4442 = vmatprep.mubr.f32.mxu1 %v4050_v1  ;;  %4512 = vmatpush2.msra.mxu0 %v4117_v29  ;;  %v4182_v29 = vld [vmem:[#allocation13 + $0x418] sm:$0xff] }
 0x612   :  { %4443 = vmatmul.mubr.f32.vlgmr.msra.gmra.mxu1 %v4049_v33  ;;  %4514 = vmatmul.mubr.f32.vlgmr.msra.gmra.mxu0 %v4047_v14  ;;  %v4652_v14 = vld [vmem:[#allocation12 + $0x9a0] sm:$0xff] }
 0x613   :  { %4521 = vmatpush1.msra.mxu1 %v4241_v34  ;;  %4584 = vmatprep.mubr.f32.mxu1 %v4050_v1  ;;  %v4608_v1 = vld [vmem:[#allocation12 + $0x840] sm:$0xff]  ;;  %v4181_v34 = vld [vmem:[#allocation13 + $0x410] sm:$0xff] }
 0x614   :  { %4522 = vmatprep.subr.mxu1 %v4238_v35  ;;  %4856 = vmatprep.subr.mxu0 %v4661_v38  ;;  %v4605_v35 = vld [vmem:[#allocation12 + $0x828] sm:$0xff] }
 0x615   :  { %4523 = vmatpush1.msra.mxu1 %v4237_v36  ;;  %4857 = vmatpush1.msra.mxu0 %v4660_v15  ;;  %v4306_v36 = vld [vmem:[#allocation13 + $0x7f8] sm:$0xff]  ;;  %v4601_v38 = vld [vmem:[#allocation12 + $0x808] sm:$0xff] }
 0x616   :  { %4524 = vmatprep.subr.mxu1 %v4234_v11  ;;  %4858 = vmatprep.subr.mxu0 %v4657_v40  ;;  %v4604_v11 = vld [vmem:[#allocation12 + $0x820] sm:$0xff]  ;;  %v4302_v15 = vld [vmem:[#allocation13 + $0x7d8] sm:$0xff] }
 0x617   :  { %4525 = vmatpush1.msra.mxu1 %v4233_v37  ;;  %4859 = vmatpush1.msra.mxu0 %v4656_v53  ;;  %v4305_v37 = vld [vmem:[#allocation13 + $0x7f0] sm:$0xff]  ;;  %v4600_v40 = vld [vmem:[#allocation12 + $0x800] sm:$0xff]  ;;  %v4725_v53 = vld [vmem:[#allocation12 + $0xbe8] sm:$0xff] }
 0x618   :  { %4526 = vmatprep.subr.mxu1 %v4230_v44  ;;  %4860 = vmatprep.subr.mxu0 %v4653_v47  ;;  %v4301_v44 = vld [vmem:[#allocation13 + $0x7d0] sm:$0xff]  ;;  %v4724_v47 = vld [vmem:[#allocation12 + $0xbe0] sm:$0xff] }
 0x619   :  { %4527 = vmatpush1.msra.mxu1 %v4229_v46  ;;  %4861 = vmatpush1.msra.mxu0 %v4652_v14  ;;  %v4298_v46 = vld [vmem:[#allocation13 + $0x7b8] sm:$0xff]  ;;  %v4721_v14 = vld [vmem:[#allocation12 + $0xbc8] sm:$0xff] }
 0x61a   :  { %4528 = vmatprep.subr.mxu1 %v4226_v20  ;;  %4862 = vmatprep.subr.mxu0 %v4649_v21  ;;  %v4297_v20 = vld [vmem:[#allocation13 + $0x7b0] sm:$0xff]  ;;  %v4720_v21 = vld [vmem:[#allocation12 + $0xbc0] sm:$0xff] }
 0x61b   :  { %4529 = vmatpush1.msra.mxu1 %v4225_v62  ;;  %4863 = vmatpush1.msra.mxu0 %v4648_v50  ;;  %v4294_v62 = vld [vmem:[#allocation13 + $0x798] sm:$0xff]  ;;  %v4717_v50 = vld [vmem:[#allocation12 + $0xba8] sm:$0xff] }
 0x61c   :  { %4530 = vmatprep.subr.mxu1 %v4222_v49  ;;  %4864 = vmatprep.subr.mxu0 %v4645_v54  ;;  %v4293_v49 = vld [vmem:[#allocation13 + $0x790] sm:$0xff]  ;;  %v4716_v54 = vld [vmem:[#allocation12 + $0xba0] sm:$0xff] }
 0x61d   :  { %4531 = vmatpush1.msra.mxu1 %v4221_v52  ;;  %4865 = vmatpush1.msra.mxu0 %v4644_v55  ;;  %v4290_v52 = vld [vmem:[#allocation13 + $0x778] sm:$0xff]  ;;  %v4713_v55 = vld [vmem:[#allocation12 + $0xb88] sm:$0xff] }
 0x61e   :  { %4532 = vmatprep.subr.mxu1 %v4218_v42  ;;  %4866 = vmatprep.subr.mxu0 %v4641_v8  ;;  %v4289_v42 = vld [vmem:[#allocation13 + $0x770] sm:$0xff]  ;;  %v4712_v8 = vld [vmem:[#allocation12 + $0xb80] sm:$0xff] }
 0x61f   :  { %4533 = vmatpush1.msra.mxu1 %v4217_v9  ;;  %4867 = vmatpush1.msra.mxu0 %v4640_v39  ;;  %v4286_v9 = vld [vmem:[#allocation13 + $0x758] sm:$0xff]  ;;  %v4709_v39 = vld [vmem:[#allocation12 + $0xb68] sm:$0xff] }
 0x620   :  { %4534 = vmatprep.subr.mxu1 %v4214_v57  ;;  %4868 = vmatprep.subr.mxu0 %v4637_v61  ;;  %v4285_v57 = vld [vmem:[#allocation13 + $0x750] sm:$0xff]  ;;  %v4708_v61 = vld [vmem:[#allocation12 + $0xb60] sm:$0xff] }
 0x621   :  { %4535 = vmatpush1.msra.mxu1 %v4213_v59  ;;  %4869 = vmatpush1.msra.mxu0 %v4636_v2  ;;  %v4282_v59 = vld [vmem:[#allocation13 + $0x738] sm:$0xff]  ;;  %v4705_v2 = vld [vmem:[#allocation12 + $0xb48] sm:$0xff] }
 0x622   :  { %4536 = vmatprep.subr.mxu1 %v4210_v0  ;;  %4870 = vmatprep.subr.mxu0 %v4633_v6  ;;  %v4281_v0 = vld [vmem:[#allocation13 + $0x730] sm:$0xff]  ;;  %v4704_v6 = vld [vmem:[#allocation12 + $0xb40] sm:$0xff] }
 0x623   :  { %4537 = vmatpush1.msra.mxu1 %v4209_v4  ;;  %4871 = vmatpush1.msra.mxu0 %v4632_v48  ;;  %v4278_v4 = vld [vmem:[#allocation13 + $0x718] sm:$0xff]  ;;  %v4701_v48 = vld [vmem:[#allocation12 + $0xb28] sm:$0xff] }
 0x624   :  { %4538 = vmatprep.subr.mxu1 %v4206_v10  ;;  %4872 = vmatprep.subr.mxu0 %v4629_v13  ;;  %v4277_v10 = vld [vmem:[#allocation13 + $0x710] sm:$0xff]  ;;  %v4700_v13 = vld [vmem:[#allocation12 + $0xb20] sm:$0xff] }
 0x625   :  { %4539 = vmatpush1.msra.mxu1 %v4205_v12  ;;  %4873 = vmatpush1.msra.mxu0 %v4628_v16  ;;  %v4274_v12 = vld [vmem:[#allocation13 + $0x6f8] sm:$0xff]  ;;  %v4697_v16 = vld [vmem:[#allocation12 + $0xb08] sm:$0xff] }
 0x626   :  { %4540 = vmatprep.subr.mxu1 %v4202_v30  ;;  %4874 = vmatprep.subr.mxu0 %v4625_v18  ;;  %v4273_v30 = vld [vmem:[#allocation13 + $0x6f0] sm:$0xff]  ;;  %v4696_v18 = vld [vmem:[#allocation12 + $0xb00] sm:$0xff] }
 0x627   :  { %4541 = vmatpush1.msra.mxu1 %v4201_v58  ;;  %4875 = vmatpush1.msra.mxu0 %v4624_v19  ;;  %v4270_v58 = vld [vmem:[#allocation13 + $0x6d8] sm:$0xff]  ;;  %v4693_v19 = vld [vmem:[#allocation12 + $0xae8] sm:$0xff] }
 0x628   :  { %4542 = vmatprep.subr.mxu1 %v4198_v63  ;;  %4876 = vmatprep.subr.mxu0 %v4621_v51  ;;  %v4269_v63 = vld [vmem:[#allocation13 + $0x6d0] sm:$0xff]  ;;  %v4692_v51 = vld [vmem:[#allocation12 + $0xae0] sm:$0xff] }
 0x629   :  { %4543 = vmatpush1.msra.mxu1 %v4197_v27  ;;  %4877 = vmatpush1.msra.mxu0 %v4620_v23  ;;  %v4266_v27 = vld [vmem:[#allocation13 + $0x6b8] sm:$0xff]  ;;  %v4689_v23 = vld [vmem:[#allocation12 + $0xac8] sm:$0xff] }
 0x62a   :  { %4544 = vmatprep.subr.mxu1 %v4194_v22  ;;  %4878 = vmatprep.subr.mxu0 %v4617_v41  ;;  %v4265_v22 = vld [vmem:[#allocation13 + $0x6b0] sm:$0xff]  ;;  %v4688_v41 = vld [vmem:[#allocation12 + $0xac0] sm:$0xff] }
 0x62b   :  { %4545 = vmatpush1.msra.mxu1 %v4193_v24  ;;  %4879 = vmatpush1.msra.mxu0 %v4616_v25  ;;  %v4262_v24 = vld [vmem:[#allocation13 + $0x698] sm:$0xff]  ;;  %v4685_v25 = vld [vmem:[#allocation12 + $0xaa8] sm:$0xff] }
 0x62c   :  { %4546 = vmatprep.subr.mxu1 %v4190_v17  ;;  %4880 = vmatprep.subr.mxu0 %v4613_v7  ;;  %v4261_v17 = vld [vmem:[#allocation13 + $0x690] sm:$0xff]  ;;  %v4684_v7 = vld [vmem:[#allocation12 + $0xaa0] sm:$0xff] }
 0x62d   :  { %4547 = vmatpush1.msra.mxu1 %v4189_v60  ;;  %4881 = vmatpush1.msra.mxu0 %v4612_v26  ;;  %v4258_v60 = vld [vmem:[#allocation13 + $0x678] sm:$0xff]  ;;  %v4681_v26 = vld [vmem:[#allocation12 + $0xa88] sm:$0xff] }
 0x62e   :  { %4548 = vmatprep.subr.mxu1 %v4186_v28  ;;  %4882 = vmatprep.subr.mxu0 %v4609_v32  ;;  %v4257_v28 = vld [vmem:[#allocation13 + $0x670] sm:$0xff] }
 0x62f   :  { %4549 = vmatpush1.msra.mxu1 %v4185_v31  ;;  %4883 = vmatpush1.msra.mxu0 %v4608_v1  ;;  %v4254_v31 = vld [vmem:[#allocation13 + $0x658] sm:$0xff]  ;;  %v4253_v32 = vld [vmem:[#allocation13 + $0x650] sm:$0xff] }
 0x630   :  { %4550 = vmatprep.subr.mxu1 %v4182_v29  ;;  %4884 = vmatprep.subr.mxu0 %v4605_v35  ;;  %v4250_v29 = vld [vmem:[#allocation13 + $0x638] sm:$0xff]  ;;  %v4249_v1 = vld [vmem:[#allocation13 + $0x630] sm:$0xff] }
 0x631   :  { %4551 = vmatpush1.msra.mxu1 %v4181_v34  ;;  %4885 = vmatpush1.msra.mxu0 %v4604_v11  ;;  %v4246_v34 = vld [vmem:[#allocation13 + $0x618] sm:$0xff]  ;;  %v4245_v35 = vld [vmem:[#allocation13 + $0x610] sm:$0xff]  ;;  %v4677_v11 = vld [vmem:[#allocation12 + $0xa68] sm:$0xff] }
 0x632   :  { %4552 = vmatprep.subr.mxu1 %v4306_v36  ;;  %4886 = vmatprep.subr.mxu0 %v4601_v38  ;;  %v4680_v36 = vld [vmem:[#allocation12 + $0xa80] sm:$0xff]  ;;  %v4673_v38 = vld [vmem:[#allocation12 + $0xa48] sm:$0xff] }
 0x633   :  { %4553 = vmatpush2.msra.mxu1 %v4305_v37  ;;  %4887 = vmatpush1.msra.mxu0 %v4600_v40  ;;  %v4676_v37 = vld [vmem:[#allocation12 + $0xa60] sm:$0xff]  ;;  %v4669_v40 = vld [vmem:[#allocation12 + $0xa28] sm:$0xff] }
 0x634   :  { %4554 = vmatprep.subr.mxu1 %v4302_v15  ;;  %4888 = vmatprep.subr.mxu0 %v4725_v53  ;;  %v4672_v15 = vld [vmem:[#allocation12 + $0xa40] sm:$0xff]  ;;  %v4665_v53 = vld [vmem:[#allocation12 + $0xa08] sm:$0xff] }
 0x635   :  { %4555 = vmatpush2.msra.mxu1 %v4301_v44  ;;  %4889 = vmatpush2.msra.mxu0 %v4724_v47  ;;  %v4668_v44 = vld [vmem:[#allocation12 + $0xa20] sm:$0xff]  ;;  %v4789_v47 = vld [vmem:[#allocation12 + $0xde8] sm:$0xff] }
 0x636   :  { %4556 = vmatprep.subr.mxu1 %v4298_v46  ;;  %4890 = vmatprep.subr.mxu0 %v4721_v14  ;;  %v4664_v46 = vld [vmem:[#allocation12 + $0xa00] sm:$0xff] }
 0x637   :  { %4557 = vmatpush2.msra.mxu1 %v4297_v20  ;;  %4891 = vmatpush2.msra.mxu0 %v4720_v21  ;;  %v4785_v20 = vld [vmem:[#allocation12 + $0xdc8] sm:$0xff]  ;;  %v4784_v14 = vld [vmem:[#allocation12 + $0xdc0] sm:$0xff] }
 0x638   :  { %4558 = vmatprep.subr.mxu1 %v4294_v62  ;;  %4892 = vmatprep.subr.mxu0 %v4717_v50  ;;  %v4781_v62 = vld [vmem:[#allocation12 + $0xda8] sm:$0xff]  ;;  %v4780_v21 = vld [vmem:[#allocation12 + $0xda0] sm:$0xff] }
 0x639   :  { %4559 = vmatpush2.msra.mxu1 %v4293_v49  ;;  %4893 = vmatpush2.msra.mxu0 %v4716_v54  ;;  %v4777_v49 = vld [vmem:[#allocation12 + $0xd88] sm:$0xff]  ;;  %v4776_v50 = vld [vmem:[#allocation12 + $0xd80] sm:$0xff] }
 0x63a   :  { %4560 = vmatprep.subr.mxu1 %v4290_v52  ;;  %4894 = vmatprep.subr.mxu0 %v4713_v55  ;;  %v4773_v52 = vld [vmem:[#allocation12 + $0xd68] sm:$0xff]  ;;  %v4772_v54 = vld [vmem:[#allocation12 + $0xd60] sm:$0xff] }
 0x63b   :  { %4561 = vmatpush2.msra.mxu1 %v4289_v42  ;;  %4895 = vmatpush2.msra.mxu0 %v4712_v8  ;;  %v4769_v42 = vld [vmem:[#allocation12 + $0xd48] sm:$0xff]  ;;  %v4768_v55 = vld [vmem:[#allocation12 + $0xd40] sm:$0xff] }
 0x63c   :  { %4562 = vmatprep.subr.mxu1 %v4286_v9  ;;  %4896 = vmatprep.subr.mxu0 %v4709_v39  ;;  %v4765_v9 = vld [vmem:[#allocation12 + $0xd28] sm:$0xff]  ;;  %v4764_v8 = vld [vmem:[#allocation12 + $0xd20] sm:$0xff] }
 0x63d   :  { %4563 = vmatpush2.msra.mxu1 %v4285_v57  ;;  %4897 = vmatpush2.msra.mxu0 %v4708_v61  ;;  %v4761_v57 = vld [vmem:[#allocation12 + $0xd08] sm:$0xff]  ;;  %v4760_v39 = vld [vmem:[#allocation12 + $0xd00] sm:$0xff] }
 0x63e   :  { %4564 = vmatprep.subr.mxu1 %v4282_v59  ;;  %4898 = vmatprep.subr.mxu0 %v4705_v2  ;;  %v4757_v59 = vld [vmem:[#allocation12 + $0xce8] sm:$0xff]  ;;  %v4756_v61 = vld [vmem:[#allocation12 + $0xce0] sm:$0xff] }
 0x63f   :  { %4565 = vmatpush2.msra.mxu1 %v4281_v0  ;;  %4899 = vmatpush2.msra.mxu0 %v4704_v6  ;;  %v4753_v0 = vld [vmem:[#allocation12 + $0xcc8] sm:$0xff]  ;;  %v4752_v2 = vld [vmem:[#allocation12 + $0xcc0] sm:$0xff] }
 0x640   :  { %4566 = vmatprep.subr.mxu1 %v4278_v4  ;;  %4900 = vmatprep.subr.mxu0 %v4701_v48  ;;  %v4749_v4 = vld [vmem:[#allocation12 + $0xca8] sm:$0xff]  ;;  %v4748_v6 = vld [vmem:[#allocation12 + $0xca0] sm:$0xff] }
 0x641   :  { %4567 = vmatpush2.msra.mxu1 %v4277_v10  ;;  %4901 = vmatpush2.msra.mxu0 %v4700_v13  ;;  %v4745_v10 = vld [vmem:[#allocation12 + $0xc88] sm:$0xff]  ;;  %v4744_v48 = vld [vmem:[#allocation12 + $0xc80] sm:$0xff] }
 0x642   :  { %4568 = vmatprep.subr.mxu1 %v4274_v12  ;;  %4902 = vmatprep.subr.mxu0 %v4697_v16  ;;  %v4741_v12 = vld [vmem:[#allocation12 + $0xc68] sm:$0xff]  ;;  %v4740_v13 = vld [vmem:[#allocation12 + $0xc60] sm:$0xff] }
 0x643   :  { %4569 = vmatpush2.msra.mxu1 %v4273_v30  ;;  %4903 = vmatpush2.msra.mxu0 %v4696_v18  ;;  %v4737_v30 = vld [vmem:[#allocation12 + $0xc48] sm:$0xff]  ;;  %v4736_v16 = vld [vmem:[#allocation12 + $0xc40] sm:$0xff] }
 0x644   :  { %4570 = vmatprep.subr.mxu1 %v4270_v58  ;;  %4904 = vmatprep.subr.mxu0 %v4693_v19  ;;  %v4733_v58 = vld [vmem:[#allocation12 + $0xc28] sm:$0xff]  ;;  %v4732_v18 = vld [vmem:[#allocation12 + $0xc20] sm:$0xff] }
 0x645   :  { %4571 = vmatpush2.msra.mxu1 %v4269_v63  ;;  %4905 = vmatpush2.msra.mxu0 %v4692_v51  ;;  %v4729_v63 = vld [vmem:[#allocation12 + $0xc08] sm:$0xff]  ;;  %v4728_v19 = vld [vmem:[#allocation12 + $0xc00] sm:$0xff] }
 0x646   :  { %4572 = vmatprep.subr.mxu1 %v4266_v27  ;;  %4906 = vmatprep.subr.mxu0 %v4689_v23  ;;  %v4853_v27 = vld [vmem:[#allocation12 + $0xfe8] sm:$0xff]  ;;  %v4852_v51 = vld [vmem:[#allocation12 + $0xfe0] sm:$0xff] }
 0x647   :  { %4573 = vmatpush2.msra.mxu1 %v4265_v22  ;;  %4907 = vmatpush2.msra.mxu0 %v4688_v41  ;;  %v4849_v22 = vld [vmem:[#allocation12 + $0xfc8] sm:$0xff]  ;;  %v4848_v23 = vld [vmem:[#allocation12 + $0xfc0] sm:$0xff] }
 0x648   :  { %4574 = vmatprep.subr.mxu1 %v4262_v24  ;;  %4908 = vmatprep.subr.mxu0 %v4685_v25  ;;  %v4845_v24 = vld [vmem:[#allocation12 + $0xfa8] sm:$0xff]  ;;  %v4844_v41 = vld [vmem:[#allocation12 + $0xfa0] sm:$0xff] }
 0x649   :  { %4575 = vmatpush2.msra.mxu1 %v4261_v17  ;;  %4909 = vmatpush2.msra.mxu0 %v4684_v7  ;;  %v4841_v17 = vld [vmem:[#allocation12 + $0xf88] sm:$0xff]  ;;  %v4840_v25 = vld [vmem:[#allocation12 + $0xf80] sm:$0xff] }
 0x64a   :  { %4576 = vmatprep.subr.mxu1 %v4258_v60  ;;  %4910 = vmatprep.subr.mxu0 %v4681_v26  ;;  %v4837_v60 = vld [vmem:[#allocation12 + $0xf68] sm:$0xff]  ;;  %v4836_v7 = vld [vmem:[#allocation12 + $0xf60] sm:$0xff] }
 0x64b   :  { %4577 = vmatpush2.msra.mxu1 %v4257_v28  ;;  %4911 = vmatpush2.msra.mxu0 %v4680_v36  ;;  %v4833_v28 = vld [vmem:[#allocation12 + $0xf48] sm:$0xff]  ;;  %v4832_v26 = vld [vmem:[#allocation12 + $0xf40] sm:$0xff] }
 0x64c   :  { %4578 = vmatprep.subr.mxu1 %v4254_v31  ;;  %4912 = vmatprep.subr.mxu0 %v4677_v11  ;;  %v4829_v31 = vld [vmem:[#allocation12 + $0xf28] sm:$0xff]  ;;  %v4816_v11 = vld [vmem:[#allocation12 + $0xec0] sm:$0xff] }
 0x64d   :  { %4579 = vmatpush2.msra.mxu1 %v4253_v32  ;;  %4913 = vmatpush2.msra.mxu0 %v4676_v37  ;;  %v4828_v32 = vld [vmem:[#allocation12 + $0xf20] sm:$0xff]  ;;  %v4817_v36 = vld [vmem:[#allocation12 + $0xec8] sm:$0xff] }
 0x64e   :  { %4580 = vmatprep.subr.mxu1 %v4250_v29  ;;  %4914 = vmatprep.subr.mxu0 %v4673_v38  ;;  %v4825_v29 = vld [vmem:[#allocation12 + $0xf08] sm:$0xff]  ;;  %v4812_v38 = vld [vmem:[#allocation12 + $0xea0] sm:$0xff] }
 0x64f   :  { %4581 = vmatpush2.msra.mxu1 %v4249_v1  ;;  %4915 = vmatpush2.msra.mxu0 %v4672_v15  ;;  %v4824_v1 = vld [vmem:[#allocation12 + $0xf00] sm:$0xff]  ;;  %v4813_v37 = vld [vmem:[#allocation12 + $0xea8] sm:$0xff] }
 0x650   :  { %4582 = vmatprep.subr.mxu1 %v4246_v34  ;;  %4916 = vmatprep.subr.mxu0 %v4669_v40  ;;  %v4821_v34 = vld [vmem:[#allocation12 + $0xee8] sm:$0xff]  ;;  %v4808_v40 = vld [vmem:[#allocation12 + $0xe80] sm:$0xff] }
 0x651   :  { %4583 = vmatpush2.msra.mxu1 %v4245_v35  ;;  %4917 = vmatpush2.msra.mxu0 %v4668_v44  ;;  %v4820_v35 = vld [vmem:[#allocation12 + $0xee0] sm:$0xff]  ;;  %v4809_v15 = vld [vmem:[#allocation12 + $0xe88] sm:$0xff] }
 0x652   :  { %4585 = vmatmul.mubr.f32.vlgmr.msra.gmra.mxu1 %v4049_v33  ;;  %4927 = vmatprep.subr.mxu1 %v4789_v47  ;;  %v4663_v33 = vld [vmem:[#allocation12 + $0x9f8] sm:$0xff]  ;;  %v4805_v44 = vld [vmem:[#allocation12 + $0xe68] sm:$0xff]  ;;  %v4800_v47 = vld [vmem:[#allocation12 + $0xe40] sm:$0xff] }
 0x653   :  { %4918 = vmatprep.subr.mxu0 %v4665_v53  ;;  %4928 = vmatpush1.msra.mxu1 %v4788_v43  ;;  %v4804_v53 = vld [vmem:[#allocation12 + $0xe60] sm:$0xff]  ;;  %v4797_v43 = vld [vmem:[#allocation12 + $0xe28] sm:$0xff] }
 0x654   :  { %4919 = vmatpush2.msra.mxu0 %v4664_v46  ;;  %4929 = vmatprep.subr.mxu1 %v4785_v20  ;;  %v4801_v46 = vld [vmem:[#allocation12 + $0xe48] sm:$0xff] }
 0x655   :  { %4998 = vmatprep.subr.mxu0 %v4663_v33  ;;  %4930 = vmatpush1.msra.mxu1 %v4784_v14  ;;  %v4796_v33 = vld [vmem:[#allocation12 + $0xe20] sm:$0xff]  ;;  %v4793_v20 = vld [vmem:[#allocation12 + $0xe08] sm:$0xff] }
 0x656   :  { %4931 = vmatprep.subr.mxu1 %v4781_v62  ;;  %v4792_v14 = vld [vmem:[#allocation12 + $0xe00] sm:$0xff]  ;;  %v4791_v62 = vld [vmem:[#allocation12 + $0xdf8] sm:$0xff] }
 0x657   :  { %4932 = vmatpush1.msra.mxu1 %v4780_v21 }
 0x658   :  { %4933 = vmatprep.subr.mxu1 %v4777_v49 }
 0x659   :  { %4934 = vmatpush1.msra.mxu1 %v4776_v50 }
 0x65a   :  { %4935 = vmatprep.subr.mxu1 %v4773_v52 }
 0x65b   :  { %4936 = vmatpush1.msra.mxu1 %v4772_v54 }
 0x65c   :  { %4937 = vmatprep.subr.mxu1 %v4769_v42 }
 0x65d   :  { %4938 = vmatpush1.msra.mxu1 %v4768_v55 }
 0x65e   :  { %4939 = vmatprep.subr.mxu1 %v4765_v9 }
 0x65f   :  { %4940 = vmatpush1.msra.mxu1 %v4764_v8 }
 0x660   :  { %4941 = vmatprep.subr.mxu1 %v4761_v57 }
 0x661   :  { %4942 = vmatpush1.msra.mxu1 %v4760_v39  ;;  %v4662_v39 = vld [vmem:[#allocation12 + $0x9f0] sm:$0xff] }
 0x662   :  { %4943 = vmatprep.subr.mxu1 %v4757_v59  ;;  %v4659_v59 = vld [vmem:[#allocation12 + $0x9d8] sm:$0xff] }
 0x663   :  { %4944 = vmatpush1.msra.mxu1 %v4756_v61  ;;  %v4658_v61 = vld [vmem:[#allocation12 + $0x9d0] sm:$0xff] }
 0x664   :  { %4945 = vmatprep.subr.mxu1 %v4753_v0  ;;  %v4655_v0 = vld [vmem:[#allocation12 + $0x9b8] sm:$0xff] }
 0x665   :  { %4946 = vmatpush1.msra.mxu1 %v4752_v2  ;;  %v4651_v2 = vld [vmem:[#allocation12 + $0x998] sm:$0xff] }
 0x666   :  { %4947 = vmatprep.subr.mxu1 %v4749_v4  ;;  %v4647_v4 = vld [vmem:[#allocation12 + $0x978] sm:$0xff] }
 0x667   :  { %4948 = vmatpush1.msra.mxu1 %v4748_v6  ;;  %v4646_v6 = vld [vmem:[#allocation12 + $0x970] sm:$0xff] }
 0x668   :  { %4949 = vmatprep.subr.mxu1 %v4745_v10  ;;  %v4643_v10 = vld [vmem:[#allocation12 + $0x958] sm:$0xff] }
 0x669   :  { %4950 = vmatpush1.msra.mxu1 %v4744_v48  ;;  %v4642_v48 = vld [vmem:[#allocation12 + $0x950] sm:$0xff] }
 0x66a   :  { %4951 = vmatprep.subr.mxu1 %v4741_v12  ;;  %v4639_v12 = vld [vmem:[#allocation12 + $0x938] sm:$0xff] }
 0x66b   :  { %4952 = vmatpush1.msra.mxu1 %v4740_v13  ;;  %v4638_v13 = vld [vmem:[#allocation12 + $0x930] sm:$0xff] }
 0x66c   :  { %4953 = vmatprep.subr.mxu1 %v4737_v30  ;;  %v4635_v30 = vld [vmem:[#allocation12 + $0x918] sm:$0xff] }
 0x66d   :  { %4954 = vmatpush1.msra.mxu1 %v4736_v16  ;;  %v4634_v16 = vld [vmem:[#allocation12 + $0x910] sm:$0xff] }
 0x66e   :  { %4955 = vmatprep.subr.mxu1 %v4733_v58  ;;  %v4631_v58 = vld [vmem:[#allocation12 + $0x8f8] sm:$0xff] }
 0x66f   :  { %4956 = vmatpush1.msra.mxu1 %v4732_v18  ;;  %v4630_v18 = vld [vmem:[#allocation12 + $0x8f0] sm:$0xff] }
 0x670   :  { %4957 = vmatprep.subr.mxu1 %v4729_v63  ;;  %v4627_v63 = vld [vmem:[#allocation12 + $0x8d8] sm:$0xff] }
 0x671   :  { %4958 = vmatpush1.msra.mxu1 %v4728_v19  ;;  %v4626_v19 = vld [vmem:[#allocation12 + $0x8d0] sm:$0xff] }
 0x672   :  { %4959 = vmatprep.subr.mxu1 %v4853_v27  ;;  %v4623_v27 = vld [vmem:[#allocation12 + $0x8b8] sm:$0xff] }
 0x673   :  { %4960 = vmatpush2.msra.mxu1 %v4852_v51  ;;  %v4622_v51 = vld [vmem:[#allocation12 + $0x8b0] sm:$0xff] }
 0x674   :  { %4961 = vmatprep.subr.mxu1 %v4849_v22  ;;  %v4619_v22 = vld [vmem:[#allocation12 + $0x898] sm:$0xff] }
 0x675   :  { %4962 = vmatpush2.msra.mxu1 %v4848_v23  ;;  %v4618_v23 = vld [vmem:[#allocation12 + $0x890] sm:$0xff] }
 0x676   :  { %4963 = vmatprep.subr.mxu1 %v4845_v24  ;;  %v4615_v24 = vld [vmem:[#allocation12 + $0x878] sm:$0xff] }
 0x677   :  { %4964 = vmatpush2.msra.mxu1 %v4844_v41  ;;  %v4614_v41 = vld [vmem:[#allocation12 + $0x870] sm:$0xff] }
 0x678   :  { %4965 = vmatprep.subr.mxu1 %v4841_v17  ;;  %v4611_v17 = vld [vmem:[#allocation12 + $0x858] sm:$0xff] }
 0x679   :  { %4966 = vmatpush2.msra.mxu1 %v4840_v25  ;;  %v4610_v25 = vld [vmem:[#allocation12 + $0x850] sm:$0xff] }
 0x67a   :  { %4967 = vmatprep.subr.mxu1 %v4837_v60  ;;  %v4607_v60 = vld [vmem:[#allocation12 + $0x838] sm:$0xff] }
 0x67b   :  { %4968 = vmatpush2.msra.mxu1 %v4836_v7  ;;  %v4606_v7 = vld [vmem:[#allocation12 + $0x830] sm:$0xff] }
 0x67c   :  { %4969 = vmatprep.subr.mxu1 %v4833_v28  ;;  %v4603_v28 = vld [vmem:[#allocation12 + $0x818] sm:$0xff] }
 0x67d   :  { %4970 = vmatpush2.msra.mxu1 %v4832_v26  ;;  %v4602_v26 = vld [vmem:[#allocation12 + $0x810] sm:$0xff] }
 0x67e   :  { %4971 = vmatprep.subr.mxu1 %v4829_v31  ;;  %v4727_v31 = vld [vmem:[#allocation12 + $0xbf8] sm:$0xff] }
 0x67f   :  { %4972 = vmatpush2.msra.mxu1 %v4828_v32  ;;  %v4726_v32 = vld [vmem:[#allocation12 + $0xbf0] sm:$0xff] }
 0x680   :  { %4973 = vmatprep.subr.mxu1 %v4825_v29  ;;  %v4723_v29 = vld [vmem:[#allocation12 + $0xbd8] sm:$0xff] }
 0x681   :  { %4974 = vmatpush2.msra.mxu1 %v4824_v1  ;;  %v4722_v1 = vld [vmem:[#allocation12 + $0xbd0] sm:$0xff] }
 0x682   :  { %4975 = vmatprep.subr.mxu1 %v4821_v34  ;;  %v4719_v34 = vld [vmem:[#allocation12 + $0xbb8] sm:$0xff] }
 0x683   :  { %4976 = vmatpush2.msra.mxu1 %v4820_v35  ;;  %v4718_v35 = vld [vmem:[#allocation12 + $0xbb0] sm:$0xff] }
 0x684   :  { %4977 = vmatprep.subr.mxu1 %v4817_v36  ;;  %v4715_v36 = vld [vmem:[#allocation12 + $0xb98] sm:$0xff] }
 0x685   :  { %4978 = vmatpush2.msra.mxu1 %v4816_v11  ;;  %v4714_v11 = vld [vmem:[#allocation12 + $0xb90] sm:$0xff] }
 0x686   :  { %4979 = vmatprep.subr.mxu1 %v4813_v37  ;;  %v4711_v37 = vld [vmem:[#allocation12 + $0xb78] sm:$0xff] }
 0x687   :  { %4980 = vmatpush2.msra.mxu1 %v4812_v38  ;;  %v4710_v38 = vld [vmem:[#allocation12 + $0xb70] sm:$0xff] }
 0x688   :  { %4981 = vmatprep.subr.mxu1 %v4809_v15  ;;  %v4707_v15 = vld [vmem:[#allocation12 + $0xb58] sm:$0xff] }
 0x689   :  { %4982 = vmatpush2.msra.mxu1 %v4808_v40  ;;  %v4706_v40 = vld [vmem:[#allocation12 + $0xb50] sm:$0xff] }
 0x68a   :  { %4983 = vmatprep.subr.mxu1 %v4805_v44  ;;  %v4703_v44 = vld [vmem:[#allocation12 + $0xb38] sm:$0xff] }
 0x68b   :  { %4984 = vmatpush2.msra.mxu1 %v4804_v53  ;;  %v4702_v53 = vld [vmem:[#allocation12 + $0xb30] sm:$0xff] }
 0x68c   :  { %4985 = vmatprep.subr.mxu1 %v4801_v46  ;;  %v4699_v46 = vld [vmem:[#allocation12 + $0xb18] sm:$0xff] }
 0x68d   :  { %4986 = vmatpush2.msra.mxu1 %v4800_v47  ;;  %v4698_v47 = vld [vmem:[#allocation12 + $0xb10] sm:$0xff] }
 0x68e   :  { %4987 = vmatprep.subr.mxu1 %v4797_v43  ;;  %v4695_v43 = vld [vmem:[#allocation12 + $0xaf8] sm:$0xff] }
 0x68f   :  { %4988 = vmatpush2.msra.mxu1 %v4796_v33  ;;  %v4694_v33 = vld [vmem:[#allocation12 + $0xaf0] sm:$0xff] }
 0x690   :  { %4989 = vmatprep.subr.mxu1 %v4793_v20  ;;  %v4691_v20 = vld [vmem:[#allocation12 + $0xad8] sm:$0xff] }
 0x691   :  { %4990 = vmatpush2.msra.mxu1 %v4792_v14  ;;  %v4690_v14 = vld [vmem:[#allocation12 + $0xad0] sm:$0xff] }
 0x692   :  { %5069 = vmatprep.subr.mxu1 %v4791_v62  ;;  %v4373_v21 = vpop.f32.mrf.mxu0  ;;  %v4687_v62 = vld [vmem:[#allocation12 + $0xab8] sm:$0xff] }
 0x694   :  { %v4375_v52 = vpop.f32.mrf.mxu0 }
 0x6d2   :  { %v4444_v49 = vpop.f32.mrf.mxu1 }
 0x6d3   :  { %v4445_v50 = vadd.f32 %v4444_v49, %v4373_v21  ;;  %v4686_v21 = vld [vmem:[#allocation12 + $0xab0] sm:$0xff]  ;;  %v4683_v49 = vld [vmem:[#allocation12 + $0xa98] sm:$0xff] }
 0x6d4   :  { %v4446_v54 = vpop.f32.mrf.mxu1 }
 0x6d5   :  { %v4447_v42 = vadd.f32 %v4446_v54, %v4375_v52  ;;  %v6225_v55 = vadd.f32 %v4445_v50, %v6186_v5  ;;  %v4654_v5 = vld [vmem:[#allocation12 + $0x9b0] sm:$0xff]  ;;  %v4515_v50 = vpop.f32.mrf.mxu0  ;;  %v4679_v54 = vld [vmem:[#allocation12 + $0xa78] sm:$0xff] }
 0x6d6   :  { %v4682_v52 = vld [vmem:[#allocation12 + $0xa90] sm:$0xff] }
 0x6d7   :  { %v6228_v9 = vadd.f32 %v4447_v42, %v6188_v45  ;;  %v4595_v57 = vmax.f32 %v6225_v55, 0.0  ;;  %v4650_v45 = vld [vmem:[#allocation12 + $0x990] sm:$0xff] }
 0x6d9   :  { %v4596_v8 = vmax.f32 %v6228_v9, 0.0 }
 0x6db   :  { %4920 = vmatprep.mubr.f32.mxu0 %v4596_v8 }
 0x6dc   :  { %4921 = vmatmul.mubr.f32.vlgmr.msra.gmra.mxu0 %v4595_v57 }
 0x6dd   :  { %4999 = vmatpush1.msra.mxu0 %v4662_v39  ;;  %5062 = vmatprep.mubr.f32.mxu0 %v4596_v8  ;;  %v4678_v8 = vld [vmem:[#allocation12 + $0xa70] sm:$0xff] }
 0x6de   :  { %5000 = vmatprep.subr.mxu0 %v4659_v59  ;;  %v4675_v59 = vld [vmem:[#allocation12 + $0xa58] sm:$0xff] }
 0x6df   :  { %5001 = vmatpush1.msra.mxu0 %v4658_v61  ;;  %v4517_v61 = vpop.f32.mrf.mxu0 }
 0x6e0   :  { %5002 = vmatprep.subr.mxu0 %v4655_v0 }
 0x6e1   :  { %5003 = vmatpush1.msra.mxu0 %v4654_v5  ;;  %v4674_v5 = vld [vmem:[#allocation12 + $0xa50] sm:$0xff] }
 0x6e2   :  { %5004 = vmatprep.subr.mxu0 %v4651_v2 }
 0x6e3   :  { %5005 = vmatpush1.msra.mxu0 %v4650_v45  ;;  %v4671_v45 = vld [vmem:[#allocation12 + $0xa38] sm:$0xff] }
 0x6e4   :  { %5006 = vmatprep.subr.mxu0 %v4647_v4 }
 0x6e5   :  { %5007 = vmatpush1.msra.mxu0 %v4646_v6  ;;  %v4670_v6 = vld [vmem:[#allocation12 + $0xa30] sm:$0xff] }
 0x6e6   :  { %5008 = vmatprep.subr.mxu0 %v4643_v10 }
 0x6e7   :  { %5009 = vmatpush1.msra.mxu0 %v4642_v48  ;;  %v4667_v48 = vld [vmem:[#allocation12 + $0xa18] sm:$0xff] }
 0x6e8   :  { %5010 = vmatprep.subr.mxu0 %v4639_v12  ;;  %v4666_v12 = vld [vmem:[#allocation12 + $0xa10] sm:$0xff] }
 0x6e9   :  { %5011 = vmatpush1.msra.mxu0 %v4638_v13 }
 0x6ea   :  { %5012 = vmatprep.subr.mxu0 %v4635_v30 }
 0x6eb   :  { %5013 = vmatpush1.msra.mxu0 %v4634_v16  ;;  %v4790_v16 = vld [vmem:[#allocation12 + $0xdf0] sm:$0xff] }
 0x6ec   :  { %5014 = vmatprep.subr.mxu0 %v4631_v58  ;;  %v4783_v58 = vld [vmem:[#allocation12 + $0xdb8] sm:$0xff] }
 0x6ed   :  { %5015 = vmatpush1.msra.mxu0 %v4630_v18  ;;  %v4782_v18 = vld [vmem:[#allocation12 + $0xdb0] sm:$0xff] }
 0x6ee   :  { %5016 = vmatprep.subr.mxu0 %v4627_v63  ;;  %v5206_v63 = vld [vmem:[#allocation13 + $0x9e8] sm:$0xff] }
 0x6ef   :  { %5017 = vmatpush1.msra.mxu0 %v4626_v19  ;;  %v5205_v19 = vld [vmem:[#allocation13 + $0x9e0] sm:$0xff] }
 0x6f0   :  { %5018 = vmatprep.subr.mxu0 %v4623_v27  ;;  %v5202_v27 = vld [vmem:[#allocation13 + $0x9c8] sm:$0xff] }
 0x6f1   :  { %5019 = vmatpush1.msra.mxu0 %v4622_v51  ;;  %v4779_v51 = vld [vmem:[#allocation12 + $0xd98] sm:$0xff] }
 0x6f2   :  { %5020 = vmatprep.subr.mxu0 %v4619_v22  ;;  %v5201_v22 = vld [vmem:[#allocation13 + $0x9c0] sm:$0xff] }
 0x6f3   :  { %5021 = vmatpush1.msra.mxu0 %v4618_v23  ;;  %v4778_v23 = vld [vmem:[#allocation12 + $0xd90] sm:$0xff] }
 0x6f4   :  { %5022 = vmatprep.subr.mxu0 %v4615_v24  ;;  %v5198_v24 = vld [vmem:[#allocation13 + $0x9a8] sm:$0xff] }
 0x6f5   :  { %5023 = vmatpush1.msra.mxu0 %v4614_v41  ;;  %v4775_v41 = vld [vmem:[#allocation12 + $0xd78] sm:$0xff] }
 0x6f6   :  { %5024 = vmatprep.subr.mxu0 %v4611_v17  ;;  %v4774_v17 = vld [vmem:[#allocation12 + $0xd70] sm:$0xff] }
 0x6f7   :  { %5025 = vmatpush1.msra.mxu0 %v4610_v25  ;;  %v5194_v25 = vld [vmem:[#allocation13 + $0x988] sm:$0xff] }
 0x6f8   :  { %5026 = vmatprep.subr.mxu0 %v4607_v60  ;;  %v4771_v60 = vld [vmem:[#allocation12 + $0xd58] sm:$0xff] }
 0x6f9   :  { %5027 = vmatpush1.msra.mxu0 %v4606_v7  ;;  %v5193_v7 = vld [vmem:[#allocation13 + $0x980] sm:$0xff] }
 0x6fa   :  { %5028 = vmatprep.subr.mxu0 %v4603_v28  ;;  %v4770_v28 = vld [vmem:[#allocation12 + $0xd50] sm:$0xff] }
 0x6fb   :  { %5029 = vmatpush1.msra.mxu0 %v4602_v26  ;;  %v5190_v26 = vld [vmem:[#allocation13 + $0x968] sm:$0xff] }
 0x6fc   :  { %5030 = vmatprep.subr.mxu0 %v4727_v31  ;;  %v4767_v31 = vld [vmem:[#allocation12 + $0xd38] sm:$0xff] }
 0x6fd   :  { %5031 = vmatpush2.msra.mxu0 %v4726_v32  ;;  %v5189_v32 = vld [vmem:[#allocation13 + $0x960] sm:$0xff] }
 0x6fe   :  { %5032 = vmatprep.subr.mxu0 %v4723_v29  ;;  %v4766_v29 = vld [vmem:[#allocation12 + $0xd30] sm:$0xff] }
 0x6ff   :  { %5033 = vmatpush2.msra.mxu0 %v4722_v1  ;;  %v5186_v1 = vld [vmem:[#allocation13 + $0x948] sm:$0xff] }
 0x700   :  { %5034 = vmatprep.subr.mxu0 %v4719_v34  ;;  %v4763_v34 = vld [vmem:[#allocation12 + $0xd18] sm:$0xff] }
 0x701   :  { %5035 = vmatpush2.msra.mxu0 %v4718_v35  ;;  %v5185_v35 = vld [vmem:[#allocation13 + $0x940] sm:$0xff] }
 0x702   :  { %5036 = vmatprep.subr.mxu0 %v4715_v36  ;;  %v4762_v36 = vld [vmem:[#allocation12 + $0xd10] sm:$0xff] }
 0x703   :  { %5037 = vmatpush2.msra.mxu0 %v4714_v11  ;;  %v5182_v11 = vld [vmem:[#allocation13 + $0x928] sm:$0xff] }
 0x704   :  { %5038 = vmatprep.subr.mxu0 %v4711_v37  ;;  %v4759_v37 = vld [vmem:[#allocation12 + $0xcf8] sm:$0xff] }
 0x705   :  { %5039 = vmatpush2.msra.mxu0 %v4710_v38  ;;  %v5181_v38 = vld [vmem:[#allocation13 + $0x920] sm:$0xff] }
 0x706   :  { %5040 = vmatprep.subr.mxu0 %v4707_v15  ;;  %v4758_v15 = vld [vmem:[#allocation12 + $0xcf0] sm:$0xff] }
 0x707   :  { %5041 = vmatpush2.msra.mxu0 %v4706_v40  ;;  %v5178_v40 = vld [vmem:[#allocation13 + $0x908] sm:$0xff] }
 0x708   :  { %5042 = vmatprep.subr.mxu0 %v4703_v44  ;;  %v4755_v44 = vld [vmem:[#allocation12 + $0xcd8] sm:$0xff] }
 0x709   :  { %5043 = vmatpush2.msra.mxu0 %v4702_v53  ;;  %v5177_v53 = vld [vmem:[#allocation13 + $0x900] sm:$0xff] }
 0x70a   :  { %5044 = vmatprep.subr.mxu0 %v4699_v46  ;;  %v4754_v46 = vld [vmem:[#allocation12 + $0xcd0] sm:$0xff] }
 0x70b   :  { %5045 = vmatpush2.msra.mxu0 %v4698_v47  ;;  %v5174_v47 = vld [vmem:[#allocation13 + $0x8e8] sm:$0xff] }
 0x70c   :  { %5046 = vmatprep.subr.mxu0 %v4695_v43  ;;  %v4751_v43 = vld [vmem:[#allocation12 + $0xcb8] sm:$0xff] }
 0x70d   :  { %5047 = vmatpush2.msra.mxu0 %v4694_v33  ;;  %v5173_v33 = vld [vmem:[#allocation13 + $0x8e0] sm:$0xff] }
 0x70e   :  { %5048 = vmatprep.subr.mxu0 %v4691_v20  ;;  %v4750_v20 = vld [vmem:[#allocation12 + $0xcb0] sm:$0xff] }
 0x70f   :  { %5049 = vmatpush2.msra.mxu0 %v4690_v14  ;;  %v5170_v14 = vld [vmem:[#allocation13 + $0x8c8] sm:$0xff] }
 0x710   :  { %5050 = vmatprep.subr.mxu0 %v4687_v62  ;;  %v4747_v62 = vld [vmem:[#allocation12 + $0xc98] sm:$0xff] }
 0x711   :  { %5051 = vmatpush2.msra.mxu0 %v4686_v21  ;;  %v5169_v21 = vld [vmem:[#allocation13 + $0x8c0] sm:$0xff] }
 0x712   :  { %v4586_v42 = vpop.f32.mrf.mxu1  ;;  %5052 = vmatprep.subr.mxu0 %v4683_v49  ;;  %v4746_v49 = vld [vmem:[#allocation12 + $0xc90] sm:$0xff] }
 0x713   :  { %v4587_v39 = vadd.f32 %v4586_v42, %v4515_v50  ;;  %5053 = vmatpush2.msra.mxu0 %v4682_v52  ;;  %v5166_v50 = vld [vmem:[#allocation13 + $0x8a8] sm:$0xff]  ;;  %v4743_v52 = vld [vmem:[#allocation12 + $0xc78] sm:$0xff]  ;;  %v4742_v42 = vld [vmem:[#allocation12 + $0xc70] sm:$0xff] }
 0x714   :  { %v4588_v0 = vpop.f32.mrf.mxu1  ;;  %5054 = vmatprep.subr.mxu0 %v4679_v54  ;;  %v5165_v54 = vld [vmem:[#allocation13 + $0x8a0] sm:$0xff] }
 0x715   :  { %v4589_v2 = vadd.f32 %v4588_v0, %v4517_v61  ;;  %5055 = vmatpush2.msra.mxu0 %v4678_v8  ;;  %v6235_v4 = vadd.f32 %v4587_v39, %v6198_v56  ;;  %v4787_v56 = vld [vmem:[#allocation12 + $0xdd8] sm:$0xff]  ;;  %v5162_v8 = vld [vmem:[#allocation13 + $0x888] sm:$0xff]  ;;  %v4738_v61 = vld [vmem:[#allocation12 + $0xc50] sm:$0xff] }
 0x716   :  { %5056 = vmatprep.subr.mxu0 %v4675_v59  ;;  %v4739_v39 = vld [vmem:[#allocation12 + $0xc58] sm:$0xff]  ;;  %v5161_v59 = vld [vmem:[#allocation13 + $0x880] sm:$0xff]  ;;  %v5158_v0 = vld [vmem:[#allocation13 + $0x868] sm:$0xff] }
 0x717   :  { %v6238_v10 = vadd.f32 %v4589_v2, %v6200_v3  ;;  %5057 = vmatpush2.msra.mxu0 %v4674_v5  ;;  %v4597_v30 = vmax.f32 %v6235_v4, 0.0  ;;  %v4786_v3 = vld [vmem:[#allocation12 + $0xdd0] sm:$0xff]  ;;  %v4735_v5 = vld [vmem:[#allocation12 + $0xc38] sm:$0xff]  ;;  %v5157_v2 = vld [vmem:[#allocation13 + $0x860] sm:$0xff] }
 0x718   :  { %5058 = vmatprep.subr.mxu0 %v4671_v45  ;;  %v4734_v45 = vld [vmem:[#allocation12 + $0xc30] sm:$0xff] }
 0x719   :  { %5059 = vmatpush2.msra.mxu0 %v4670_v6  ;;  %v4598_v13 = vmax.f32 %v6238_v10, 0.0  ;;  %v5154_v6 = vld [vmem:[#allocation13 + $0x848] sm:$0xff] }
 0x71a   :  { %5060 = vmatprep.subr.mxu0 %v4667_v48  ;;  %v4731_v48 = vld [vmem:[#allocation12 + $0xc18] sm:$0xff] }
 0x71b   :  { %4991 = vmatprep.mubr.f32.mxu1 %v4598_v13  ;;  %5061 = vmatpush2.msra.mxu0 %v4666_v12  ;;  %v5153_v12 = vld [vmem:[#allocation13 + $0x840] sm:$0xff] }
 0x71c   :  { %4992 = vmatmul.mubr.f32.vlgmr.msra.gmra.mxu1 %v4597_v30  ;;  %5063 = vmatmul.mubr.f32.vlgmr.msra.gmra.mxu0 %v4595_v57  ;;  %v5197_v57 = vld [vmem:[#allocation13 + $0x9a0] sm:$0xff] }
 0x71d   :  { %5070 = vmatpush1.msra.mxu1 %v4790_v16  ;;  %5133 = vmatprep.mubr.f32.mxu1 %v4598_v13  ;;  %v4730_v13 = vld [vmem:[#allocation12 + $0xc10] sm:$0xff]  ;;  %v5150_v16 = vld [vmem:[#allocation13 + $0x828] sm:$0xff] }
 0x71e   :  { %5071 = vmatprep.subr.mxu1 %v4787_v56  ;;  %5401 = vmatprep.subr.mxu0 %v5206_v63  ;;  %v4855_v56 = vld [vmem:[#allocation12 + $0xff8] sm:$0xff] }
 0x71f   :  { %5072 = vmatpush1.msra.mxu1 %v4786_v3  ;;  %5402 = vmatpush1.msra.mxu0 %v5205_v19  ;;  %v5149_v3 = vld [vmem:[#allocation13 + $0x820] sm:$0xff]  ;;  %v4851_v63 = vld [vmem:[#allocation12 + $0xfd8] sm:$0xff] }
 0x720   :  { %5073 = vmatprep.subr.mxu1 %v4783_v58  ;;  %5403 = vmatprep.subr.mxu0 %v5202_v27  ;;  %v4854_v58 = vld [vmem:[#allocation12 + $0xff0] sm:$0xff]  ;;  %v5145_v19 = vld [vmem:[#allocation13 + $0x800] sm:$0xff] }
 0x721   :  { %5074 = vmatpush1.msra.mxu1 %v4782_v18  ;;  %5404 = vmatpush1.msra.mxu0 %v5201_v22  ;;  %v5146_v18 = vld [vmem:[#allocation13 + $0x808] sm:$0xff]  ;;  %v4850_v27 = vld [vmem:[#allocation12 + $0xfd0] sm:$0xff]  ;;  %v4847_v22 = vld [vmem:[#allocation12 + $0xfb8] sm:$0xff] }
 0x722   :  { %5075 = vmatprep.subr.mxu1 %v4779_v51  ;;  %5405 = vmatprep.subr.mxu0 %v5198_v24  ;;  %v5270_v51 = vld [vmem:[#allocation13 + $0xbe8] sm:$0xff]  ;;  %v4846_v24 = vld [vmem:[#allocation12 + $0xfb0] sm:$0xff] }
 0x723   :  { %5076 = vmatpush1.msra.mxu1 %v4778_v23  ;;  %5406 = vmatpush1.msra.mxu0 %v5197_v57  ;;  %v5269_v23 = vld [vmem:[#allocation13 + $0xbe0] sm:$0xff]  ;;  %v4843_v57 = vld [vmem:[#allocation12 + $0xf98] sm:$0xff] }
 0x724   :  { %5077 = vmatprep.subr.mxu1 %v4775_v41  ;;  %5407 = vmatprep.subr.mxu0 %v5194_v25  ;;  %v5266_v41 = vld [vmem:[#allocation13 + $0xbc8] sm:$0xff]  ;;  %v4842_v25 = vld [vmem:[#allocation12 + $0xf90] sm:$0xff] }
 0x725   :  { %5078 = vmatpush1.msra.mxu1 %v4774_v17  ;;  %5408 = vmatpush1.msra.mxu0 %v5193_v7  ;;  %v5265_v17 = vld [vmem:[#allocation13 + $0xbc0] sm:$0xff]  ;;  %v4839_v7 = vld [vmem:[#allocation12 + $0xf78] sm:$0xff] }
 0x726   :  { %5079 = vmatprep.subr.mxu1 %v4771_v60  ;;  %5409 = vmatprep.subr.mxu0 %v5190_v26  ;;  %v5262_v60 = vld [vmem:[#allocation13 + $0xba8] sm:$0xff]  ;;  %v4838_v26 = vld [vmem:[#allocation12 + $0xf70] sm:$0xff] }
 0x727   :  { %5080 = vmatpush1.msra.mxu1 %v4770_v28  ;;  %5410 = vmatpush1.msra.mxu0 %v5189_v32  ;;  %v5261_v28 = vld [vmem:[#allocation13 + $0xba0] sm:$0xff]  ;;  %v4835_v32 = vld [vmem:[#allocation12 + $0xf58] sm:$0xff] }
 0x728   :  { %5081 = vmatprep.subr.mxu1 %v4767_v31  ;;  %5411 = vmatprep.subr.mxu0 %v5186_v1  ;;  %v5258_v31 = vld [vmem:[#allocation13 + $0xb88] sm:$0xff]  ;;  %v4834_v1 = vld [vmem:[#allocation12 + $0xf50] sm:$0xff] }
 0x729   :  { %5082 = vmatpush1.msra.mxu1 %v4766_v29  ;;  %5412 = vmatpush1.msra.mxu0 %v5185_v35  ;;  %v5257_v29 = vld [vmem:[#allocation13 + $0xb80] sm:$0xff]  ;;  %v4831_v35 = vld [vmem:[#allocation12 + $0xf38] sm:$0xff] }
 0x72a   :  { %5083 = vmatprep.subr.mxu1 %v4763_v34  ;;  %5413 = vmatprep.subr.mxu0 %v5182_v11  ;;  %v5254_v34 = vld [vmem:[#allocation13 + $0xb68] sm:$0xff]  ;;  %v4830_v11 = vld [vmem:[#allocation12 + $0xf30] sm:$0xff] }
 0x72b   :  { %5084 = vmatpush1.msra.mxu1 %v4762_v36  ;;  %5414 = vmatpush1.msra.mxu0 %v5181_v38  ;;  %v5253_v36 = vld [vmem:[#allocation13 + $0xb60] sm:$0xff]  ;;  %v4827_v38 = vld [vmem:[#allocation12 + $0xf18] sm:$0xff] }
 0x72c   :  { %5085 = vmatprep.subr.mxu1 %v4759_v37  ;;  %5415 = vmatprep.subr.mxu0 %v5178_v40  ;;  %v5250_v37 = vld [vmem:[#allocation13 + $0xb48] sm:$0xff]  ;;  %v4826_v40 = vld [vmem:[#allocation12 + $0xf10] sm:$0xff] }
 0x72d   :  { %5086 = vmatpush1.msra.mxu1 %v4758_v15  ;;  %5416 = vmatpush1.msra.mxu0 %v5177_v53  ;;  %v5249_v15 = vld [vmem:[#allocation13 + $0xb40] sm:$0xff]  ;;  %v4823_v53 = vld [vmem:[#allocation12 + $0xef8] sm:$0xff] }
 0x72e   :  { %5087 = vmatprep.subr.mxu1 %v4755_v44  ;;  %5417 = vmatprep.subr.mxu0 %v5174_v47  ;;  %v5246_v44 = vld [vmem:[#allocation13 + $0xb28] sm:$0xff]  ;;  %v4822_v47 = vld [vmem:[#allocation12 + $0xef0] sm:$0xff] }
 0x72f   :  { %5088 = vmatpush1.msra.mxu1 %v4754_v46  ;;  %5418 = vmatpush1.msra.mxu0 %v5173_v33  ;;  %v5245_v46 = vld [vmem:[#allocation13 + $0xb20] sm:$0xff]  ;;  %v4819_v33 = vld [vmem:[#allocation12 + $0xed8] sm:$0xff] }
 0x730   :  { %5089 = vmatprep.subr.mxu1 %v4751_v43  ;;  %5419 = vmatprep.subr.mxu0 %v5170_v14  ;;  %v5242_v43 = vld [vmem:[#allocation13 + $0xb08] sm:$0xff]  ;;  %v4818_v14 = vld [vmem:[#allocation12 + $0xed0] sm:$0xff] }
 0x731   :  { %5090 = vmatpush1.msra.mxu1 %v4750_v20  ;;  %5420 = vmatpush1.msra.mxu0 %v5169_v21  ;;  %v5241_v20 = vld [vmem:[#allocation13 + $0xb00] sm:$0xff]  ;;  %v4815_v21 = vld [vmem:[#allocation12 + $0xeb8] sm:$0xff] }
 0x732   :  { %5091 = vmatprep.subr.mxu1 %v4747_v62  ;;  %5421 = vmatprep.subr.mxu0 %v5166_v50  ;;  %v5238_v62 = vld [vmem:[#allocation13 + $0xae8] sm:$0xff]  ;;  %v4814_v50 = vld [vmem:[#allocation12 + $0xeb0] sm:$0xff] }
 0x733   :  { %5092 = vmatpush1.msra.mxu1 %v4746_v49  ;;  %5422 = vmatpush1.msra.mxu0 %v5165_v54  ;;  %v5237_v49 = vld [vmem:[#allocation13 + $0xae0] sm:$0xff]  ;;  %v4811_v54 = vld [vmem:[#allocation12 + $0xe98] sm:$0xff] }
 0x734   :  { %5093 = vmatprep.subr.mxu1 %v4743_v52  ;;  %5423 = vmatprep.subr.mxu0 %v5162_v8  ;;  %v5234_v52 = vld [vmem:[#allocation13 + $0xac8] sm:$0xff]  ;;  %v4810_v8 = vld [vmem:[#allocation12 + $0xe90] sm:$0xff] }
 0x735   :  { %5094 = vmatpush1.msra.mxu1 %v4742_v42  ;;  %5424 = vmatpush1.msra.mxu0 %v5161_v59  ;;  %v5233_v42 = vld [vmem:[#allocation13 + $0xac0] sm:$0xff]  ;;  %v4807_v59 = vld [vmem:[#allocation12 + $0xe78] sm:$0xff] }
 0x736   :  { %5095 = vmatprep.subr.mxu1 %v4739_v39  ;;  %5425 = vmatprep.subr.mxu0 %v5158_v0  ;;  %v5230_v39 = vld [vmem:[#allocation13 + $0xaa8] sm:$0xff]  ;;  %v4806_v0 = vld [vmem:[#allocation12 + $0xe70] sm:$0xff] }
 0x737   :  { %5096 = vmatpush1.msra.mxu1 %v4738_v61  ;;  %5426 = vmatpush1.msra.mxu0 %v5157_v2  ;;  %v5229_v61 = vld [vmem:[#allocation13 + $0xaa0] sm:$0xff]  ;;  %v4803_v2 = vld [vmem:[#allocation12 + $0xe58] sm:$0xff] }
 0x738   :  { %5097 = vmatprep.subr.mxu1 %v4735_v5  ;;  %5427 = vmatprep.subr.mxu0 %v5154_v6  ;;  %v5226_v5 = vld [vmem:[#allocation13 + $0xa88] sm:$0xff]  ;;  %v4802_v6 = vld [vmem:[#allocation12 + $0xe50] sm:$0xff] }
 0x739   :  { %5098 = vmatpush1.msra.mxu1 %v4734_v45  ;;  %5428 = vmatpush1.msra.mxu0 %v5153_v12  ;;  %v5225_v45 = vld [vmem:[#allocation13 + $0xa80] sm:$0xff]  ;;  %v4799_v12 = vld [vmem:[#allocation12 + $0xe38] sm:$0xff] }
 0x73a   :  { %5099 = vmatprep.subr.mxu1 %v4731_v48  ;;  %5429 = vmatprep.subr.mxu0 %v5150_v16  ;;  %v5222_v48 = vld [vmem:[#allocation13 + $0xa68] sm:$0xff]  ;;  %v4795_v16 = vld [vmem:[#allocation12 + $0xe18] sm:$0xff] }
 0x73b   :  { %5100 = vmatpush1.msra.mxu1 %v4730_v13  ;;  %5430 = vmatpush1.msra.mxu0 %v5149_v3  ;;  %v4798_v13 = vld [vmem:[#allocation12 + $0xe30] sm:$0xff]  ;;  %v5221_v3 = vld [vmem:[#allocation13 + $0xa60] sm:$0xff] }
 0x73c   :  { %5101 = vmatprep.subr.mxu1 %v4855_v56  ;;  %5431 = vmatprep.subr.mxu0 %v5146_v18  ;;  %v4794_v56 = vld [vmem:[#allocation12 + $0xe10] sm:$0xff]  ;;  %v5217_v18 = vld [vmem:[#allocation13 + $0xa40] sm:$0xff] }
 0x73d   :  { %5102 = vmatpush2.msra.mxu1 %v4854_v58  ;;  %5432 = vmatpush1.msra.mxu0 %v5145_v19  ;;  %v5218_v58 = vld [vmem:[#allocation13 + $0xa48] sm:$0xff]  ;;  %v5213_v19 = vld [vmem:[#allocation13 + $0xa20] sm:$0xff] }
 0x73e   :  { %5103 = vmatprep.subr.mxu1 %v4851_v63  ;;  %5433 = vmatprep.subr.mxu0 %v5270_v51  ;;  %v5214_v63 = vld [vmem:[#allocation13 + $0xa28] sm:$0xff]  ;;  %v5209_v51 = vld [vmem:[#allocation13 + $0xa00] sm:$0xff] }
 0x73f   :  { %5104 = vmatpush2.msra.mxu1 %v4850_v27  ;;  %5434 = vmatpush2.msra.mxu0 %v5269_v23  ;;  %v5210_v27 = vld [vmem:[#allocation13 + $0xa08] sm:$0xff]  ;;  %v5333_v23 = vld [vmem:[#allocation13 + $0xde0] sm:$0xff] }
 0x740   :  { %5105 = vmatprep.subr.mxu1 %v4847_v22  ;;  %5435 = vmatprep.subr.mxu0 %v5266_v41  ;;  %v5334_v22 = vld [vmem:[#allocation13 + $0xde8] sm:$0xff]  ;;  %v5329_v41 = vld [vmem:[#allocation13 + $0xdc0] sm:$0xff] }
 0x741   :  { %5106 = vmatpush2.msra.mxu1 %v4846_v24  ;;  %5436 = vmatpush2.msra.mxu0 %v5265_v17  ;;  %v5208_v24 = vld [vmem:[#allocation13 + $0x9f8] sm:$0xff]  ;;  %v5325_v17 = vld [vmem:[#allocation13 + $0xda0] sm:$0xff] }
 0x742   :  { %5107 = vmatprep.subr.mxu1 %v4843_v57  ;;  %5437 = vmatprep.subr.mxu0 %v5262_v60  ;;  %v5326_v57 = vld [vmem:[#allocation13 + $0xda8] sm:$0xff]  ;;  %v5321_v60 = vld [vmem:[#allocation13 + $0xd80] sm:$0xff] }
 0x743   :  { %5108 = vmatpush2.msra.mxu1 %v4842_v25  ;;  %5438 = vmatpush2.msra.mxu0 %v5261_v28  ;;  %v5322_v25 = vld [vmem:[#allocation13 + $0xd88] sm:$0xff]  ;;  %v5317_v28 = vld [vmem:[#allocation13 + $0xd60] sm:$0xff] }
 0x744   :  { %5109 = vmatprep.subr.mxu1 %v4839_v7  ;;  %5439 = vmatprep.subr.mxu0 %v5258_v31  ;;  %v5318_v7 = vld [vmem:[#allocation13 + $0xd68] sm:$0xff]  ;;  %v5313_v31 = vld [vmem:[#allocation13 + $0xd40] sm:$0xff] }
 0x745   :  { %5110 = vmatpush2.msra.mxu1 %v4838_v26  ;;  %5440 = vmatpush2.msra.mxu0 %v5257_v29  ;;  %v5314_v26 = vld [vmem:[#allocation13 + $0xd48] sm:$0xff]  ;;  %v5309_v29 = vld [vmem:[#allocation13 + $0xd20] sm:$0xff] }
 0x746   :  { %5111 = vmatprep.subr.mxu1 %v4835_v32  ;;  %5441 = vmatprep.subr.mxu0 %v5254_v34  ;;  %v5310_v32 = vld [vmem:[#allocation13 + $0xd28] sm:$0xff]  ;;  %v5305_v34 = vld [vmem:[#allocation13 + $0xd00] sm:$0xff] }
 0x747   :  { %5112 = vmatpush2.msra.mxu1 %v4834_v1  ;;  %5442 = vmatpush2.msra.mxu0 %v5253_v36  ;;  %v5306_v1 = vld [vmem:[#allocation13 + $0xd08] sm:$0xff]  ;;  %v5301_v36 = vld [vmem:[#allocation13 + $0xce0] sm:$0xff] }
 0x748   :  { %5113 = vmatprep.subr.mxu1 %v4831_v35  ;;  %5443 = vmatprep.subr.mxu0 %v5250_v37  ;;  %v5302_v35 = vld [vmem:[#allocation13 + $0xce8] sm:$0xff]  ;;  %v5297_v37 = vld [vmem:[#allocation13 + $0xcc0] sm:$0xff] }
 0x749   :  { %5114 = vmatpush2.msra.mxu1 %v4830_v11  ;;  %5444 = vmatpush2.msra.mxu0 %v5249_v15  ;;  %v5298_v11 = vld [vmem:[#allocation13 + $0xcc8] sm:$0xff]  ;;  %v5293_v15 = vld [vmem:[#allocation13 + $0xca0] sm:$0xff] }
 0x74a   :  { %5115 = vmatprep.subr.mxu1 %v4827_v38  ;;  %5445 = vmatprep.subr.mxu0 %v5246_v44  ;;  %v5294_v38 = vld [vmem:[#allocation13 + $0xca8] sm:$0xff]  ;;  %v5289_v44 = vld [vmem:[#allocation13 + $0xc80] sm:$0xff] }
 0x74b   :  { %5116 = vmatpush2.msra.mxu1 %v4826_v40  ;;  %5446 = vmatpush2.msra.mxu0 %v5245_v46  ;;  %v5290_v40 = vld [vmem:[#allocation13 + $0xc88] sm:$0xff]  ;;  %v5285_v46 = vld [vmem:[#allocation13 + $0xc60] sm:$0xff] }
 0x74c   :  { %5117 = vmatprep.subr.mxu1 %v4823_v53  ;;  %5447 = vmatprep.subr.mxu0 %v5242_v43  ;;  %v5286_v53 = vld [vmem:[#allocation13 + $0xc68] sm:$0xff]  ;;  %v5281_v43 = vld [vmem:[#allocation13 + $0xc40] sm:$0xff] }
 0x74d   :  { %5118 = vmatpush2.msra.mxu1 %v4822_v47  ;;  %5448 = vmatpush2.msra.mxu0 %v5241_v20  ;;  %v5282_v47 = vld [vmem:[#allocation13 + $0xc48] sm:$0xff]  ;;  %v5277_v20 = vld [vmem:[#allocation13 + $0xc20] sm:$0xff] }
 0x74e   :  { %5119 = vmatprep.subr.mxu1 %v4819_v33  ;;  %5449 = vmatprep.subr.mxu0 %v5238_v62  ;;  %v5278_v33 = vld [vmem:[#allocation13 + $0xc28] sm:$0xff]  ;;  %v5273_v62 = vld [vmem:[#allocation13 + $0xc00] sm:$0xff] }
 0x74f   :  { %5120 = vmatpush2.msra.mxu1 %v4818_v14  ;;  %5450 = vmatpush2.msra.mxu0 %v5237_v49  ;;  %v5274_v14 = vld [vmem:[#allocation13 + $0xc08] sm:$0xff]  ;;  %v5397_v49 = vld [vmem:[#allocation13 + $0xfe0] sm:$0xff] }
 0x750   :  { %5121 = vmatprep.subr.mxu1 %v4815_v21  ;;  %5451 = vmatprep.subr.mxu0 %v5234_v52  ;;  %v5398_v21 = vld [vmem:[#allocation13 + $0xfe8] sm:$0xff]  ;;  %v5393_v52 = vld [vmem:[#allocation13 + $0xfc0] sm:$0xff] }
 0x751   :  { %5122 = vmatpush2.msra.mxu1 %v4814_v50  ;;  %5452 = vmatpush2.msra.mxu0 %v5233_v42  ;;  %v5394_v50 = vld [vmem:[#allocation13 + $0xfc8] sm:$0xff]  ;;  %v5389_v42 = vld [vmem:[#allocation13 + $0xfa0] sm:$0xff] }
 0x752   :  { %5123 = vmatprep.subr.mxu1 %v4811_v54  ;;  %5453 = vmatprep.subr.mxu0 %v5230_v39  ;;  %v5390_v54 = vld [vmem:[#allocation13 + $0xfa8] sm:$0xff]  ;;  %v5385_v39 = vld [vmem:[#allocation13 + $0xf80] sm:$0xff] }
 0x753   :  { %5124 = vmatpush2.msra.mxu1 %v4810_v8  ;;  %5454 = vmatpush2.msra.mxu0 %v5229_v61  ;;  %v5386_v8 = vld [vmem:[#allocation13 + $0xf88] sm:$0xff]  ;;  %v5381_v61 = vld [vmem:[#allocation13 + $0xf60] sm:$0xff] }
 0x754   :  { %5125 = vmatprep.subr.mxu1 %v4807_v59  ;;  %5455 = vmatprep.subr.mxu0 %v5226_v5  ;;  %v5382_v59 = vld [vmem:[#allocation13 + $0xf68] sm:$0xff]  ;;  %v5377_v5 = vld [vmem:[#allocation13 + $0xf40] sm:$0xff] }
 0x755   :  { %5126 = vmatpush2.msra.mxu1 %v4806_v0  ;;  %5456 = vmatpush2.msra.mxu0 %v5225_v45  ;;  %v5378_v0 = vld [vmem:[#allocation13 + $0xf48] sm:$0xff]  ;;  %v5373_v45 = vld [vmem:[#allocation13 + $0xf20] sm:$0xff] }
 0x756   :  { %5127 = vmatprep.subr.mxu1 %v4803_v2  ;;  %5457 = vmatprep.subr.mxu0 %v5222_v48  ;;  %v5374_v2 = vld [vmem:[#allocation13 + $0xf28] sm:$0xff]  ;;  %v5369_v48 = vld [vmem:[#allocation13 + $0xf00] sm:$0xff] }
 0x757   :  { %5128 = vmatpush2.msra.mxu1 %v4802_v6  ;;  %5458 = vmatpush2.msra.mxu0 %v5221_v3  ;;  %v5370_v6 = vld [vmem:[#allocation13 + $0xf08] sm:$0xff] }
 0x758   :  { %5129 = vmatprep.subr.mxu1 %v4799_v12  ;;  %5459 = vmatprep.subr.mxu0 %v5218_v58  ;;  %v5366_v12 = vld [vmem:[#allocation13 + $0xee8] sm:$0xff]  ;;  %v5357_v58 = vld [vmem:[#allocation13 + $0xea0] sm:$0xff] }
 0x759   :  { %5130 = vmatpush2.msra.mxu1 %v4798_v13  ;;  %5460 = vmatpush2.msra.mxu0 %v5217_v18  ;;  %v5365_v13 = vld [vmem:[#allocation13 + $0xee0] sm:$0xff]  ;;  %v5358_v3 = vld [vmem:[#allocation13 + $0xea8] sm:$0xff] }
 0x75a   :  { %5131 = vmatprep.subr.mxu1 %v4795_v16  ;;  %5461 = vmatprep.subr.mxu0 %v5214_v63  ;;  %v5362_v16 = vld [vmem:[#allocation13 + $0xec8] sm:$0xff]  ;;  %v5353_v63 = vld [vmem:[#allocation13 + $0xe80] sm:$0xff] }
 0x75b   :  { %5132 = vmatpush2.msra.mxu1 %v4794_v56  ;;  %5462 = vmatpush2.msra.mxu0 %v5213_v19  ;;  %v5361_v56 = vld [vmem:[#allocation13 + $0xec0] sm:$0xff]  ;;  %v5354_v18 = vld [vmem:[#allocation13 + $0xe88] sm:$0xff] }
 0x75c   :  { %5134 = vmatmul.mubr.f32.vlgmr.msra.gmra.mxu1 %v4597_v30  ;;  %5463 = vmatprep.subr.mxu0 %v5210_v27  ;;  %v5330_v30 = vld [vmem:[#allocation13 + $0xdc8] sm:$0xff]  ;;  %v5349_v27 = vld [vmem:[#allocation13 + $0xe60] sm:$0xff] }
 0x75d   :  { %5472 = vmatprep.subr.mxu1 %v5334_v22  ;;  %5464 = vmatpush2.msra.mxu0 %v5209_v51  ;;  %v5350_v19 = vld [vmem:[#allocation13 + $0xe68] sm:$0xff]  ;;  %v5345_v22 = vld [vmem:[#allocation13 + $0xe40] sm:$0xff] }
 0x75e   :  { %5473 = vmatpush1.msra.mxu1 %v5333_v23  ;;  %5543 = vmatprep.subr.mxu0 %v5208_v24  ;;  %v5346_v51 = vld [vmem:[#allocation13 + $0xe48] sm:$0xff]  ;;  %v5341_v24 = vld [vmem:[#allocation13 + $0xe20] sm:$0xff] }
 0x75f   :  { %5474 = vmatprep.subr.mxu1 %v5330_v30  ;;  %v5342_v23 = vld [vmem:[#allocation13 + $0xe28] sm:$0xff] }
 0x760   :  { %5475 = vmatpush1.msra.mxu1 %v5329_v41  ;;  %v5338_v30 = vld [vmem:[#allocation13 + $0xe08] sm:$0xff]  ;;  %v5337_v41 = vld [vmem:[#allocation13 + $0xe00] sm:$0xff] }
 0x761   :  { %5476 = vmatprep.subr.mxu1 %v5326_v57  ;;  %v5336_v57 = vld [vmem:[#allocation13 + $0xdf8] sm:$0xff] }
 0x762   :  { %5477 = vmatpush1.msra.mxu1 %v5325_v17 }
 0x763   :  { %5478 = vmatprep.subr.mxu1 %v5322_v25 }
 0x764   :  { %5479 = vmatpush1.msra.mxu1 %v5321_v60 }
 0x765   :  { %5480 = vmatprep.subr.mxu1 %v5318_v7 }
 0x766   :  { %5481 = vmatpush1.msra.mxu1 %v5317_v28 }
 0x767   :  { %5482 = vmatprep.subr.mxu1 %v5314_v26 }
 0x768   :  { %5483 = vmatpush1.msra.mxu1 %v5313_v31 }
 0x769   :  { %5484 = vmatprep.subr.mxu1 %v5310_v32 }
 0x76a   :  { %5485 = vmatpush1.msra.mxu1 %v5309_v29  ;;  %v5207_v29 = vld [vmem:[#allocation13 + $0x9f0] sm:$0xff] }
 0x76b   :  { %5486 = vmatprep.subr.mxu1 %v5306_v1  ;;  %v5204_v1 = vld [vmem:[#allocation13 + $0x9d8] sm:$0xff] }
 0x76c   :  { %5487 = vmatpush1.msra.mxu1 %v5305_v34  ;;  %v5203_v34 = vld [vmem:[#allocation13 + $0x9d0] sm:$0xff] }
 0x76d   :  { %5488 = vmatprep.subr.mxu1 %v5302_v35  ;;  %v5200_v35 = vld [vmem:[#allocation13 + $0x9b8] sm:$0xff] }
 0x76e   :  { %5489 = vmatpush1.msra.mxu1 %v5301_v36  ;;  %v5199_v36 = vld [vmem:[#allocation13 + $0x9b0] sm:$0xff] }
 0x76f   :  { %5490 = vmatprep.subr.mxu1 %v5298_v11  ;;  %v5196_v11 = vld [vmem:[#allocation13 + $0x998] sm:$0xff] }
 0x770   :  { %5491 = vmatpush1.msra.mxu1 %v5297_v37  ;;  %v5195_v37 = vld [vmem:[#allocation13 + $0x990] sm:$0xff] }
 0x771   :  { %5492 = vmatprep.subr.mxu1 %v5294_v38  ;;  %v5192_v38 = vld [vmem:[#allocation13 + $0x978] sm:$0xff] }
 0x772   :  { %5493 = vmatpush1.msra.mxu1 %v5293_v15  ;;  %v5191_v15 = vld [vmem:[#allocation13 + $0x970] sm:$0xff] }
 0x773   :  { %5494 = vmatprep.subr.mxu1 %v5290_v40  ;;  %v5188_v40 = vld [vmem:[#allocation13 + $0x958] sm:$0xff] }
 0x774   :  { %5495 = vmatpush1.msra.mxu1 %v5289_v44  ;;  %v5187_v44 = vld [vmem:[#allocation13 + $0x950] sm:$0xff] }
 0x775   :  { %5496 = vmatprep.subr.mxu1 %v5286_v53  ;;  %v5184_v53 = vld [vmem:[#allocation13 + $0x938] sm:$0xff] }
 0x776   :  { %5497 = vmatpush1.msra.mxu1 %v5285_v46  ;;  %v5183_v46 = vld [vmem:[#allocation13 + $0x930] sm:$0xff] }
 0x777   :  { %5498 = vmatprep.subr.mxu1 %v5282_v47  ;;  %v5180_v47 = vld [vmem:[#allocation13 + $0x918] sm:$0xff] }
 0x778   :  { %5499 = vmatpush1.msra.mxu1 %v5281_v43  ;;  %v5179_v43 = vld [vmem:[#allocation13 + $0x910] sm:$0xff] }
 0x779   :  { %5500 = vmatprep.subr.mxu1 %v5278_v33  ;;  %v5176_v33 = vld [vmem:[#allocation13 + $0x8f8] sm:$0xff] }
 0x77a   :  { %5501 = vmatpush1.msra.mxu1 %v5277_v20  ;;  %v5175_v20 = vld [vmem:[#allocation13 + $0x8f0] sm:$0xff] }
 0x77b   :  { %5502 = vmatprep.subr.mxu1 %v5274_v14  ;;  %v5172_v14 = vld [vmem:[#allocation13 + $0x8d8] sm:$0xff] }
 0x77c   :  { %5503 = vmatpush1.msra.mxu1 %v5273_v62  ;;  %v5171_v62 = vld [vmem:[#allocation13 + $0x8d0] sm:$0xff] }
 0x77d   :  { %5504 = vmatprep.subr.mxu1 %v5398_v21  ;;  %v5168_v21 = vld [vmem:[#allocation13 + $0x8b8] sm:$0xff] }
 0x77e   :  { %5505 = vmatpush2.msra.mxu1 %v5397_v49  ;;  %v5167_v49 = vld [vmem:[#allocation13 + $0x8b0] sm:$0xff] }
 0x77f   :  { %5506 = vmatprep.subr.mxu1 %v5394_v50  ;;  %v5164_v50 = vld [vmem:[#allocation13 + $0x898] sm:$0xff] }
 0x780   :  { %5507 = vmatpush2.msra.mxu1 %v5393_v52  ;;  %v5163_v52 = vld [vmem:[#allocation13 + $0x890] sm:$0xff] }
 0x781   :  { %5508 = vmatprep.subr.mxu1 %v5390_v54  ;;  %v5160_v54 = vld [vmem:[#allocation13 + $0x878] sm:$0xff] }
 0x782   :  { %5509 = vmatpush2.msra.mxu1 %v5389_v42  ;;  %v5159_v42 = vld [vmem:[#allocation13 + $0x870] sm:$0xff] }
 0x783   :  { %5510 = vmatprep.subr.mxu1 %v5386_v8  ;;  %v5156_v8 = vld [vmem:[#allocation13 + $0x858] sm:$0xff] }
 0x784   :  { %5511 = vmatpush2.msra.mxu1 %v5385_v39  ;;  %v5155_v39 = vld [vmem:[#allocation13 + $0x850] sm:$0xff] }
 0x785   :  { %5512 = vmatprep.subr.mxu1 %v5382_v59  ;;  %v5152_v59 = vld [vmem:[#allocation13 + $0x838] sm:$0xff] }
 0x786   :  { %5513 = vmatpush2.msra.mxu1 %v5381_v61  ;;  %v5151_v61 = vld [vmem:[#allocation13 + $0x830] sm:$0xff] }
 0x787   :  { %5514 = vmatprep.subr.mxu1 %v5378_v0  ;;  %v5148_v0 = vld [vmem:[#allocation13 + $0x818] sm:$0xff] }
 0x788   :  { %5515 = vmatpush2.msra.mxu1 %v5377_v5  ;;  %v5147_v5 = vld [vmem:[#allocation13 + $0x810] sm:$0xff] }
 0x789   :  { %5516 = vmatprep.subr.mxu1 %v5374_v2  ;;  %v5272_v2 = vld [vmem:[#allocation13 + $0xbf8] sm:$0xff] }
 0x78a   :  { %5517 = vmatpush2.msra.mxu1 %v5373_v45  ;;  %v5271_v45 = vld [vmem:[#allocation13 + $0xbf0] sm:$0xff] }
 0x78b   :  { %5518 = vmatprep.subr.mxu1 %v5370_v6  ;;  %v5268_v6 = vld [vmem:[#allocation13 + $0xbd8] sm:$0xff] }
 0x78c   :  { %5519 = vmatpush2.msra.mxu1 %v5369_v48  ;;  %v5267_v48 = vld [vmem:[#allocation13 + $0xbd0] sm:$0xff] }
 0x78d   :  { %5520 = vmatprep.subr.mxu1 %v5366_v12  ;;  %v5264_v12 = vld [vmem:[#allocation13 + $0xbb8] sm:$0xff] }
 0x78e   :  { %5521 = vmatpush2.msra.mxu1 %v5365_v13  ;;  %v5263_v13 = vld [vmem:[#allocation13 + $0xbb0] sm:$0xff] }
 0x78f   :  { %5522 = vmatprep.subr.mxu1 %v5362_v16  ;;  %v5260_v16 = vld [vmem:[#allocation13 + $0xb98] sm:$0xff] }
 0x790   :  { %5523 = vmatpush2.msra.mxu1 %v5361_v56  ;;  %v5259_v56 = vld [vmem:[#allocation13 + $0xb90] sm:$0xff] }
 0x791   :  { %5524 = vmatprep.subr.mxu1 %v5358_v3  ;;  %v5256_v3 = vld [vmem:[#allocation13 + $0xb78] sm:$0xff] }
 0x792   :  { %5525 = vmatpush2.msra.mxu1 %v5357_v58  ;;  %v5255_v58 = vld [vmem:[#allocation13 + $0xb70] sm:$0xff] }
 0x793   :  { %5526 = vmatprep.subr.mxu1 %v5354_v18  ;;  %v5252_v18 = vld [vmem:[#allocation13 + $0xb58] sm:$0xff] }
 0x794   :  { %5527 = vmatpush2.msra.mxu1 %v5353_v63  ;;  %v5251_v63 = vld [vmem:[#allocation13 + $0xb50] sm:$0xff] }
 0x795   :  { %5528 = vmatprep.subr.mxu1 %v5350_v19  ;;  %v5248_v19 = vld [vmem:[#allocation13 + $0xb38] sm:$0xff] }
 0x796   :  { %5529 = vmatpush2.msra.mxu1 %v5349_v27  ;;  %v5247_v27 = vld [vmem:[#allocation13 + $0xb30] sm:$0xff] }
 0x797   :  { %5530 = vmatprep.subr.mxu1 %v5346_v51  ;;  %v5244_v51 = vld [vmem:[#allocation13 + $0xb18] sm:$0xff] }
 0x798   :  { %5531 = vmatpush2.msra.mxu1 %v5345_v22  ;;  %v5243_v22 = vld [vmem:[#allocation13 + $0xb10] sm:$0xff] }
 0x799   :  { %5532 = vmatprep.subr.mxu1 %v5342_v23  ;;  %v5240_v23 = vld [vmem:[#allocation13 + $0xaf8] sm:$0xff] }
 0x79a   :  { %5533 = vmatpush2.msra.mxu1 %v5341_v24  ;;  %v5239_v24 = vld [vmem:[#allocation13 + $0xaf0] sm:$0xff] }
 0x79b   :  { %5534 = vmatprep.subr.mxu1 %v5338_v30  ;;  %v5236_v30 = vld [vmem:[#allocation13 + $0xad8] sm:$0xff] }
 0x79c   :  { %5535 = vmatpush2.msra.mxu1 %v5337_v41  ;;  %v4922_v17 = vpop.f32.mrf.mxu0  ;;  %v5235_v41 = vld [vmem:[#allocation13 + $0xad0] sm:$0xff] }
 0x79d   :  { %5614 = vmatprep.subr.mxu1 %v5336_v57  ;;  %v5232_v57 = vld [vmem:[#allocation13 + $0xab8] sm:$0xff] }
 0x79e   :  { %v4924_v60 = vpop.f32.mrf.mxu0 }
 0x7dc   :  { %v4993_v25 = vpop.f32.mrf.mxu1 }
 0x7dd   :  { %v6248_v7 = vadd.f32 %v4993_v25, %v4922_v17  ;;  %v5231_v17 = vld [vmem:[#allocation13 + $0xab0] sm:$0xff]  ;;  %v5228_v25 = vld [vmem:[#allocation13 + $0xa98] sm:$0xff] }
 0x7de   :  { %v4995_v28 = vpop.f32.mrf.mxu1 }
 0x7df   :  { %v4996_v26 = vadd.f32 %v4995_v28, %v4924_v60  ;;  %v5140_v32 = vmax.f32 %v6248_v7, 0.0  ;;  %v5227_v60 = vld [vmem:[#allocation13 + $0xa90] sm:$0xff]  ;;  %v5224_v28 = vld [vmem:[#allocation13 + $0xa78] sm:$0xff] }
 0x7e0   :  { %v5312_v7 = vld [vmem:[#allocation13 + $0xd38] sm:$0xff] }
 0x7e1   :  { %v5141_v31 = vmax.f32 %v4996_v26, 0.0  ;;  %v5064_v26 = vpop.f32.mrf.mxu0 }
 0x7e3   :  { %5465 = vmatprep.mubr.f32.mxu0 %v5141_v31 }
 0x7e4   :  { %5466 = vmatmul.mubr.f32.vlgmr.msra.gmra.mxu0 %v5140_v32 }
 0x7e5   :  { %5544 = vmatpush1.msra.mxu0 %v5207_v29  ;;  %5607 = vmatprep.mubr.f32.mxu0 %v5141_v31  ;;  %v5223_v31 = vld [vmem:[#allocation13 + $0xa70] sm:$0xff]  ;;  %v5220_v29 = vld [vmem:[#allocation13 + $0xa58] sm:$0xff] }
 0x7e6   :  { %5545 = vmatprep.subr.mxu0 %v5204_v1 }
 0x7e7   :  { %5546 = vmatpush1.msra.mxu0 %v5203_v34  ;;  %v5219_v34 = vld [vmem:[#allocation13 + $0xa50] sm:$0xff] }
 0x7e8   :  { %5547 = vmatprep.subr.mxu0 %v5200_v35  ;;  %v5216_v35 = vld [vmem:[#allocation13 + $0xa38] sm:$0xff] }
 0x7e9   :  { %5548 = vmatpush1.msra.mxu0 %v5199_v36  ;;  %v5066_v36 = vpop.f32.mrf.mxu0 }
 0x7ea   :  { %5549 = vmatprep.subr.mxu0 %v5196_v11 }
 0x7eb   :  { %5550 = vmatpush1.msra.mxu0 %v5195_v37 }
 0x7ec   :  { %5551 = vmatprep.subr.mxu0 %v5192_v38  ;;  %v5215_v38 = vld [vmem:[#allocation13 + $0xa30] sm:$0xff] }
 0x7ed   :  { %5552 = vmatpush1.msra.mxu0 %v5191_v15 }
 0x7ee   :  { %5553 = vmatprep.subr.mxu0 %v5188_v40  ;;  %v5212_v40 = vld [vmem:[#allocation13 + $0xa18] sm:$0xff] }
 0x7ef   :  { %5554 = vmatpush1.msra.mxu0 %v5187_v44  ;;  %v5211_v44 = vld [vmem:[#allocation13 + $0xa10] sm:$0xff] }
 0x7f0   :  { %5555 = vmatprep.subr.mxu0 %v5184_v53 }
 0x7f1   :  { %5556 = vmatpush1.msra.mxu0 %v5183_v46 }
 0x7f2   :  { %5557 = vmatprep.subr.mxu0 %v5180_v47  ;;  %v5335_v47 = vld [vmem:[#allocation13 + $0xdf0] sm:$0xff] }
 0x7f3   :  { %5558 = vmatpush1.msra.mxu0 %v5179_v43  ;;  %v5332_v43 = vld [vmem:[#allocation13 + $0xdd8] sm:$0xff] }
 0x7f4   :  { %5559 = vmatprep.subr.mxu0 %v5176_v33  ;;  %v5331_v33 = vld [vmem:[#allocation13 + $0xdd0] sm:$0xff] }
 0x7f5   :  { %5560 = vmatpush1.msra.mxu0 %v5175_v20  ;;  %v5328_v20 = vld [vmem:[#allocation13 + $0xdb8] sm:$0xff] }
 0x7f6   :  { %5561 = vmatprep.subr.mxu0 %v5172_v14  ;;  %v5327_v14 = vld [vmem:[#allocation13 + $0xdb0] sm:$0xff] }
 0x7f7   :  { %5562 = vmatpush1.msra.mxu0 %v5171_v62  ;;  %v5324_v62 = vld [vmem:[#allocation13 + $0xd98] sm:$0xff] }
 0x7f8   :  { %5563 = vmatprep.subr.mxu0 %v5168_v21  ;;  %v5323_v21 = vld [vmem:[#allocation13 + $0xd90] sm:$0xff] }
 0x7f9   :  { %5564 = vmatpush1.msra.mxu0 %v5167_v49  ;;  %v5320_v49 = vld [vmem:[#allocation13 + $0xd78] sm:$0xff] }
 0x7fa   :  { %5565 = vmatprep.subr.mxu0 %v5164_v50  ;;  %v5319_v50 = vld [vmem:[#allocation13 + $0xd70] sm:$0xff] }
 0x7fb   :  { %5566 = vmatpush1.msra.mxu0 %v5163_v52  ;;  %v5316_v52 = vld [vmem:[#allocation13 + $0xd58] sm:$0xff] }
 0x7fc   :  { %5567 = vmatprep.subr.mxu0 %v5160_v54  ;;  %v5315_v54 = vld [vmem:[#allocation13 + $0xd50] sm:$0xff] }
 0x7fd   :  { %5568 = vmatpush1.msra.mxu0 %v5159_v42  ;;  %v5308_v42 = vld [vmem:[#allocation13 + $0xd18] sm:$0xff] }
 0x7fe   :  { %5569 = vmatprep.subr.mxu0 %v5156_v8  ;;  %v5307_v8 = vld [vmem:[#allocation13 + $0xd10] sm:$0xff] }
 0x7ff   :  { %5570 = vmatpush1.msra.mxu0 %v5155_v39  ;;  %v5304_v39 = vld [vmem:[#allocation13 + $0xcf8] sm:$0xff] }
 0x800   :  { %5571 = vmatprep.subr.mxu0 %v5152_v59  ;;  %v5303_v59 = vld [vmem:[#allocation13 + $0xcf0] sm:$0xff] }
 0x801   :  { %5572 = vmatpush1.msra.mxu0 %v5151_v61  ;;  %v5300_v61 = vld [vmem:[#allocation13 + $0xcd8] sm:$0xff] }
 0x802   :  { %5573 = vmatprep.subr.mxu0 %v5148_v0  ;;  %v5299_v0 = vld [vmem:[#allocation13 + $0xcd0] sm:$0xff] }
 0x803   :  { %5574 = vmatpush1.msra.mxu0 %v5147_v5  ;;  %v5296_v5 = vld [vmem:[#allocation13 + $0xcb8] sm:$0xff] }
 0x804   :  { %5575 = vmatprep.subr.mxu0 %v5272_v2  ;;  %v5295_v2 = vld [vmem:[#allocation13 + $0xcb0] sm:$0xff] }
 0x805   :  { %5576 = vmatpush2.msra.mxu0 %v5271_v45  ;;  %v5292_v45 = vld [vmem:[#allocation13 + $0xc98] sm:$0xff] }
 0x806   :  { %5577 = vmatprep.subr.mxu0 %v5268_v6  ;;  %v5291_v6 = vld [vmem:[#allocation13 + $0xc90] sm:$0xff] }
 0x807   :  { %5578 = vmatpush2.msra.mxu0 %v5267_v48  ;;  %v5288_v48 = vld [vmem:[#allocation13 + $0xc78] sm:$0xff] }
 0x808   :  { %5579 = vmatprep.subr.mxu0 %v5264_v12  ;;  %v5287_v12 = vld [vmem:[#allocation13 + $0xc70] sm:$0xff] }
 0x809   :  { %5580 = vmatpush2.msra.mxu0 %v5263_v13  ;;  %v5284_v13 = vld [vmem:[#allocation13 + $0xc58] sm:$0xff] }
 0x80a   :  { %5581 = vmatprep.subr.mxu0 %v5260_v16  ;;  %v5283_v16 = vld [vmem:[#allocation13 + $0xc50] sm:$0xff] }
 0x80b   :  { %5582 = vmatpush2.msra.mxu0 %v5259_v56  ;;  %v5280_v56 = vld [vmem:[#allocation13 + $0xc38] sm:$0xff] }
 0x80c   :  { %5583 = vmatprep.subr.mxu0 %v5256_v3  ;;  %v5279_v3 = vld [vmem:[#allocation13 + $0xc30] sm:$0xff] }
 0x80d   :  { %5584 = vmatpush2.msra.mxu0 %v5255_v58  ;;  %v5276_v58 = vld [vmem:[#allocation13 + $0xc18] sm:$0xff] }
 0x80e   :  { %5585 = vmatprep.subr.mxu0 %v5252_v18  ;;  %v5275_v18 = vld [vmem:[#allocation13 + $0xc10] sm:$0xff] }
 0x80f   :  { %5586 = vmatpush2.msra.mxu0 %v5251_v63  ;;  %v5400_v63 = vld [vmem:[#allocation13 + $0xff8] sm:$0xff] }
 0x810   :  { %5587 = vmatprep.subr.mxu0 %v5248_v19  ;;  %v5399_v19 = vld [vmem:[#allocation13 + $0xff0] sm:$0xff] }
 0x811   :  { %5588 = vmatpush2.msra.mxu0 %v5247_v27  ;;  %v5396_v27 = vld [vmem:[#allocation13 + $0xfd8] sm:$0xff] }
 0x812   :  { %5589 = vmatprep.subr.mxu0 %v5244_v51  ;;  %v5395_v51 = vld [vmem:[#allocation13 + $0xfd0] sm:$0xff] }
 0x813   :  { %5590 = vmatpush2.msra.mxu0 %v5243_v22  ;;  %v5392_v22 = vld [vmem:[#allocation13 + $0xfb8] sm:$0xff] }
 0x814   :  { %5591 = vmatprep.subr.mxu0 %v5240_v23  ;;  %v5391_v23 = vld [vmem:[#allocation13 + $0xfb0] sm:$0xff] }
 0x815   :  { %5592 = vmatpush2.msra.mxu0 %v5239_v24  ;;  %v5388_v24 = vld [vmem:[#allocation13 + $0xf98] sm:$0xff] }
 0x816   :  { %5593 = vmatprep.subr.mxu0 %v5236_v30  ;;  %v5387_v30 = vld [vmem:[#allocation13 + $0xf90] sm:$0xff] }
 0x817   :  { %5594 = vmatpush2.msra.mxu0 %v5235_v41  ;;  %v5384_v41 = vld [vmem:[#allocation13 + $0xf78] sm:$0xff] }
 0x818   :  { %5595 = vmatprep.subr.mxu0 %v5232_v57  ;;  %v5383_v57 = vld [vmem:[#allocation13 + $0xf70] sm:$0xff] }
 0x819   :  { %5596 = vmatpush2.msra.mxu0 %v5231_v17  ;;  %v5380_v17 = vld [vmem:[#allocation13 + $0xf58] sm:$0xff] }
 0x81a   :  { %5597 = vmatprep.subr.mxu0 %v5228_v25  ;;  %v5379_v25 = vld [vmem:[#allocation13 + $0xf50] sm:$0xff] }
 0x81b   :  { %5598 = vmatpush2.msra.mxu0 %v5227_v60  ;;  %v5376_v60 = vld [vmem:[#allocation13 + $0xf38] sm:$0xff] }
 0x81c   :  { %v5135_v1 = vpop.f32.mrf.mxu1  ;;  %5599 = vmatprep.subr.mxu0 %v5224_v28  ;;  %v5375_v28 = vld [vmem:[#allocation13 + $0xf30] sm:$0xff] }
 0x81d   :  { %5600 = vmatpush2.msra.mxu0 %v5223_v31  ;;  %v6253_v11 = vadd.f32 %v5135_v1, %v5064_v26  ;;  %v5372_v26 = vld [vmem:[#allocation13 + $0xf18] sm:$0xff]  ;;  %v5371_v31 = vld [vmem:[#allocation13 + $0xf10] sm:$0xff] }
 0x81e   :  { %v5137_v37 = vpop.f32.mrf.mxu1  ;;  %5601 = vmatprep.subr.mxu0 %v5220_v29  ;;  %v5368_v29 = vld [vmem:[#allocation13 + $0xef8] sm:$0xff]  ;;  %v5367_v1 = vld [vmem:[#allocation13 + $0xef0] sm:$0xff] }
 0x81f   :  { %v5138_v15 = vadd.f32 %v5137_v37, %v5066_v36  ;;  %5602 = vmatpush2.msra.mxu0 %v5219_v34  ;;  %v5142_v46 = vmax.f32 %v6253_v11, 0.0  ;;  %v5364_v34 = vld [vmem:[#allocation13 + $0xed8] sm:$0xff]  ;;  %v5359_v37 = vld [vmem:[#allocation13 + $0xeb0] sm:$0xff] }
 0x820   :  { %5603 = vmatprep.subr.mxu0 %v5216_v35  ;;  %v5363_v35 = vld [vmem:[#allocation13 + $0xed0] sm:$0xff]  ;;  %v5360_v36 = vld [vmem:[#allocation13 + $0xeb8] sm:$0xff] }
 0x821   :  { %v5143_v53 = vmax.f32 %v5138_v15, 0.0  ;;  %5604 = vmatpush2.msra.mxu0 %v5215_v38  ;;  %v5356_v38 = vld [vmem:[#allocation13 + $0xe98] sm:$0xff]  ;;  %v5355_v15 = vld [vmem:[#allocation13 + $0xe90] sm:$0xff] }
 0x822   :  { %5605 = vmatprep.subr.mxu0 %v5212_v40  ;;  %v5352_v40 = vld [vmem:[#allocation13 + $0xe78] sm:$0xff] }
 0x823   :  { %5536 = vmatprep.mubr.f32.mxu1 %v5143_v53  ;;  %5606 = vmatpush2.msra.mxu0 %v5211_v44  ;;  %v5351_v44 = vld [vmem:[#allocation13 + $0xe70] sm:$0xff] }
 0x824   :  { %5537 = vmatmul.mubr.f32.vlgmr.msra.gmra.mxu1 %v5142_v46  ;;  %5608 = vmatmul.mubr.f32.vlgmr.msra.gmra.mxu0 %v5140_v32  ;;  %v5311_v32 = vld [vmem:[#allocation13 + $0xd30] sm:$0xff] }
 0x825   :  { %5615 = vmatpush1.msra.mxu1 %v5335_v47  ;;  %5678 = vmatprep.mubr.f32.mxu1 %v5143_v53  ;;  %v5348_v53 = vld [vmem:[#allocation13 + $0xe58] sm:$0xff]  ;;  %v5347_v47 = vld [vmem:[#allocation13 + $0xe50] sm:$0xff] }
 0x826   :  { %5616 = vmatprep.subr.mxu1 %v5332_v43  ;;  %v5344_v43 = vld [vmem:[#allocation13 + $0xe38] sm:$0xff] }
 0x827   :  { %5617 = vmatpush1.msra.mxu1 %v5331_v33  ;;  %v5343_v33 = vld [vmem:[#allocation13 + $0xe30] sm:$0xff] }
 0x828   :  { %5618 = vmatprep.subr.mxu1 %v5328_v20  ;;  %v5340_v20 = vld [vmem:[#allocation13 + $0xe18] sm:$0xff] }
 0x829   :  { %5619 = vmatpush1.msra.mxu1 %v5327_v14  ;;  %v5339_v14 = vld [vmem:[#allocation13 + $0xe10] sm:$0xff] }
 0x82a   :  { %5620 = vmatprep.subr.mxu1 %v5324_v62 }
 0x82b   :  { %5621 = vmatpush1.msra.mxu1 %v5323_v21 }
 0x82c   :  { %5622 = vmatprep.subr.mxu1 %v5320_v49 }
 0x82d   :  { %5623 = vmatpush1.msra.mxu1 %v5319_v50 }
 0x82e   :  { %5624 = vmatprep.subr.mxu1 %v5316_v52 }
 0x82f   :  { %5625 = vmatpush1.msra.mxu1 %v5315_v54 }
 0x830   :  { %5626 = vmatprep.subr.mxu1 %v5312_v7 }
 0x831   :  { %5627 = vmatpush1.msra.mxu1 %v5311_v32 }
 0x832   :  { %5628 = vmatprep.subr.mxu1 %v5308_v42 }
 0x833   :  { %5629 = vmatpush1.msra.mxu1 %v5307_v8 }
 0x834   :  { %5630 = vmatprep.subr.mxu1 %v5304_v39 }
 0x835   :  { %5631 = vmatpush1.msra.mxu1 %v5303_v59 }
 0x836   :  { %5632 = vmatprep.subr.mxu1 %v5300_v61 }
 0x837   :  { %5633 = vmatpush1.msra.mxu1 %v5299_v0 }
 0x838   :  { %5634 = vmatprep.subr.mxu1 %v5296_v5 }
 0x839   :  { %5635 = vmatpush1.msra.mxu1 %v5295_v2 }
 0x83a   :  { %5636 = vmatprep.subr.mxu1 %v5292_v45 }
 0x83b   :  { %5637 = vmatpush1.msra.mxu1 %v5291_v6 }
 0x83c   :  { %5638 = vmatprep.subr.mxu1 %v5288_v48 }
 0x83d   :  { %5639 = vmatpush1.msra.mxu1 %v5287_v12 }
 0x83e   :  { %5640 = vmatprep.subr.mxu1 %v5284_v13 }
 0x83f   :  { %5641 = vmatpush1.msra.mxu1 %v5283_v16 }
 0x840   :  { %5642 = vmatprep.subr.mxu1 %v5280_v56 }
 0x841   :  { %5643 = vmatpush1.msra.mxu1 %v5279_v3 }
 0x842   :  { %5644 = vmatprep.subr.mxu1 %v5276_v58 }
 0x843   :  { %5645 = vmatpush1.msra.mxu1 %v5275_v18 }
 0x844   :  { %5646 = vmatprep.subr.mxu1 %v5400_v63 }
 0x845   :  { %5647 = vmatpush2.msra.mxu1 %v5399_v19 }
 0x846   :  { %5648 = vmatprep.subr.mxu1 %v5396_v27 }
 0x847   :  { %5649 = vmatpush2.msra.mxu1 %v5395_v51 }
 0x848   :  { %5650 = vmatprep.subr.mxu1 %v5392_v22 }
 0x849   :  { %5651 = vmatpush2.msra.mxu1 %v5391_v23 }
 0x84a   :  { %5652 = vmatprep.subr.mxu1 %v5388_v24 }
 0x84b   :  { %5653 = vmatpush2.msra.mxu1 %v5387_v30 }
 0x84c   :  { %5654 = vmatprep.subr.mxu1 %v5384_v41 }
 0x84d   :  { %5655 = vmatpush2.msra.mxu1 %v5383_v57 }
 0x84e   :  { %5656 = vmatprep.subr.mxu1 %v5380_v17 }
 0x84f   :  { %5657 = vmatpush2.msra.mxu1 %v5379_v25 }
 0x850   :  { %5658 = vmatprep.subr.mxu1 %v5376_v60 }
 0x851   :  { %5659 = vmatpush2.msra.mxu1 %v5375_v28 }
 0x852   :  { %5660 = vmatprep.subr.mxu1 %v5372_v26 }
 0x853   :  { %5661 = vmatpush2.msra.mxu1 %v5371_v31 }
 0x854   :  { %5662 = vmatprep.subr.mxu1 %v5368_v29 }
 0x855   :  { %5663 = vmatpush2.msra.mxu1 %v5367_v1 }
 0x856   :  { %5664 = vmatprep.subr.mxu1 %v5364_v34 }
 0x857   :  { %5665 = vmatpush2.msra.mxu1 %v5363_v35 }
 0x858   :  { %5666 = vmatprep.subr.mxu1 %v5360_v36 }
 0x859   :  { %5667 = vmatpush2.msra.mxu1 %v5359_v37 }
 0x85a   :  { %5668 = vmatprep.subr.mxu1 %v5356_v38 }
 0x85b   :  { %5669 = vmatpush2.msra.mxu1 %v5355_v15 }
 0x85c   :  { %5670 = vmatprep.subr.mxu1 %v5352_v40 }
 0x85d   :  { %5671 = vmatpush2.msra.mxu1 %v5351_v44 }
 0x85e   :  { %5672 = vmatprep.subr.mxu1 %v5348_v53 }
 0x85f   :  { %5673 = vmatpush2.msra.mxu1 %v5347_v47 }
 0x860   :  { %5674 = vmatprep.subr.mxu1 %v5344_v43 }
 0x861   :  { %5675 = vmatpush2.msra.mxu1 %v5343_v33 }
 0x862   :  { %5676 = vmatprep.subr.mxu1 %v5340_v20 }
 0x863   :  { %5677 = vmatpush2.msra.mxu1 %v5339_v14 }
 0x864   :  { %5679 = vmatmul.mubr.f32.vlgmr.msra.gmra.mxu1 %v5142_v46 }
 0x8a4   :  { %v5467_v62 = vpop.f32.mrf.mxu0 }
 0x8a6   :  { %v5469_v50 = vpop.f32.mrf.mxu0 }
 0x8e4   :  { %v5538_v21 = vpop.f32.mrf.mxu1  ;;  %v5609_v11 = vpop.f32.mrf.mxu0 }
 0x8e5   :  { %v5539_v49 = vadd.f32 %v5538_v21, %v5467_v62 }
 0x8e6   :  { %v5540_v52 = vpop.f32.mrf.mxu1  ;;  %v5611_v8 = vpop.f32.mrf.mxu0 }
 0x8e7   :  { %v5685_v54 = vadd.f32 %v5539_v49, %v6225_v55  ;;  %v5541_v7 = vadd.f32 %v5540_v52, %v5469_v50 }
 0x8e9   :  { %5689 = vst [vmem:[%s6287_s9] sm:$0xff] %v5685_v54  ;;  %v5686_v32 = vadd.f32 %v5541_v7, %v6228_v9 }
 0x8eb   :  { %5690 = vst [vmem:[%s6287_s9 + $0x8] sm:$0xff] %v5686_v32 }
 0x924   :  { %v5680_v46 = vpop.f32.mrf.mxu1 }
 0x925   :  { %v5681_v42 = vadd.f32 %v5680_v46, %v5609_v11 }
 0x926   :  { %v5682_v39 = vpop.f32.mrf.mxu1 }
 0x927   :  { %v5687_v59 = vadd.f32 %v5681_v42, %v6235_v4  ;;  %v5683_v61 = vadd.f32 %v5682_v39, %v5611_v8 }
 0x929   :  { %5691 = vst [vmem:[%s6287_s9 + $0x10] sm:$0xff] %v5687_v59  ;;  %v5688_v55 = vadd.f32 %v5683_v61, %v6238_v10 }
 0x92b   :  { %5692 = vst [vmem:[%s6287_s9 + $0x18] sm:$0xff] %v5688_v55 }
 0x92c   :  { %5697 = vsyncpa [#allocation3], 1 }
 0x92d   :  { %5698 = vsyncpa [#allocation5], 1 }
 0x92e   :  { %5699 = vsyncpa [#allocation8], 1 }
 0x92f   :  { %5700 = vsyncpa [#allocation11], 1 }
 0x930   :  { %5701 = vsyncpa [#allocation14], 1 }

</bundles_post_ra>
